<compile_context>
chip_gen: v7x
topology: tpu7x:2x2x1
jax: 0.10.0
libtpu: 0.0.40
codegen_flags: <defaults>
</compile_context>

<pallas_src>
import jax
import jax.numpy as jnp
from jax.experimental import pallas as pl
from jax.experimental.pallas import tpu as pltpu

INPUT_SIZE = 32 + 5 + 2 + 1 + 32 + 96 + 3  # = 171
INPUT_PAD = 256                            # lane-aligned K for layer 1
OUTPUT_SIZE = 32
LAYER_SIZES = [INPUT_PAD, 1024, 1024, 1024, 512, 128, OUTPUT_SIZE]

MAX_TILE_B = 512        # rows per grid step for large batches (amortizes ~0.35us/step)
MIN_SPLIT_BATCH = 16    # above this, force >= 2 tiles so both v7x TCs are used


def _mlp_kernel(x_ref,
                w1, b1, w2, b2, w3, b3, w4, b4, w5, b5, w6, b6,
                o_ref):
    """One batch tile per grid step; all weights resident in VMEM (single-buffered)."""

    def layer(h_bf16, w_ref, b_ref):
        # bf16 MXU operands, f32 accumulation; bias-add + ReLU in f32 (v5e VPU has
        # no bf16), then cast back so inter-layer activations stay bf16.
        z = jnp.dot(h_bf16, w_ref[...], preferred_element_type=jnp.float32) + b_ref[...]
        return jnp.maximum(z, 0.0).astype(jnp.bfloat16)

    h = x_ref[...].astype(jnp.bfloat16)          # (tile_b, 256)
    h = layer(h, w1, b1)
    h = layer(h, w2, b2)
    h = layer(h, w3, b3)
    h = layer(h, w4, b4)
    h = layer(h, w5, b5)
    # Final layer: no ReLU, emit f32.
    o_ref[...] = (jnp.dot(h, w6[...], preferred_element_type=jnp.float32)
                  + b6[...]).astype(o_ref.dtype)


def _round_up(n, m):
    return (n + m - 1) // m * m


def _select_tile_b(batch):
    """Near-equal, sublane-aligned tiles; >=2 (even count) tiles for batch > 16."""
    n_tiles = max(1, -(-batch // MAX_TILE_B))
    if batch > MIN_SPLIT_BATCH:
        n_tiles = max(n_tiles, 2)
        if n_tiles % 2 == 1:
            n_tiles += 1          # even tile count balances the 2 v7x TensorCores
    return _round_up(-(-batch // n_tiles), 8)


def _vmem_limit_bytes():
    """Conservative on v7x / unknown (64 MiB physical VMEM), generous on v5e/v6e."""
    try:
        kind = jax.devices()[0].device_kind.lower()
    except Exception:
        kind = ""
    if "v5" in kind or "v6" in kind:
        return 96 << 20
    return 48 << 20


@jax.jit
def suit_solo_net_forward(x, params):
    """x: (B, 171) f32; params: flat list [W1, b1, ..., W6, b6] (W bf16, b f32)."""
    batch = x.shape[0]

    tile_b = _select_tile_b(batch)
    padded_b = _round_up(batch, tile_b)

    feat_pad = INPUT_PAD - x.shape[1]
    row_pad = padded_b - batch
    if feat_pad or row_pad:
        # Zero-pad features to 256 (matches zero rows in W1) and batch to a tile
        # multiple. Padded rows produce garbage that is sliced off below.
        x = jnp.pad(x, ((0, row_pad), (0, feat_pad)))

    grid = (padded_b // tile_b,)

    x_spec = pl.BlockSpec((tile_b, INPUT_PAD), lambda i: (i, 0))
    # Full-array blocks with a constant index_map: each weight/bias is DMA'd once
    # and stays resident in a single VMEM buffer across all batch tiles.
    param_specs = [
        pl.BlockSpec(p.shape, lambda i: (0, 0), pipeline_mode=pl.Buffered(1))
        for p in params
    ]
    out_spec = pl.BlockSpec((tile_b, OUTPUT_SIZE), lambda i: (i, 0))

    out = pl.pallas_call(
        _mlp_kernel,
        out_shape=jax.ShapeDtypeStruct((padded_b, OUTPUT_SIZE), jnp.float32),
        grid=grid,
        in_specs=[x_spec] + param_specs,
        out_specs=out_spec,
        compiler_params=pltpu.CompilerParams(
            dimension_semantics=("parallel",),   # batch tiles independent -> megacore
            vmem_limit_bytes=_vmem_limit_bytes(),
        ),
    )(x, *params)

    return out[:batch]


def init_params(key):
    """Deterministic synthetic parameters matching nn.Linear init shapes.

    Weights are built directly as (in, out) bf16 (PyTorch stores (out, in) and does
    x @ W.T); W1 is zero-padded from 171 -> 256 input rows; biases are (1, out) f32.
    """
    params = []
    fan_ins = [INPUT_SIZE] + LAYER_SIZES[1:-1]
    for i in range(len(LAYER_SIZES) - 1):
        fan_in, out = fan_ins[i], LAYER_SIZES[i + 1]
        key, kw, kb = jax.random.split(key, 3)
        bound = 1.0 / jnp.sqrt(jnp.float32(fan_in))
        w = jax.random.uniform(kw, (fan_in, out), jnp.float32, -bound, bound)
        if i == 0:
            w = jnp.pad(w, ((0, INPUT_PAD - INPUT_SIZE), (0, 0)))  # zero rows 171..255
        b = jax.random.uniform(kb, (1, out), jnp.float32, -bound, bound)
        params.extend([w.astype(jnp.bfloat16), b])
    return params


def reference_forward(x, params):
    """Pure-JAX reference with identical numerics (bf16 operands, f32 accumulate)."""
    h = jnp.pad(x, ((0, 0), (0, INPUT_PAD - x.shape[1]))).astype(jnp.bfloat16)
    n_layers = len(params) // 2
    for i in range(n_layers):
        w, b = params[2 * i], params[2 * i + 1]
        h = jnp.dot(h, w, preferred_element_type=jnp.float32) + b
        if i < n_layers - 1:
            h = jnp.maximum(h, 0.0).astype(jnp.bfloat16)
    return h


if __name__ == "__main__":
    key = jax.random.PRNGKey(0)
    key, kx = jax.random.split(key)
    params = init_params(key)

    # Small batch: single tile, grid=(1,).
    batch = 8
    x = jax.random.normal(kx, (batch, INPUT_SIZE), jnp.float32)
    out = jax.block_until_ready(suit_solo_net_forward(x, params))
    ref = reference_forward(x, params)
    assert out.shape == (batch, OUTPUT_SIZE), out.shape
    assert jnp.allclose(out, ref, atol=2e-2, rtol=2e-2), "mismatch vs JAX reference (B=8)"

    # Non-multiple batch exercising the adaptive multi-tile path (2 x 152-row tiles).
    key, kx2 = jax.random.split(key)
    batch2 = 300
    x2 = jax.random.normal(kx2, (batch2, INPUT_SIZE), jnp.float32)
    out2 = jax.block_until_ready(suit_solo_net_forward(x2, params))
    ref2 = reference_forward(x2, params)
    assert out2.shape == (batch2, OUTPUT_SIZE), out2.shape
    assert jnp.allclose(out2, ref2, atol=2e-2, rtol=2e-2), "mismatch vs JAX reference (B=300)"

    print("KERNEL_OK")
</pallas_src>

<mosaic_0001>
module attributes {stable_mosaic.version = 11 : i64} {
  func.func @_mlp_kernel(%arg0: i32, %arg1: memref<8x256xf32, #tpu.memory_space<vmem>>, %arg2: memref<256x1024xbf16, #tpu.memory_space<vmem>>, %arg3: memref<1x1024xf32, #tpu.memory_space<vmem>>, %arg4: memref<1024x1024xbf16, #tpu.memory_space<vmem>>, %arg5: memref<1x1024xf32, #tpu.memory_space<vmem>>, %arg6: memref<1024x1024xbf16, #tpu.memory_space<vmem>>, %arg7: memref<1x1024xf32, #tpu.memory_space<vmem>>, %arg8: memref<1024x512xbf16, #tpu.memory_space<vmem>>, %arg9: memref<1x512xf32, #tpu.memory_space<vmem>>, %arg10: memref<512x128xbf16, #tpu.memory_space<vmem>>, %arg11: memref<1x128xf32, #tpu.memory_space<vmem>>, %arg12: memref<128x32xbf16, #tpu.memory_space<vmem>>, %arg13: memref<1x32xf32, #tpu.memory_space<vmem>>, %arg14: memref<8x32xf32, #tpu.memory_space<vmem>>) attributes {dimension_semantics = [#tpu.dimension_semantics<parallel>], iteration_bounds = array<i64: 1>, scalar_prefetch = 0 : i64, scratch_operands = 0 : i64, tpu.core_type = #tpu.core_type<tc>, window_params = [{transform_indices = @transform_0, window_bounds = array<i64: 8, 256>}, {pipeline_mode = #tpu.pipeline_mode<synchronous>, transform_indices = @transform_1, window_bounds = array<i64: 256, 1024>}, {pipeline_mode = #tpu.pipeline_mode<synchronous>, transform_indices = @transform_2, window_bounds = array<i64: 1, 1024>}, {pipeline_mode = #tpu.pipeline_mode<synchronous>, transform_indices = @transform_3, window_bounds = array<i64: 1024, 1024>}, {pipeline_mode = #tpu.pipeline_mode<synchronous>, transform_indices = @transform_4, window_bounds = array<i64: 1, 1024>}, {pipeline_mode = #tpu.pipeline_mode<synchronous>, transform_indices = @transform_5, window_bounds = array<i64: 1024, 1024>}, {pipeline_mode = #tpu.pipeline_mode<synchronous>, transform_indices = @transform_6, window_bounds = array<i64: 1, 1024>}, {pipeline_mode = #tpu.pipeline_mode<synchronous>, transform_indices = @transform_7, window_bounds = array<i64: 1024, 512>}, {pipeline_mode = #tpu.pipeline_mode<synchronous>, transform_indices = @transform_8, window_bounds = array<i64: 1, 512>}, {pipeline_mode = #tpu.pipeline_mode<synchronous>, transform_indices = @transform_9, window_bounds = array<i64: 512, 128>}, {pipeline_mode = #tpu.pipeline_mode<synchronous>, transform_indices = @transform_10, window_bounds = array<i64: 1, 128>}, {pipeline_mode = #tpu.pipeline_mode<synchronous>, transform_indices = @transform_11, window_bounds = array<i64: 128, 32>}, {pipeline_mode = #tpu.pipeline_mode<synchronous>, transform_indices = @transform_12, window_bounds = array<i64: 1, 32>}, {transform_indices = @transform_13, window_bounds = array<i64: 8, 32>}]} {
    %c0 = arith.constant 0 : index
    %c0_0 = arith.constant 0 : index
    %0 = vector.load %arg1[%c0, %c0_0] : memref<8x256xf32, #tpu.memory_space<vmem>>, vector<8x256xf32>
    %1 = arith.truncf %0 : vector<8x256xf32> to vector<8x256xbf16>
    %c0_1 = arith.constant 0 : index
    %c0_2 = arith.constant 0 : index
    %2 = vector.load %arg2[%c0_1, %c0_2] : memref<256x1024xbf16, #tpu.memory_space<vmem>>, vector<256x1024xbf16>
    %cst = arith.constant dense<0.000000e+00> : vector<8x1024xf32>
    %3 = tpu.matmul %1, %2, %cst {dimension_numbers = #tpu.dot_dimension_numbers<[1], [0], [0], [1], [0, 0, 1, 1], [], []>} : vector<8x256xbf16>, vector<256x1024xbf16>, vector<8x1024xf32> -> vector<8x1024xf32>
    %c0_3 = arith.constant 0 : index
    %c0_4 = arith.constant 0 : index
    %4 = vector.load %arg3[%c0_3, %c0_4] : memref<1x1024xf32, #tpu.memory_space<vmem>>, vector<1x1024xf32>
    %5 = vector.broadcast %4 : vector<1x1024xf32> to vector<8x1024xf32>
    %6 = arith.addf %3, %5 : vector<8x1024xf32>
    %cst_5 = arith.constant 0.000000e+00 : f32
    %7 = vector.broadcast %cst_5 : f32 to vector<8x1024xf32>
    %8 = arith.maximumf %6, %7 : vector<8x1024xf32>
    %9 = arith.truncf %8 : vector<8x1024xf32> to vector<8x1024xbf16>
    %c0_6 = arith.constant 0 : index
    %c0_7 = arith.constant 0 : index
    %10 = vector.load %arg4[%c0_6, %c0_7] : memref<1024x1024xbf16, #tpu.memory_space<vmem>>, vector<1024x1024xbf16>
    %cst_8 = arith.constant dense<0.000000e+00> : vector<8x1024xf32>
    %11 = tpu.matmul %9, %10, %cst_8 {dimension_numbers = #tpu.dot_dimension_numbers<[1], [0], [0], [1], [0, 0, 1, 1], [], []>} : vector<8x1024xbf16>, vector<1024x1024xbf16>, vector<8x1024xf32> -> vector<8x1024xf32>
    %c0_9 = arith.constant 0 : index
    %c0_10 = arith.constant 0 : index
    %12 = vector.load %arg5[%c0_9, %c0_10] : memref<1x1024xf32, #tpu.memory_space<vmem>>, vector<1x1024xf32>
    %13 = vector.broadcast %12 : vector<1x1024xf32> to vector<8x1024xf32>
    %14 = arith.addf %11, %13 : vector<8x1024xf32>
    %cst_11 = arith.constant 0.000000e+00 : f32
    %15 = vector.broadcast %cst_11 : f32 to vector<8x1024xf32>
    %16 = arith.maximumf %14, %15 : vector<8x1024xf32>
    %17 = arith.truncf %16 : vector<8x1024xf32> to vector<8x1024xbf16>
    %c0_12 = arith.constant 0 : index
    %c0_13 = arith.constant 0 : index
    %18 = vector.load %arg6[%c0_12, %c0_13] : memref<1024x1024xbf16, #tpu.memory_space<vmem>>, vector<1024x1024xbf16>
    %cst_14 = arith.constant dense<0.000000e+00> : vector<8x1024xf32>
    %19 = tpu.matmul %17, %18, %cst_14 {dimension_numbers = #tpu.dot_dimension_numbers<[1], [0], [0], [1], [0, 0, 1, 1], [], []>} : vector<8x1024xbf16>, vector<1024x1024xbf16>, vector<8x1024xf32> -> vector<8x1024xf32>
    %c0_15 = arith.constant 0 : index
    %c0_16 = arith.constant 0 : index
    %20 = vector.load %arg7[%c0_15, %c0_16] : memref<1x1024xf32, #tpu.memory_space<vmem>>, vector<1x1024xf32>
    %21 = vector.broadcast %20 : vector<1x1024xf32> to vector<8x1024xf32>
    %22 = arith.addf %19, %21 : vector<8x1024xf32>
    %cst_17 = arith.constant 0.000000e+00 : f32
    %23 = vector.broadcast %cst_17 : f32 to vector<8x1024xf32>
    %24 = arith.maximumf %22, %23 : vector<8x1024xf32>
    %25 = arith.truncf %24 : vector<8x1024xf32> to vector<8x1024xbf16>
    %c0_18 = arith.constant 0 : index
    %c0_19 = arith.constant 0 : index
    %26 = vector.load %arg8[%c0_18, %c0_19] : memref<1024x512xbf16, #tpu.memory_space<vmem>>, vector<1024x512xbf16>
    %cst_20 = arith.constant dense<0.000000e+00> : vector<8x512xf32>
    %27 = tpu.matmul %25, %26, %cst_20 {dimension_numbers = #tpu.dot_dimension_numbers<[1], [0], [0], [1], [0, 0, 1, 1], [], []>} : vector<8x1024xbf16>, vector<1024x512xbf16>, vector<8x512xf32> -> vector<8x512xf32>
    %c0_21 = arith.constant 0 : index
    %c0_22 = arith.constant 0 : index
    %28 = vector.load %arg9[%c0_21, %c0_22] : memref<1x512xf32, #tpu.memory_space<vmem>>, vector<1x512xf32>
    %29 = vector.broadcast %28 : vector<1x512xf32> to vector<8x512xf32>
    %30 = arith.addf %27, %29 : vector<8x512xf32>
    %cst_23 = arith.constant 0.000000e+00 : f32
    %31 = vector.broadcast %cst_23 : f32 to vector<8x512xf32>
    %32 = arith.maximumf %30, %31 : vector<8x512xf32>
    %33 = arith.truncf %32 : vector<8x512xf32> to vector<8x512xbf16>
    %c0_24 = arith.constant 0 : index
    %c0_25 = arith.constant 0 : index
    %34 = vector.load %arg10[%c0_24, %c0_25] : memref<512x128xbf16, #tpu.memory_space<vmem>>, vector<512x128xbf16>
    %cst_26 = arith.constant dense<0.000000e+00> : vector<8x128xf32>
    %35 = tpu.matmul %33, %34, %cst_26 {dimension_numbers = #tpu.dot_dimension_numbers<[1], [0], [0], [1], [0, 0, 1, 1], [], []>} : vector<8x512xbf16>, vector<512x128xbf16>, vector<8x128xf32> -> vector<8x128xf32>
    %c0_27 = arith.constant 0 : index
    %c0_28 = arith.constant 0 : index
    %36 = vector.load %arg11[%c0_27, %c0_28] : memref<1x128xf32, #tpu.memory_space<vmem>>, vector<1x128xf32>
    %37 = vector.broadcast %36 : vector<1x128xf32> to vector<8x128xf32>
    %38 = arith.addf %35, %37 : vector<8x128xf32>
    %cst_29 = arith.constant 0.000000e+00 : f32
    %39 = vector.broadcast %cst_29 : f32 to vector<8x128xf32>
    %40 = arith.maximumf %38, %39 : vector<8x128xf32>
    %41 = arith.truncf %40 : vector<8x128xf32> to vector<8x128xbf16>
    %c0_30 = arith.constant 0 : index
    %c0_31 = arith.constant 0 : index
    %42 = vector.load %arg12[%c0_30, %c0_31] : memref<128x32xbf16, #tpu.memory_space<vmem>>, vector<128x32xbf16>
    %cst_32 = arith.constant dense<0.000000e+00> : vector<8x32xf32>
    %43 = tpu.matmul %41, %42, %cst_32 {dimension_numbers = #tpu.dot_dimension_numbers<[1], [0], [0], [1], [0, 0, 1, 1], [], []>} : vector<8x128xbf16>, vector<128x32xbf16>, vector<8x32xf32> -> vector<8x32xf32>
    %c0_33 = arith.constant 0 : index
    %c0_34 = arith.constant 0 : index
    %44 = vector.load %arg13[%c0_33, %c0_34] : memref<1x32xf32, #tpu.memory_space<vmem>>, vector<1x32xf32>
    %45 = vector.broadcast %44 : vector<1x32xf32> to vector<8x32xf32>
    %46 = arith.addf %43, %45 : vector<8x32xf32>
    %c0_35 = arith.constant 0 : index
    %c0_36 = arith.constant 0 : index
    %47 = vector.load %arg14[%c0_35, %c0_36] : memref<8x32xf32, #tpu.memory_space<vmem>>, vector<8x32xf32>
    tpu.vector_store %arg14[%c0_35, %c0_36], %46 {strides = array<i32>} : memref<8x32xf32, #tpu.memory_space<vmem>>, vector<8x32xf32>,
    return
  }
  func.func @transform_0(%arg0: i32) -> (i32, i32) {
    %c0_i32 = arith.constant 0 : i32
    %c0_i32_0 = arith.constant 0 : i32
    return %arg0, %c0_i32 : i32, i32
  }
  func.func @transform_1(%arg0: i32) -> (i32, i32) {
    %c0_i32 = arith.constant 0 : i32
    %c0_i32_0 = arith.constant 0 : i32
    %c0_i32_1 = arith.constant 0 : i32
    return %c0_i32, %c0_i32_0 : i32, i32
  }
  func.func @transform_2(%arg0: i32) -> (i32, i32) {
    %c0_i32 = arith.constant 0 : i32
    %c0_i32_0 = arith.constant 0 : i32
    %c0_i32_1 = arith.constant 0 : i32
    return %c0_i32, %c0_i32_0 : i32, i32
  }
  func.func @transform_3(%arg0: i32) -> (i32, i32) {
    %c0_i32 = arith.constant 0 : i32
    %c0_i32_0 = arith.constant 0 : i32
    %c0_i32_1 = arith.constant 0 : i32
    return %c0_i32, %c0_i32_0 : i32, i32
  }
  func.func @transform_4(%arg0: i32) -> (i32, i32) {
    %c0_i32 = arith.constant 0 : i32
    %c0_i32_0 = arith.constant 0 : i32
    %c0_i32_1 = arith.constant 0 : i32
    return %c0_i32, %c0_i32_0 : i32, i32
  }
  func.func @transform_5(%arg0: i32) -> (i32, i32) {
    %c0_i32 = arith.constant 0 : i32
    %c0_i32_0 = arith.constant 0 : i32
    %c0_i32_1 = arith.constant 0 : i32
    return %c0_i32, %c0_i32_0 : i32, i32
  }
  func.func @transform_6(%arg0: i32) -> (i32, i32) {
    %c0_i32 = arith.constant 0 : i32
    %c0_i32_0 = arith.constant 0 : i32
    %c0_i32_1 = arith.constant 0 : i32
    return %c0_i32, %c0_i32_0 : i32, i32
  }
  func.func @transform_7(%arg0: i32) -> (i32, i32) {
    %c0_i32 = arith.constant 0 : i32
    %c0_i32_0 = arith.constant 0 : i32
    %c0_i32_1 = arith.constant 0 : i32
    return %c0_i32, %c0_i32_0 : i32, i32
  }
  func.func @transform_8(%arg0: i32) -> (i32, i32) {
    %c0_i32 = arith.constant 0 : i32
    %c0_i32_0 = arith.constant 0 : i32
    %c0_i32_1 = arith.constant 0 : i32
    return %c0_i32, %c0_i32_0 : i32, i32
  }
  func.func @transform_9(%arg0: i32) -> (i32, i32) {
    %c0_i32 = arith.constant 0 : i32
    %c0_i32_0 = arith.constant 0 : i32
    %c0_i32_1 = arith.constant 0 : i32
    return %c0_i32, %c0_i32_0 : i32, i32
  }
  func.func @transform_10(%arg0: i32) -> (i32, i32) {
    %c0_i32 = arith.constant 0 : i32
    %c0_i32_0 = arith.constant 0 : i32
    %c0_i32_1 = arith.constant 0 : i32
    return %c0_i32, %c0_i32_0 : i32, i32
  }
  func.func @transform_11(%arg0: i32) -> (i32, i32) {
    %c0_i32 = arith.constant 0 : i32
    %c0_i32_0 = arith.constant 0 : i32
    %c0_i32_1 = arith.constant 0 : i32
    return %c0_i32, %c0_i32_0 : i32, i32
  }
  func.func @transform_12(%arg0: i32) -> (i32, i32) {
    %c0_i32 = arith.constant 0 : i32
    %c0_i32_0 = arith.constant 0 : i32
    %c0_i32_1 = arith.constant 0 : i32
    return %c0_i32, %c0_i32_0 : i32, i32
  }
  func.func @transform_13(%arg0: i32) -> (i32, i32) {
    %c0_i32 = arith.constant 0 : i32
    %c0_i32_0 = arith.constant 0 : i32
    return %arg0, %c0_i32 : i32, i32
  }
}

</mosaic_0001>

<bundles_post_ra>
// kernel: suit_solo_net_forward.1
= control target key start
LH: loop header
LB: loop body
LE: loop exit
PB: predicated region body
PF: predicated region fallthrough
CT: control target
= control target key end

     0   :  { %18 = vsyncpa [#allocation3], 0  ;;  %s14052_s0 = inlined_call_operand.vmem [shape: f32[8,256], index: 0, kind: input, shape index: {}]   ;;  %s14053_s1 = inlined_call_operand.hbm [shape: bf16[256,1024], index: 1, kind: input, shape index: {}]   ;;  %s14054_s2 = inlined_call_operand.hbm [shape: f32[1,1024], index: 2, kind: input, shape index: {}]   ;;  %s14055_s3 = inlined_call_operand.hbm [shape: bf16[1024,1024], index: 3, kind: input, shape index: {}]   ;;  %s14056_s4 = inlined_call_operand.hbm [shape: f32[1,1024], index: 4, kind: input, shape index: {}]   ;;  %s14057_s5 = inlined_call_operand.hbm [shape: bf16[1024,1024], index: 5, kind: input, shape index: {}]   ;;  %s14058_s6 = inlined_call_operand.hbm [shape: f32[1,1024], index: 6, kind: input, shape index: {}]   ;;  %s14059_s7 = inlined_call_operand.hbm [shape: bf16[1024,512], index: 7, kind: input, shape index: {}]   ;;  %s14060_s8 = inlined_call_operand.hbm [shape: f32[1,512], index: 8, kind: input, shape index: {}]   ;;  %s14061_s9 = inlined_call_operand.hbm [shape: bf16[512,128], index: 9, kind: input, shape index: {}]   ;;  %s14062_s10 = inlined_call_operand.hbm [shape: f32[1,128], index: 10, kind: input, shape index: {}]   ;;  %s14063_s11 = inlined_call_operand.vmem [shape: bf16[128,32], index: 11, kind: input, shape index: {}]   ;;  %s14064_s12 = inlined_call_operand.hbm [shape: f32[1,32], index: 12, kind: input, shape index: {}]   ;;  %s14065_s13 = inlined_call_operand.hbm [shape: f32[8,32], index: 13, kind: output, shape index: {}]  }
   0x1   :  { %19 = vsyncpa [#allocation6], 0 }
   0x2   :  { %20 = vsyncpa [#allocation9], 0 }
   0x3   :  { %21 = vsyncpa [#allocation12], 0 }
   0x4   :  { %22 = vsyncpa [#allocation15], 0 }
   0x5   :  { %23 = vsyncpa [#allocation18], 0 }
   0x6   :  { %24 = vsyncpa [#allocation4], 0  ;;  %s13509_s25 = smov [#allocation5]   ;;  %s13510_s27 = smov [#allocation8]  }
   0x7   :  { %s45_s26 = sshll.u32 %s13509_s25, 4  ;;  %s67_s28 = sshll.u32 %s13510_s27, 4  ;;  %s46_s26 = int_to_ptr.vmem [resolvable:$true] %s45_s26  ;;  %s68_s28 = int_to_ptr.vmem [resolvable:$true] %s67_s28 }
   0x8   :  { %s13231_s14 = scalar_lea.hbm %s14054_s2, 128 }
   0x9   :  { %p13232_p0 = scmp.ne.s32.totalorder %s14054_s2, %s13231_s14  ;;  %p13235_p1 = scmp.lt.u32.totalorder %s13231_s14, %s14054_s2 }
   0xb   :  { %p13237_p2 = pnand %p13235_p1, %p13232_p0 }
   0xd   :  { %13240 = shalt.err (!%p13237_p2)
}
   0xe   :  { %s13241_s19 = scalar_lea.vmem %s46_s26, 128  ;;  %p13246_p4 = scmp.lt.s32.totalorder %s46_s26, %s46_s26 }
   0xf   :  { %p13242_p3 = scmp.ne.s32.totalorder %s46_s26, %s13241_s19  ;;  %p13247_p5 = scmp.lt.s32.totalorder %s13241_s19, %s13241_s19 }
  0x11   :  { %p13248_p6 = por %p13247_p5, %p13246_p4 }
  0x13   :  { %p13249_p7 = pnand %p13248_p6, %p13242_p3 }
  0x15   :  { %13252 = shalt.err (!%p13249_p7)
}
  0x16   :  { %48 = dma.hbm_to_vmem [thread:$0]  %s14054_s2, 128, %s46_s26, [#allocation6]  }
  0x17   :  { %s13253_s24 = scalar_lea.hbm %s14056_s4, 128 }
  0x18   :  { %p13254_p8 = scmp.ne.s32.totalorder %s14056_s4, %s13253_s24  ;;  %p13257_p9 = scmp.lt.u32.totalorder %s13253_s24, %s14056_s4 }
  0x1a   :  { %p13259_p10 = pnand %p13257_p9, %p13254_p8 }
  0x1c   :  { %13262 = shalt.err (!%p13259_p10)
}
  0x1d   :  { %s13263_s14 = scalar_lea.vmem %s68_s28, 128  ;;  %p13268_p12 = scmp.lt.s32.totalorder %s68_s28, %s68_s28 }
  0x1e   :  { %p13264_p11 = scmp.ne.s32.totalorder %s68_s28, %s13263_s14  ;;  %p13269_p13 = scmp.lt.s32.totalorder %s13263_s14, %s13263_s14 }
  0x20   :  { %p13270_p0 = por %p13269_p13, %p13268_p12 }
  0x22   :  { %p13271_p1 = pnand %p13270_p0, %p13264_p11 }
  0x24   :  { %13274 = shalt.err (!%p13271_p1)
}
  0x25   :  { %70 = dma.hbm_to_vmem [thread:$0]  %s14056_s4, 128, %s68_s28, [#allocation9]  }
  0x26   :  { %s13511_s15 = smov [#allocation11]   ;;  %s13512_s17 = smov [#allocation14]  }
  0x27   :  { %s89_s16 = sshll.u32 %s13511_s15, 4  ;;  %s111_s18 = sshll.u32 %s13512_s17, 4  ;;  %s90_s16 = int_to_ptr.vmem [resolvable:$true] %s89_s16  ;;  %s112_s18 = int_to_ptr.vmem [resolvable:$true] %s111_s18 }
  0x28   :  { %s13275_s21 = scalar_lea.hbm %s14058_s6, 128 }
  0x29   :  { %p13276_p2 = scmp.ne.s32.totalorder %s14058_s6, %s13275_s21  ;;  %p13279_p3 = scmp.lt.u32.totalorder %s13275_s21, %s14058_s6 }
  0x2b   :  { %p13281_p4 = pnand %p13279_p3, %p13276_p2 }
  0x2d   :  { %13284 = shalt.err (!%p13281_p4)
}
  0x2e   :  { %s13285_s4 = scalar_lea.vmem %s90_s16, 128  ;;  %p13290_p6 = scmp.lt.s32.totalorder %s90_s16, %s90_s16 }
  0x2f   :  { %p13286_p5 = scmp.ne.s32.totalorder %s90_s16, %s13285_s4  ;;  %p13291_p7 = scmp.lt.s32.totalorder %s13285_s4, %s13285_s4 }
  0x31   :  { %p13292_p8 = por %p13291_p7, %p13290_p6 }
  0x33   :  { %p13293_p9 = pnand %p13292_p8, %p13286_p5 }
  0x35   :  { %13296 = shalt.err (!%p13293_p9)
}
  0x36   :  { %92 = dma.hbm_to_vmem [thread:$0]  %s14058_s6, 128, %s90_s16, [#allocation12]  }
  0x37   :  { %s13297_s14 = scalar_lea.hbm %s14060_s8, 64 }
  0x38   :  { %p13298_p10 = scmp.ne.s32.totalorder %s14060_s8, %s13297_s14  ;;  %p13301_p11 = scmp.lt.u32.totalorder %s13297_s14, %s14060_s8 }
  0x3a   :  { %p13303_p12 = pnand %p13301_p11, %p13298_p10 }
  0x3c   :  { %13306 = shalt.err (!%p13303_p12)
}
  0x3d   :  { %s13307_s19 = scalar_lea.vmem %s112_s18, 64  ;;  %p13312_p0 = scmp.lt.s32.totalorder %s112_s18, %s112_s18 }
  0x3e   :  { %p13308_p13 = scmp.ne.s32.totalorder %s112_s18, %s13307_s19  ;;  %p13313_p1 = scmp.lt.s32.totalorder %s13307_s19, %s13307_s19 }
  0x40   :  { %p13314_p2 = por %p13313_p1, %p13312_p0 }
  0x42   :  { %p13315_p3 = pnand %p13314_p2, %p13308_p13 }
  0x44   :  { %13318 = shalt.err (!%p13315_p3)
}
  0x45   :  { %114 = dma.hbm_to_vmem [thread:$0]  %s14060_s8, 64, %s112_s18, [#allocation15]  }
  0x46   :  { %s13513_s20 = smov [#allocation17]   ;;  %s13514_s22 = smov [#allocation2]  }
  0x47   :  { %s133_s21 = sshll.u32 %s13513_s20, 4  ;;  %s32_s23 = sshll.u32 %s13514_s22, 4  ;;  %s134_s21 = int_to_ptr.vmem [resolvable:$true] %s133_s21  ;;  %s13647_s23 = int_to_ptr.vmem [resolvable:$true] %s32_s23 }
  0x48   :  { %s13319_s4 = scalar_lea.hbm %s14062_s10, 16 }
  0x49   :  { %p13320_p4 = scmp.ne.s32.totalorder %s14062_s10, %s13319_s4  ;;  %p13323_p5 = scmp.lt.u32.totalorder %s13319_s4, %s14062_s10 }
  0x4b   :  { %p13325_p6 = pnand %p13323_p5, %p13320_p4 }
  0x4d   :  { %13328 = shalt.err (!%p13325_p6)
}
  0x4e   :  { %s13329_s8 = scalar_lea.vmem %s134_s21, 16  ;;  %s13333_s18 = scalar_lea.vmem %s134_s21, 32 }
  0x4f   :  { %p13330_p7 = scmp.ne.s32.totalorder %s134_s21, %s13329_s8  ;;  %p13334_p8 = scmp.lt.s32.totalorder %s134_s21, %s134_s21 }
  0x50   :  { %p13335_p9 = scmp.lt.s32.totalorder %s13333_s18, %s13329_s8 }
  0x52   :  { %p13336_p10 = por %p13335_p9, %p13334_p8 }
  0x54   :  { %p13337_p11 = pnand %p13336_p10, %p13330_p7 }
  0x56   :  { %13340 = shalt.err (!%p13337_p11)
}
  0x57   :  { %136 = dma.hbm_to_vmem [thread:$0]  %s14062_s10, 16, %s134_s21, [#allocation18]  }
  0x58   :  { %s13341_s17 = scalar_lea.hbm %s14053_s1, 16384 }
  0x59   :  { %p13342_p12 = scmp.ne.s32.totalorder %s14053_s1, %s13341_s17  ;;  %p13345_p13 = scmp.lt.u32.totalorder %s13341_s17, %s14053_s1 }
  0x5b   :  { %p13347_p0 = pnand %p13345_p13, %p13342_p12 }
  0x5d   :  { %13350 = shalt.err (!%p13347_p0)
}
  0x5e   :  { %s13351_s22 = scalar_lea.vmem %s13647_s23, 16384  ;;  %p13356_p2 = scmp.lt.s32.totalorder %s13647_s23, %s13647_s23 }
  0x5f   :  { %p13352_p1 = scmp.ne.s32.totalorder %s13647_s23, %s13351_s22  ;;  %p13357_p3 = scmp.lt.s32.totalorder %s13351_s22, %s13351_s22 }
  0x61   :  { %p13358_p4 = por %p13357_p3, %p13356_p2 }
  0x63   :  { %p13359_p5 = pnand %p13358_p4, %p13352_p1 }
  0x65   :  { %13362 = shalt.err (!%p13359_p5)
}
  0x66   :  { %s13515_s10 = smov 512   ;;  %s13516_s21 = smov 32  }
  0x67   :  { %38 = dma.hbm_to_vmem [thread:$0]  %s14053_s1, 16384, %s13647_s23, [#allocation3], %s13515_s10, %s13515_s10, %s13516_s21  }
  0x68   :  { %s13517_s4 = smov [#allocation7]   ;;  %s13518_s27 = smov [#allocation10]  }
  0x69   :  { %s54_s28 = sshll.u32 %s13517_s4, 4  ;;  %s76_s29 = sshll.u32 %s13518_s27, 4  ;;  %s55_s28 = int_to_ptr.vmem [resolvable:$true] %s54_s28  ;;  %s13681_s29 = int_to_ptr.vmem [resolvable:$true] %s76_s29 }
  0x6a   :  { %s13363_s18 = scalar_lea.hbm %s14055_s3, 65536 }
  0x6b   :  { %p13364_p6 = scmp.ne.s32.totalorder %s14055_s3, %s13363_s18  ;;  %p13367_p7 = scmp.lt.u32.totalorder %s13363_s18, %s14055_s3 }
  0x6d   :  { %p13369_p8 = pnand %p13367_p7, %p13364_p6 }
  0x6f   :  { %13372 = shalt.err (!%p13369_p8)
}
  0x70   :  { %s13373_s1 = scalar_lea.vmem %s55_s28, 65536  ;;  %p13378_p10 = scmp.lt.s32.totalorder %s55_s28, %s55_s28 }
  0x71   :  { %p13374_p9 = scmp.ne.s32.totalorder %s55_s28, %s13373_s1  ;;  %p13379_p11 = scmp.lt.s32.totalorder %s13373_s1, %s13373_s1 }
  0x73   :  { %p13380_p12 = por %p13379_p11, %p13378_p10 }
  0x75   :  { %p13381_p13 = pnand %p13380_p12, %p13374_p9 }
  0x77   :  { %13384 = shalt.err (!%p13381_p13)
}
  0x78   :  { %60 = dma.hbm_to_vmem [thread:$0]  %s14055_s3, 65536, %s55_s28, [#allocation6], %s13515_s10, %s13515_s10, %s13516_s21  }
  0x79   :  { %s13385_s16 = scalar_lea.hbm %s14057_s5, 65536 }
  0x7a   :  { %p13386_p0 = scmp.ne.s32.totalorder %s14057_s5, %s13385_s16  ;;  %p13389_p1 = scmp.lt.u32.totalorder %s13385_s16, %s14057_s5 }
  0x7c   :  { %p13391_p2 = pnand %p13389_p1, %p13386_p0 }
  0x7e   :  { %13394 = shalt.err (!%p13391_p2)
}
  0x7f   :  { %s13395_s4 = scalar_lea.vmem %s13681_s29, 65536  ;;  %p13400_p4 = scmp.lt.s32.totalorder %s13681_s29, %s13681_s29 }
  0x80   :  { %p13396_p3 = scmp.ne.s32.totalorder %s13681_s29, %s13395_s4  ;;  %p13401_p5 = scmp.lt.s32.totalorder %s13395_s4, %s13395_s4 }
  0x82   :  { %p13402_p6 = por %p13401_p5, %p13400_p4 }
  0x84   :  { %p13403_p7 = pnand %p13402_p6, %p13396_p3 }
  0x86   :  { %13406 = shalt.err (!%p13403_p7)
}
  0x87   :  { %82 = dma.hbm_to_vmem [thread:$0]  %s14057_s5, 65536, %s13681_s29, [#allocation9], %s13515_s10, %s13515_s10, %s13516_s21  }
  0x88   :  { %s13519_s27 = smov [#allocation13]   ;;  %s13407_s14 = scalar_lea.hbm %s14059_s7, 32768 }
  0x89   :  { %s98_s30 = sshll.u32 %s13519_s27, 4  ;;  %p13408_p8 = scmp.ne.s32.totalorder %s14059_s7, %s13407_s14  ;;  %s99_s30 = int_to_ptr.vmem [resolvable:$true] %s98_s30 }
  0x8a   :  { %p13411_p9 = scmp.lt.u32.totalorder %s13407_s14, %s14059_s7 }
  0x8c   :  { %p13413_p10 = pnand %p13411_p9, %p13408_p8 }
  0x8e   :  { %13416 = shalt.err (!%p13413_p10)
}
  0x8f   :  { %s13417_s23 = scalar_lea.vmem %s99_s30, 32768  ;;  %p13422_p12 = scmp.lt.s32.totalorder %s99_s30, %s99_s30 }
  0x90   :  { %p13418_p11 = scmp.ne.s32.totalorder %s99_s30, %s13417_s23  ;;  %p13423_p13 = scmp.lt.s32.totalorder %s13417_s23, %s13417_s23 }
  0x92   :  { %p13424_p0 = por %p13423_p13, %p13422_p12 }
  0x94   :  { %p13425_p1 = pnand %p13424_p0, %p13418_p11 }
  0x96   :  { %13428 = shalt.err (!%p13425_p1)
}
  0x97   :  { %s13520_s5 = smov 256   ;;  %s13521_s10 = smov 16  }
  0x98   :  { %104 = dma.hbm_to_vmem [thread:$0]  %s14059_s7, 32768, %s99_s30, [#allocation12], %s13520_s5, %s13520_s5, %s13521_s10  }
  0x99   :  { %s13522_s17 = smov [#allocation16]   ;;  %s13429_s20 = scalar_lea.hbm %s14061_s9, 4096 }
  0x9a   :  { %s120_s19 = sshll.u32 %s13522_s17, 4  ;;  %p13430_p2 = scmp.ne.s32.totalorder %s14061_s9, %s13429_s20  ;;  %s121_s19 = int_to_ptr.vmem [resolvable:$true] %s120_s19 }
  0x9b   :  { %p13433_p3 = scmp.lt.u32.totalorder %s13429_s20, %s14061_s9 }
  0x9d   :  { %p13435_p4 = pnand %p13433_p3, %p13430_p2 }
  0x9f   :  { %13438 = shalt.err (!%p13435_p4)
}
  0xa0   :  { %s13439_s3 = scalar_lea.vmem %s121_s19, 4096  ;;  %p13444_p6 = scmp.lt.s32.totalorder %s121_s19, %s121_s19 }
  0xa1   :  { %p13440_p5 = scmp.ne.s32.totalorder %s121_s19, %s13439_s3  ;;  %p13445_p7 = scmp.lt.s32.totalorder %s13439_s3, %s13439_s3 }
  0xa3   :  { %p13446_p8 = por %p13445_p7, %p13444_p6 }
  0xa5   :  { %p13447_p9 = pnand %p13446_p8, %p13440_p5 }
  0xa7   :  { %13450 = shalt.err (!%p13447_p9)
}
  0xa8   :  { %s13523_s7 = smov 64   ;;  %s13524_s28 = smov 4  }
  0xa9   :  { %126 = dma.hbm_to_vmem [thread:$0]  %s14061_s9, 4096, %s121_s19, [#allocation15], %s13523_s7, %s13523_s7, %s13524_s28  }
  0xaa   :  { %s13525_s8 = smov [#allocation19]   ;;  %s13451_s26 = scalar_lea.hbm %s14064_s12, 16 }
  0xab   :  { %s145_s18 = sshll.u32 %s13525_s8, 4  ;;  %p13452_p10 = scmp.ne.s32.totalorder %s14064_s12, %s13451_s26  ;;  %s146_s18 = int_to_ptr.vmem [resolvable:$true] %s145_s18 }
  0xac   :  { %p13455_p11 = scmp.lt.u32.totalorder %s13451_s26, %s14064_s12 }
  0xae   :  { %p13457_p12 = pnand %p13455_p11, %p13452_p10 }
  0xb0   :  { %13460 = shalt.err (!%p13457_p12)
}
  0xb1   :  { %s13461_s10 = scalar_lea.vmem %s146_s18, 16  ;;  %s13465_s9 = scalar_lea.vmem %s146_s18, 32 }
  0xb2   :  { %p13462_p13 = scmp.ne.s32.totalorder %s146_s18, %s13461_s10  ;;  %p13466_p0 = scmp.lt.s32.totalorder %s146_s18, %s146_s18 }
  0xb3   :  { %p13467_p1 = scmp.lt.s32.totalorder %s13465_s9, %s13461_s10 }
  0xb5   :  { %p13468_p2 = por %p13467_p1, %p13466_p0 }
  0xb7   :  { %p13469_p3 = pnand %p13468_p2, %p13462_p13 }
  0xb9   :  { %13472 = shalt.err (!%p13469_p3)
}
  0xba   :  { %148 = dma.hbm_to_vmem [thread:$0]  %s14064_s12, 16, %s146_s18, [#allocation18]  }
  0xbb   :  { %13495 = dma.done.wait [#allocation3], 16384  }
  0xbc   :  { %13496 = vsyncadd [#allocation3], 4294950912 }
  0xbd   :  { %13497 = dma.done.wait [#allocation6], 65664  }
  0xbe   :  { %13498 = vsyncadd [#allocation6], 4294901632 }
  0xbf   :  { %13499 = dma.done.wait [#allocation9], 65664  }
  0xc0   :  { %13500 = vsyncadd [#allocation9], 4294901632 }
  0xc1   :  { %13501 = dma.done.wait [#allocation12], 32896  }
  0xc2   :  { %13502 = vsyncadd [#allocation12], 4294934400 }
  0xc3   :  { %13503 = dma.done.wait [#allocation15], 4160  }
  0xc4   :  { %13504 = vsyncadd [#allocation15], 4294963136 }
  0xc5   :  { %13505 = dma.done.wait [#allocation18], 32  }
  0xc6   :  { %13506 = vsyncadd [#allocation18], 4294967264  ;;  %v187_v0 = vld [vmem:[#allocation2] sm:$0xff]  ;;  %v188_v17 = vld [vmem:[#allocation2 + $0x8] sm:$0xff]  ;;  %vm13527_vm0 = vmmov 0   ;;  %vm11099_vm1 = vcmask 261120  }
  0xc7   :  { %v191_v1 = vld [vmem:[#allocation2 + $0x20] sm:$0xff]  ;;  %v192_v18 = vld [vmem:[#allocation2 + $0x28] sm:$0xff]  ;;  %v184_v19 = vld [vmem:[%s14052_s0 + $0x8] sm:$0xff] }
  0xc8   :  { %v195_v2 = vld [vmem:[#allocation2 + $0x40] sm:$0xff]  ;;  %v11122_v3 = vcombine.high %v187_v0, %v191_v1  ;;  %v11121_v4 = vcombine.low %v187_v0, %v191_v1  ;;  %v11124_v21 = vcombine.high %v188_v17, %v192_v18  ;;  %v11123_v22 = vcombine.low %v188_v17, %v192_v18  ;;  %v196_v24 = vld [vmem:[#allocation2 + $0x48] sm:$0xff] }
  0xc9   :  { %v199_v5 = vld [vmem:[#allocation2 + $0x60] sm:$0xff]  ;;  %v13757_v23 = vpack.c.bf16 %v184_v19, %v184_v19  ;;  %v200_v25 = vld [vmem:[#allocation2 + $0x68] sm:$0xff] }
  0xca   :  { %v11130_v6 = vcombine.high %v195_v2, %v199_v5  ;;  %v203_v7 = vld [vmem:[#allocation2 + $0x80] sm:$0xff]  ;;  %997 = vmatprep.subr.bf16.mxu0 %v11122_v3  ;;  %v11129_v9 = vcombine.low %v195_v2, %v199_v5  ;;  %v11132_v27 = vcombine.high %v196_v24, %v200_v25  ;;  %v204_v28 = vld [vmem:[#allocation2 + $0x88] sm:$0xff]  ;;  %1038 = vmatprep.subr.bf16.mxu1 %v11124_v21 }
  0xcb   :  { %v207_v8 = vld [vmem:[#allocation2 + $0xa0] sm:$0xff]  ;;  %998 = vmatpush1.bf16.msra.mxu0 %v11121_v4  ;;  %v208_v29 = vld [vmem:[#allocation2 + $0xa8] sm:$0xff]  ;;  %1029 = vmatprep.mubr.bf16.mxu0 %v13757_v23  ;;  %v11131_v32 = vcombine.low %v196_v24, %v200_v25 }
  0xcc   :  { %999 = vmatprep.subr.bf16.mxu0 %v11130_v6  ;;  %v11138_v10 = vcombine.high %v203_v7, %v207_v8  ;;  %v211_v11 = vld [vmem:[#allocation2 + $0xc0] sm:$0xff]  ;;  %v11137_v13 = vcombine.low %v203_v7, %v207_v8  ;;  %1039 = vmatpush1.bf16.msra.mxu1 %v11123_v22  ;;  %v11140_v34 = vcombine.high %v204_v28, %v208_v29  ;;  %v212_v36 = vld [vmem:[#allocation2 + $0xc8] sm:$0xff] }
  0xcd   :  { %v215_v12 = vld [vmem:[#allocation2 + $0xe0] sm:$0xff]  ;;  %1070 = vmatprep.mubr.bf16.mxu1 %v13757_v23  ;;  %1040 = vmatprep.subr.bf16.mxu1 %v11132_v27  ;;  %v216_v37 = vld [vmem:[#allocation2 + $0xe8] sm:$0xff]  ;;  %v11139_v40 = vcombine.low %v204_v28, %v208_v29 }
  0xce   :  { %v11146_v14 = vcombine.high %v211_v11, %v215_v12  ;;  %v219_v15 = vld [vmem:[#allocation2 + $0x100] sm:$0xff]  ;;  %v11145_v20 = vcombine.low %v211_v11, %v215_v12  ;;  %v11148_v42 = vcombine.high %v212_v36, %v216_v37  ;;  %v220_v44 = vld [vmem:[#allocation2 + $0x108] sm:$0xff]  ;;  %v11147_v48 = vcombine.low %v212_v36, %v216_v37 }
  0xcf   :  { %1000 = vmatpush1.bf16.msra.mxu0 %v11129_v9  ;;  %v223_v16 = vld [vmem:[#allocation2 + $0x120] sm:$0xff]  ;;  %v224_v45 = vld [vmem:[#allocation2 + $0x128] sm:$0xff] }
  0xd0   :  { %1001 = vmatprep.subr.bf16.mxu0 %v11138_v10  ;;  %v11154_v26 = vcombine.high %v219_v15, %v223_v16  ;;  %v227_v30 = vld [vmem:[#allocation2 + $0x140] sm:$0xff]  ;;  %v11153_v33 = vcombine.low %v219_v15, %v223_v16  ;;  %1041 = vmatpush1.bf16.msra.mxu1 %v11131_v32  ;;  %v11156_v50 = vcombine.high %v220_v44, %v224_v45  ;;  %v228_v52 = vld [vmem:[#allocation2 + $0x148] sm:$0xff] }
  0xd1   :  { %v231_v31 = vld [vmem:[#allocation2 + $0x160] sm:$0xff]  ;;  %1042 = vmatprep.subr.bf16.mxu1 %v11140_v34  ;;  %v232_v53 = vld [vmem:[#allocation2 + $0x168] sm:$0xff]  ;;  %v11155_v56 = vcombine.low %v220_v44, %v224_v45 }
  0xd2   :  { %v11162_v35 = vcombine.high %v227_v30, %v231_v31  ;;  %v235_v38 = vld [vmem:[#allocation2 + $0x180] sm:$0xff]  ;;  %v11161_v41 = vcombine.low %v227_v30, %v231_v31  ;;  %v11164_v58 = vcombine.high %v228_v52, %v232_v53  ;;  %v236_v60 = vld [vmem:[#allocation2 + $0x188] sm:$0xff]  ;;  %v11163_v0 = vcombine.low %v228_v52, %v232_v53 }
  0xd3   :  { %1002 = vmatpush1.bf16.msra.mxu0 %v11137_v13  ;;  %v239_v39 = vld [vmem:[#allocation2 + $0x1a0] sm:$0xff]  ;;  %v240_v61 = vld [vmem:[#allocation2 + $0x1a8] sm:$0xff] }
  0xd4   :  { %1003 = vmatprep.subr.bf16.mxu0 %v11146_v14  ;;  %v11170_v43 = vcombine.high %v235_v38, %v239_v39  ;;  %v243_v46 = vld [vmem:[#allocation2 + $0x1c0] sm:$0xff]  ;;  %1043 = vmatpush1.bf16.msra.mxu1 %v11139_v40  ;;  %v11169_v49 = vcombine.low %v235_v38, %v239_v39  ;;  %v11172_v2 = vcombine.high %v236_v60, %v240_v61  ;;  %v244_v4 = vld [vmem:[#allocation2 + $0x1c8] sm:$0xff] }
  0xd5   :  { %v247_v47 = vld [vmem:[#allocation2 + $0x1e0] sm:$0xff]  ;;  %1044 = vmatprep.subr.bf16.mxu1 %v11148_v42  ;;  %v248_v5 = vld [vmem:[#allocation2 + $0x1e8] sm:$0xff]  ;;  %v11171_v8 = vcombine.low %v236_v60, %v240_v61 }
  0xd6   :  { %v11178_v51 = vcombine.high %v243_v46, %v247_v47  ;;  %v251_v54 = vld [vmem:[#allocation2 + $0x200] sm:$0xff]  ;;  %v11177_v57 = vcombine.low %v243_v46, %v247_v47  ;;  %v11180_v10 = vcombine.high %v244_v4, %v248_v5  ;;  %v252_v12 = vld [vmem:[#allocation2 + $0x208] sm:$0xff]  ;;  %v11179_v16 = vcombine.low %v244_v4, %v248_v5 }
  0xd7   :  { %1004 = vmatpush1.bf16.msra.mxu0 %v11145_v20  ;;  %v255_v55 = vld [vmem:[#allocation2 + $0x220] sm:$0xff]  ;;  %v256_v13 = vld [vmem:[#allocation2 + $0x228] sm:$0xff] }
  0xd8   :  { %1005 = vmatprep.subr.bf16.mxu0 %v11154_v26  ;;  %1045 = vmatpush1.bf16.msra.mxu1 %v11147_v48  ;;  %v11186_v59 = vcombine.high %v251_v54, %v255_v55  ;;  %v259_v62 = vld [vmem:[#allocation2 + $0x240] sm:$0xff]  ;;  %v11185_v1 = vcombine.low %v251_v54, %v255_v55  ;;  %v11188_v18 = vcombine.high %v252_v12, %v256_v13  ;;  %v260_v20 = vld [vmem:[#allocation2 + $0x248] sm:$0xff]  ;;  %v189_v55 = vld [vmem:[#allocation2 + $0x10] sm:$0xff] }
  0xd9   :  { %1046 = vmatprep.subr.bf16.mxu1 %v11156_v50  ;;  %v263_v63 = vld [vmem:[#allocation2 + $0x260] sm:$0xff]  ;;  %v264_v21 = vld [vmem:[#allocation2 + $0x268] sm:$0xff]  ;;  %v11187_v25 = vcombine.low %v252_v12, %v256_v13  ;;  %v190_v12 = vld [vmem:[#allocation2 + $0x18] sm:$0xff] }
  0xda   :  { %v11194_v3 = vcombine.high %v259_v62, %v263_v63  ;;  %v267_v6 = vld [vmem:[#allocation2 + $0x280] sm:$0xff]  ;;  %v11193_v9 = vcombine.low %v259_v62, %v263_v63  ;;  %v11196_v27 = vcombine.high %v260_v20, %v264_v21  ;;  %v268_v29 = vld [vmem:[#allocation2 + $0x288] sm:$0xff]  ;;  %v197_v63 = vld [vmem:[#allocation2 + $0x50] sm:$0xff] }
  0xdb   :  { %1006 = vmatpush1.bf16.msra.mxu0 %v11153_v33  ;;  %v271_v7 = vld [vmem:[#allocation2 + $0x2a0] sm:$0xff]  ;;  %v272_v30 = vld [vmem:[#allocation2 + $0x2a8] sm:$0xff]  ;;  %v11195_v33 = vcombine.low %v260_v20, %v264_v21  ;;  %v194_v13 = vld [vmem:[#allocation2 + $0x38] sm:$0xff] }
  0xdc   :  { %1007 = vmatprep.subr.bf16.mxu0 %v11162_v35  ;;  %1047 = vmatpush1.bf16.msra.mxu1 %v11155_v56  ;;  %v11202_v11 = vcombine.high %v267_v6, %v271_v7  ;;  %v275_v14 = vld [vmem:[#allocation2 + $0x2c0] sm:$0xff]  ;;  %v11201_v17 = vcombine.low %v267_v6, %v271_v7  ;;  %v11204_v35 = vcombine.high %v268_v29, %v272_v30  ;;  %v276_v37 = vld [vmem:[#allocation2 + $0x2c8] sm:$0xff]  ;;  %v193_v56 = vld [vmem:[#allocation2 + $0x30] sm:$0xff] }
  0xdd   :  { %1048 = vmatprep.subr.bf16.mxu1 %v11164_v58  ;;  %v279_v15 = vld [vmem:[#allocation2 + $0x2e0] sm:$0xff]  ;;  %v280_v38 = vld [vmem:[#allocation2 + $0x2e8] sm:$0xff]  ;;  %v11125_v7 = vcombine.low %v189_v55, %v193_v56  ;;  %v198_v20 = vld [vmem:[#allocation2 + $0x58] sm:$0xff] }
  0xde   :  { %v11210_v19 = vcombine.high %v275_v14, %v279_v15  ;;  %v283_v22 = vld [vmem:[#allocation2 + $0x300] sm:$0xff]  ;;  %v11209_v26 = vcombine.low %v275_v14, %v279_v15  ;;  %v284_v45 = vld [vmem:[#allocation2 + $0x308] sm:$0xff]  ;;  %v202_v21 = vld [vmem:[#allocation2 + $0x78] sm:$0xff] }
  0xdf   :  { %1008 = vmatpush1.bf16.msra.mxu0 %v11161_v41  ;;  %v287_v24 = vld [vmem:[#allocation2 + $0x320] sm:$0xff]  ;;  %v11203_v41 = vcombine.low %v268_v29, %v272_v30  ;;  %v288_v46 = vld [vmem:[#allocation2 + $0x328] sm:$0xff]  ;;  %v206_v29 = vld [vmem:[#allocation2 + $0x98] sm:$0xff] }
  0xe0   :  { %1009 = vmatprep.subr.bf16.mxu0 %v11170_v43  ;;  %1049 = vmatpush1.bf16.msra.mxu1 %v11163_v0  ;;  %v11218_v28 = vcombine.high %v283_v22, %v287_v24  ;;  %v291_v31 = vld [vmem:[#allocation2 + $0x340] sm:$0xff]  ;;  %v11217_v34 = vcombine.low %v283_v22, %v287_v24  ;;  %v11212_v43 = vcombine.high %v276_v37, %v280_v38  ;;  %v292_v53 = vld [vmem:[#allocation2 + $0x348] sm:$0xff]  ;;  %v201_v0 = vld [vmem:[#allocation2 + $0x70] sm:$0xff] }
  0xe1   :  { %1050 = vmatprep.subr.bf16.mxu1 %v11172_v2  ;;  %v295_v32 = vld [vmem:[#allocation2 + $0x360] sm:$0xff]  ;;  %v296_v54 = vld [vmem:[#allocation2 + $0x368] sm:$0xff]  ;;  %v11219_v58 = vcombine.low %v284_v45, %v288_v46  ;;  %v11133_v15 = vcombine.low %v197_v63, %v201_v0  ;;  %v221_v24 = vld [vmem:[#allocation2 + $0x110] sm:$0xff] }
  0xe2   :  { %v11226_v36 = vcombine.high %v291_v31, %v295_v32  ;;  %v299_v39 = vld [vmem:[#allocation2 + $0x380] sm:$0xff]  ;;  %v11225_v42 = vcombine.low %v291_v31, %v295_v32  ;;  %v304_v60 = vld [vmem:[#allocation2 + $0x3a8] sm:$0xff]  ;;  %v11228_v62 = vcombine.high %v292_v53, %v296_v54  ;;  %v210_v30 = vld [vmem:[#allocation2 + $0xb8] sm:$0xff] }
  0xe3   :  { %1010 = vmatpush1.bf16.msra.mxu0 %v11169_v49  ;;  %v303_v40 = vld [vmem:[#allocation2 + $0x3a0] sm:$0xff]  ;;  %v11211_v49 = vcombine.low %v276_v37, %v280_v38  ;;  %v308_v4 = vld [vmem:[#allocation2 + $0x3c8] sm:$0xff]  ;;  %v229_v32 = vld [vmem:[#allocation2 + $0x150] sm:$0xff] }
  0xe4   :  { %1011 = vmatprep.subr.bf16.mxu0 %v11178_v51  ;;  %1051 = vmatpush1.bf16.msra.mxu1 %v11171_v8  ;;  %v11234_v44 = vcombine.high %v299_v39, %v303_v40  ;;  %v307_v47 = vld [vmem:[#allocation2 + $0x3c0] sm:$0xff]  ;;  %v11233_v50 = vcombine.low %v299_v39, %v303_v40  ;;  %v11220_v51 = vcombine.high %v284_v45, %v288_v46  ;;  %v312_v5 = vld [vmem:[#allocation2 + $0x3e8] sm:$0xff]  ;;  %v205_v8 = vld [vmem:[#allocation2 + $0x90] sm:$0xff] }
  0xe5   :  { %1052 = vmatprep.subr.bf16.mxu1 %v11180_v10  ;;  %v311_v48 = vld [vmem:[#allocation2 + $0x3e0] sm:$0xff]  ;;  %v11134_v10 = vcombine.high %v197_v63, %v201_v0  ;;  %v11244_v14 = vcombine.high %v308_v4, %v312_v5  ;;  %v214_v37 = vld [vmem:[#allocation2 + $0xd8] sm:$0xff]  ;;  %v237_v40 = vld [vmem:[#allocation2 + $0x190] sm:$0xff] }
  0xe6   :  { %v11242_v52 = vcombine.high %v307_v47, %v311_v48  ;;  %v11241_v61 = vcombine.low %v307_v47, %v311_v48  ;;  %v218_v38 = vld [vmem:[#allocation2 + $0xf8] sm:$0xff]  ;;  %v245_v48 = vld [vmem:[#allocation2 + $0x1d0] sm:$0xff] }
  0xe7   :  { %1012 = vmatpush1.bf16.msra.mxu0 %v11177_v57  ;;  %v183_v57 = vld [vmem:[%s14052_s0] sm:$0xff]  ;;  %v222_v45 = vld [vmem:[#allocation2 + $0x118] sm:$0xff] }
  0xe8   :  { %1013 = vmatprep.subr.bf16.mxu0 %v11186_v59  ;;  %1053 = vmatpush1.bf16.msra.mxu1 %v11179_v16  ;;  %v300_v59 = vld [vmem:[#allocation2 + $0x388] sm:$0xff]  ;;  %v13764_v2 = vpack.c.bf16 %v183_v57, %v183_v57  ;;  %v213_v16 = vld [vmem:[#allocation2 + $0xd0] sm:$0xff]  ;;  %v226_v46 = vld [vmem:[#allocation2 + $0x138] sm:$0xff] }
  0xe9   :  { %1054 = vmatprep.subr.bf16.mxu1 %v11188_v18  ;;  %v11236_v6 = vcombine.high %v300_v59, %v304_v60  ;;  %v11160_v57 = vcombine.high %v222_v45, %v226_v46  ;;  %v261_v63 = vld [vmem:[#allocation2 + $0x250] sm:$0xff] }
  0xea   :  { %v265_v0 = vld [vmem:[#allocation2 + $0x270] sm:$0xff] }
  0xeb   :  { %1014 = vmatpush1.bf16.msra.mxu0 %v11185_v1  ;;  %v11126_v1 = vcombine.high %v189_v55, %v193_v56  ;;  %v253_v55 = vld [vmem:[#allocation2 + $0x210] sm:$0xff] }
  0xec   :  { %1015 = vmatprep.subr.bf16.mxu0 %v11194_v3  ;;  %1055 = vmatpush1.bf16.msra.mxu1 %v11187_v25  ;;  %v11227_v3 = vcombine.low %v292_v53, %v296_v54  ;;  %v225_v25 = vld [vmem:[#allocation2 + $0x130] sm:$0xff]  ;;  %v234_v53 = vld [vmem:[#allocation2 + $0x178] sm:$0xff] }
  0xed   :  { %1056 = vmatprep.subr.bf16.mxu1 %v11196_v27  ;;  %v11157_v39 = vcombine.low %v221_v24, %v225_v25  ;;  %v257_v56 = vld [vmem:[#allocation2 + $0x230] sm:$0xff] }
  0xef   :  { %1016 = vmatpush1.bf16.msra.mxu0 %v11193_v9  ;;  %v209_v9 = vld [vmem:[#allocation2 + $0xb0] sm:$0xff] }
  0xf0   :  { %1017 = vmatprep.subr.bf16.mxu0 %v11202_v11  ;;  %1057 = vmatpush1.bf16.msra.mxu1 %v11195_v33  ;;  %v11235_v11 = vcombine.low %v300_v59, %v304_v60  ;;  %v11142_v18 = vcombine.high %v205_v8, %v209_v9  ;;  %v11141_v22 = vcombine.low %v205_v8, %v209_v9  ;;  %v233_v33 = vld [vmem:[#allocation2 + $0x170] sm:$0xff]  ;;  %v238_v60 = vld [vmem:[#allocation2 + $0x198] sm:$0xff] }
  0xf1   :  { %1058 = vmatprep.subr.bf16.mxu1 %v11204_v35  ;;  %v11158_v35 = vcombine.high %v221_v24, %v225_v25  ;;  %v11165_v47 = vcombine.low %v229_v32, %v233_v33  ;;  %v11159_v59 = vcombine.low %v222_v45, %v226_v46  ;;  %v269_v8 = vld [vmem:[#allocation2 + $0x290] sm:$0xff]  ;;  %v286_v46 = vld [vmem:[#allocation2 + $0x318] sm:$0xff] }
  0xf2   :  { %v273_v9 = vld [vmem:[#allocation2 + $0x2b0] sm:$0xff] }
  0xf3   :  { %1018 = vmatpush1.bf16.msra.mxu0 %v11201_v17  ;;  %v217_v17 = vld [vmem:[#allocation2 + $0xf0] sm:$0xff]  ;;  %v11205_v24 = vcombine.low %v269_v8, %v273_v9 }
  0xf4   :  { %1019 = vmatprep.subr.bf16.mxu0 %v11210_v19  ;;  %1059 = vmatpush1.bf16.msra.mxu1 %v11203_v41  ;;  %v11243_v19 = vcombine.low %v308_v4, %v312_v5  ;;  %v11150_v27 = vcombine.high %v213_v16, %v217_v17  ;;  %v11149_v31 = vcombine.low %v213_v16, %v217_v17  ;;  %v241_v41 = vld [vmem:[#allocation2 + $0x1b0] sm:$0xff]  ;;  %v246_v5 = vld [vmem:[#allocation2 + $0x1d8] sm:$0xff] }
  0xf5   :  { %1060 = vmatprep.subr.bf16.mxu1 %v11212_v43  ;;  %v11166_v43 = vcombine.high %v229_v32, %v233_v33  ;;  %v11173_v54 = vcombine.low %v237_v40, %v241_v41  ;;  %v277_v16 = vld [vmem:[#allocation2 + $0x2d0] sm:$0xff] }
  0xf6   :  { %v281_v17 = vld [vmem:[#allocation2 + $0x2f0] sm:$0xff] }
  0xf7   :  { %1020 = vmatpush1.bf16.msra.mxu0 %v11209_v26  ;;  %v11128_v26 = vcombine.high %v190_v12, %v194_v13  ;;  %v285_v25 = vld [vmem:[#allocation2 + $0x310] sm:$0xff]  ;;  %v11213_v32 = vcombine.low %v277_v16, %v281_v17 }
  0xf8   :  { %1021 = vmatprep.subr.bf16.mxu0 %v11218_v28  ;;  %1061 = vmatpush1.bf16.msra.mxu1 %v11211_v49  ;;  %v11127_v28 = vcombine.low %v190_v12, %v194_v13  ;;  %v249_v49 = vld [vmem:[#allocation2 + $0x1f0] sm:$0xff]  ;;  %v254_v13 = vld [vmem:[#allocation2 + $0x218] sm:$0xff] }
  0xf9   :  { %1062 = vmatprep.subr.bf16.mxu1 %v11220_v51  ;;  %v11151_v51 = vcombine.low %v214_v37, %v218_v38  ;;  %v293_v33 = vld [vmem:[#allocation2 + $0x350] sm:$0xff] }
  0xfb   :  { %1022 = vmatpush1.bf16.msra.mxu0 %v11217_v34  ;;  %v11136_v34 = vcombine.high %v198_v20, %v202_v21 }
  0xfc   :  { %1023 = vmatprep.subr.bf16.mxu0 %v11226_v36  ;;  %1063 = vmatpush1.bf16.msra.mxu1 %v11219_v58  ;;  %v11135_v36 = vcombine.low %v198_v20, %v202_v21  ;;  %v11182_v58 = vcombine.high %v245_v48, %v249_v49  ;;  %v262_v21 = vld [vmem:[#allocation2 + $0x258] sm:$0xff] }
  0xfd   :  { %1064 = vmatprep.subr.bf16.mxu1 %v11228_v62  ;;  %v11181_v62 = vcombine.low %v245_v48, %v249_v49  ;;  %v309_v49 = vld [vmem:[#allocation2 + $0x3d0] sm:$0xff] }
  0xff   :  { %1024 = vmatpush1.bf16.msra.mxu0 %v11225_v42  ;;  %v11144_v42 = vcombine.high %v206_v29, %v210_v30 }
 0x100   :  { %1025 = vmatprep.subr.bf16.mxu0 %v11234_v44  ;;  %1065 = vmatpush1.bf16.msra.mxu1 %v11227_v3  ;;  %v11143_v44 = vcombine.low %v206_v29, %v210_v30  ;;  %v11190_v3 = vcombine.high %v253_v55, %v257_v56  ;;  %v270_v30 = vld [vmem:[#allocation2 + $0x298] sm:$0xff] }
 0x101   :  { %1066 = vmatprep.subr.bf16.mxu1 %v11236_v6  ;;  %v250_v6 = vld [vmem:[#allocation2 + $0x1f8] sm:$0xff] }
 0x102   :  { %v11183_v20 = vcombine.low %v246_v5, %v250_v6 }
 0x103   :  { %1026 = vmatpush1.bf16.msra.mxu0 %v11233_v50  ;;  %v11152_v50 = vcombine.high %v214_v37, %v218_v38  ;;  %v278_v38 = vld [vmem:[#allocation2 + $0x2d8] sm:$0xff] }
 0x104   :  { %1027 = vmatprep.subr.bf16.mxu0 %v11242_v52  ;;  %1067 = vmatpush1.bf16.msra.mxu1 %v11235_v11  ;;  %v230_v52 = vld [vmem:[#allocation2 + $0x158] sm:$0xff]  ;;  %v11198_v11 = vcombine.high %v261_v63, %v265_v0 }
 0x105   :  { %1068 = vmatprep.subr.bf16.mxu1 %v11244_v14  ;;  %v11167_v4 = vcombine.low %v230_v52, %v234_v53  ;;  %v258_v14 = vld [vmem:[#allocation2 + $0x238] sm:$0xff] }
 0x106   :  { %v11191_v29 = vcombine.low %v254_v13, %v258_v14 }
 0x107   :  { %1028 = vmatpush1.bf16.msra.mxu0 %v11241_v61  ;;  %v242_v61 = vld [vmem:[#allocation2 + $0x1b8] sm:$0xff] }
 0x108   :  { %1079 = vmatprep.subr.bf16.mxu0 %v11126_v1  ;;  %1069 = vmatpush1.bf16.msra.mxu1 %v11243_v19  ;;  %v11168_v1 = vcombine.high %v230_v52, %v234_v53  ;;  %v11175_v12 = vcombine.low %v238_v60, %v242_v61  ;;  %v11206_v19 = vcombine.high %v269_v8, %v273_v9  ;;  %v294_v53 = vld [vmem:[#allocation2 + $0x358] sm:$0xff] }
 0x109   :  { %1120 = vmatprep.subr.bf16.mxu1 %v11128_v26  ;;  %v289_v26 = vld [vmem:[#allocation2 + $0x330] sm:$0xff] }
 0x10a   :  { %1030 = vmatmul.mubr.bf16.vlgmr.msra.gmra.mrb[0].mxu0 %v13764_v2 }
 0x10b   :  { %1080 = vmatpush1.bf16.msra.mxu0 %v11125_v7  ;;  %1111 = vmatprep.mubr.bf16.mxu0 %v13757_v23  ;;  %v11189_v7 = vcombine.low %v253_v55, %v257_v56 }
 0x10c   :  { %1081 = vmatprep.subr.bf16.mxu0 %v11134_v10  ;;  %1071 = vmatmul.mubr.bf16.vlgmr.msra.gmra.mrb[0].mxu1 %v13764_v2  ;;  %v11176_v10 = vcombine.high %v238_v60, %v242_v61  ;;  %v302_v61 = vld [vmem:[#allocation2 + $0x398] sm:$0xff] }
 0x10d   :  { %1121 = vmatpush1.bf16.msra.mxu1 %v11127_v28  ;;  %1152 = vmatprep.mubr.bf16.mxu1 %v13757_v23  ;;  %v11174_v23 = vcombine.high %v237_v40, %v241_v41  ;;  %v11214_v28 = vcombine.high %v277_v16, %v281_v17  ;;  %v11221_v40 = vcombine.low %v285_v25, %v289_v26  ;;  %v301_v41 = vld [vmem:[#allocation2 + $0x390] sm:$0xff] }
 0x10e   :  { %1122 = vmatprep.subr.bf16.mxu1 %v11136_v34  ;;  %v297_v34 = vld [vmem:[#allocation2 + $0x370] sm:$0xff] }
 0x10f   :  { %1082 = vmatpush1.bf16.msra.mxu0 %v11133_v15  ;;  %v11197_v15 = vcombine.low %v261_v63, %v265_v0  ;;  %v11229_v48 = vcombine.low %v293_v33, %v297_v34 }
 0x110   :  { %1083 = vmatprep.subr.bf16.mxu0 %v11142_v18  ;;  %v11184_v18 = vcombine.high %v246_v5, %v250_v6  ;;  %v310_v6 = vld [vmem:[#allocation2 + $0x3d8] sm:$0xff] }
 0x111   :  { %1123 = vmatpush1.bf16.msra.mxu1 %v11135_v36  ;;  %v11222_v36 = vcombine.high %v285_v25, %v289_v26 }
 0x112   :  { %1124 = vmatprep.subr.bf16.mxu1 %v11144_v42  ;;  %v305_v42 = vld [vmem:[#allocation2 + $0x3b0] sm:$0xff] }
 0x113   :  { %1084 = vmatpush1.bf16.msra.mxu0 %v11141_v22  ;;  %v266_v22 = vld [vmem:[#allocation2 + $0x278] sm:$0xff]  ;;  %v11237_v55 = vcombine.low %v301_v41, %v305_v42 }
 0x114   :  { %1085 = vmatprep.subr.bf16.mxu0 %v11150_v27  ;;  %v11192_v27 = vcombine.high %v254_v13, %v258_v14  ;;  %v11199_v37 = vcombine.low %v262_v21, %v266_v22  ;;  %v1178_v14 = vld [vmem:[#allocation7 + $0x8] sm:$0xff] }
 0x115   :  { %1125 = vmatpush1.bf16.msra.mxu1 %v11143_v44  ;;  %v11230_v44 = vcombine.high %v293_v33, %v297_v34 }
 0x116   :  { %1126 = vmatprep.subr.bf16.mxu1 %v11152_v50  ;;  %v313_v50 = vld [vmem:[#allocation2 + $0x3f0] sm:$0xff] }
 0x117   :  { %1086 = vmatpush1.bf16.msra.mxu0 %v11149_v31  ;;  %v274_v31 = vld [vmem:[#allocation2 + $0x2b8] sm:$0xff]  ;;  %v11245_v63 = vcombine.low %v309_v49, %v313_v50 }
 0x118   :  { %1087 = vmatprep.subr.bf16.mxu0 %v11158_v35  ;;  %v11200_v35 = vcombine.high %v262_v21, %v266_v22  ;;  %v11207_v45 = vcombine.low %v270_v30, %v274_v31  ;;  %v1186_v22 = vld [vmem:[#allocation7 + $0x48] sm:$0xff] }
 0x119   :  { %1127 = vmatpush1.bf16.msra.mxu1 %v11151_v51  ;;  %v11238_v51 = vcombine.high %v301_v41, %v305_v42 }
 0x11a   :  { %1128 = vmatprep.subr.bf16.mxu1 %v11160_v57  ;;  %v1177_v57 = vld [vmem:[#allocation7] sm:$0xff] }
 0x11b   :  { %1088 = vmatpush1.bf16.msra.mxu0 %v11157_v39  ;;  %v282_v39 = vld [vmem:[#allocation2 + $0x2f8] sm:$0xff] }
 0x11c   :  { %1089 = vmatprep.subr.bf16.mxu0 %v11166_v43  ;;  %v11208_v43 = vcombine.high %v270_v30, %v274_v31  ;;  %v11215_v52 = vcombine.low %v278_v38, %v282_v39  ;;  %v1194_v31 = vld [vmem:[#allocation7 + $0x88] sm:$0xff] }
 0x11d   :  { %1129 = vmatpush1.bf16.msra.mxu1 %v11159_v59  ;;  %v11246_v59 = vcombine.high %v309_v49, %v313_v50  ;;  %v1233_v50 = vld [vmem:[#allocation7 + $0x1c0] sm:$0xff] }
 0x11e   :  { %1130 = vmatprep.subr.bf16.mxu1 %v11168_v1  ;;  %v1185_v1 = vld [vmem:[#allocation7 + $0x40] sm:$0xff] }
 0x11f   :  { %1090 = vmatpush1.bf16.msra.mxu0 %v11165_v47  ;;  %v290_v47 = vld [vmem:[#allocation2 + $0x338] sm:$0xff] }
 0x120   :  { %1091 = vmatprep.subr.bf16.mxu0 %v11174_v23  ;;  %v11216_v23 = vcombine.high %v278_v38, %v282_v39  ;;  %v11224_v56 = vcombine.high %v286_v46, %v290_v47  ;;  %v11223_v60 = vcombine.low %v286_v46, %v290_v47  ;;  %v1202_v39 = vld [vmem:[#allocation7 + $0xc8] sm:$0xff] }
 0x121   :  { %1131 = vmatpush1.bf16.msra.mxu1 %v11167_v4  ;;  %v1210_v47 = vld [vmem:[#allocation7 + $0x108] sm:$0xff] }
 0x122   :  { %1132 = vmatprep.subr.bf16.mxu1 %v11176_v10  ;;  %v1193_v10 = vld [vmem:[#allocation7 + $0x80] sm:$0xff] }
 0x123   :  { %1092 = vmatpush1.bf16.msra.mxu0 %v11173_v54  ;;  %v298_v54 = vld [vmem:[#allocation2 + $0x378] sm:$0xff] }
 0x124   :  { %1093 = vmatprep.subr.bf16.mxu0 %v11182_v58  ;;  %v1181_v58 = vld [vmem:[#allocation7 + $0x20] sm:$0xff]  ;;  %v11232_v0 = vcombine.high %v294_v53, %v298_v54  ;;  %v11231_v5 = vcombine.low %v294_v53, %v298_v54  ;;  %v1218_v53 = vld [vmem:[#allocation7 + $0x148] sm:$0xff] }
 0x125   :  { %1133 = vmatpush1.bf16.msra.mxu1 %v11175_v12  ;;  %v11250_v4 = vcombine.high %v1177_v57, %v1181_v58  ;;  %v11249_v9 = vcombine.low %v1177_v57, %v1181_v58  ;;  %v1222_v54 = vld [vmem:[#allocation7 + $0x168] sm:$0xff]  ;;  %v1241_v57 = vld [vmem:[#allocation7 + $0x200] sm:$0xff] }
 0x126   :  { %1134 = vmatprep.subr.bf16.mxu1 %v11184_v18  ;;  %v1201_v18 = vld [vmem:[#allocation7 + $0xc0] sm:$0xff] }
 0x127   :  { %1094 = vmatpush1.bf16.msra.mxu0 %v11181_v62  ;;  %v306_v62 = vld [vmem:[#allocation2 + $0x3b8] sm:$0xff]  ;;  %v1245_v58 = vld [vmem:[#allocation7 + $0x220] sm:$0xff] }
 0x128   :  { %1095 = vmatprep.subr.bf16.mxu0 %v11190_v3  ;;  %v1189_v3 = vld [vmem:[#allocation7 + $0x60] sm:$0xff]  ;;  %v11240_v8 = vcombine.high %v302_v61, %v306_v62  ;;  %v11239_v13 = vcombine.low %v302_v61, %v306_v62  ;;  %v1226_v61 = vld [vmem:[#allocation7 + $0x188] sm:$0xff] }
 0x129   :  { %1135 = vmatpush1.bf16.msra.mxu1 %v11183_v20  ;;  %v11258_v12 = vcombine.high %v1185_v1, %v1189_v3  ;;  %v11257_v17 = vcombine.low %v1185_v1, %v1189_v3  ;;  %v1230_v62 = vld [vmem:[#allocation7 + $0x1a8] sm:$0xff]  ;;  %v11292_v3 = vcombine.high %v1218_v53, %v1222_v54 }
 0x12a   :  { %1136 = vmatprep.subr.bf16.mxu1 %v11192_v27  ;;  %v1209_v27 = vld [vmem:[#allocation7 + $0x100] sm:$0xff]  ;;  %v13776_v1 = vld [vmem:[#allocation7 + $0x408] sm:$0xff] }
 0x12b   :  { %1096 = vmatpush1.bf16.msra.mxu0 %v11189_v7  ;;  %v314_v7 = vld [vmem:[#allocation2 + $0x3f8] sm:$0xff] }
 0x12c   :  { %1097 = vmatprep.subr.bf16.mxu0 %v11198_v11  ;;  %v1197_v11 = vld [vmem:[#allocation7 + $0xa0] sm:$0xff]  ;;  %v11248_v16 = vcombine.high %v310_v6, %v314_v7  ;;  %v11247_v21 = vcombine.low %v310_v6, %v314_v7  ;;  %v13778_v7 = vld [vmem:[#allocation7 + $0x428] sm:$0xff] }
 0x12d   :  { %1137 = vmatpush1.bf16.msra.mxu1 %v11191_v29  ;;  %v11266_v20 = vcombine.high %v1193_v10, %v1197_v11  ;;  %v11265_v26 = vcombine.low %v1193_v10, %v1197_v11  ;;  %v1253_v6 = vld [vmem:[#allocation7 + $0x260] sm:$0xff]  ;;  %v11379_v10 = vcombine.low %v13776_v1, %v13778_v7  ;;  %v11291_v11 = vcombine.low %v1218_v53, %v1222_v54  ;;  %v1278_v53 = vld [vmem:[#allocation7 + $0x328] sm:$0xff] }
 0x12e   :  { %1138 = vmatprep.subr.bf16.mxu1 %v11200_v35  ;;  %v1217_v35 = vld [vmem:[#allocation7 + $0x140] sm:$0xff] }
 0x12f   :  { %1098 = vmatpush1.bf16.msra.mxu0 %v11197_v15  ;;  %v1182_v15 = vld [vmem:[#allocation7 + $0x28] sm:$0xff] }
 0x130   :  { %1099 = vmatprep.subr.bf16.mxu0 %v11206_v19  ;;  %v1205_v19 = vld [vmem:[#allocation7 + $0xe0] sm:$0xff]  ;;  %v11252_v25 = vcombine.high %v1178_v14, %v1182_v15  ;;  %v11251_v30 = vcombine.low %v1178_v14, %v1182_v15  ;;  %v1238_v14 = vld [vmem:[#allocation7 + $0x1e8] sm:$0xff]  ;;  %v11313_v15 = vcombine.low %v1241_v57, %v1245_v58 }
 0x131   :  { %1139 = vmatpush1.bf16.msra.mxu1 %v11199_v37  ;;  %v11274_v29 = vcombine.high %v1201_v18, %v1205_v19  ;;  %v11273_v34 = vcombine.low %v1201_v18, %v1205_v19  ;;  %v1261_v18 = vld [vmem:[#allocation7 + $0x2a0] sm:$0xff]  ;;  %v11299_v19 = vcombine.low %v1226_v61, %v1230_v62 }
 0x132   :  { %1140 = vmatprep.subr.bf16.mxu1 %v11208_v43  ;;  %v1225_v43 = vld [vmem:[#allocation7 + $0x180] sm:$0xff] }
 0x133   :  { %1100 = vmatpush1.bf16.msra.mxu0 %v11205_v24  ;;  %v1190_v24 = vld [vmem:[#allocation7 + $0x68] sm:$0xff] }
 0x134   :  { %1101 = vmatprep.subr.bf16.mxu0 %v11214_v28  ;;  %v1213_v28 = vld [vmem:[#allocation7 + $0x120] sm:$0xff]  ;;  %v11260_v33 = vcombine.high %v1186_v22, %v1190_v24  ;;  %v11259_v38 = vcombine.low %v1186_v22, %v1190_v24  ;;  %v1246_v22 = vld [vmem:[#allocation7 + $0x228] sm:$0xff] }
 0x135   :  { %1141 = vmatpush1.bf16.msra.mxu1 %v11207_v45  ;;  %v11282_v37 = vcombine.high %v1209_v27, %v1213_v28  ;;  %v11281_v42 = vcombine.low %v1209_v27, %v1213_v28  ;;  %v1269_v27 = vld [vmem:[#allocation7 + $0x2e0] sm:$0xff] }
 0x136   :  { %1142 = vmatprep.subr.bf16.mxu1 %v11216_v23  ;;  %v1237_v23 = vld [vmem:[#allocation7 + $0x1e0] sm:$0xff] }
 0x137   :  { %1102 = vmatpush1.bf16.msra.mxu0 %v11213_v32  ;;  %v1198_v32 = vld [vmem:[#allocation7 + $0xa8] sm:$0xff] }
 0x138   :  { %1103 = vmatprep.subr.bf16.mxu0 %v11222_v36  ;;  %v1221_v36 = vld [vmem:[#allocation7 + $0x160] sm:$0xff]  ;;  %v11268_v41 = vcombine.high %v1194_v31, %v1198_v32  ;;  %v11267_v46 = vcombine.low %v1194_v31, %v1198_v32  ;;  %v1254_v31 = vld [vmem:[#allocation7 + $0x268] sm:$0xff] }
 0x139   :  { %1143 = vmatpush1.bf16.msra.mxu1 %v11215_v52  ;;  %v11290_v45 = vcombine.high %v1217_v35, %v1221_v36 }
 0x13a   :  { %1144 = vmatprep.subr.bf16.mxu1 %v11224_v56 }
 0x13b   :  { %1104 = vmatpush1.bf16.msra.mxu0 %v11221_v40  ;;  %v1206_v40 = vld [vmem:[#allocation7 + $0xe8] sm:$0xff] }
 0x13c   :  { %1105 = vmatprep.subr.bf16.mxu0 %v11230_v44  ;;  %v1229_v44 = vld [vmem:[#allocation7 + $0x1a0] sm:$0xff]  ;;  %v11276_v49 = vcombine.high %v1202_v39, %v1206_v40  ;;  %v11275_v52 = vcombine.low %v1202_v39, %v1206_v40  ;;  %v1262_v39 = vld [vmem:[#allocation7 + $0x2a8] sm:$0xff] }
 0x13d   :  { %1145 = vmatpush1.bf16.msra.mxu1 %v11223_v60  ;;  %v11297_v56 = vcombine.low %v1225_v43, %v1229_v44 }
 0x13e   :  { %1146 = vmatprep.subr.bf16.mxu1 %v11232_v0  ;;  %v13774_v0 = vld [vmem:[#allocation7 + $0x420] sm:$0xff] }
 0x13f   :  { %1106 = vmatpush1.bf16.msra.mxu0 %v11229_v48  ;;  %v1214_v48 = vld [vmem:[#allocation7 + $0x128] sm:$0xff] }
 0x140   :  { %1107 = vmatprep.subr.bf16.mxu0 %v11238_v51  ;;  %v11298_v51 = vcombine.high %v1225_v43, %v1229_v44  ;;  %v11283_v60 = vcombine.low %v1210_v47, %v1214_v48  ;;  %v1285_v43 = vld [vmem:[#allocation7 + $0x360] sm:$0xff] }
 0x141   :  { %1147 = vmatpush1.bf16.msra.mxu1 %v11231_v5  ;;  %v1249_v5 = vld [vmem:[#allocation7 + $0x240] sm:$0xff] }
 0x142   :  { %1148 = vmatprep.subr.bf16.mxu1 %v11240_v8  ;;  %v11314_v8 = vcombine.high %v1241_v57, %v1245_v58  ;;  %v11321_v24 = vcombine.low %v1249_v5, %v1253_v6  ;;  %v1301_v57 = vld [vmem:[#allocation7 + $0x3e0] sm:$0xff] }
 0x143   :  { %1108 = vmatpush1.bf16.msra.mxu0 %v11237_v55  ;;  %v11284_v55 = vcombine.high %v1210_v47, %v1214_v48  ;;  %v1270_v47 = vld [vmem:[#allocation7 + $0x2e8] sm:$0xff] }
 0x144   :  { %1109 = vmatprep.subr.bf16.mxu0 %v11246_v59  ;;  %v11306_v59 = vcombine.high %v1233_v50, %v1237_v23 }
 0x145   :  { %1149 = vmatpush1.bf16.msra.mxu1 %v11239_v13  ;;  %v1234_v13 = vld [vmem:[#allocation7 + $0x1c8] sm:$0xff] }
 0x146   :  { %1150 = vmatprep.subr.bf16.mxu1 %v11248_v16  ;;  %v1257_v16 = vld [vmem:[#allocation7 + $0x280] sm:$0xff]  ;;  %v11307_v28 = vcombine.low %v1234_v13, %v1238_v14 }
 0x147   :  { %1110 = vmatpush1.bf16.msra.mxu0 %v11245_v63  ;;  %v13772_v63 = vld [vmem:[#allocation7 + $0x400] sm:$0xff]  ;;  %v11329_v32 = vcombine.low %v1257_v16, %v1261_v18 }
 0x148   :  { %4291 = vmatprep.subr.bf16.mxu0 %v11250_v4  ;;  %v11305_v4 = vcombine.low %v1233_v50, %v1237_v23  ;;  %v1293_v50 = vld [vmem:[#allocation7 + $0x3a0] sm:$0xff] }
 0x149   :  { %1151 = vmatpush1.bf16.msra.mxu1 %v11247_v21  ;;  %v1242_v21 = vld [vmem:[#allocation7 + $0x208] sm:$0xff] }
 0x14a   :  { %1112 = vmatmul.mubr.bf16.vlgmr.msra.gmra.mrb[4].mxu0 %v13764_v2  ;;  %4455 = vmatprep.subr.bf16.mxu1 %v11252_v25  ;;  %v1265_v25 = vld [vmem:[#allocation7 + $0x2c0] sm:$0xff] }
 0x14b   :  { %4292 = vmatpush1.bf16.msra.mxu0 %v11249_v9  ;;  %v11377_v9 = vcombine.low %v13772_v63, %v13774_v0  ;;  %v11337_v40 = vcombine.low %v1265_v25, %v1269_v27 }
 0x14c   :  { %4293 = vmatprep.subr.bf16.mxu0 %v11258_v12  ;;  %1153 = vmatmul.mubr.bf16.vlgmr.msra.gmra.mrb[4].mxu1 %v13764_v2  ;;  %v11289_v2 = vcombine.low %v1217_v35, %v1221_v36  ;;  %v11300_v12 = vcombine.high %v1226_v61, %v1230_v62  ;;  %v1277_v35 = vld [vmem:[#allocation7 + $0x320] sm:$0xff]  ;;  %v11315_v36 = vcombine.low %v1242_v21, %v1246_v22  ;;  %v1286_v62 = vld [vmem:[#allocation7 + $0x368] sm:$0xff] }
 0x14d   :  { %4456 = vmatpush1.bf16.msra.mxu1 %v11251_v30  ;;  %v1250_v30 = vld [vmem:[#allocation7 + $0x248] sm:$0xff] }
 0x14e   :  { %4457 = vmatprep.subr.bf16.mxu1 %v11260_v33  ;;  %v1273_v33 = vld [vmem:[#allocation7 + $0x300] sm:$0xff]  ;;  %v11323_v44 = vcombine.low %v1250_v30, %v1254_v31 }
 0x14f   :  { %4294 = vmatpush1.bf16.msra.mxu0 %v11257_v17  ;;  %v11322_v17 = vcombine.high %v1249_v5, %v1253_v6  ;;  %v11345_v48 = vcombine.low %v1273_v33, %v1277_v35 }
 0x150   :  { %4295 = vmatprep.subr.bf16.mxu0 %v11266_v20  ;;  %v11308_v20 = vcombine.high %v1234_v13, %v1238_v14 }
 0x151   :  { %4458 = vmatpush1.bf16.msra.mxu1 %v11259_v38  ;;  %v1258_v38 = vld [vmem:[#allocation7 + $0x288] sm:$0xff] }
 0x152   :  { %4459 = vmatprep.subr.bf16.mxu1 %v11268_v41  ;;  %v1281_v41 = vld [vmem:[#allocation7 + $0x340] sm:$0xff]  ;;  %v11331_v23 = vcombine.low %v1258_v38, %v1262_v39 }
 0x153   :  { %4296 = vmatpush1.bf16.msra.mxu0 %v11265_v26  ;;  %v11330_v26 = vcombine.high %v1257_v16, %v1261_v18  ;;  %v11353_v54 = vcombine.low %v1281_v41, %v1285_v43  ;;  %v1302_v16 = vld [vmem:[#allocation7 + $0x3e8] sm:$0xff] }
 0x154   :  { %4297 = vmatprep.subr.bf16.mxu0 %v11274_v29  ;;  %v11316_v29 = vcombine.high %v1242_v21, %v1246_v22  ;;  %v317_v21 = vlaneseq }
 0x155   :  { %4460 = vmatpush1.bf16.msra.mxu1 %v11267_v46  ;;  %v1266_v46 = vld [vmem:[#allocation7 + $0x2c8] sm:$0xff] }
 0x156   :  { %4461 = vmatprep.subr.bf16.mxu1 %v11276_v49  ;;  %v1289_v49 = vld [vmem:[#allocation7 + $0x380] sm:$0xff]  ;;  %v11339_v58 = vcombine.low %v1266_v46, %v1270_v47  ;;  %v13788_v22 = vshrl.u32 %v317_v21, 7 }
 0x157   :  { %4298 = vmatpush1.bf16.msra.mxu0 %v11273_v34  ;;  %v11338_v34 = vcombine.high %v1265_v25, %v1269_v27  ;;  %v11361_v61 = vcombine.low %v1289_v49, %v1293_v50  ;;  %v13793_v25 = vld [vmem:[#allocation5] sm:$0xff]  ;;  %v1353_v21 = vld [vmem:[#allocation7 + $0x580] sm:$0xff] }
 0x158   :  { %4299 = vmatprep.subr.bf16.mxu0 %v11282_v37  ;;  %v11324_v37 = vcombine.high %v1250_v30, %v1254_v31 }
 0x159   :  { %4462 = vmatpush1.bf16.msra.mxu1 %v11275_v52  ;;  %v1274_v52 = vld [vmem:[#allocation7 + $0x308] sm:$0xff] }
 0x15a   :  { %4463 = vmatprep.subr.bf16.mxu1 %v11284_v55  ;;  %v1297_v55 = vld [vmem:[#allocation7 + $0x3c0] sm:$0xff] }
 0x15b   :  { %4300 = vmatpush1.bf16.msra.mxu0 %v11281_v42  ;;  %v11346_v42 = vcombine.high %v1273_v33, %v1277_v35  ;;  %v11369_v6 = vcombine.low %v1297_v55, %v1301_v57 }
 0x15c   :  { %4301 = vmatprep.subr.bf16.mxu0 %v11290_v45  ;;  %v11332_v45 = vcombine.high %v1258_v38, %v1262_v39  ;;  %v1317_v38 = vld [vmem:[#allocation7 + $0x460] sm:$0xff]  ;;  %v1314_v39 = vld [vmem:[#allocation7 + $0x448] sm:$0xff] }
 0x15d   :  { %4464 = vmatpush1.bf16.msra.mxu1 %v11283_v60  ;;  %v1282_v60 = vld [vmem:[#allocation7 + $0x348] sm:$0xff] }
 0x15e   :  { %4465 = vmatprep.subr.bf16.mxu1 %v11292_v3  ;;  %v11370_v3 = vcombine.high %v1297_v55, %v1301_v57  ;;  %v11356_v5 = vcombine.high %v1282_v60, %v1286_v62  ;;  %v11355_v13 = vcombine.low %v1282_v60, %v1286_v62  ;;  %v1333_v55 = vld [vmem:[#allocation7 + $0x4e0] sm:$0xff]  ;;  %v1334_v57 = vld [vmem:[#allocation7 + $0x4e8] sm:$0xff] }
 0x15f   :  { %4302 = vmatpush1.bf16.msra.mxu0 %v11289_v2  ;;  %v11354_v2 = vcombine.high %v1281_v41, %v1285_v43  ;;  %v13803_v41 = vsub.s32 3, %v13788_v22  ;;  %v1337_v60 = vld [vmem:[#allocation7 + $0x500] sm:$0xff] }
 0x160   :  { %4303 = vmatprep.subr.bf16.mxu0 %v11298_v51  ;;  %v11340_v51 = vcombine.high %v1266_v46, %v1270_v47  ;;  %v1321_v46 = vld [vmem:[#allocation7 + $0x480] sm:$0xff] }
 0x161   :  { %4466 = vmatpush1.bf16.msra.mxu1 %v11291_v11  ;;  %v1294_v11 = vld [vmem:[#allocation7 + $0x3a8] sm:$0xff]  ;;  %v1325_v47 = vld [vmem:[#allocation7 + $0x4a0] sm:$0xff] }
 0x162   :  { %4467 = vmatprep.subr.bf16.mxu1 %v11300_v12  ;;  %v11378_v12 = vcombine.high %v13772_v63, %v13774_v0  ;;  %v11393_v0 = vcombine.low %v1321_v46, %v1325_v47  ;;  %v1341_v62 = vld [vmem:[#allocation7 + $0x520] sm:$0xff] }
 0x163   :  { %4304 = vmatpush1.bf16.msra.mxu0 %v11297_v56  ;;  %v11362_v56 = vcombine.high %v1289_v49, %v1293_v50  ;;  %v1326_v49 = vld [vmem:[#allocation7 + $0x4a8] sm:$0xff] }
 0x164   :  { %4305 = vmatprep.subr.bf16.mxu0 %v11306_v59  ;;  %v11348_v59 = vcombine.high %v1274_v52, %v1278_v53 }
 0x165   :  { %4468 = vmatpush1.bf16.msra.mxu1 %v11299_v19 }
 0x166   :  { %4469 = vmatprep.subr.bf16.mxu1 %v11308_v20  ;;  %v11380_v20 = vcombine.high %v13776_v1, %v13778_v7 }
 0x167   :  { %4306 = vmatpush1.bf16.msra.mxu0 %v11305_v4  ;;  %v11347_v4 = vcombine.low %v1274_v52, %v1278_v53  ;;  %v1329_v53 = vld [vmem:[#allocation7 + $0x4c0] sm:$0xff] }
 0x168   :  { %4307 = vmatprep.subr.bf16.mxu0 %v11314_v8  ;;  %v1290_v8 = vld [vmem:[#allocation7 + $0x388] sm:$0xff] }
 0x169   :  { %4470 = vmatpush1.bf16.msra.mxu1 %v11307_v28  ;;  %v11364_v14 = vcombine.high %v1290_v8, %v1294_v11 }
 0x16a   :  { %4471 = vmatprep.subr.bf16.mxu1 %v11316_v29 }
 0x16b   :  { %4308 = vmatpush1.bf16.msra.mxu0 %v11313_v15  ;;  %v1298_v15 = vld [vmem:[#allocation7 + $0x3c8] sm:$0xff] }
 0x16c   :  { %4309 = vmatprep.subr.bf16.mxu0 %v11322_v17  ;;  %v11363_v17 = vcombine.low %v1290_v8, %v1294_v11  ;;  %v11372_v18 = vcombine.high %v1298_v15, %v1302_v16  ;;  %v11371_v19 = vcombine.low %v1298_v15, %v1302_v16  ;;  %v11410_v11 = vcombine.high %v1337_v60, %v1341_v62  ;;  %v1346_v15 = vld [vmem:[#allocation7 + $0x548] sm:$0xff] }
 0x16d   :  { %4472 = vmatpush1.bf16.msra.mxu1 %v11315_v36  ;;  %v1313_v36 = vld [vmem:[#allocation7 + $0x440] sm:$0xff]  ;;  %v1350_v16 = vld [vmem:[#allocation7 + $0x568] sm:$0xff] }
 0x16e   :  { %4473 = vmatprep.subr.bf16.mxu1 %v11324_v37  ;;  %v11385_v50 = vcombine.low %v1313_v36, %v1317_v38 }
 0x16f   :  { %4310 = vmatpush1.bf16.msra.mxu0 %v11321_v24  ;;  %v13791_v24 = vsub.s32 0, %v13788_v22 }
 0x170   :  { %4311 = vmatprep.subr.bf16.mxu0 %v11330_v26  ;;  %v13796_v26 = vsub.s32 1, %v13788_v22 }
 0x171   :  { %4474 = vmatpush1.bf16.msra.mxu1 %v11323_v44  ;;  %v320_v27 = vrot.slane %v13793_v25, %v13791_v24  ;;  %v11386_v44 = vcombine.high %v1313_v36, %v1317_v38  ;;  %v1362_v36 = vld [vmem:[#allocation7 + $0x5c8] sm:$0xff] }
 0x172   :  { %4475 = vmatprep.subr.bf16.mxu1 %v11332_v45  ;;  %v324_v28 = vrot.slane %v13793_v25, %v13796_v26 }
 0x173   :  { %4312 = vmatpush1.bf16.msra.mxu0 %v11329_v32 }
 0x174   :  { %4313 = vmatprep.subr.bf16.mxu0 %v11338_v34 }
 0x175   :  { %4476 = vmatpush1.bf16.msra.mxu1 %v11331_v23 }
 0x176   :  { %4477 = vmatprep.subr.bf16.mxu1 %v11340_v51  ;;  %v11394_v51 = vcombine.high %v1321_v46, %v1325_v47  ;;  %v1373_v46 = vld [vmem:[#allocation7 + $0x620] sm:$0xff]  ;;  %v1370_v47 = vld [vmem:[#allocation7 + $0x608] sm:$0xff] }
 0x177   :  { %4314 = vmatpush1.bf16.msra.mxu0 %v11337_v40  ;;  %v1318_v40 = vld [vmem:[#allocation7 + $0x468] sm:$0xff] }
 0x178   :  { %4315 = vmatprep.subr.bf16.mxu0 %v11346_v42  ;;  %v11388_v45 = vcombine.high %v1314_v39, %v1318_v40  ;;  %v11387_v23 = vcombine.low %v1314_v39, %v1318_v40 }
 0x179   :  { %4478 = vmatpush1.bf16.msra.mxu1 %v11339_v58 }
 0x17a   :  { %4479 = vmatprep.subr.bf16.mxu1 %v11348_v59 }
 0x17b   :  { %4316 = vmatpush1.bf16.msra.mxu0 %v11345_v48  ;;  %v1322_v48 = vld [vmem:[#allocation7 + $0x488] sm:$0xff] }
 0x17c   :  { %4317 = vmatprep.subr.bf16.mxu0 %v11354_v2  ;;  %v332_v2 = vrot.slane %v13793_v25, %v13803_v41  ;;  %v11396_v52 = vcombine.high %v1322_v48, %v1326_v49  ;;  %v11395_v1 = vcombine.low %v1322_v48, %v1326_v49  ;;  %v1374_v48 = vld [vmem:[#allocation7 + $0x628] sm:$0xff] }
 0x17d   :  { %4480 = vmatpush1.bf16.msra.mxu1 %v11347_v4  ;;  %v1342_v4 = vld [vmem:[#allocation7 + $0x528] sm:$0xff] }
 0x17e   :  { %4481 = vmatprep.subr.bf16.mxu1 %v11356_v5 }
 0x17f   :  { %4318 = vmatpush1.bf16.msra.mxu0 %v11353_v54 }
 0x180   :  { %4319 = vmatprep.subr.bf16.mxu0 %v11362_v56  ;;  %v1330_v56 = vld [vmem:[#allocation7 + $0x4c8] sm:$0xff] }
 0x181   :  { %4482 = vmatpush1.bf16.msra.mxu1 %v11355_v13  ;;  %v11403_v8 = vcombine.low %v1330_v56, %v1334_v57  ;;  %v1345_v13 = vld [vmem:[#allocation7 + $0x540] sm:$0xff] }
 0x182   :  { %4483 = vmatprep.subr.bf16.mxu1 %v11364_v14  ;;  %v1349_v14 = vld [vmem:[#allocation7 + $0x560] sm:$0xff] }
 0x183   :  { %4320 = vmatpush1.bf16.msra.mxu0 %v11361_v61 }
 0x184   :  { %4321 = vmatprep.subr.bf16.mxu0 %v11370_v3  ;;  %v1338_v3 = vld [vmem:[#allocation7 + $0x508] sm:$0xff] }
 0x185   :  { %4484 = vmatpush1.bf16.msra.mxu1 %v11363_v17  ;;  %v11409_v17 = vcombine.low %v1337_v60, %v1341_v62  ;;  %v1393_v62 = vld [vmem:[#allocation7 + $0x6c0] sm:$0xff] }
 0x186   :  { %4485 = vmatprep.subr.bf16.mxu1 %v11372_v18  ;;  %v11411_v18 = vcombine.low %v1338_v3, %v1342_v4 }
 0x187   :  { %4322 = vmatpush1.bf16.msra.mxu0 %v11369_v6  ;;  %v11401_v6 = vcombine.low %v1329_v53, %v1333_v55 }
 0x188   :  { %4332 = vmatprep.subr.bf16.mxu0 %v11378_v12  ;;  %v11412_v12 = vcombine.high %v1338_v3, %v1342_v4  ;;  %v1397_v3 = vld [vmem:[#allocation7 + $0x6e0] sm:$0xff]  ;;  %v1394_v4 = vld [vmem:[#allocation7 + $0x6c8] sm:$0xff] }
 0x189   :  { %4486 = vmatpush1.bf16.msra.mxu1 %v11371_v19  ;;  %v11418_v19 = vcombine.high %v1345_v13, %v1349_v14 }
 0x18a   :  { %4496 = vmatprep.subr.bf16.mxu1 %v11380_v20  ;;  %v11420_v20 = vcombine.high %v1346_v15, %v1350_v16 }
 0x1dd   :  { %v1031_v29 = vpop.f32.mrb[0].mxu0 }
 0x1de   :  { %v1032_v30 = vadd.f32 %v1031_v29, %v320_v27  ;;  %v1033_v31 = vpop.f32.mrb[1].mxu0  ;;  %v1357_v27 = vld [vmem:[#allocation7 + $0x5a0] sm:$0xff]  ;;  %v1358_v29 = vld [vmem:[#allocation7 + $0x5a8] sm:$0xff] }
 0x1df   :  { %v1034_v32 = vadd.f32 %v1033_v31, %v324_v28  ;;  %v1035_v33 = vpop.f32.mrb[2].mxu0  ;;  %v13821_v54 = vpop.f32.mrb[0].mxu1  ;;  %v1354_v28 = vld [vmem:[#allocation7 + $0x588] sm:$0xff]  ;;  %v11419_v31 = vcombine.low %v1346_v15, %v1350_v16  ;;  %v11425_v38 = vcombine.low %v1353_v21, %v1357_v27  ;;  %v1405_v15 = vld [vmem:[#allocation7 + $0x720] sm:$0xff] }
 0x1e0   :  { %v1161_v34 = vmax.f32 %v1032_v30, 0.0  ;;  %v1036_v35 = vpop.f32.mrb[3].mxu0  ;;  %v1074_v58 = vpop.f32.mrb[1].mxu1  ;;  %v11417_v30 = vcombine.low %v1345_v13, %v1349_v14  ;;  %v11428_v33 = vcombine.high %v1354_v28, %v1358_v29  ;;  %v11427_v39 = vcombine.low %v1354_v28, %v1358_v29  ;;  %v1401_v14 = vld [vmem:[#allocation7 + $0x700] sm:$0xff]  ;;  %v1402_v16 = vld [vmem:[#allocation7 + $0x708] sm:$0xff] }
 0x1e1   :  { %v1162_v37 = vmax.f32 %v1034_v32, 0.0  ;;  %v1075_v59 = vadd.f32 %v1074_v58, %v332_v2  ;;  %v1076_v63 = vpop.f32.mrb[2].mxu1  ;;  %v11426_v32 = vcombine.high %v1353_v21, %v1357_v27  ;;  %v1365_v35 = vld [vmem:[#allocation7 + $0x5e0] sm:$0xff]  ;;  %v1410_v29 = vld [vmem:[#allocation7 + $0x748] sm:$0xff] }
 0x1e2   :  { %v13807_v43 = vpack.c.bf16 %v1161_v34, %v1161_v34  ;;  %v1077_v7 = vpop.f32.mrb[3].mxu1  ;;  %v1361_v34 = vld [vmem:[#allocation7 + $0x5c0] sm:$0xff] }
 0x1e3   :  { %v13805_v42 = vpack.c.bf16 %v1162_v37, %v1162_v37  ;;  %v1164_v61 = vmax.f32 %v1075_v59, 0.0  ;;  %v1366_v37 = vld [vmem:[#allocation7 + $0x5e8] sm:$0xff]  ;;  %v11434_v40 = vcombine.high %v1361_v34, %v1365_v35  ;;  %v11433_v49 = vcombine.low %v1361_v34, %v1365_v35  ;;  %v1385_v63 = vld [vmem:[#allocation7 + $0x680] sm:$0xff] }
 0x1e4   :  { %v11435_v2 = vcombine.low %v1362_v36, %v1366_v37  ;;  %v1390_v7 = vld [vmem:[#allocation7 + $0x6a8] sm:$0xff]  ;;  %v1409_v27 = vld [vmem:[#allocation7 + $0x740] sm:$0xff] }
 0x1e5   :  { %4323 = vmatprep.mubr.bf16.mxu0 %v13805_v42  ;;  %4487 = vmatprep.mubr.bf16.mxu1 %v13805_v42  ;;  %v13823_v5 = vpack.c.bf16 %v1164_v61, %v1164_v61  ;;  %v1413_v28 = vld [vmem:[#allocation7 + $0x760] sm:$0xff] }
 0x1e6   :  { %4324 = vmatmul.mubr.bf16.vlgmr.msra.gmra.mrb[8].mxu0 %v13807_v43  ;;  %4488 = vmatmul.mubr.bf16.vlgmr.msra.gmra.mrb[8].mxu1 %v13807_v43  ;;  %v11482_v34 = vcombine.high %v1409_v27, %v1413_v28 }
 0x1e7   :  { %4333 = vmatpush1.bf16.msra.mxu0 %v11377_v9  ;;  %4497 = vmatpush1.bf16.msra.mxu1 %v11379_v10  ;;  %v11402_v9 = vcombine.high %v1329_v53, %v1333_v55  ;;  %v11404_v10 = vcombine.high %v1330_v56, %v1334_v57  ;;  %v1378_v53 = vld [vmem:[#allocation7 + $0x648] sm:$0xff]  ;;  %v11443_v57 = vcombine.low %v1370_v47, %v1374_v48 }
 0x1e8   :  { %4334 = vmatprep.subr.bf16.mxu0 %v11386_v44  ;;  %4498 = vmatprep.subr.bf16.mxu1 %v11388_v45  ;;  %v11436_v44 = vcombine.high %v1362_v36, %v1366_v37  ;;  %v1369_v45 = vld [vmem:[#allocation7 + $0x600] sm:$0xff]  ;;  %v1382_v55 = vld [vmem:[#allocation7 + $0x668] sm:$0xff] }
 0x1e9   :  { %4364 = vmatprep.mubr.bf16.mxu0 %v13823_v5  ;;  %4528 = vmatprep.mubr.bf16.mxu1 %v13823_v5  ;;  %v11441_v56 = vcombine.low %v1369_v45, %v1373_v46  ;;  %v11452_v59 = vcombine.high %v1378_v53, %v1382_v55  ;;  %v1417_v36 = vld [vmem:[#allocation7 + $0x780] sm:$0xff] }
 0x1ea   :  { %v1421_v37 = vld [vmem:[#allocation7 + $0x7a0] sm:$0xff] }
 0x1eb   :  { %4335 = vmatpush1.bf16.msra.mxu0 %v11385_v50  ;;  %4499 = vmatpush1.bf16.msra.mxu1 %v11387_v23  ;;  %v11442_v50 = vcombine.high %v1369_v45, %v1373_v46  ;;  %v11444_v23 = vcombine.high %v1370_v47, %v1374_v48  ;;  %v13833_v46 = vsub.s32 5, %v13788_v22  ;;  %v11490_v47 = vcombine.high %v1417_v36, %v1421_v37 }
 0x1ec   :  { %4336 = vmatprep.subr.bf16.mxu0 %v11394_v51  ;;  %4500 = vmatprep.subr.bf16.mxu1 %v11396_v52  ;;  %v1377_v51 = vld [vmem:[#allocation7 + $0x640] sm:$0xff] }
 0x1ed   :  { %v1381_v52 = vld [vmem:[#allocation7 + $0x660] sm:$0xff] }
 0x1ee   :  { %v11450_v58 = vcombine.high %v1377_v51, %v1381_v52 }
 0x1ef   :  { %4337 = vmatpush1.bf16.msra.mxu0 %v11393_v0  ;;  %4501 = vmatpush1.bf16.msra.mxu1 %v11395_v1  ;;  %v1389_v0 = vld [vmem:[#allocation7 + $0x6a0] sm:$0xff]  ;;  %v1386_v1 = vld [vmem:[#allocation7 + $0x688] sm:$0xff] }
 0x1f0   :  { %4338 = vmatprep.subr.bf16.mxu0 %v11402_v9  ;;  %4502 = vmatprep.subr.bf16.mxu1 %v11404_v10  ;;  %v11449_v9 = vcombine.low %v1377_v51, %v1381_v52  ;;  %v11451_v10 = vcombine.low %v1378_v53, %v1382_v55  ;;  %v11458_v60 = vcombine.high %v1385_v63, %v1389_v0 }
 0x1f1   :  { %v11460_v61 = vcombine.high %v1386_v1, %v1390_v7  ;;  %v11489_v52 = vcombine.low %v1417_v36, %v1421_v37  ;;  %v340_v55 = vrot.slane %v13793_v25, %v13833_v46  ;;  %v1461_v36 = vld [vmem:[#allocation7 + $0x8e0] sm:$0xff]  ;;  %v1458_v37 = vld [vmem:[#allocation7 + $0x8c8] sm:$0xff] }
 0x1f3   :  { %4339 = vmatpush1.bf16.msra.mxu0 %v11401_v6  ;;  %4503 = vmatpush1.bf16.msra.mxu1 %v11403_v8  ;;  %v1398_v6 = vld [vmem:[#allocation7 + $0x6e8] sm:$0xff]  ;;  %v11457_v8 = vcombine.low %v1385_v63, %v1389_v0 }
 0x1f4   :  { %4340 = vmatprep.subr.bf16.mxu0 %v11410_v11  ;;  %4504 = vmatprep.subr.bf16.mxu1 %v11412_v12  ;;  %v11459_v11 = vcombine.low %v1386_v1, %v1390_v7  ;;  %v11466_v12 = vcombine.high %v1393_v62, %v1397_v3  ;;  %v11468_v13 = vcombine.high %v1394_v4, %v1398_v6  ;;  %v1434_v63 = vld [vmem:[#allocation7 + $0x808] sm:$0xff] }
 0x1f5   :  { %v1438_v0 = vld [vmem:[#allocation7 + $0x828] sm:$0xff] }
 0x1f7   :  { %4341 = vmatpush1.bf16.msra.mxu0 %v11409_v17  ;;  %4505 = vmatpush1.bf16.msra.mxu1 %v11411_v18  ;;  %v1406_v17 = vld [vmem:[#allocation7 + $0x728] sm:$0xff]  ;;  %v11465_v18 = vcombine.low %v1393_v62, %v1397_v3  ;;  %v11508_v3 = vcombine.high %v1434_v63, %v1438_v0 }
 0x1f8   :  { %4342 = vmatprep.subr.bf16.mxu0 %v11418_v19  ;;  %4506 = vmatprep.subr.bf16.mxu1 %v11420_v20  ;;  %v11467_v19 = vcombine.low %v1394_v4, %v1398_v6  ;;  %v11474_v20 = vcombine.high %v1401_v14, %v1405_v15  ;;  %v11476_v21 = vcombine.high %v1402_v16, %v1406_v17  ;;  %v1441_v4 = vld [vmem:[#allocation7 + $0x840] sm:$0xff] }
 0x1fb   :  { %4343 = vmatpush1.bf16.msra.mxu0 %v11417_v30  ;;  %4507 = vmatpush1.bf16.msra.mxu1 %v11419_v31  ;;  %v1414_v30 = vld [vmem:[#allocation7 + $0x768] sm:$0xff]  ;;  %v13828_v31 = vsub.s32 2, %v13788_v22 }
 0x1fc   :  { %4344 = vmatprep.subr.bf16.mxu0 %v11426_v32  ;;  %4508 = vmatprep.subr.bf16.mxu1 %v11428_v33  ;;  %v11473_v32 = vcombine.low %v1401_v14, %v1405_v15  ;;  %v11475_v33 = vcombine.low %v1402_v16, %v1406_v17  ;;  %v11484_v35 = vcombine.high %v1410_v29, %v1414_v30 }
 0x1fd   :  { %v11483_v45 = vcombine.low %v1410_v29, %v1414_v30  ;;  %v11507_v16 = vcombine.low %v1434_v63, %v1438_v0  ;;  %v1478_v63 = vld [vmem:[#allocation7 + $0x968] sm:$0xff] }
 0x1ff   :  { %4345 = vmatpush1.bf16.msra.mxu0 %v11425_v38  ;;  %4509 = vmatpush1.bf16.msra.mxu1 %v11427_v39  ;;  %v1418_v38 = vld [vmem:[#allocation7 + $0x788] sm:$0xff] }
 0x200   :  { %4346 = vmatprep.subr.bf16.mxu0 %v11434_v40  ;;  %4510 = vmatprep.subr.bf16.mxu1 %v11436_v44  ;;  %v1422_v39 = vld [vmem:[#allocation7 + $0x7a8] sm:$0xff]  ;;  %v328_v40 = vrot.slane %v13793_v25, %v13828_v31  ;;  %v11481_v44 = vcombine.low %v1409_v27, %v1413_v28 }
 0x201   :  { %v11492_v48 = vcombine.high %v1418_v38, %v1422_v39  ;;  %v11491_v53 = vcombine.low %v1418_v38, %v1422_v39  ;;  %v1454_v27 = vld [vmem:[#allocation7 + $0x8a8] sm:$0xff] }
 0x202   :  { %v1073_v51 = vadd.f32 %v13821_v54, %v328_v40  ;;  %v1462_v38 = vld [vmem:[#allocation7 + $0x8e8] sm:$0xff] }
 0x203   :  { %4347 = vmatpush1.bf16.msra.mxu0 %v11433_v49  ;;  %4511 = vmatpush1.bf16.msra.mxu1 %v11435_v2  ;;  %v1425_v49 = vld [vmem:[#allocation7 + $0x7c0] sm:$0xff] }
 0x204   :  { %4348 = vmatprep.subr.bf16.mxu0 %v11442_v50  ;;  %4512 = vmatprep.subr.bf16.mxu1 %v11444_v23  ;;  %v1429_v2 = vld [vmem:[#allocation7 + $0x7e0] sm:$0xff]  ;;  %v1426_v50 = vld [vmem:[#allocation7 + $0x7c8] sm:$0xff]  ;;  %v1163_v7 = vmax.f32 %v1073_v51, 0.0 }
 0x205   :  { %v1430_v23 = vld [vmem:[#allocation7 + $0x7e8] sm:$0xff]  ;;  %v11497_v54 = vcombine.low %v1425_v49, %v1429_v2 }
 0x206   :  { %v13840_v14 = vpack.c.bf16 %v1163_v7, %v1163_v7  ;;  %v1470_v51 = vld [vmem:[#allocation7 + $0x928] sm:$0xff] }
 0x207   :  { %4349 = vmatpush1.bf16.msra.mxu0 %v11441_v56  ;;  %4513 = vmatpush1.bf16.msra.mxu1 %v11443_v57  ;;  %v11498_v56 = vcombine.high %v1425_v49, %v1429_v2  ;;  %v11500_v57 = vcombine.high %v1426_v50, %v1430_v23  ;;  %v11532_v49 = vcombine.high %v1458_v37, %v1462_v38  ;;  %v1465_v2 = vld [vmem:[#allocation7 + $0x900] sm:$0xff] }
 0x208   :  { %4350 = vmatprep.subr.bf16.mxu0 %v11450_v58  ;;  %4514 = vmatprep.subr.bf16.mxu1 %v11452_v59  ;;  %v1433_v58 = vld [vmem:[#allocation7 + $0x800] sm:$0xff] }
 0x209   :  { %v1437_v59 = vld [vmem:[#allocation7 + $0x820] sm:$0xff] }
 0x20a   :  { %v11506_v62 = vcombine.high %v1433_v58, %v1437_v59  ;;  %v11505_v15 = vcombine.low %v1433_v58, %v1437_v59  ;;  %v1477_v58 = vld [vmem:[#allocation7 + $0x960] sm:$0xff]  ;;  %v1474_v59 = vld [vmem:[#allocation7 + $0x948] sm:$0xff] }
 0x20b   :  { %4351 = vmatpush1.bf16.msra.mxu0 %v11449_v9  ;;  %4515 = vmatpush1.bf16.msra.mxu1 %v11451_v10  ;;  %v11499_v10 = vcombine.low %v1426_v50, %v1430_v23  ;;  %v1469_v50 = vld [vmem:[#allocation7 + $0x920] sm:$0xff]  ;;  %v1466_v23 = vld [vmem:[#allocation7 + $0x908] sm:$0xff] }
 0x20c   :  { %4352 = vmatprep.subr.bf16.mxu0 %v11458_v60  ;;  %4516 = vmatprep.subr.bf16.mxu1 %v11460_v61  ;;  %v11537_v0 = vcombine.low %v1465_v2, %v1469_v50  ;;  %v11539_v7 = vcombine.low %v1466_v23, %v1470_v51 }
 0x20f   :  { %4353 = vmatpush1.bf16.msra.mxu0 %v11457_v8  ;;  %4517 = vmatpush1.bf16.msra.mxu1 %v11459_v11  ;;  %v1445_v8 = vld [vmem:[#allocation7 + $0x860] sm:$0xff]  ;;  %v1442_v11 = vld [vmem:[#allocation7 + $0x848] sm:$0xff] }
 0x210   :  { %4354 = vmatprep.subr.bf16.mxu0 %v11466_v12  ;;  %4518 = vmatprep.subr.bf16.mxu1 %v11468_v13  ;;  %v1446_v12 = vld [vmem:[#allocation7 + $0x868] sm:$0xff]  ;;  %v11514_v17 = vcombine.high %v1441_v4, %v1445_v8  ;;  %v11513_v29 = vcombine.low %v1441_v4, %v1445_v8  ;;  %v11547_v4 = vcombine.low %v1474_v59, %v1478_v63 }
 0x211   :  { %v11515_v30 = vcombine.low %v1442_v11, %v1446_v12 }
 0x213   :  { %4355 = vmatpush1.bf16.msra.mxu0 %v11465_v18  ;;  %4519 = vmatpush1.bf16.msra.mxu1 %v11467_v19  ;;  %v11516_v18 = vcombine.high %v1442_v11, %v1446_v12  ;;  %v1449_v19 = vld [vmem:[#allocation7 + $0x880] sm:$0xff] }
 0x214   :  { %4356 = vmatprep.subr.bf16.mxu0 %v11474_v20  ;;  %4520 = vmatprep.subr.bf16.mxu1 %v11476_v21  ;;  %v1453_v20 = vld [vmem:[#allocation7 + $0x8a0] sm:$0xff]  ;;  %v1450_v21 = vld [vmem:[#allocation7 + $0x888] sm:$0xff] }
 0x215   :  { %v1489_v11 = vld [vmem:[#allocation7 + $0x9c0] sm:$0xff] }
 0x216   :  { %v1493_v12 = vld [vmem:[#allocation7 + $0x9e0] sm:$0xff] }
 0x217   :  { %4357 = vmatpush1.bf16.msra.mxu0 %v11473_v32  ;;  %4521 = vmatpush1.bf16.msra.mxu1 %v11475_v33  ;;  %v11522_v32 = vcombine.high %v1449_v19, %v1453_v20  ;;  %v11524_v33 = vcombine.high %v1450_v21, %v1454_v27 }
 0x218   :  { %4358 = vmatprep.subr.bf16.mxu0 %v11482_v34  ;;  %4522 = vmatprep.subr.bf16.mxu1 %v11484_v35  ;;  %v1457_v34 = vld [vmem:[#allocation7 + $0x8c0] sm:$0xff] }
 0x21b   :  { %4359 = vmatpush1.bf16.msra.mxu0 %v11481_v44  ;;  %4523 = vmatpush1.bf16.msra.mxu1 %v11483_v45  ;;  %v11521_v44 = vcombine.low %v1449_v19, %v1453_v20  ;;  %v11523_v45 = vcombine.low %v1450_v21, %v1454_v27  ;;  %v1497_v20 = vld [vmem:[#allocation7 + $0xa00] sm:$0xff]  ;;  %v1498_v27 = vld [vmem:[#allocation7 + $0xa08] sm:$0xff] }
 0x21c   :  { %4360 = vmatprep.subr.bf16.mxu0 %v11490_v47  ;;  %4524 = vmatprep.subr.bf16.mxu1 %v11492_v48  ;;  %v11530_v48 = vcombine.high %v1457_v34, %v1461_v36  ;;  %v1501_v21 = vld [vmem:[#allocation7 + $0xa20] sm:$0xff] }
 0x21d   :  { %v13838_v1 = vpop.f32.mrb[4].mxu0 }
 0x21e   :  { %v1115_v9 = vpop.f32.mrb[5].mxu0 }
 0x21f   :  { %4361 = vmatpush1.bf16.msra.mxu0 %v11489_v52  ;;  %4525 = vmatpush1.bf16.msra.mxu1 %v11491_v53  ;;  %v1116_v60 = vadd.f32 %v1115_v9, %v340_v55  ;;  %v1117_v61 = vpop.f32.mrb[6].mxu0  ;;  %v13846_v35 = vpop.f32.mrb[4].mxu1  ;;  %v11529_v52 = vcombine.low %v1457_v34, %v1461_v36  ;;  %v11531_v53 = vcombine.low %v1458_v37, %v1462_v38  ;;  %v1505_v36 = vld [vmem:[#allocation7 + $0xa40] sm:$0xff]  ;;  %v1506_v38 = vld [vmem:[#allocation7 + $0xa48] sm:$0xff] }
 0x220   :  { %4362 = vmatprep.subr.bf16.mxu0 %v11498_v56  ;;  %4526 = vmatprep.subr.bf16.mxu1 %v11500_v57  ;;  %v1118_v6 = vpop.f32.mrb[7].mxu0  ;;  %v13850_v39 = vpop.f32.mrb[5].mxu1  ;;  %v11538_v55 = vcombine.high %v1465_v2, %v1469_v50  ;;  %v11540_v56 = vcombine.high %v1466_v23, %v1470_v51  ;;  %v1473_v57 = vld [vmem:[#allocation7 + $0x940] sm:$0xff]  ;;  %v1482_v61 = vld [vmem:[#allocation7 + $0x988] sm:$0xff] }
 0x221   :  { %v1166_v13 = vmax.f32 %v1116_v60, 0.0  ;;  %v1158_v40 = vpop.f32.mrb[6].mxu1  ;;  %v11546_v9 = vcombine.high %v1473_v57, %v1477_v58  ;;  %v1485_v60 = vld [vmem:[#allocation7 + $0x9a0] sm:$0xff]  ;;  %v1514_v50 = vld [vmem:[#allocation7 + $0xa88] sm:$0xff] }
 0x222   :  { %v1159_v47 = vpop.f32.mrb[7].mxu1  ;;  %v1509_v37 = vld [vmem:[#allocation7 + $0xa60] sm:$0xff]  ;;  %v1510_v40 = vld [vmem:[#allocation7 + $0xa68] sm:$0xff] }
 0x223   :  { %4363 = vmatpush1.bf16.msra.mxu0 %v11497_v54  ;;  %4527 = vmatpush1.bf16.msra.mxu1 %v11499_v10  ;;  %v13842_v28 = vpack.c.bf16 %v1166_v13, %v1166_v13  ;;  %v11548_v54 = vcombine.high %v1474_v59, %v1478_v63  ;;  %v1481_v10 = vld [vmem:[#allocation7 + $0x980] sm:$0xff]  ;;  %v1490_v13 = vld [vmem:[#allocation7 + $0x9c8] sm:$0xff]  ;;  %v11578_v47 = vcombine.high %v1505_v36, %v1509_v37 }
 0x224   :  { %4373 = vmatprep.subr.bf16.mxu0 %v11506_v62  ;;  %4537 = vmatprep.subr.bf16.mxu1 %v11508_v3  ;;  %v1486_v62 = vld [vmem:[#allocation7 + $0x9a8] sm:$0xff]  ;;  %v11545_v3 = vcombine.low %v1473_v57, %v1477_v58  ;;  %v11554_v6 = vcombine.high %v1481_v10, %v1485_v60  ;;  %v1517_v2 = vld [vmem:[#allocation7 + $0xaa0] sm:$0xff]  ;;  %v11577_v51 = vcombine.low %v1505_v36, %v1509_v37 }
 0x225   :  { %v11556_v8 = vcombine.high %v1482_v61, %v1486_v62  ;;  %v1518_v23 = vld [vmem:[#allocation7 + $0xaa8] sm:$0xff]  ;;  %v1525_v57 = vld [vmem:[#allocation7 + $0xae0] sm:$0xff] }
 0x226   :  { %4365 = vmatmul.mubr.bf16.vlgmr.msra.gmra.mrb[8].mxu0 %v13840_v14  ;;  %4529 = vmatmul.mubr.bf16.vlgmr.msra.gmra.mrb[8].mxu1 %v13840_v14  ;;  %v1522_v58 = vld [vmem:[#allocation7 + $0xac8] sm:$0xff] }
 0x227   :  { %4374 = vmatpush1.bf16.msra.mxu0 %v11505_v15  ;;  %4538 = vmatpush1.bf16.msra.mxu1 %v11507_v16  ;;  %v1494_v15 = vld [vmem:[#allocation7 + $0x9e8] sm:$0xff]  ;;  %v11553_v16 = vcombine.low %v1481_v10, %v1485_v60  ;;  %v1533_v10 = vld [vmem:[#allocation7 + $0xb20] sm:$0xff] }
 0x228   :  { %4375 = vmatprep.subr.bf16.mxu0 %v11514_v17  ;;  %4539 = vmatprep.subr.bf16.mxu1 %v11516_v18  ;;  %v11555_v17 = vcombine.low %v1482_v61, %v1486_v62  ;;  %v11562_v18 = vcombine.high %v1489_v11, %v1493_v12  ;;  %v11564_v19 = vcombine.high %v1490_v13, %v1494_v15  ;;  %v1526_v59 = vld [vmem:[#allocation7 + $0xae8] sm:$0xff] }
 0x229   :  { %4405 = vmatprep.mubr.bf16.mxu0 %v13842_v28  ;;  %4569 = vmatprep.mubr.bf16.mxu1 %v13842_v28  ;;  %v1530_v60 = vld [vmem:[#allocation7 + $0xb08] sm:$0xff] }
 0x22a   :  { %v1534_v61 = vld [vmem:[#allocation7 + $0xb28] sm:$0xff] }
 0x22b   :  { %4376 = vmatpush1.bf16.msra.mxu0 %v11513_v29  ;;  %4540 = vmatpush1.bf16.msra.mxu1 %v11515_v30  ;;  %v1502_v29 = vld [vmem:[#allocation7 + $0xa28] sm:$0xff]  ;;  %v11561_v30 = vcombine.low %v1489_v11, %v1493_v12  ;;  %v1541_v11 = vld [vmem:[#allocation7 + $0xb60] sm:$0xff] }
 0x22c   :  { %4377 = vmatprep.subr.bf16.mxu0 %v11522_v32  ;;  %4541 = vmatprep.subr.bf16.mxu1 %v11524_v33  ;;  %v11563_v32 = vcombine.low %v1490_v13, %v1494_v15  ;;  %v11570_v33 = vcombine.high %v1497_v20, %v1501_v21  ;;  %v11572_v34 = vcombine.high %v1498_v27, %v1502_v29  ;;  %v1538_v12 = vld [vmem:[#allocation7 + $0xb48] sm:$0xff]  ;;  %v13853_v15 = vsub.s32 4, %v13788_v22 }
 0x22d   :  { %v1542_v13 = vld [vmem:[#allocation7 + $0xb68] sm:$0xff] }
 0x22f   :  { %4378 = vmatpush1.bf16.msra.mxu0 %v11521_v44  ;;  %4542 = vmatpush1.bf16.msra.mxu1 %v11523_v45  ;;  %v11569_v44 = vcombine.low %v1497_v20, %v1501_v21  ;;  %v11571_v45 = vcombine.low %v1498_v27, %v1502_v29  ;;  %v1545_v20 = vld [vmem:[#allocation7 + $0xb80] sm:$0xff]  ;;  %v1546_v27 = vld [vmem:[#allocation7 + $0xb88] sm:$0xff] }
 0x230   :  { %4379 = vmatprep.subr.bf16.mxu0 %v11530_v48  ;;  %4543 = vmatprep.subr.bf16.mxu1 %v11532_v49  ;;  %v11580_v48 = vcombine.high %v1506_v38, %v1510_v40  ;;  %v1513_v49 = vld [vmem:[#allocation7 + $0xa80] sm:$0xff]  ;;  %v1550_v29 = vld [vmem:[#allocation7 + $0xba8] sm:$0xff] }
 0x231   :  { %v11585_v63 = vcombine.low %v1513_v49, %v1517_v2  ;;  %v1549_v21 = vld [vmem:[#allocation7 + $0xba0] sm:$0xff]  ;;  %v11620_v37 = vcombine.high %v1546_v27, %v1550_v29 }
 0x232   :  { %v11618_v36 = vcombine.high %v1545_v20, %v1549_v21 }
 0x233   :  { %4380 = vmatpush1.bf16.msra.mxu0 %v11529_v52  ;;  %4544 = vmatpush1.bf16.msra.mxu1 %v11531_v53  ;;  %v11579_v52 = vcombine.low %v1506_v38, %v1510_v40  ;;  %v11586_v53 = vcombine.high %v1513_v49, %v1517_v2  ;;  %v1553_v38 = vld [vmem:[#allocation7 + $0xbc0] sm:$0xff]  ;;  %v11617_v49 = vcombine.low %v1545_v20, %v1549_v21  ;;  %v1586_v20 = vld [vmem:[#allocation7 + $0xcc8] sm:$0xff] }
 0x234   :  { %4381 = vmatprep.subr.bf16.mxu0 %v11538_v55  ;;  %4545 = vmatprep.subr.bf16.mxu1 %v11540_v56  ;;  %v11588_v55 = vcombine.high %v1514_v50, %v1518_v23  ;;  %v1521_v56 = vld [vmem:[#allocation7 + $0xac0] sm:$0xff]  ;;  %v11619_v2 = vcombine.low %v1546_v27, %v1550_v29  ;;  %v1590_v21 = vld [vmem:[#allocation7 + $0xce8] sm:$0xff] }
 0x235   :  { %v11593_v62 = vcombine.low %v1521_v56, %v1525_v57  ;;  %v1557_v40 = vld [vmem:[#allocation7 + $0xbe0] sm:$0xff] }
 0x237   :  { %4382 = vmatpush1.bf16.msra.mxu0 %v11537_v0  ;;  %4546 = vmatpush1.bf16.msra.mxu1 %v11539_v7  ;;  %v11587_v0 = vcombine.low %v1514_v50, %v1518_v23  ;;  %v11594_v7 = vcombine.high %v1521_v56, %v1525_v57  ;;  %v11626_v50 = vcombine.high %v1553_v38, %v1557_v40 }
 0x238   :  { %4383 = vmatprep.subr.bf16.mxu0 %v11546_v9  ;;  %4547 = vmatprep.subr.bf16.mxu1 %v11548_v54  ;;  %v11596_v9 = vcombine.high %v1522_v58, %v1526_v59  ;;  %v1529_v54 = vld [vmem:[#allocation7 + $0xb00] sm:$0xff] }
 0x23b   :  { %4384 = vmatpush1.bf16.msra.mxu0 %v11545_v3  ;;  %4548 = vmatpush1.bf16.msra.mxu1 %v11547_v4  ;;  %v11595_v3 = vcombine.low %v1522_v58, %v1526_v59  ;;  %v11602_v4 = vcombine.high %v1529_v54, %v1533_v10 }
 0x23c   :  { %4385 = vmatprep.subr.bf16.mxu0 %v11554_v6  ;;  %4549 = vmatprep.subr.bf16.mxu1 %v11556_v8  ;;  %v11604_v6 = vcombine.high %v1530_v60, %v1534_v61  ;;  %v1537_v8 = vld [vmem:[#allocation7 + $0xb40] sm:$0xff] }
 0x23f   :  { %4386 = vmatpush1.bf16.msra.mxu0 %v11553_v16  ;;  %4550 = vmatpush1.bf16.msra.mxu1 %v11555_v17  ;;  %v11601_v16 = vcombine.low %v1529_v54, %v1533_v10  ;;  %v11603_v17 = vcombine.low %v1530_v60, %v1534_v61 }
 0x240   :  { %4387 = vmatprep.subr.bf16.mxu0 %v11562_v18  ;;  %4551 = vmatprep.subr.bf16.mxu1 %v11564_v19  ;;  %v11610_v18 = vcombine.high %v1537_v8, %v1541_v11  ;;  %v11612_v19 = vcombine.high %v1538_v12, %v1542_v13 }
 0x243   :  { %4388 = vmatpush1.bf16.msra.mxu0 %v11561_v30  ;;  %4552 = vmatpush1.bf16.msra.mxu1 %v11563_v32  ;;  %v13856_v30 = vsub.s32 7, %v13788_v22  ;;  %v336_v32 = vrot.slane %v13793_v25, %v13853_v15 }
 0x244   :  { %4389 = vmatprep.subr.bf16.mxu0 %v11570_v33  ;;  %4553 = vmatprep.subr.bf16.mxu1 %v11572_v34  ;;  %v11609_v33 = vcombine.low %v1537_v8, %v1541_v11  ;;  %v11611_v34 = vcombine.low %v1538_v12, %v1542_v13  ;;  %v1582_v8 = vld [vmem:[#allocation7 + $0xca8] sm:$0xff] }
 0x247   :  { %4390 = vmatpush1.bf16.msra.mxu0 %v11569_v44  ;;  %4554 = vmatpush1.bf16.msra.mxu1 %v11571_v45  ;;  %v1554_v44 = vld [vmem:[#allocation7 + $0xbc8] sm:$0xff] }
 0x248   :  { %4391 = vmatprep.subr.bf16.mxu0 %v11578_v47  ;;  %4555 = vmatprep.subr.bf16.mxu1 %v11580_v48  ;;  %v1558_v45 = vld [vmem:[#allocation7 + $0xbe8] sm:$0xff]  ;;  %v348_v47 = vrot.slane %v13793_v25, %v13856_v30  ;;  %v1114_v48 = vadd.f32 %v13838_v1, %v336_v32  ;;  %v11625_v25 = vcombine.low %v1553_v38, %v1557_v40 }
 0x249   :  { %v11628_v23 = vcombine.high %v1554_v44, %v1558_v45  ;;  %v11627_v58 = vcombine.low %v1554_v44, %v1558_v45  ;;  %v1598_v38 = vld [vmem:[#allocation7 + $0xd28] sm:$0xff]  ;;  %v11659_v44 = vcombine.low %v1586_v20, %v1590_v21 }
 0x24a   :  { %v1157_v56 = vadd.f32 %v13850_v39, %v348_v47  ;;  %v1165_v57 = vmax.f32 %v1114_v48, 0.0  ;;  %v1601_v48 = vld [vmem:[#allocation7 + $0xd40] sm:$0xff] }
 0x24b   :  { %4392 = vmatpush1.bf16.msra.mxu0 %v11577_v51  ;;  %4556 = vmatpush1.bf16.msra.mxu1 %v11579_v52  ;;  %v1561_v51 = vld [vmem:[#allocation7 + $0xc00] sm:$0xff] }
 0x24c   :  { %4393 = vmatprep.subr.bf16.mxu0 %v11586_v53  ;;  %4557 = vmatprep.subr.bf16.mxu1 %v11588_v55  ;;  %v1565_v52 = vld [vmem:[#allocation7 + $0xc20] sm:$0xff]  ;;  %v1562_v53 = vld [vmem:[#allocation7 + $0xc08] sm:$0xff]  ;;  %v1168_v54 = vmax.f32 %v1157_v56, 0.0  ;;  %v13864_v10 = vpack.c.bf16 %v1165_v57, %v1165_v57 }
 0x24d   :  { %v1566_v55 = vld [vmem:[#allocation7 + $0xc28] sm:$0xff]  ;;  %v11634_v1 = vcombine.high %v1561_v51, %v1565_v52  ;;  %v11633_v60 = vcombine.low %v1561_v51, %v1565_v52  ;;  %v1613_v56 = vld [vmem:[#allocation7 + $0xda0] sm:$0xff] }
 0x24e   :  { %v11636_v59 = vcombine.high %v1562_v53, %v1566_v55  ;;  %v11635_v39 = vcombine.low %v1562_v53, %v1566_v55  ;;  %v13866_v11 = vpack.c.bf16 %v1168_v54, %v1168_v54  ;;  %v1609_v55 = vld [vmem:[#allocation7 + $0xd80] sm:$0xff]  ;;  %v1610_v57 = vld [vmem:[#allocation7 + $0xd88] sm:$0xff] }
 0x24f   :  { %4394 = vmatpush1.bf16.msra.mxu0 %v11585_v63  ;;  %4558 = vmatpush1.bf16.msra.mxu1 %v11587_v0  ;;  %v1569_v63 = vld [vmem:[#allocation7 + $0xc40] sm:$0xff]  ;;  %v1622_v54 = vld [vmem:[#allocation7 + $0xde8] sm:$0xff] }
 0x250   :  { %4395 = vmatprep.subr.bf16.mxu0 %v11594_v7  ;;  %4559 = vmatprep.subr.bf16.mxu1 %v11596_v9  ;;  %v1573_v0 = vld [vmem:[#allocation7 + $0xc60] sm:$0xff]  ;;  %v1570_v7 = vld [vmem:[#allocation7 + $0xc48] sm:$0xff] }
 0x251   :  { %v1574_v9 = vld [vmem:[#allocation7 + $0xc68] sm:$0xff]  ;;  %v11642_v61 = vcombine.high %v1569_v63, %v1573_v0  ;;  %v11641_v12 = vcombine.low %v1569_v63, %v1573_v0  ;;  %v1617_v0 = vld [vmem:[#allocation7 + $0xdc0] sm:$0xff] }
 0x252   :  { %v11643_v13 = vcombine.low %v1570_v7, %v1574_v9 }
 0x253   :  { %4396 = vmatpush1.bf16.msra.mxu0 %v11593_v62  ;;  %4560 = vmatpush1.bf16.msra.mxu1 %v11595_v3  ;;  %v11644_v62 = vcombine.high %v1570_v7, %v1574_v9  ;;  %v1577_v3 = vld [vmem:[#allocation7 + $0xc80] sm:$0xff]  ;;  %v1618_v9 = vld [vmem:[#allocation7 + $0xdc8] sm:$0xff] }
 0x254   :  { %4397 = vmatprep.subr.bf16.mxu0 %v11602_v4  ;;  %4561 = vmatprep.subr.bf16.mxu1 %v11604_v6  ;;  %v1581_v4 = vld [vmem:[#allocation7 + $0xca0] sm:$0xff]  ;;  %v1578_v6 = vld [vmem:[#allocation7 + $0xc88] sm:$0xff] }
 0x255   :  { %v11649_v27 = vcombine.low %v1577_v3, %v1581_v4  ;;  %v11651_v29 = vcombine.low %v1578_v6, %v1582_v8  ;;  %v1621_v7 = vld [vmem:[#allocation7 + $0xde0] sm:$0xff] }
 0x257   :  { %4398 = vmatpush1.bf16.msra.mxu0 %v11601_v16  ;;  %4562 = vmatpush1.bf16.msra.mxu1 %v11603_v17  ;;  %v11650_v16 = vcombine.high %v1577_v3, %v1581_v4  ;;  %v11652_v17 = vcombine.high %v1578_v6, %v1582_v8  ;;  %v1625_v3 = vld [vmem:[#allocation7 + $0xe00] sm:$0xff]  ;;  %v1626_v6 = vld [vmem:[#allocation7 + $0xe08] sm:$0xff] }
 0x258   :  { %4399 = vmatprep.subr.bf16.mxu0 %v11610_v18  ;;  %4563 = vmatprep.subr.bf16.mxu1 %v11612_v19  ;;  %v1585_v18 = vld [vmem:[#allocation7 + $0xcc0] sm:$0xff]  ;;  %v1630_v8 = vld [vmem:[#allocation7 + $0xe28] sm:$0xff] }
 0x259   :  { %v1589_v19 = vld [vmem:[#allocation7 + $0xce0] sm:$0xff] }
 0x25a   :  { %v11658_v32 = vcombine.high %v1585_v18, %v1589_v19  ;;  %v11657_v40 = vcombine.low %v1585_v18, %v1589_v19  ;;  %v1629_v4 = vld [vmem:[#allocation7 + $0xe20] sm:$0xff] }
 0x25b   :  { %4400 = vmatpush1.bf16.msra.mxu0 %v11609_v33  ;;  %4564 = vmatpush1.bf16.msra.mxu1 %v11611_v34  ;;  %v11660_v33 = vcombine.high %v1586_v20, %v1590_v21  ;;  %v1593_v34 = vld [vmem:[#allocation7 + $0xd00] sm:$0xff]  ;;  %v1634_v20 = vld [vmem:[#allocation7 + $0xe48] sm:$0xff] }
 0x25c   :  { %4401 = vmatprep.subr.bf16.mxu0 %v11618_v36  ;;  %4565 = vmatprep.subr.bf16.mxu1 %v11620_v37  ;;  %v1597_v36 = vld [vmem:[#allocation7 + $0xd20] sm:$0xff]  ;;  %v1594_v37 = vld [vmem:[#allocation7 + $0xd08] sm:$0xff] }
 0x25d   :  { %v11666_v45 = vcombine.high %v1593_v34, %v1597_v36  ;;  %v11668_v47 = vcombine.high %v1594_v37, %v1598_v38  ;;  %v11667_v51 = vcombine.low %v1594_v37, %v1598_v38  ;;  %v1633_v18 = vld [vmem:[#allocation7 + $0xe40] sm:$0xff]  ;;  %v1638_v21 = vld [vmem:[#allocation7 + $0xe68] sm:$0xff] }
 0x25e   :  { %v1637_v19 = vld [vmem:[#allocation7 + $0xe60] sm:$0xff]  ;;  %v1642_v37 = vld [vmem:[#allocation7 + $0xe88] sm:$0xff] }
 0x25f   :  { %4402 = vmatpush1.bf16.msra.mxu0 %v11617_v49  ;;  %4566 = vmatpush1.bf16.msra.mxu1 %v11619_v2  ;;  %v1605_v49 = vld [vmem:[#allocation7 + $0xd60] sm:$0xff]  ;;  %v1602_v2 = vld [vmem:[#allocation7 + $0xd48] sm:$0xff] }
 0x260   :  { %4403 = vmatprep.subr.bf16.mxu0 %v11626_v50  ;;  %4567 = vmatprep.subr.bf16.mxu1 %v11628_v23  ;;  %v1606_v50 = vld [vmem:[#allocation7 + $0xd68] sm:$0xff]  ;;  %v11665_v23 = vcombine.low %v1593_v34, %v1597_v36  ;;  %v11674_v52 = vcombine.high %v1601_v48, %v1605_v49  ;;  %v1641_v34 = vld [vmem:[#allocation7 + $0xe80] sm:$0xff] }
 0x261   :  { %v11676_v53 = vcombine.high %v1602_v2, %v1606_v50  ;;  %v1645_v36 = vld [vmem:[#allocation7 + $0xea0] sm:$0xff]  ;;  %v1646_v38 = vld [vmem:[#allocation7 + $0xea8] sm:$0xff] }
 0x263   :  { %4404 = vmatpush1.bf16.msra.mxu0 %v11625_v25  ;;  %4568 = vmatpush1.bf16.msra.mxu1 %v11627_v58  ;;  %v1614_v25 = vld [vmem:[#allocation7 + $0xda8] sm:$0xff]  ;;  %v11673_v58 = vcombine.low %v1601_v48, %v1605_v49  ;;  %v1649_v48 = vld [vmem:[#allocation7 + $0xec0] sm:$0xff] }
 0x264   :  { %4414 = vmatprep.subr.bf16.mxu0 %v11634_v1  ;;  %4578 = vmatprep.subr.bf16.mxu1 %v11636_v59  ;;  %v11675_v1 = vcombine.low %v1602_v2, %v1606_v50  ;;  %v11682_v59 = vcombine.high %v1609_v55, %v1613_v56  ;;  %v11684_v63 = vcombine.high %v1610_v57, %v1614_v25  ;;  %v1653_v49 = vld [vmem:[#allocation7 + $0xee0] sm:$0xff]  ;;  %v1650_v2 = vld [vmem:[#allocation7 + $0xec8] sm:$0xff] }
 0x265   :  { %v1654_v50 = vld [vmem:[#allocation7 + $0xee8] sm:$0xff] }
 0x266   :  { %4406 = vmatmul.mubr.bf16.vlgmr.msra.gmra.mrb[8].mxu0 %v13864_v10  ;;  %4570 = vmatmul.mubr.bf16.vlgmr.msra.gmra.mrb[8].mxu1 %v13864_v10 }
 0x267   :  { %4415 = vmatpush1.bf16.msra.mxu0 %v11633_v60  ;;  %4579 = vmatpush1.bf16.msra.mxu1 %v11635_v39  ;;  %v11681_v60 = vcombine.low %v1609_v55, %v1613_v56  ;;  %v11683_v39 = vcombine.low %v1610_v57, %v1614_v25  ;;  %v1657_v55 = vld [vmem:[#allocation7 + $0xf00] sm:$0xff]  ;;  %v1658_v57 = vld [vmem:[#allocation7 + $0xf08] sm:$0xff] }
 0x268   :  { %4416 = vmatprep.subr.bf16.mxu0 %v11642_v61  ;;  %4580 = vmatprep.subr.bf16.mxu1 %v11644_v62  ;;  %v11690_v61 = vcombine.high %v1617_v0, %v1621_v7  ;;  %v11692_v62 = vcombine.high %v1618_v9, %v1622_v54  ;;  %v1661_v56 = vld [vmem:[#allocation7 + $0xf20] sm:$0xff]  ;;  %v1662_v25 = vld [vmem:[#allocation7 + $0xf28] sm:$0xff] }
 0x269   :  { %4446 = vmatprep.mubr.bf16.mxu0 %v13866_v11  ;;  %4610 = vmatprep.mubr.bf16.mxu1 %v13866_v11 }
 0x26b   :  { %4417 = vmatpush1.bf16.msra.mxu0 %v11641_v12  ;;  %4581 = vmatpush1.bf16.msra.mxu1 %v11643_v13  ;;  %v11689_v12 = vcombine.low %v1617_v0, %v1621_v7  ;;  %v11691_v13 = vcombine.low %v1618_v9, %v1622_v54  ;;  %v1665_v0 = vld [vmem:[#allocation7 + $0xf40] sm:$0xff]  ;;  %v1666_v9 = vld [vmem:[#allocation7 + $0xf48] sm:$0xff] }
 0x26c   :  { %4418 = vmatprep.subr.bf16.mxu0 %v11650_v16  ;;  %4582 = vmatprep.subr.bf16.mxu1 %v11652_v17  ;;  %v11698_v16 = vcombine.high %v1625_v3, %v1629_v4  ;;  %v11700_v17 = vcombine.high %v1626_v6, %v1630_v8  ;;  %v1669_v7 = vld [vmem:[#allocation7 + $0xf60] sm:$0xff]  ;;  %v1670_v54 = vld [vmem:[#allocation7 + $0xf68] sm:$0xff] }
 0x26f   :  { %4419 = vmatpush1.bf16.msra.mxu0 %v11649_v27  ;;  %4583 = vmatpush1.bf16.msra.mxu1 %v11651_v29  ;;  %v11697_v27 = vcombine.low %v1625_v3, %v1629_v4  ;;  %v11699_v29 = vcombine.low %v1626_v6, %v1630_v8  ;;  %v11740_v3 = vcombine.high %v1666_v9, %v1670_v54  ;;  %v1673_v4 = vld [vmem:[#allocation7 + $0xf80] sm:$0xff]  ;;  %v1674_v8 = vld [vmem:[#allocation7 + $0xf88] sm:$0xff] }
 0x270   :  { %4420 = vmatprep.subr.bf16.mxu0 %v11658_v32  ;;  %4584 = vmatprep.subr.bf16.mxu1 %v11660_v33  ;;  %v11706_v32 = vcombine.high %v1633_v18, %v1637_v19  ;;  %v11708_v33 = vcombine.high %v1634_v20, %v1638_v21  ;;  %v1677_v6 = vld [vmem:[#allocation7 + $0xfa0] sm:$0xff] }
 0x273   :  { %4421 = vmatpush1.bf16.msra.mxu0 %v11657_v40  ;;  %4585 = vmatpush1.bf16.msra.mxu1 %v11659_v44  ;;  %v11705_v40 = vcombine.low %v1633_v18, %v1637_v19  ;;  %v11707_v44 = vcombine.low %v1634_v20, %v1638_v21  ;;  %v11746_v18 = vcombine.high %v1673_v4, %v1677_v6  ;;  %v1681_v20 = vld [vmem:[#allocation7 + $0xfc0] sm:$0xff] }
 0x274   :  { %4422 = vmatprep.subr.bf16.mxu0 %v11666_v45  ;;  %4586 = vmatprep.subr.bf16.mxu1 %v11668_v47  ;;  %v11714_v45 = vcombine.high %v1641_v34, %v1645_v36  ;;  %v11716_v47 = vcombine.high %v1642_v37, %v1646_v38  ;;  %v1685_v21 = vld [vmem:[#allocation7 + $0xfe0] sm:$0xff] }
 0x277   :  { %4423 = vmatpush1.bf16.msra.mxu0 %v11665_v23  ;;  %4587 = vmatpush1.bf16.msra.mxu1 %v11667_v51  ;;  %v11713_v23 = vcombine.low %v1641_v34, %v1645_v36  ;;  %v11715_v51 = vcombine.low %v1642_v37, %v1646_v38  ;;  %v11754_v36 = vcombine.high %v1681_v20, %v1685_v21  ;;  %v1179_v38 = vld [vmem:[#allocation7 + $0x10] sm:$0xff] }
 0x278   :  { %4424 = vmatprep.subr.bf16.mxu0 %v11674_v52  ;;  %4588 = vmatprep.subr.bf16.mxu1 %v11676_v53  ;;  %v11722_v52 = vcombine.high %v1649_v48, %v1653_v49  ;;  %v11724_v53 = vcombine.high %v1650_v2, %v1654_v50 }
 0x27b   :  { %4425 = vmatpush1.bf16.msra.mxu0 %v11673_v58  ;;  %4589 = vmatpush1.bf16.msra.mxu1 %v11675_v1  ;;  %v11721_v58 = vcombine.low %v1649_v48, %v1653_v49  ;;  %v11723_v1 = vcombine.low %v1650_v2, %v1654_v50  ;;  %v11753_v48 = vcombine.low %v1681_v20, %v1685_v21  ;;  %v1187_v50 = vld [vmem:[#allocation7 + $0x50] sm:$0xff] }
 0x27c   :  { %4426 = vmatprep.subr.bf16.mxu0 %v11682_v59  ;;  %4590 = vmatprep.subr.bf16.mxu1 %v11684_v63  ;;  %v11730_v59 = vcombine.high %v1657_v55, %v1661_v56  ;;  %v11732_v63 = vcombine.high %v1658_v57, %v1662_v25  ;;  %v1219_v21 = vld [vmem:[#allocation7 + $0x150] sm:$0xff] }
 0x27f   :  { %4427 = vmatpush1.bf16.msra.mxu0 %v11681_v60  ;;  %4591 = vmatpush1.bf16.msra.mxu1 %v11683_v39  ;;  %v13873_v60 = vsub.s32 6, %v13788_v22  ;;  %v11729_v39 = vcombine.low %v1657_v55, %v1661_v56  ;;  %v11739_v22 = vcombine.low %v1666_v9, %v1670_v54 }
 0x280   :  { %4428 = vmatprep.subr.bf16.mxu0 %v11690_v61  ;;  %4592 = vmatprep.subr.bf16.mxu1 %v11692_v62  ;;  %v11731_v61 = vcombine.low %v1658_v57, %v1662_v25  ;;  %v11738_v62 = vcombine.high %v1665_v0, %v1669_v7 }
 0x283   :  { %4429 = vmatpush1.bf16.msra.mxu0 %v11689_v12  ;;  %4593 = vmatpush1.bf16.msra.mxu1 %v11691_v13  ;;  %v1678_v12 = vld [vmem:[#allocation7 + $0xfa8] sm:$0xff]  ;;  %v13228_v13 = vld [vmem:[#allocation5] sm:$0xff] }
 0x284   :  { %4430 = vmatprep.subr.bf16.mxu0 %v11698_v16  ;;  %4594 = vmatprep.subr.bf16.mxu1 %v11700_v17  ;;  %v344_v16 = vrot.slane %v13228_v13, %v13873_v60  ;;  %v11737_v17 = vcombine.low %v1665_v0, %v1669_v7  ;;  %v11748_v19 = vcombine.high %v1674_v8, %v1678_v12  ;;  %v1211_v13 = vld [vmem:[#allocation7 + $0x110] sm:$0xff] }
 0x285   :  { %v11747_v34 = vcombine.low %v1674_v8, %v1678_v12 }
 0x287   :  { %4431 = vmatpush1.bf16.msra.mxu0 %v11697_v27  ;;  %4595 = vmatpush1.bf16.msra.mxu1 %v11699_v29  ;;  %v1682_v27 = vld [vmem:[#allocation7 + $0xfc8] sm:$0xff] }
 0x288   :  { %4432 = vmatprep.subr.bf16.mxu0 %v11706_v32  ;;  %4596 = vmatprep.subr.bf16.mxu1 %v11708_v33  ;;  %v1686_v29 = vld [vmem:[#allocation7 + $0xfe8] sm:$0xff]  ;;  %v1155_v32 = vadd.f32 %v13846_v35, %v344_v16  ;;  %v11745_v33 = vcombine.low %v1673_v4, %v1677_v6  ;;  %v1215_v16 = vld [vmem:[#allocation7 + $0x130] sm:$0xff] }
 0x289   :  { %v11756_v37 = vcombine.high %v1682_v27, %v1686_v29  ;;  %v11755_v49 = vcombine.low %v1682_v27, %v1686_v29  ;;  %v1223_v27 = vld [vmem:[#allocation7 + $0x170] sm:$0xff]  ;;  %v1220_v29 = vld [vmem:[#allocation7 + $0x158] sm:$0xff] }
 0x28b   :  { %4433 = vmatpush1.bf16.msra.mxu0 %v11705_v40  ;;  %4597 = vmatpush1.bf16.msra.mxu1 %v11707_v44  ;;  %v1183_v40 = vld [vmem:[#allocation7 + $0x30] sm:$0xff]  ;;  %v1180_v44 = vld [vmem:[#allocation7 + $0x18] sm:$0xff] }
 0x28c   :  { %4434 = vmatprep.subr.bf16.mxu0 %v11714_v45  ;;  %4598 = vmatprep.subr.bf16.mxu1 %v11716_v47  ;;  %v1184_v45 = vld [vmem:[#allocation7 + $0x38] sm:$0xff]  ;;  %v1167_v47 = vmax.f32 %v1155_v32, 0.0  ;;  %v11254_v35 = vcombine.high %v1179_v38, %v1183_v40  ;;  %v11253_v55 = vcombine.low %v1179_v38, %v1183_v40  ;;  %v1227_v38 = vld [vmem:[#allocation7 + $0x190] sm:$0xff] }
 0x28d   :  { %v11256_v2 = vcombine.high %v1180_v44, %v1184_v45  ;;  %v11255_v56 = vcombine.low %v1180_v44, %v1184_v45  ;;  %v1224_v32 = vld [vmem:[#allocation7 + $0x178] sm:$0xff]  ;;  %v1231_v40 = vld [vmem:[#allocation7 + $0x1b0] sm:$0xff] }
 0x28e   :  { %v1228_v44 = vld [vmem:[#allocation7 + $0x198] sm:$0xff] }
 0x28f   :  { %4435 = vmatpush1.bf16.msra.mxu0 %v11713_v23  ;;  %4599 = vmatpush1.bf16.msra.mxu1 %v11715_v51  ;;  %v13877_v23 = vpack.c.bf16 %v1167_v47, %v1167_v47  ;;  %v1191_v51 = vld [vmem:[#allocation7 + $0x70] sm:$0xff]  ;;  %v1232_v45 = vld [vmem:[#allocation7 + $0x1b8] sm:$0xff]  ;;  %v11293_v47 = vcombine.low %v1219_v21, %v1223_v27 }
 0x290   :  { %4436 = vmatprep.subr.bf16.mxu0 %v11722_v52  ;;  %4600 = vmatprep.subr.bf16.mxu1 %v11724_v53  ;;  %v1188_v52 = vld [vmem:[#allocation7 + $0x58] sm:$0xff]  ;;  %v11262_v57 = vcombine.high %v1187_v50, %v1191_v51  ;;  %v11261_v0 = vcombine.low %v1187_v50, %v1191_v51  ;;  %v1239_v50 = vld [vmem:[#allocation7 + $0x1f0] sm:$0xff] }
 0x291   :  { %v1192_v53 = vld [vmem:[#allocation7 + $0x78] sm:$0xff] }
 0x292   :  { %v11264_v25 = vcombine.high %v1188_v52, %v1192_v53  ;;  %v11263_v7 = vcombine.low %v1188_v52, %v1192_v53  ;;  %v1236_v51 = vld [vmem:[#allocation7 + $0x1d8] sm:$0xff]  ;;  %v11301_v53 = vcombine.low %v1227_v38, %v1231_v40 }
 0x293   :  { %4437 = vmatpush1.bf16.msra.mxu0 %v11721_v58  ;;  %4601 = vmatpush1.bf16.msra.mxu1 %v11723_v1  ;;  %v1195_v58 = vld [vmem:[#allocation7 + $0x90] sm:$0xff]  ;;  %v1240_v52 = vld [vmem:[#allocation7 + $0x1f8] sm:$0xff] }
 0x294   :  { %4438 = vmatprep.subr.bf16.mxu0 %v11730_v59  ;;  %4602 = vmatprep.subr.bf16.mxu1 %v11732_v63  ;;  %v1199_v1 = vld [vmem:[#allocation7 + $0xb0] sm:$0xff]  ;;  %v1196_v59 = vld [vmem:[#allocation7 + $0x98] sm:$0xff] }
 0x295   :  { %v1200_v63 = vld [vmem:[#allocation7 + $0xb8] sm:$0xff]  ;;  %v11270_v9 = vcombine.high %v1195_v58, %v1199_v1  ;;  %v11269_v4 = vcombine.low %v1195_v58, %v1199_v1  ;;  %v1247_v58 = vld [vmem:[#allocation7 + $0x230] sm:$0xff] }
 0x296   :  { %v11272_v54 = vcombine.high %v1196_v59, %v1200_v63  ;;  %v11271_v6 = vcombine.low %v1196_v59, %v1200_v63  ;;  %v1244_v1 = vld [vmem:[#allocation7 + $0x218] sm:$0xff] }
 0x297   :  { %4439 = vmatpush1.bf16.msra.mxu0 %v11729_v39  ;;  %4603 = vmatpush1.bf16.msra.mxu1 %v11731_v61  ;;  %v1203_v39 = vld [vmem:[#allocation7 + $0xd0] sm:$0xff]  ;;  %v1248_v59 = vld [vmem:[#allocation7 + $0x238] sm:$0xff] }
 0x298   :  { %4440 = vmatprep.subr.bf16.mxu0 %v11738_v62  ;;  %4604 = vmatprep.subr.bf16.mxu1 %v11740_v3  ;;  %v1207_v61 = vld [vmem:[#allocation7 + $0xf0] sm:$0xff]  ;;  %v1204_v62 = vld [vmem:[#allocation7 + $0xd8] sm:$0xff] }
 0x299   :  { %v1208_v3 = vld [vmem:[#allocation7 + $0xf8] sm:$0xff]  ;;  %v11278_v8 = vcombine.high %v1203_v39, %v1207_v61 }
 0x29a   :  { %v11280_v12 = vcombine.high %v1204_v62, %v1208_v3 }
 0x29b   :  { %4441 = vmatpush1.bf16.msra.mxu0 %v11737_v17  ;;  %4605 = vmatpush1.bf16.msra.mxu1 %v11739_v22  ;;  %v1216_v17 = vld [vmem:[#allocation7 + $0x138] sm:$0xff]  ;;  %v11277_v22 = vcombine.low %v1203_v39, %v1207_v61  ;;  %v1255_v39 = vld [vmem:[#allocation7 + $0x270] sm:$0xff] }
 0x29c   :  { %4442 = vmatprep.subr.bf16.mxu0 %v11746_v18  ;;  %4606 = vmatprep.subr.bf16.mxu1 %v11748_v19  ;;  %v11279_v18 = vcombine.low %v1204_v62, %v1208_v3  ;;  %v11286_v19 = vcombine.high %v1211_v13, %v1215_v16  ;;  %v1252_v61 = vld [vmem:[#allocation7 + $0x258] sm:$0xff] }
 0x29d   :  { %v1256_v62 = vld [vmem:[#allocation7 + $0x278] sm:$0xff] }
 0x29f   :  { %4443 = vmatpush1.bf16.msra.mxu0 %v11745_v33  ;;  %4607 = vmatpush1.bf16.msra.mxu1 %v11747_v34  ;;  %v11285_v33 = vcombine.low %v1211_v13, %v1215_v16  ;;  %v1263_v13 = vld [vmem:[#allocation7 + $0x2b0] sm:$0xff]  ;;  %v1260_v16 = vld [vmem:[#allocation7 + $0x298] sm:$0xff] }
 0x2a0   :  { %4444 = vmatprep.subr.bf16.mxu0 %v11754_v36  ;;  %4608 = vmatprep.subr.bf16.mxu1 %v11756_v37  ;;  %v11294_v36 = vcombine.high %v1219_v21, %v1223_v27  ;;  %v11296_v37 = vcombine.high %v1220_v29, %v1224_v32  ;;  %v1271_v21 = vld [vmem:[#allocation7 + $0x2f0] sm:$0xff]  ;;  %v1268_v27 = vld [vmem:[#allocation7 + $0x2d8] sm:$0xff] }
 0x2a3   :  { %4445 = vmatpush1.bf16.msra.mxu0 %v11753_v48  ;;  %4609 = vmatpush1.bf16.msra.mxu1 %v11755_v49  ;;  %v11295_v48 = vcombine.low %v1220_v29, %v1224_v32  ;;  %v11302_v49 = vcombine.high %v1227_v38, %v1231_v40  ;;  %v1272_v29 = vld [vmem:[#allocation7 + $0x2f8] sm:$0xff]  ;;  %v1279_v38 = vld [vmem:[#allocation7 + $0x330] sm:$0xff] }
 0x2a4   :  { %4619 = vmatprep.subr.bf16.mxu0 %v11254_v35  ;;  %4783 = vmatprep.subr.bf16.mxu1 %v11256_v2  ;;  %v11304_v35 = vcombine.high %v1228_v44, %v1232_v45  ;;  %v1235_v2 = vld [vmem:[#allocation7 + $0x1d0] sm:$0xff]  ;;  %v1276_v40 = vld [vmem:[#allocation7 + $0x318] sm:$0xff] }
 0x2a5   :  { %v11309_v63 = vcombine.low %v1235_v2, %v1239_v50 }
 0x2a6   :  { %4447 = vmatmul.mubr.bf16.vlgmr.msra.gmra.mrb[8].mxu0 %v13877_v23  ;;  %4611 = vmatmul.mubr.bf16.vlgmr.msra.gmra.mrb[8].mxu1 %v13877_v23 }
 0x2a7   :  { %4620 = vmatpush1.bf16.msra.mxu0 %v11253_v55  ;;  %4651 = vmatprep.mubr.bf16.mxu0 %v13805_v42  ;;  %v11303_v55 = vcombine.low %v1228_v44, %v1232_v45  ;;  %v1280_v44 = vld [vmem:[#allocation7 + $0x338] sm:$0xff] }
 0x2a8   :  { %4784 = vmatpush1.bf16.msra.mxu1 %v11255_v56  ;;  %4815 = vmatprep.mubr.bf16.mxu1 %v13805_v42  ;;  %v1212_v42 = vld [vmem:[#allocation7 + $0x118] sm:$0xff]  ;;  %v11310_v56 = vcombine.high %v1235_v2, %v1239_v50  ;;  %v1287_v2 = vld [vmem:[#allocation7 + $0x370] sm:$0xff] }
 0x2a9   :  { %4621 = vmatprep.subr.bf16.mxu0 %v11262_v57  ;;  %4785 = vmatprep.subr.bf16.mxu1 %v11264_v25  ;;  %v11288_v20 = vcombine.high %v1212_v42, %v1216_v17  ;;  %v11287_v34 = vcombine.low %v1212_v42, %v1216_v17  ;;  %v11312_v57 = vcombine.high %v1236_v51, %v1240_v52  ;;  %v1243_v25 = vld [vmem:[#allocation7 + $0x210] sm:$0xff]  ;;  %v1264_v42 = vld [vmem:[#allocation7 + $0x2b8] sm:$0xff] }
 0x2aa   :  { %v11317_v3 = vcombine.low %v1243_v25, %v1247_v58  ;;  %v1284_v50 = vld [vmem:[#allocation7 + $0x358] sm:$0xff] }
 0x2ab   :  { %4622 = vmatpush1.bf16.msra.mxu0 %v11261_v0  ;;  %v11311_v0 = vcombine.low %v1236_v51, %v1240_v52  ;;  %v1288_v51 = vld [vmem:[#allocation7 + $0x378] sm:$0xff] }
 0x2ac   :  { %4786 = vmatpush1.bf16.msra.mxu1 %v11263_v7  ;;  %4623 = vmatprep.subr.bf16.mxu0 %v11270_v9  ;;  %v11318_v7 = vcombine.high %v1243_v25, %v1247_v58  ;;  %v11320_v9 = vcombine.high %v1244_v1, %v1248_v59  ;;  %v1295_v25 = vld [vmem:[#allocation7 + $0x3b0] sm:$0xff]  ;;  %v1292_v58 = vld [vmem:[#allocation7 + $0x398] sm:$0xff] }
 0x2ad   :  { %4787 = vmatprep.subr.bf16.mxu1 %v11272_v54  ;;  %v1251_v54 = vld [vmem:[#allocation7 + $0x250] sm:$0xff] }
 0x2ae   :  { %v11325_v17 = vcombine.low %v1251_v54, %v1255_v39 }
 0x2af   :  { %4624 = vmatpush1.bf16.msra.mxu0 %v11269_v4  ;;  %v11319_v4 = vcombine.low %v1244_v1, %v1248_v59  ;;  %v1296_v1 = vld [vmem:[#allocation7 + $0x3b8] sm:$0xff] }
 0x2b0   :  { %4788 = vmatpush1.bf16.msra.mxu1 %v11271_v6  ;;  %4625 = vmatprep.subr.bf16.mxu0 %v11278_v8  ;;  %v11326_v6 = vcombine.high %v1251_v54, %v1255_v39  ;;  %v11328_v8 = vcombine.high %v1252_v61, %v1256_v62  ;;  %v1303_v54 = vld [vmem:[#allocation7 + $0x3f0] sm:$0xff]  ;;  %v1300_v39 = vld [vmem:[#allocation7 + $0x3d8] sm:$0xff] }
 0x2b1   :  { %4789 = vmatprep.subr.bf16.mxu1 %v11280_v12  ;;  %v1259_v12 = vld [vmem:[#allocation7 + $0x290] sm:$0xff] }
 0x2b2   :  { %v11333_v32 = vcombine.low %v1259_v12, %v1263_v13 }
 0x2b3   :  { %4626 = vmatpush1.bf16.msra.mxu0 %v11277_v22  ;;  %v11327_v22 = vcombine.low %v1252_v61, %v1256_v62  ;;  %v1304_v61 = vld [vmem:[#allocation7 + $0x3f8] sm:$0xff] }
 0x2b4   :  { %4790 = vmatpush1.bf16.msra.mxu1 %v11279_v18  ;;  %4627 = vmatprep.subr.bf16.mxu0 %v11286_v19  ;;  %v11334_v18 = vcombine.high %v1259_v12, %v1263_v13  ;;  %v11336_v19 = vcombine.high %v1260_v16, %v1264_v42  ;;  %v1311_v12 = vld [vmem:[#allocation7 + $0x430] sm:$0xff]  ;;  %v1308_v13 = vld [vmem:[#allocation7 + $0x418] sm:$0xff] }
 0x2b5   :  { %4791 = vmatprep.subr.bf16.mxu1 %v11288_v20  ;;  %v1267_v20 = vld [vmem:[#allocation7 + $0x2d0] sm:$0xff] }
 0x2b6   :  { %v11341_v45 = vcombine.low %v1267_v20, %v1271_v21 }
 0x2b7   :  { %4628 = vmatpush1.bf16.msra.mxu0 %v11285_v33  ;;  %v11335_v33 = vcombine.low %v1260_v16, %v1264_v42  ;;  %v1312_v16 = vld [vmem:[#allocation7 + $0x438] sm:$0xff] }
 0x2b8   :  { %4792 = vmatpush1.bf16.msra.mxu1 %v11287_v34  ;;  %4629 = vmatprep.subr.bf16.mxu0 %v11294_v36  ;;  %v11342_v34 = vcombine.high %v1267_v20, %v1271_v21  ;;  %v11344_v36 = vcombine.high %v1268_v27, %v1272_v29  ;;  %v1319_v20 = vld [vmem:[#allocation7 + $0x470] sm:$0xff] }
 0x2b9   :  { %4793 = vmatprep.subr.bf16.mxu1 %v11296_v37  ;;  %v1275_v37 = vld [vmem:[#allocation7 + $0x310] sm:$0xff] }
 0x2ba   :  { %v11349_v52 = vcombine.low %v1275_v37, %v1279_v38 }
 0x2bb   :  { %4630 = vmatpush1.bf16.msra.mxu0 %v11293_v47  ;;  %v11343_v47 = vcombine.low %v1268_v27, %v1272_v29  ;;  %v1316_v27 = vld [vmem:[#allocation7 + $0x458] sm:$0xff] }
 0x2bc   :  { %4794 = vmatpush1.bf16.msra.mxu1 %v11295_v48  ;;  %4631 = vmatprep.subr.bf16.mxu0 %v11302_v49  ;;  %v11350_v48 = vcombine.high %v1275_v37, %v1279_v38  ;;  %v11352_v49 = vcombine.high %v1276_v40, %v1280_v44  ;;  %v1320_v29 = vld [vmem:[#allocation7 + $0x478] sm:$0xff] }
 0x2bd   :  { %4795 = vmatprep.subr.bf16.mxu1 %v11304_v35  ;;  %v1283_v35 = vld [vmem:[#allocation7 + $0x350] sm:$0xff]  ;;  %v11392_v37 = vcombine.high %v1316_v27, %v1320_v29  ;;  %v1324_v38 = vld [vmem:[#allocation7 + $0x498] sm:$0xff] }
 0x2be   :  { %v11357_v59 = vcombine.low %v1283_v35, %v1287_v2 }
 0x2bf   :  { %4632 = vmatpush1.bf16.msra.mxu0 %v11301_v53  ;;  %v11351_v53 = vcombine.low %v1276_v40, %v1280_v44  ;;  %v1328_v40 = vld [vmem:[#allocation7 + $0x4b8] sm:$0xff] }
 0x2c0   :  { %4796 = vmatpush1.bf16.msra.mxu1 %v11303_v55  ;;  %4633 = vmatprep.subr.bf16.mxu0 %v11310_v56  ;;  %v11358_v55 = vcombine.high %v1283_v35, %v1287_v2  ;;  %v11360_v56 = vcombine.high %v1284_v50, %v1288_v51  ;;  %v1335_v35 = vld [vmem:[#allocation7 + $0x4f0] sm:$0xff]  ;;  %v1332_v2 = vld [vmem:[#allocation7 + $0x4d8] sm:$0xff] }
 0x2c1   :  { %4797 = vmatprep.subr.bf16.mxu1 %v11312_v57  ;;  %v1291_v57 = vld [vmem:[#allocation7 + $0x390] sm:$0xff] }
 0x2c2   :  { %v11365_v62 = vcombine.low %v1291_v57, %v1295_v25 }
 0x2c3   :  { %4634 = vmatpush1.bf16.msra.mxu0 %v11309_v63  ;;  %v11359_v63 = vcombine.low %v1284_v50, %v1288_v51  ;;  %v1336_v50 = vld [vmem:[#allocation7 + $0x4f8] sm:$0xff] }
 0x2c4   :  { %4798 = vmatpush1.bf16.msra.mxu1 %v11311_v0  ;;  %4635 = vmatprep.subr.bf16.mxu0 %v11318_v7  ;;  %v11366_v0 = vcombine.high %v1291_v57, %v1295_v25  ;;  %v11368_v7 = vcombine.high %v1292_v58, %v1296_v1  ;;  %v1340_v57 = vld [vmem:[#allocation7 + $0x518] sm:$0xff] }
 0x2c5   :  { %4799 = vmatprep.subr.bf16.mxu1 %v11320_v9  ;;  %v1299_v9 = vld [vmem:[#allocation7 + $0x3d0] sm:$0xff]  ;;  %v1344_v25 = vld [vmem:[#allocation7 + $0x538] sm:$0xff] }
 0x2c6   :  { %v11373_v42 = vcombine.low %v1299_v9, %v1303_v54 }
 0x2c7   :  { %4636 = vmatpush1.bf16.msra.mxu0 %v11317_v3  ;;  %v11367_v3 = vcombine.low %v1292_v58, %v1296_v1  ;;  %v11407_v58 = vcombine.low %v1332_v2, %v1336_v50 }
 0x2c8   :  { %4800 = vmatpush1.bf16.msra.mxu1 %v11319_v4  ;;  %4637 = vmatprep.subr.bf16.mxu0 %v11326_v6  ;;  %v11374_v4 = vcombine.high %v1299_v9, %v1303_v54  ;;  %v11376_v6 = vcombine.high %v1300_v39, %v1304_v61  ;;  %v1352_v9 = vld [vmem:[#allocation7 + $0x578] sm:$0xff] }
 0x2c9   :  { %4801 = vmatprep.subr.bf16.mxu1 %v11328_v8  ;;  %v1307_v8 = vld [vmem:[#allocation7 + $0x410] sm:$0xff] }
 0x2ca   :  { %v11381_v21 = vcombine.low %v1307_v8, %v1311_v12 }
 0x2cb   :  { %4638 = vmatpush1.bf16.msra.mxu0 %v11325_v17  ;;  %v11375_v17 = vcombine.low %v1300_v39, %v1304_v61  ;;  %v11415_v39 = vcombine.low %v1340_v57, %v1344_v25 }
 0x2cc   :  { %4802 = vmatpush1.bf16.msra.mxu1 %v11327_v22  ;;  %4639 = vmatprep.subr.bf16.mxu0 %v11334_v18  ;;  %v11382_v22 = vcombine.high %v1307_v8, %v1311_v12  ;;  %v11384_v18 = vcombine.high %v1308_v13, %v1312_v16  ;;  %v1360_v8 = vld [vmem:[#allocation7 + $0x5b8] sm:$0xff] }
 0x2cd   :  { %4803 = vmatprep.subr.bf16.mxu1 %v11336_v19  ;;  %v1315_v19 = vld [vmem:[#allocation7 + $0x450] sm:$0xff] }
 0x2ce   :  { %v11389_v44 = vcombine.low %v1315_v19, %v1319_v20 }
 0x2cf   :  { %4640 = vmatpush1.bf16.msra.mxu0 %v11333_v32  ;;  %v11383_v32 = vcombine.low %v1308_v13, %v1312_v16 }
 0x2d0   :  { %4804 = vmatpush1.bf16.msra.mxu1 %v11335_v33  ;;  %4641 = vmatprep.subr.bf16.mxu0 %v11342_v34  ;;  %v11390_v33 = vcombine.high %v1315_v19, %v1319_v20  ;;  %v1323_v34 = vld [vmem:[#allocation7 + $0x490] sm:$0xff]  ;;  %v1368_v19 = vld [vmem:[#allocation7 + $0x5f8] sm:$0xff] }
 0x2d1   :  { %4805 = vmatprep.subr.bf16.mxu1 %v11344_v36  ;;  %v1327_v36 = vld [vmem:[#allocation7 + $0x4b0] sm:$0xff] }
 0x2d2   :  { %v11397_v51 = vcombine.low %v1323_v34, %v1327_v36 }
 0x2d3   :  { %4642 = vmatpush1.bf16.msra.mxu0 %v11341_v45  ;;  %v11391_v45 = vcombine.low %v1316_v27, %v1320_v29 }
 0x2d4   :  { %4806 = vmatpush1.bf16.msra.mxu1 %v11343_v47  ;;  %4643 = vmatprep.subr.bf16.mxu0 %v11350_v48  ;;  %v11398_v47 = vcombine.high %v1323_v34, %v1327_v36  ;;  %v11400_v48 = vcombine.high %v1324_v38, %v1328_v40  ;;  %v1372_v34 = vld [vmem:[#allocation7 + $0x618] sm:$0xff] }
 0x2d5   :  { %4807 = vmatprep.subr.bf16.mxu1 %v11352_v49  ;;  %v1331_v49 = vld [vmem:[#allocation7 + $0x4d0] sm:$0xff]  ;;  %v1376_v36 = vld [vmem:[#allocation7 + $0x638] sm:$0xff] }
 0x2d7   :  { %4644 = vmatpush1.bf16.msra.mxu0 %v11349_v52  ;;  %v11406_v52 = vcombine.high %v1331_v49, %v1335_v35 }
 0x2d8   :  { %4808 = vmatpush1.bf16.msra.mxu1 %v11351_v53  ;;  %4645 = vmatprep.subr.bf16.mxu0 %v11358_v55  ;;  %v11408_v53 = vcombine.high %v1332_v2, %v1336_v50  ;;  %v1339_v55 = vld [vmem:[#allocation7 + $0x510] sm:$0xff]  ;;  %v11447_v2 = vcombine.low %v1372_v34, %v1376_v36 }
 0x2d9   :  { %4809 = vmatprep.subr.bf16.mxu1 %v11360_v56  ;;  %v1343_v56 = vld [vmem:[#allocation7 + $0x530] sm:$0xff] }
 0x2da   :  { %v11414_v1 = vcombine.high %v1339_v55, %v1343_v56  ;;  %v11413_v54 = vcombine.low %v1339_v55, %v1343_v56  ;;  %v1392_v55 = vld [vmem:[#allocation7 + $0x6b8] sm:$0xff] }
 0x2db   :  { %4646 = vmatpush1.bf16.msra.mxu0 %v11357_v59  ;;  %v11416_v59 = vcombine.high %v1340_v57, %v1344_v25 }
 0x2dc   :  { %4810 = vmatpush1.bf16.msra.mxu1 %v11359_v63  ;;  %4647 = vmatprep.subr.bf16.mxu0 %v11366_v0  ;;  %v1347_v63 = vld [vmem:[#allocation7 + $0x550] sm:$0xff] }
 0x2dd   :  { %4811 = vmatprep.subr.bf16.mxu1 %v11368_v7  ;;  %v1351_v0 = vld [vmem:[#allocation7 + $0x570] sm:$0xff]  ;;  %v1348_v7 = vld [vmem:[#allocation7 + $0x558] sm:$0xff] }
 0x2de   :  { %v11422_v61 = vcombine.high %v1347_v63, %v1351_v0  ;;  %v11421_v12 = vcombine.low %v1347_v63, %v1351_v0  ;;  %v11423_v13 = vcombine.low %v1348_v7, %v1352_v9  ;;  %v1400_v63 = vld [vmem:[#allocation7 + $0x6f8] sm:$0xff] }
 0x2df   :  { %4648 = vmatpush1.bf16.msra.mxu0 %v11365_v62  ;;  %v11424_v62 = vcombine.high %v1348_v7, %v1352_v9 }
 0x2e0   :  { %4812 = vmatpush1.bf16.msra.mxu1 %v11367_v3  ;;  %4649 = vmatprep.subr.bf16.mxu0 %v11374_v4  ;;  %v1355_v3 = vld [vmem:[#allocation7 + $0x590] sm:$0xff] }
 0x2e1   :  { %4813 = vmatprep.subr.bf16.mxu1 %v11376_v6  ;;  %v1359_v4 = vld [vmem:[#allocation7 + $0x5b0] sm:$0xff]  ;;  %v1356_v6 = vld [vmem:[#allocation7 + $0x598] sm:$0xff] }
 0x2e2   :  { %v11430_v16 = vcombine.high %v1355_v3, %v1359_v4  ;;  %v11429_v20 = vcombine.low %v1355_v3, %v1359_v4  ;;  %v1408_v3 = vld [vmem:[#allocation7 + $0x738] sm:$0xff] }
 0x2e3   :  { %4650 = vmatpush1.bf16.msra.mxu0 %v11373_v42  ;;  %v11432_v42 = vcombine.high %v1356_v6, %v1360_v8 }
 0x2e4   :  { %4814 = vmatpush1.bf16.msra.mxu1 %v11375_v17  ;;  %4660 = vmatprep.subr.bf16.mxu0 %v11382_v22  ;;  %v1363_v17 = vld [vmem:[#allocation7 + $0x5d0] sm:$0xff] }
 0x2e5   :  { %4824 = vmatprep.subr.bf16.mxu1 %v11384_v18  ;;  %v1367_v22 = vld [vmem:[#allocation7 + $0x5f0] sm:$0xff]  ;;  %v1364_v18 = vld [vmem:[#allocation7 + $0x5d8] sm:$0xff] }
 0x2e6   :  { %4652 = vmatmul.mubr.bf16.vlgmr.msra.gmra.mrb[12].mxu0 %v13807_v43  ;;  %v11438_v27 = vcombine.high %v1363_v17, %v1367_v22  ;;  %v11440_v29 = vcombine.high %v1364_v18, %v1368_v19 }
 0x2e7   :  { %4816 = vmatmul.mubr.bf16.vlgmr.msra.gmra.mrb[12].mxu1 %v13807_v43  ;;  %4661 = vmatpush1.bf16.msra.mxu0 %v11381_v21  ;;  %v11399_v43 = vcombine.low %v1324_v38, %v1328_v40  ;;  %v11431_v21 = vcombine.low %v1356_v6, %v1360_v8  ;;  %v11439_v38 = vcombine.low %v1364_v18, %v1368_v19 }
 0x2e8   :  { %4692 = vmatprep.mubr.bf16.mxu0 %v13823_v5  ;;  %4825 = vmatpush1.bf16.msra.mxu1 %v11383_v32  ;;  %v1371_v32 = vld [vmem:[#allocation7 + $0x610] sm:$0xff] }
 0x2e9   :  { %4856 = vmatprep.mubr.bf16.mxu1 %v13823_v5  ;;  %4662 = vmatprep.subr.bf16.mxu0 %v11390_v33  ;;  %v11405_v5 = vcombine.low %v1331_v49, %v1335_v35  ;;  %v1375_v33 = vld [vmem:[#allocation7 + $0x630] sm:$0xff]  ;;  %v1384_v49 = vld [vmem:[#allocation7 + $0x678] sm:$0xff] }
 0x2ea   :  { %4826 = vmatprep.subr.bf16.mxu1 %v11392_v37  ;;  %v11437_v37 = vcombine.low %v1363_v17, %v1367_v22  ;;  %v11446_v40 = vcombine.high %v1371_v32, %v1375_v33  ;;  %v11445_v35 = vcombine.low %v1371_v32, %v1375_v33  ;;  %v1416_v17 = vld [vmem:[#allocation7 + $0x778] sm:$0xff] }
 0x2eb   :  { %4663 = vmatpush1.bf16.msra.mxu0 %v11389_v44  ;;  %v11448_v44 = vcombine.high %v1372_v34, %v1376_v36  ;;  %v1424_v32 = vld [vmem:[#allocation7 + $0x7b8] sm:$0xff] }
 0x2ec   :  { %4827 = vmatpush1.bf16.msra.mxu1 %v11391_v45  ;;  %4664 = vmatprep.subr.bf16.mxu0 %v11398_v47  ;;  %v1379_v45 = vld [vmem:[#allocation7 + $0x650] sm:$0xff] }
 0x2ed   :  { %4828 = vmatprep.subr.bf16.mxu1 %v11400_v48  ;;  %v1383_v47 = vld [vmem:[#allocation7 + $0x670] sm:$0xff]  ;;  %v1380_v48 = vld [vmem:[#allocation7 + $0x658] sm:$0xff] }
 0x2ee   :  { %v11454_v50 = vcombine.high %v1379_v45, %v1383_v47  ;;  %v11453_v56 = vcombine.low %v1379_v45, %v1383_v47  ;;  %v11455_v57 = vcombine.low %v1380_v48, %v1384_v49  ;;  %v1432_v45 = vld [vmem:[#allocation7 + $0x7f8] sm:$0xff] }
 0x2ef   :  { %4665 = vmatpush1.bf16.msra.mxu0 %v11397_v51  ;;  %v11456_v51 = vcombine.high %v1380_v48, %v1384_v49 }
 0x2f0   :  { %4829 = vmatpush1.bf16.msra.mxu1 %v11399_v43  ;;  %4666 = vmatprep.subr.bf16.mxu0 %v11406_v52  ;;  %v1387_v43 = vld [vmem:[#allocation7 + $0x690] sm:$0xff] }
 0x2f1   :  { %4830 = vmatprep.subr.bf16.mxu1 %v11408_v53  ;;  %v1391_v52 = vld [vmem:[#allocation7 + $0x6b0] sm:$0xff]  ;;  %v1388_v53 = vld [vmem:[#allocation7 + $0x698] sm:$0xff] }
 0x2f2   :  { %v11462_v25 = vcombine.high %v1387_v43, %v1391_v52  ;;  %v11461_v0 = vcombine.low %v1387_v43, %v1391_v52  ;;  %v11463_v7 = vcombine.low %v1388_v53, %v1392_v55  ;;  %v1440_v43 = vld [vmem:[#allocation7 + $0x838] sm:$0xff] }
 0x2f3   :  { %4667 = vmatpush1.bf16.msra.mxu0 %v11405_v5  ;;  %v11464_v5 = vcombine.high %v1388_v53, %v1392_v55 }
 0x2f4   :  { %4831 = vmatpush1.bf16.msra.mxu1 %v11407_v58  ;;  %4668 = vmatprep.subr.bf16.mxu0 %v11414_v1  ;;  %v1395_v58 = vld [vmem:[#allocation7 + $0x6d0] sm:$0xff] }
 0x2f5   :  { %4832 = vmatprep.subr.bf16.mxu1 %v11416_v59  ;;  %v1399_v1 = vld [vmem:[#allocation7 + $0x6f0] sm:$0xff]  ;;  %v1396_v59 = vld [vmem:[#allocation7 + $0x6d8] sm:$0xff] }
 0x2f6   :  { %v11470_v9 = vcombine.high %v1395_v58, %v1399_v1  ;;  %v11469_v4 = vcombine.low %v1395_v58, %v1399_v1  ;;  %v11471_v6 = vcombine.low %v1396_v59, %v1400_v63  ;;  %v1444_v58 = vld [vmem:[#allocation7 + $0x858] sm:$0xff] }
 0x2f7   :  { %4669 = vmatpush1.bf16.msra.mxu0 %v11413_v54  ;;  %v11472_v54 = vcombine.high %v1396_v59, %v1400_v63  ;;  %v1448_v1 = vld [vmem:[#allocation7 + $0x878] sm:$0xff] }
 0x2f8   :  { %4833 = vmatpush1.bf16.msra.mxu1 %v11415_v39  ;;  %4670 = vmatprep.subr.bf16.mxu0 %v11422_v61  ;;  %v1403_v39 = vld [vmem:[#allocation7 + $0x710] sm:$0xff] }
 0x2f9   :  { %4834 = vmatprep.subr.bf16.mxu1 %v11424_v62  ;;  %v1407_v61 = vld [vmem:[#allocation7 + $0x730] sm:$0xff]  ;;  %v1404_v62 = vld [vmem:[#allocation7 + $0x718] sm:$0xff] }
 0x2fa   :  { %v11478_v8 = vcombine.high %v1403_v39, %v1407_v61  ;;  %v11477_v22 = vcombine.low %v1403_v39, %v1407_v61  ;;  %v11479_v18 = vcombine.low %v1404_v62, %v1408_v3  ;;  %v1456_v39 = vld [vmem:[#allocation7 + $0x8b8] sm:$0xff] }
 0x2fb   :  { %4671 = vmatpush1.bf16.msra.mxu0 %v11421_v12  ;;  %v11480_v12 = vcombine.high %v1404_v62, %v1408_v3  ;;  %v11519_v62 = vcombine.low %v1444_v58, %v1448_v1 }
 0x2fc   :  { %4835 = vmatpush1.bf16.msra.mxu1 %v11423_v13  ;;  %4672 = vmatprep.subr.bf16.mxu0 %v11430_v16  ;;  %v1411_v13 = vld [vmem:[#allocation7 + $0x750] sm:$0xff] }
 0x2fd   :  { %4836 = vmatprep.subr.bf16.mxu1 %v11432_v42  ;;  %v1415_v16 = vld [vmem:[#allocation7 + $0x770] sm:$0xff]  ;;  %v1412_v42 = vld [vmem:[#allocation7 + $0x758] sm:$0xff] }
 0x2fe   :  { %v11486_v19 = vcombine.high %v1411_v13, %v1415_v16  ;;  %v11485_v33 = vcombine.low %v1411_v13, %v1415_v16  ;;  %v11487_v34 = vcombine.low %v1412_v42, %v1416_v17  ;;  %v1464_v13 = vld [vmem:[#allocation7 + $0x8f8] sm:$0xff] }
 0x2ff   :  { %4673 = vmatpush1.bf16.msra.mxu0 %v11429_v20  ;;  %v11488_v20 = vcombine.high %v1412_v42, %v1416_v17 }
 0x300   :  { %4837 = vmatpush1.bf16.msra.mxu1 %v11431_v21  ;;  %4674 = vmatprep.subr.bf16.mxu0 %v11438_v27  ;;  %v1419_v21 = vld [vmem:[#allocation7 + $0x790] sm:$0xff] }
 0x301   :  { %4838 = vmatprep.subr.bf16.mxu1 %v11440_v29  ;;  %v1423_v27 = vld [vmem:[#allocation7 + $0x7b0] sm:$0xff]  ;;  %v1420_v29 = vld [vmem:[#allocation7 + $0x798] sm:$0xff] }
 0x302   :  { %v11494_v36 = vcombine.high %v1419_v21, %v1423_v27  ;;  %v11493_v47 = vcombine.low %v1419_v21, %v1423_v27  ;;  %v11495_v48 = vcombine.low %v1420_v29, %v1424_v32 }
 0x303   :  { %4675 = vmatpush1.bf16.msra.mxu0 %v11437_v37  ;;  %v11496_v37 = vcombine.high %v1420_v29, %v1424_v32  ;;  %v1475_v32 = vld [vmem:[#allocation7 + $0x950] sm:$0xff] }
 0x304   :  { %4839 = vmatpush1.bf16.msra.mxu1 %v11439_v38  ;;  %4676 = vmatprep.subr.bf16.mxu0 %v11446_v40  ;;  %v1427_v38 = vld [vmem:[#allocation7 + $0x7d0] sm:$0xff] }
 0x305   :  { %4840 = vmatprep.subr.bf16.mxu1 %v11448_v44  ;;  %v1431_v40 = vld [vmem:[#allocation7 + $0x7f0] sm:$0xff]  ;;  %v1428_v44 = vld [vmem:[#allocation7 + $0x7d8] sm:$0xff] }
 0x306   :  { %v11502_v49 = vcombine.high %v1427_v38, %v1431_v40  ;;  %v11501_v52 = vcombine.low %v1427_v38, %v1431_v40  ;;  %v11503_v53 = vcombine.low %v1428_v44, %v1432_v45 }
 0x307   :  { %4677 = vmatpush1.bf16.msra.mxu0 %v11445_v35  ;;  %v11504_v35 = vcombine.high %v1428_v44, %v1432_v45  ;;  %v1483_v45 = vld [vmem:[#allocation7 + $0x990] sm:$0xff] }
 0x308   :  { %4841 = vmatpush1.bf16.msra.mxu1 %v11447_v2  ;;  %4678 = vmatprep.subr.bf16.mxu0 %v11454_v50  ;;  %v1435_v2 = vld [vmem:[#allocation7 + $0x810] sm:$0xff] }
 0x309   :  { %4842 = vmatprep.subr.bf16.mxu1 %v11456_v51  ;;  %v1439_v50 = vld [vmem:[#allocation7 + $0x830] sm:$0xff]  ;;  %v1436_v51 = vld [vmem:[#allocation7 + $0x818] sm:$0xff] }
 0x30a   :  { %v11510_v55 = vcombine.high %v1435_v2, %v1439_v50  ;;  %v11511_v59 = vcombine.low %v1436_v51, %v1440_v43 }
 0x30b   :  { %4679 = vmatpush1.bf16.msra.mxu0 %v11453_v56  ;;  %v11512_v56 = vcombine.high %v1436_v51, %v1440_v43  ;;  %v1491_v43 = vld [vmem:[#allocation7 + $0x9d0] sm:$0xff] }
 0x30c   :  { %4843 = vmatpush1.bf16.msra.mxu1 %v11455_v57  ;;  %4680 = vmatprep.subr.bf16.mxu0 %v11462_v25  ;;  %v1443_v57 = vld [vmem:[#allocation7 + $0x850] sm:$0xff] }
 0x30d   :  { %4844 = vmatprep.subr.bf16.mxu1 %v11464_v5  ;;  %v1447_v25 = vld [vmem:[#allocation7 + $0x870] sm:$0xff]  ;;  %v11509_v5 = vcombine.low %v1435_v2, %v1439_v50 }
 0x30e   :  { %v11518_v63 = vcombine.high %v1443_v57, %v1447_v25  ;;  %v11517_v61 = vcombine.low %v1443_v57, %v1447_v25 }
 0x30f   :  { %4681 = vmatpush1.bf16.msra.mxu0 %v11461_v0  ;;  %v1451_v0 = vld [vmem:[#allocation7 + $0x890] sm:$0xff] }
 0x310   :  { %4845 = vmatpush1.bf16.msra.mxu1 %v11463_v7  ;;  %4682 = vmatprep.subr.bf16.mxu0 %v11470_v9  ;;  %v1455_v7 = vld [vmem:[#allocation7 + $0x8b0] sm:$0xff]  ;;  %v11520_v9 = vcombine.high %v1444_v58, %v1448_v1 }
 0x311   :  { %4846 = vmatprep.subr.bf16.mxu1 %v11472_v54  ;;  %v1452_v54 = vld [vmem:[#allocation7 + $0x898] sm:$0xff]  ;;  %v11526_v3 = vcombine.high %v1451_v0, %v1455_v7  ;;  %v11525_v16 = vcombine.low %v1451_v0, %v1455_v7  ;;  %v1499_v58 = vld [vmem:[#allocation7 + $0xa10] sm:$0xff] }
 0x312   :  { %v1503_v1 = vld [vmem:[#allocation7 + $0xa30] sm:$0xff] }
 0x313   :  { %4683 = vmatpush1.bf16.msra.mxu0 %v11469_v4  ;;  %v11528_v4 = vcombine.high %v1452_v54, %v1456_v39 }
 0x314   :  { %4847 = vmatpush1.bf16.msra.mxu1 %v11471_v6  ;;  %4684 = vmatprep.subr.bf16.mxu0 %v11478_v8  ;;  %v1459_v6 = vld [vmem:[#allocation7 + $0x8d0] sm:$0xff] }
 0x315   :  { %4848 = vmatprep.subr.bf16.mxu1 %v11480_v12  ;;  %v1463_v8 = vld [vmem:[#allocation7 + $0x8f0] sm:$0xff]  ;;  %v1460_v12 = vld [vmem:[#allocation7 + $0x8d8] sm:$0xff] }
 0x316   :  { %v11534_v42 = vcombine.high %v1459_v6, %v1463_v8  ;;  %v11536_v17 = vcombine.high %v1460_v12, %v1464_v13  ;;  %v11535_v21 = vcombine.low %v1460_v12, %v1464_v13  ;;  %v1515_v13 = vld [vmem:[#allocation7 + $0xa90] sm:$0xff] }
 0x317   :  { %4685 = vmatpush1.bf16.msra.mxu0 %v11477_v22  ;;  %v1467_v22 = vld [vmem:[#allocation7 + $0x910] sm:$0xff] }
 0x318   :  { %4849 = vmatpush1.bf16.msra.mxu1 %v11479_v18  ;;  %4686 = vmatprep.subr.bf16.mxu0 %v11486_v19  ;;  %v1471_v18 = vld [vmem:[#allocation7 + $0x930] sm:$0xff]  ;;  %v1468_v19 = vld [vmem:[#allocation7 + $0x918] sm:$0xff] }
 0x319   :  { %4850 = vmatprep.subr.bf16.mxu1 %v11488_v20  ;;  %v1472_v20 = vld [vmem:[#allocation7 + $0x938] sm:$0xff]  ;;  %v11542_v27 = vcombine.high %v1467_v22, %v1471_v18 }
 0x31a   :  { %v11544_v29 = vcombine.high %v1468_v19, %v1472_v20  ;;  %v11543_v38 = vcombine.low %v1468_v19, %v1472_v20  ;;  %v1523_v20 = vld [vmem:[#allocation7 + $0xad0] sm:$0xff] }
 0x31b   :  { %4687 = vmatpush1.bf16.msra.mxu0 %v11485_v33  ;;  %v1479_v33 = vld [vmem:[#allocation7 + $0x970] sm:$0xff] }
 0x31c   :  { %4851 = vmatpush1.bf16.msra.mxu1 %v11487_v34  ;;  %4688 = vmatprep.subr.bf16.mxu0 %v11494_v36  ;;  %v1476_v34 = vld [vmem:[#allocation7 + $0x958] sm:$0xff]  ;;  %v11550_v40 = vcombine.high %v1475_v32, %v1479_v33 }
 0x31d   :  { %4852 = vmatprep.subr.bf16.mxu1 %v11496_v37  ;;  %v1480_v36 = vld [vmem:[#allocation7 + $0x978] sm:$0xff]  ;;  %v11541_v37 = vcombine.low %v1467_v22, %v1471_v18 }
 0x31e   :  { %v11552_v44 = vcombine.high %v1476_v34, %v1480_v36  ;;  %v11551_v2 = vcombine.low %v1476_v34, %v1480_v36  ;;  %v1531_v36 = vld [vmem:[#allocation7 + $0xb10] sm:$0xff] }
 0x31f   :  { %4689 = vmatpush1.bf16.msra.mxu0 %v11493_v47  ;;  %v1487_v47 = vld [vmem:[#allocation7 + $0x9b0] sm:$0xff] }
 0x320   :  { %4853 = vmatpush1.bf16.msra.mxu1 %v11495_v48  ;;  %4690 = vmatprep.subr.bf16.mxu0 %v11502_v49  ;;  %v1484_v48 = vld [vmem:[#allocation7 + $0x998] sm:$0xff]  ;;  %v11558_v50 = vcombine.high %v1483_v45, %v1487_v47 }
 0x321   :  { %4854 = vmatprep.subr.bf16.mxu1 %v11504_v35  ;;  %v1488_v49 = vld [vmem:[#allocation7 + $0x9b8] sm:$0xff]  ;;  %v11549_v35 = vcombine.low %v1475_v32, %v1479_v33 }
 0x322   :  { %v11560_v51 = vcombine.high %v1484_v48, %v1488_v49  ;;  %v11559_v57 = vcombine.low %v1484_v48, %v1488_v49  ;;  %v1539_v49 = vld [vmem:[#allocation7 + $0xb50] sm:$0xff] }
 0x323   :  { %4691 = vmatpush1.bf16.msra.mxu0 %v11501_v52  ;;  %v1495_v52 = vld [vmem:[#allocation7 + $0x9f0] sm:$0xff] }
 0x324   :  { %4855 = vmatpush1.bf16.msra.mxu1 %v11503_v53  ;;  %4701 = vmatprep.subr.bf16.mxu0 %v11510_v55  ;;  %v1492_v53 = vld [vmem:[#allocation7 + $0x9d8] sm:$0xff]  ;;  %v11566_v25 = vcombine.high %v1491_v43, %v1495_v52  ;;  %v11565_v0 = vcombine.low %v1491_v43, %v1495_v52 }
 0x325   :  { %4865 = vmatprep.subr.bf16.mxu1 %v11512_v56  ;;  %v1496_v55 = vld [vmem:[#allocation7 + $0x9f8] sm:$0xff]  ;;  %v11557_v56 = vcombine.low %v1483_v45, %v1487_v47 }
 0x326   :  { %4693 = vmatmul.mubr.bf16.vlgmr.msra.gmra.mrb[12].mxu0 %v13840_v14  ;;  %v11567_v7 = vcombine.low %v1492_v53, %v1496_v55 }
 0x327   :  { %4857 = vmatmul.mubr.bf16.vlgmr.msra.gmra.mrb[12].mxu1 %v13840_v14  ;;  %4702 = vmatpush1.bf16.msra.mxu0 %v11509_v5  ;;  %v11527_v14 = vcombine.low %v1452_v54, %v1456_v39  ;;  %v11568_v5 = vcombine.high %v1492_v53, %v1496_v55  ;;  %v1507_v39 = vld [vmem:[#allocation7 + $0xa50] sm:$0xff] }
 0x328   :  { %4733 = vmatprep.mubr.bf16.mxu0 %v13842_v28  ;;  %4866 = vmatpush1.bf16.msra.mxu1 %v11511_v59  ;;  %v1500_v59 = vld [vmem:[#allocation7 + $0xa18] sm:$0xff]  ;;  %v1547_v55 = vld [vmem:[#allocation7 + $0xb90] sm:$0xff] }
 0x329   :  { %4897 = vmatprep.mubr.bf16.mxu1 %v13842_v28  ;;  %4703 = vmatprep.subr.bf16.mxu0 %v11518_v63  ;;  %v11533_v28 = vcombine.low %v1459_v6, %v1463_v8  ;;  %v1504_v63 = vld [vmem:[#allocation7 + $0xa38] sm:$0xff] }
 0x32a   :  { %4867 = vmatprep.subr.bf16.mxu1 %v11520_v9  ;;  %v11574_v9 = vcombine.high %v1499_v58, %v1503_v1  ;;  %v11576_v54 = vcombine.high %v1500_v59, %v1504_v63  ;;  %v11575_v6 = vcombine.low %v1500_v59, %v1504_v63  ;;  %v1555_v63 = vld [vmem:[#allocation7 + $0xbd0] sm:$0xff] }
 0x32b   :  { %4704 = vmatpush1.bf16.msra.mxu0 %v11517_v61  ;;  %v1511_v61 = vld [vmem:[#allocation7 + $0xa70] sm:$0xff] }
 0x32c   :  { %4868 = vmatpush1.bf16.msra.mxu1 %v11519_v62  ;;  %4705 = vmatprep.subr.bf16.mxu0 %v11526_v3  ;;  %v1508_v62 = vld [vmem:[#allocation7 + $0xa58] sm:$0xff]  ;;  %v11582_v8 = vcombine.high %v1507_v39, %v1511_v61 }
 0x32d   :  { %4869 = vmatprep.subr.bf16.mxu1 %v11528_v4  ;;  %v1512_v3 = vld [vmem:[#allocation7 + $0xa78] sm:$0xff]  ;;  %v11573_v4 = vcombine.low %v1499_v58, %v1503_v1 }
 0x32e   :  { %v11584_v12 = vcombine.high %v1508_v62, %v1512_v3  ;;  %v11583_v22 = vcombine.low %v1508_v62, %v1512_v3  ;;  %v1563_v3 = vld [vmem:[#allocation7 + $0xc10] sm:$0xff] }
 0x32f   :  { %4706 = vmatpush1.bf16.msra.mxu0 %v11525_v16  ;;  %v1519_v16 = vld [vmem:[#allocation7 + $0xab0] sm:$0xff] }
 0x330   :  { %4870 = vmatpush1.bf16.msra.mxu1 %v11527_v14  ;;  %4707 = vmatprep.subr.bf16.mxu0 %v11534_v42  ;;  %v1516_v14 = vld [vmem:[#allocation7 + $0xa98] sm:$0xff]  ;;  %v11590_v18 = vcombine.high %v1515_v13, %v1519_v16 }
 0x331   :  { %4871 = vmatprep.subr.bf16.mxu1 %v11536_v17  ;;  %v1520_v42 = vld [vmem:[#allocation7 + $0xab8] sm:$0xff]  ;;  %v11581_v17 = vcombine.low %v1507_v39, %v1511_v61 }
 0x332   :  { %v11592_v19 = vcombine.high %v1516_v14, %v1520_v42  ;;  %v11591_v32 = vcombine.low %v1516_v14, %v1520_v42  ;;  %v1571_v42 = vld [vmem:[#allocation7 + $0xc50] sm:$0xff] }
 0x333   :  { %4708 = vmatpush1.bf16.msra.mxu0 %v11533_v28  ;;  %v1527_v28 = vld [vmem:[#allocation7 + $0xaf0] sm:$0xff] }
 0x334   :  { %4872 = vmatpush1.bf16.msra.mxu1 %v11535_v21  ;;  %4709 = vmatprep.subr.bf16.mxu0 %v11542_v27  ;;  %v1524_v21 = vld [vmem:[#allocation7 + $0xad8] sm:$0xff]  ;;  %v11598_v33 = vcombine.high %v1523_v20, %v1527_v28 }
 0x335   :  { %4873 = vmatprep.subr.bf16.mxu1 %v11544_v29  ;;  %v1528_v27 = vld [vmem:[#allocation7 + $0xaf8] sm:$0xff]  ;;  %v11589_v29 = vcombine.low %v1515_v13, %v1519_v16 }
 0x336   :  { %v11600_v34 = vcombine.high %v1524_v21, %v1528_v27  ;;  %v11599_v45 = vcombine.low %v1524_v21, %v1528_v27  ;;  %v1579_v21 = vld [vmem:[#allocation7 + $0xc90] sm:$0xff] }
 0x337   :  { %4710 = vmatpush1.bf16.msra.mxu0 %v11541_v37  ;;  %v1535_v37 = vld [vmem:[#allocation7 + $0xb30] sm:$0xff] }
 0x338   :  { %4874 = vmatpush1.bf16.msra.mxu1 %v11543_v38  ;;  %4711 = vmatprep.subr.bf16.mxu0 %v11550_v40  ;;  %v1532_v38 = vld [vmem:[#allocation7 + $0xb18] sm:$0xff]  ;;  %v11606_v47 = vcombine.high %v1531_v36, %v1535_v37  ;;  %v1583_v27 = vld [vmem:[#allocation7 + $0xcb0] sm:$0xff] }
 0x339   :  { %4875 = vmatprep.subr.bf16.mxu1 %v11552_v44  ;;  %v1536_v40 = vld [vmem:[#allocation7 + $0xb38] sm:$0xff]  ;;  %v11597_v44 = vcombine.low %v1523_v20, %v1527_v28 }
 0x33a   :  { %v11608_v48 = vcombine.high %v1532_v38, %v1536_v40  ;;  %v11607_v43 = vcombine.low %v1532_v38, %v1536_v40  ;;  %v1587_v40 = vld [vmem:[#allocation7 + $0xcd0] sm:$0xff] }
 0x33b   :  { %4712 = vmatpush1.bf16.msra.mxu0 %v11549_v35  ;;  %v1543_v35 = vld [vmem:[#allocation7 + $0xb70] sm:$0xff] }
 0x33c   :  { %4876 = vmatpush1.bf16.msra.mxu1 %v11551_v2  ;;  %4713 = vmatprep.subr.bf16.mxu0 %v11558_v50  ;;  %v1540_v2 = vld [vmem:[#allocation7 + $0xb58] sm:$0xff]  ;;  %v11614_v52 = vcombine.high %v1539_v49, %v1543_v35 }
 0x33d   :  { %4877 = vmatprep.subr.bf16.mxu1 %v11560_v51  ;;  %v1544_v50 = vld [vmem:[#allocation7 + $0xb78] sm:$0xff]  ;;  %v11605_v51 = vcombine.low %v1531_v36, %v1535_v37  ;;  %v11654_v37 = vcombine.high %v1579_v21, %v1583_v27 }
 0x33e   :  { %v11616_v53 = vcombine.high %v1540_v2, %v1544_v50  ;;  %v11615_v58 = vcombine.low %v1540_v2, %v1544_v50  ;;  %v1595_v2 = vld [vmem:[#allocation7 + $0xd10] sm:$0xff] }
 0x33f   :  { %4714 = vmatpush1.bf16.msra.mxu0 %v11557_v56  ;;  %v1551_v56 = vld [vmem:[#allocation7 + $0xbb0] sm:$0xff] }
 0x340   :  { %4878 = vmatpush1.bf16.msra.mxu1 %v11559_v57  ;;  %4715 = vmatprep.subr.bf16.mxu0 %v11566_v25  ;;  %v1548_v57 = vld [vmem:[#allocation7 + $0xb98] sm:$0xff]  ;;  %v11622_v1 = vcombine.high %v1547_v55, %v1551_v56  ;;  %v1599_v50 = vld [vmem:[#allocation7 + $0xd30] sm:$0xff] }
 0x341   :  { %4879 = vmatprep.subr.bf16.mxu1 %v11568_v5  ;;  %v1552_v25 = vld [vmem:[#allocation7 + $0xbb8] sm:$0xff]  ;;  %v11613_v5 = vcombine.low %v1539_v49, %v1543_v35 }
 0x342   :  { %v11624_v59 = vcombine.high %v1548_v57, %v1552_v25  ;;  %v11623_v39 = vcombine.low %v1548_v57, %v1552_v25  ;;  %v1607_v57 = vld [vmem:[#allocation7 + $0xd70] sm:$0xff]  ;;  %v1604_v25 = vld [vmem:[#allocation7 + $0xd58] sm:$0xff] }
 0x343   :  { %4716 = vmatpush1.bf16.msra.mxu0 %v11565_v0  ;;  %v1559_v0 = vld [vmem:[#allocation7 + $0xbf0] sm:$0xff] }
 0x344   :  { %4880 = vmatpush1.bf16.msra.mxu1 %v11567_v7  ;;  %4717 = vmatprep.subr.bf16.mxu0 %v11574_v9  ;;  %v1556_v7 = vld [vmem:[#allocation7 + $0xbd8] sm:$0xff]  ;;  %v11630_v61 = vcombine.high %v1555_v63, %v1559_v0 }
 0x345   :  { %4881 = vmatprep.subr.bf16.mxu1 %v11576_v54  ;;  %v1560_v9 = vld [vmem:[#allocation7 + $0xbf8] sm:$0xff]  ;;  %v11621_v54 = vcombine.low %v1547_v55, %v1551_v56  ;;  %v1603_v56 = vld [vmem:[#allocation7 + $0xd50] sm:$0xff] }
 0x346   :  { %v11632_v62 = vcombine.high %v1556_v7, %v1560_v9  ;;  %v11631_v13 = vcombine.low %v1556_v7, %v1560_v9  ;;  %v1615_v7 = vld [vmem:[#allocation7 + $0xdb0] sm:$0xff]  ;;  %v1612_v9 = vld [vmem:[#allocation7 + $0xd98] sm:$0xff] }
 0x347   :  { %4718 = vmatpush1.bf16.msra.mxu0 %v11573_v4  ;;  %v1567_v4 = vld [vmem:[#allocation7 + $0xc30] sm:$0xff] }
 0x348   :  { %4882 = vmatpush1.bf16.msra.mxu1 %v11575_v6  ;;  %4719 = vmatprep.subr.bf16.mxu0 %v11582_v8  ;;  %v1564_v6 = vld [vmem:[#allocation7 + $0xc18] sm:$0xff]  ;;  %v11638_v16 = vcombine.high %v1563_v3, %v1567_v4 }
 0x349   :  { %4883 = vmatprep.subr.bf16.mxu1 %v11584_v12  ;;  %v1568_v8 = vld [vmem:[#allocation7 + $0xc38] sm:$0xff]  ;;  %v11629_v12 = vcombine.low %v1555_v63, %v1559_v0  ;;  %v1611_v0 = vld [vmem:[#allocation7 + $0xd90] sm:$0xff] }
 0x34a   :  { %v11640_v14 = vcombine.high %v1564_v6, %v1568_v8  ;;  %v11639_v20 = vcombine.low %v1564_v6, %v1568_v8  ;;  %v1619_v8 = vld [vmem:[#allocation7 + $0xdd0] sm:$0xff] }
 0x34b   :  { %4720 = vmatpush1.bf16.msra.mxu0 %v11581_v17  ;;  %v1575_v17 = vld [vmem:[#allocation7 + $0xc70] sm:$0xff] }
 0x34c   :  { %4884 = vmatpush1.bf16.msra.mxu1 %v11583_v22  ;;  %4721 = vmatprep.subr.bf16.mxu0 %v11590_v18  ;;  %v11637_v22 = vcombine.low %v1563_v3, %v1567_v4  ;;  %v1572_v18 = vld [vmem:[#allocation7 + $0xc58] sm:$0xff]  ;;  %v11646_v28 = vcombine.high %v1571_v42, %v1575_v17 }
 0x34d   :  { %4885 = vmatprep.subr.bf16.mxu1 %v11592_v19  ;;  %v1576_v19 = vld [vmem:[#allocation7 + $0xc78] sm:$0xff] }
 0x34e   :  { %v11647_v36 = vcombine.low %v1572_v18, %v1576_v19 }
 0x34f   :  { %4722 = vmatpush1.bf16.msra.mxu0 %v11589_v29  ;;  %v11648_v29 = vcombine.high %v1572_v18, %v1576_v19  ;;  %v11685_v18 = vcombine.low %v1611_v0, %v1615_v7 }
 0x350   :  { %4886 = vmatpush1.bf16.msra.mxu1 %v11591_v32  ;;  %4723 = vmatprep.subr.bf16.mxu0 %v11598_v33  ;;  %v1580_v32 = vld [vmem:[#allocation7 + $0xc98] sm:$0xff] }
 0x351   :  { %4887 = vmatprep.subr.bf16.mxu1 %v11600_v34  ;;  %v1584_v33 = vld [vmem:[#allocation7 + $0xcb8] sm:$0xff]  ;;  %v11645_v34 = vcombine.low %v1571_v42, %v1575_v17 }
 0x352   :  { %v11656_v38 = vcombine.high %v1580_v32, %v1584_v33  ;;  %v1624_v42 = vld [vmem:[#allocation7 + $0xdf8] sm:$0xff] }
 0x353   :  { %4724 = vmatpush1.bf16.msra.mxu0 %v11597_v44  ;;  %v1591_v44 = vld [vmem:[#allocation7 + $0xcf0] sm:$0xff] }
 0x354   :  { %4888 = vmatpush1.bf16.msra.mxu1 %v11599_v45  ;;  %4725 = vmatprep.subr.bf16.mxu0 %v11606_v47  ;;  %v1588_v45 = vld [vmem:[#allocation7 + $0xcd8] sm:$0xff]  ;;  %v11662_v49 = vcombine.high %v1587_v40, %v1591_v44 }
 0x355   :  { %4889 = vmatprep.subr.bf16.mxu1 %v11608_v48  ;;  %v1592_v47 = vld [vmem:[#allocation7 + $0xcf8] sm:$0xff]  ;;  %v11653_v48 = vcombine.low %v1579_v21, %v1583_v27 }
 0x356   :  { %v11664_v35 = vcombine.high %v1588_v45, %v1592_v47 }
 0x357   :  { %4726 = vmatpush1.bf16.msra.mxu0 %v11605_v51  ;;  %v1596_v51 = vld [vmem:[#allocation7 + $0xd18] sm:$0xff] }
 0x358   :  { %4890 = vmatpush1.bf16.msra.mxu1 %v11607_v43  ;;  %4727 = vmatprep.subr.bf16.mxu0 %v11614_v52  ;;  %v1600_v43 = vld [vmem:[#allocation7 + $0xd38] sm:$0xff]  ;;  %v11663_v52 = vcombine.low %v1588_v45, %v1592_v47  ;;  %v1639_v45 = vld [vmem:[#allocation7 + $0xe70] sm:$0xff] }
 0x359   :  { %4891 = vmatprep.subr.bf16.mxu1 %v11616_v53  ;;  %v11670_v53 = vcombine.high %v1595_v2, %v1599_v50  ;;  %v11672_v55 = vcombine.high %v1596_v51, %v1600_v43  ;;  %v1636_v47 = vld [vmem:[#allocation7 + $0xe58] sm:$0xff] }
 0x35b   :  { %4728 = vmatpush1.bf16.msra.mxu0 %v11613_v5  ;;  %v1608_v5 = vld [vmem:[#allocation7 + $0xd78] sm:$0xff] }
 0x35c   :  { %4892 = vmatpush1.bf16.msra.mxu1 %v11615_v58  ;;  %4729 = vmatprep.subr.bf16.mxu0 %v11622_v1  ;;  %v11669_v58 = vcombine.low %v1595_v2, %v1599_v50  ;;  %v11671_v1 = vcombine.low %v1596_v51, %v1600_v43  ;;  %v11680_v63 = vcombine.high %v1604_v25, %v1608_v5  ;;  %v1643_v50 = vld [vmem:[#allocation7 + $0xe90] sm:$0xff]  ;;  %v1644_v43 = vld [vmem:[#allocation7 + $0xe98] sm:$0xff] }
 0x35d   :  { %4893 = vmatprep.subr.bf16.mxu1 %v11624_v59  ;;  %v11678_v59 = vcombine.high %v1603_v56, %v1607_v57  ;;  %v1647_v51 = vld [vmem:[#allocation7 + $0xeb0] sm:$0xff] }
 0x35f   :  { %4730 = vmatpush1.bf16.msra.mxu0 %v11621_v54  ;;  %v1616_v54 = vld [vmem:[#allocation7 + $0xdb8] sm:$0xff] }
 0x360   :  { %4894 = vmatpush1.bf16.msra.mxu1 %v11623_v39  ;;  %4731 = vmatprep.subr.bf16.mxu0 %v11630_v61  ;;  %v11677_v39 = vcombine.low %v1603_v56, %v1607_v57  ;;  %v11679_v61 = vcombine.low %v1604_v25, %v1608_v5  ;;  %v11688_v6 = vcombine.high %v1612_v9, %v1616_v54  ;;  %v1651_v57 = vld [vmem:[#allocation7 + $0xed0] sm:$0xff]  ;;  %v1652_v5 = vld [vmem:[#allocation7 + $0xed8] sm:$0xff] }
 0x361   :  { %4895 = vmatprep.subr.bf16.mxu1 %v11632_v62  ;;  %v11686_v62 = vcombine.high %v1611_v0, %v1615_v7  ;;  %v1655_v25 = vld [vmem:[#allocation7 + $0xef0] sm:$0xff] }
 0x362   :  { %v1659_v7 = vld [vmem:[#allocation7 + $0xf10] sm:$0xff] }
 0x363   :  { %4732 = vmatpush1.bf16.msra.mxu0 %v11629_v12  ;;  %v1623_v12 = vld [vmem:[#allocation7 + $0xdf0] sm:$0xff] }
 0x364   :  { %4896 = vmatpush1.bf16.msra.mxu1 %v11631_v13  ;;  %4742 = vmatprep.subr.bf16.mxu0 %v11638_v16  ;;  %v11694_v21 = vcombine.high %v1619_v8, %v1623_v12 }
 0x365   :  { %4906 = vmatprep.subr.bf16.mxu1 %v11640_v14  ;;  %v1620_v14 = vld [vmem:[#allocation7 + $0xdd8] sm:$0xff] }
 0x366   :  { %4734 = vmatmul.mubr.bf16.vlgmr.msra.gmra.mrb[12].mxu0 %v13864_v10  ;;  %v11696_v27 = vcombine.high %v1620_v14, %v1624_v42 }
 0x367   :  { %4898 = vmatmul.mubr.bf16.vlgmr.msra.gmra.mrb[12].mxu1 %v13864_v10  ;;  %4743 = vmatpush1.bf16.msra.mxu0 %v11637_v22  ;;  %v11655_v10 = vcombine.low %v1580_v32, %v1584_v33  ;;  %v1631_v32 = vld [vmem:[#allocation7 + $0xe30] sm:$0xff]  ;;  %v1628_v33 = vld [vmem:[#allocation7 + $0xe18] sm:$0xff] }
 0x368   :  { %4774 = vmatprep.mubr.bf16.mxu0 %v13866_v11  ;;  %4907 = vmatpush1.bf16.msra.mxu1 %v11639_v20 }
 0x369   :  { %4938 = vmatprep.mubr.bf16.mxu1 %v13866_v11  ;;  %4744 = vmatprep.subr.bf16.mxu0 %v11646_v28  ;;  %v11661_v11 = vcombine.low %v1587_v40, %v1591_v44  ;;  %v11687_v28 = vcombine.low %v1612_v9, %v1616_v54  ;;  %v1635_v44 = vld [vmem:[#allocation7 + $0xe50] sm:$0xff]  ;;  %v1660_v54 = vld [vmem:[#allocation7 + $0xf18] sm:$0xff] }
 0x36a   :  { %4908 = vmatprep.subr.bf16.mxu1 %v11648_v29  ;;  %v1627_v29 = vld [vmem:[#allocation7 + $0xe10] sm:$0xff] }
 0x36b   :  { %4745 = vmatpush1.bf16.msra.mxu0 %v11645_v34  ;;  %v1632_v34 = vld [vmem:[#allocation7 + $0xe38] sm:$0xff]  ;;  %v1663_v9 = vld [vmem:[#allocation7 + $0xf30] sm:$0xff] }
 0x36c   :  { %4909 = vmatpush1.bf16.msra.mxu1 %v11647_v36  ;;  %4746 = vmatprep.subr.bf16.mxu0 %v11654_v37  ;;  %v11693_v36 = vcombine.low %v1619_v8, %v1623_v12  ;;  %v11695_v37 = vcombine.low %v1620_v14, %v1624_v42  ;;  %v11704_v40 = vcombine.high %v1628_v33, %v1632_v34  ;;  %v1667_v12 = vld [vmem:[#allocation7 + $0xf50] sm:$0xff]  ;;  %v1668_v42 = vld [vmem:[#allocation7 + $0xf58] sm:$0xff] }
 0x36d   :  { %4910 = vmatprep.subr.bf16.mxu1 %v11656_v38  ;;  %v11702_v38 = vcombine.high %v1627_v29, %v1631_v32  ;;  %v1671_v14 = vld [vmem:[#allocation7 + $0xf70] sm:$0xff] }
 0x36f   :  { %4747 = vmatpush1.bf16.msra.mxu0 %v11653_v48  ;;  %v1640_v48 = vld [vmem:[#allocation7 + $0xe78] sm:$0xff] }
 0x370   :  { %4911 = vmatpush1.bf16.msra.mxu1 %v11655_v10  ;;  %4748 = vmatprep.subr.bf16.mxu0 %v11662_v49  ;;  %v11701_v10 = vcombine.low %v1627_v29, %v1631_v32  ;;  %v11703_v49 = vcombine.low %v1628_v33, %v1632_v34  ;;  %v11712_v2 = vcombine.high %v1636_v47, %v1640_v48  ;;  %v1680_v29 = vld [vmem:[#allocation7 + $0xfb8] sm:$0xff]  ;;  %v13903_v32 = vld [vmem:[#allocation8] sm:$0xff] }
 0x371   :  { %4912 = vmatprep.subr.bf16.mxu1 %v11664_v35  ;;  %v11710_v35 = vcombine.high %v1635_v44, %v1639_v45  ;;  %v11741_v33 = vcombine.low %v1667_v12, %v1671_v14 }
 0x373   :  { %4749 = vmatpush1.bf16.msra.mxu0 %v11661_v11  ;;  %v1648_v11 = vld [vmem:[#allocation7 + $0xeb8] sm:$0xff] }
 0x374   :  { %4913 = vmatpush1.bf16.msra.mxu1 %v11663_v52  ;;  %4750 = vmatprep.subr.bf16.mxu0 %v11670_v53  ;;  %v11709_v52 = vcombine.low %v1635_v44, %v1639_v45  ;;  %v11711_v53 = vcombine.low %v1636_v47, %v1640_v48  ;;  %v11720_v56 = vcombine.high %v1644_v43, %v1648_v11  ;;  %v1684_v45 = vld [vmem:[#allocation7 + $0xfd8] sm:$0xff] }
 0x375   :  { %4914 = vmatprep.subr.bf16.mxu1 %v11672_v55  ;;  %v11718_v55 = vcombine.high %v1643_v50, %v1647_v51  ;;  %v1698_v44 = vrot.slane %v13903_v32, %v13796_v26  ;;  %v1688_v47 = vld [vmem:[#allocation7 + $0xff8] sm:$0xff] }
 0x377   :  { %4751 = vmatpush1.bf16.msra.mxu0 %v11669_v58  ;;  %v1656_v58 = vld [vmem:[#allocation7 + $0xef8] sm:$0xff] }
 0x378   :  { %4915 = vmatpush1.bf16.msra.mxu1 %v11671_v1  ;;  %4752 = vmatprep.subr.bf16.mxu0 %v11678_v59  ;;  %v11717_v1 = vcombine.low %v1643_v50, %v1647_v51  ;;  %v11719_v59 = vcombine.low %v1644_v43, %v1648_v11  ;;  %v11728_v0 = vcombine.high %v1652_v5, %v1656_v58  ;;  %v4967_v50 = vld [vmem:[#allocation10 + $0x20] sm:$0xff]  ;;  %v4964_v43 = vld [vmem:[#allocation10 + $0x8] sm:$0xff] }
 0x379   :  { %v13895_v3 = vpop.f32.mrb[8].mxu0  ;;  %v13897_v4 = vpop.f32.mrb[8].mxu1  ;;  %4916 = vmatprep.subr.bf16.mxu1 %v11680_v63  ;;  %v11726_v63 = vcombine.high %v1651_v57, %v1655_v25  ;;  %v4968_v11 = vld [vmem:[#allocation10 + $0x28] sm:$0xff] }
 0x37a   :  { %v13899_v13 = vpop.f32.mrb[9].mxu0  ;;  %v13901_v16 = vpop.f32.mrb[9].mxu1 }
 0x37b   :  { %v4452_v17 = vpop.f32.mrb[10].mxu0  ;;  %v4616_v22 = vpop.f32.mrb[10].mxu1  ;;  %4753 = vmatpush1.bf16.msra.mxu0 %v11677_v39  ;;  %v1664_v39 = vld [vmem:[#allocation7 + $0xf38] sm:$0xff]  ;;  %v12645_v51 = vadd.f32 %v13899_v13, %v1698_v44  ;;  %v11763_v13 = vcombine.low %v4964_v43, %v4968_v11  ;;  %v5004_v44 = vld [vmem:[#allocation10 + $0x148] sm:$0xff] }
 0x37c   :  { %4917 = vmatpush1.bf16.msra.mxu1 %v11679_v61  ;;  %v4453_v19 = vpop.f32.mrb[11].mxu0  ;;  %v4617_v20 = vpop.f32.mrb[11].mxu1  ;;  %4754 = vmatprep.subr.bf16.mxu0 %v11686_v62  ;;  %v11725_v61 = vcombine.low %v1651_v57, %v1655_v25  ;;  %v11727_v62 = vcombine.low %v1652_v5, %v1656_v58  ;;  %v11736_v8 = vcombine.high %v1660_v54, %v1664_v39  ;;  %v1672_v17 = vld [vmem:[#allocation7 + $0xf78] sm:$0xff]  ;;  %v4971_v25 = vld [vmem:[#allocation10 + $0x40] sm:$0xff] }
 0x37d   :  { %4918 = vmatprep.subr.bf16.mxu1 %v11688_v6  ;;  %v11734_v6 = vcombine.high %v1659_v7, %v1663_v9  ;;  %v11733_v22 = vcombine.low %v1659_v7, %v1663_v9  ;;  %v11742_v19 = vcombine.high %v1667_v12, %v1671_v14  ;;  %v11744_v20 = vcombine.high %v1668_v42, %v1672_v17  ;;  %v4975_v5 = vld [vmem:[#allocation10 + $0x60] sm:$0xff] }
 0x37e   :  { %v11743_v34 = vcombine.low %v1668_v42, %v1672_v17  ;;  %v4948_v57 = vmax.f32 %v12645_v51, 0.0  ;;  %v4983_v7 = vld [vmem:[#allocation10 + $0xa0] sm:$0xff]  ;;  %v4988_v17 = vld [vmem:[#allocation10 + $0xc8] sm:$0xff] }
 0x37f   :  { %4755 = vmatpush1.bf16.msra.mxu0 %v11685_v18  ;;  %v11735_v18 = vcombine.low %v1660_v54, %v1664_v39  ;;  %v4980_v39 = vld [vmem:[#allocation10 + $0x88] sm:$0xff]  ;;  %v4987_v14 = vld [vmem:[#allocation10 + $0xc0] sm:$0xff] }
 0x380   :  { %4919 = vmatpush1.bf16.msra.mxu1 %v11687_v28  ;;  %4756 = vmatprep.subr.bf16.mxu0 %v11694_v21  ;;  %v1675_v28 = vld [vmem:[#allocation7 + $0xf90] sm:$0xff]  ;;  %v13908_v9 = vpack.c.bf16 %v4948_v57, %v4948_v57  ;;  %v4991_v42 = vld [vmem:[#allocation10 + $0xe0] sm:$0xff] }
 0x381   :  { %4920 = vmatprep.subr.bf16.mxu1 %v11696_v27  ;;  %v1679_v21 = vld [vmem:[#allocation7 + $0xfb0] sm:$0xff]  ;;  %v1676_v27 = vld [vmem:[#allocation7 + $0xf98] sm:$0xff] }
 0x382   :  { %v11749_v48 = vcombine.low %v1675_v28, %v1679_v21  ;;  %v5016_v51 = vld [vmem:[#allocation10 + $0x1a8] sm:$0xff] }
 0x383   :  { %4757 = vmatpush1.bf16.msra.mxu0 %v11693_v36  ;;  %v11750_v36 = vcombine.high %v1675_v28, %v1679_v21  ;;  %v4995_v28 = vld [vmem:[#allocation10 + $0x100] sm:$0xff]  ;;  %v5020_v57 = vld [vmem:[#allocation10 + $0x1c8] sm:$0xff] }
 0x384   :  { %4921 = vmatpush1.bf16.msra.mxu1 %v11695_v37  ;;  %4758 = vmatprep.subr.bf16.mxu0 %v11702_v38  ;;  %v11752_v37 = vcombine.high %v1676_v27, %v1680_v29  ;;  %v1683_v38 = vld [vmem:[#allocation7 + $0xfd0] sm:$0xff]  ;;  %v4999_v21 = vld [vmem:[#allocation10 + $0x120] sm:$0xff] }
 0x385   :  { %4922 = vmatprep.subr.bf16.mxu1 %v11704_v40  ;;  %v1687_v40 = vld [vmem:[#allocation7 + $0xff0] sm:$0xff] }
 0x387   :  { %4759 = vmatpush1.bf16.msra.mxu0 %v11701_v10  ;;  %v11751_v10 = vcombine.low %v1676_v27, %v1680_v29  ;;  %v4996_v27 = vld [vmem:[#allocation10 + $0x108] sm:$0xff] }
 0x388   :  { %4923 = vmatpush1.bf16.msra.mxu1 %v11703_v49  ;;  %4760 = vmatprep.subr.bf16.mxu0 %v11710_v35  ;;  %v11758_v49 = vcombine.high %v1683_v38, %v1687_v40  ;;  %v11760_v35 = vcombine.high %v1684_v45, %v1688_v47  ;;  %v5000_v29 = vld [vmem:[#allocation10 + $0x128] sm:$0xff] }
 0x389   :  { %4924 = vmatprep.subr.bf16.mxu1 %v11712_v2  ;;  %v4963_v2 = vld [vmem:[#allocation10] sm:$0xff] }
 0x38a   :  { %v11761_v58 = vcombine.low %v4963_v2, %v4967_v50 }
 0x38b   :  { %4761 = vmatpush1.bf16.msra.mxu0 %v11709_v52  ;;  %v11757_v52 = vcombine.low %v1683_v38, %v1687_v40  ;;  %v5003_v38 = vld [vmem:[#allocation10 + $0x140] sm:$0xff] }
 0x38c   :  { %4925 = vmatpush1.bf16.msra.mxu1 %v11711_v53  ;;  %4762 = vmatprep.subr.bf16.mxu0 %v11718_v55  ;;  %v11759_v53 = vcombine.low %v1684_v45, %v1688_v47  ;;  %v11762_v55 = vcombine.high %v4963_v2, %v4967_v50  ;;  %v5007_v40 = vld [vmem:[#allocation10 + $0x160] sm:$0xff]  ;;  %v5008_v45 = vld [vmem:[#allocation10 + $0x168] sm:$0xff]  ;;  %v11793_v47 = vcombine.low %v4995_v28, %v4999_v21 }
 0x38d   :  { %4926 = vmatprep.subr.bf16.mxu1 %v11720_v56  ;;  %v11764_v56 = vcombine.high %v4964_v43, %v4968_v11  ;;  %v5015_v2 = vld [vmem:[#allocation10 + $0x1a0] sm:$0xff]  ;;  %v5012_v50 = vld [vmem:[#allocation10 + $0x188] sm:$0xff]  ;;  %v11801_v43 = vcombine.low %v5003_v38, %v5007_v40  ;;  %v11803_v11 = vcombine.low %v5004_v44, %v5008_v45 }
 0x38f   :  { %4763 = vmatpush1.bf16.msra.mxu0 %v11717_v1  ;;  %v4972_v1 = vld [vmem:[#allocation10 + $0x48] sm:$0xff] }
 0x390   :  { %4927 = vmatpush1.bf16.msra.mxu1 %v11719_v59  ;;  %4764 = vmatprep.subr.bf16.mxu0 %v11726_v63  ;;  %v4976_v59 = vld [vmem:[#allocation10 + $0x68] sm:$0xff]  ;;  %v11770_v63 = vcombine.high %v4971_v25, %v4975_v5 }
 0x391   :  { %4928 = vmatprep.subr.bf16.mxu1 %v11728_v0  ;;  %v4979_v0 = vld [vmem:[#allocation10 + $0x80] sm:$0xff]  ;;  %v11772_v54 = vcombine.high %v4972_v1, %v4976_v59 }
 0x393   :  { %4765 = vmatpush1.bf16.msra.mxu0 %v11725_v61  ;;  %v4984_v61 = vld [vmem:[#allocation10 + $0xa8] sm:$0xff] }
 0x394   :  { %4929 = vmatpush1.bf16.msra.mxu1 %v11727_v62  ;;  %4766 = vmatprep.subr.bf16.mxu0 %v11734_v6  ;;  %v11769_v62 = vcombine.low %v4971_v25, %v4975_v5  ;;  %v11771_v6 = vcombine.low %v4972_v1, %v4976_v59  ;;  %v11780_v12 = vcombine.high %v4980_v39, %v4984_v61  ;;  %v5024_v25 = vld [vmem:[#allocation10 + $0x1e8] sm:$0xff] }
 0x395   :  { %4930 = vmatprep.subr.bf16.mxu1 %v11736_v8  ;;  %v11778_v8 = vcombine.high %v4979_v0, %v4983_v7  ;;  %v11820_v59 = vcombine.high %v5020_v57, %v5024_v25 }
 0x397   :  { %4767 = vmatpush1.bf16.msra.mxu0 %v11733_v22  ;;  %v4992_v22 = vld [vmem:[#allocation10 + $0xe8] sm:$0xff] }
 0x398   :  { %4931 = vmatpush1.bf16.msra.mxu1 %v11735_v18  ;;  %4768 = vmatprep.subr.bf16.mxu0 %v11742_v19  ;;  %v11777_v18 = vcombine.low %v4979_v0, %v4983_v7  ;;  %v11786_v19 = vcombine.high %v4987_v14, %v4991_v42  ;;  %v5028_v0 = vld [vmem:[#allocation10 + $0x208] sm:$0xff] }
 0x399   :  { %4932 = vmatprep.subr.bf16.mxu1 %v11744_v20  ;;  %v11788_v20 = vcombine.high %v4988_v17, %v4992_v22  ;;  %v5032_v7 = vld [vmem:[#allocation10 + $0x228] sm:$0xff] }
 0x39b   :  { %4769 = vmatpush1.bf16.msra.mxu0 %v11741_v33  ;;  %v11785_v33 = vcombine.low %v4987_v14, %v4991_v42  ;;  %v5040_v14 = vld [vmem:[#allocation10 + $0x268] sm:$0xff] }
 0x39c   :  { %4933 = vmatpush1.bf16.msra.mxu1 %v11743_v34  ;;  %4770 = vmatprep.subr.bf16.mxu0 %v11750_v36  ;;  %v11787_v34 = vcombine.low %v4988_v17, %v4992_v22  ;;  %v11794_v36 = vcombine.high %v4995_v28, %v4999_v21  ;;  %v11827_v17 = vcombine.low %v5028_v0, %v5032_v7  ;;  %v5048_v28 = vld [vmem:[#allocation10 + $0x2a8] sm:$0xff] }
 0x39d   :  { %4934 = vmatprep.subr.bf16.mxu1 %v11752_v37  ;;  %v11796_v37 = vcombine.high %v4996_v27, %v5000_v29 }
 0x39f   :  { %4771 = vmatpush1.bf16.msra.mxu0 %v11749_v48  ;;  %v11795_v48 = vcombine.low %v4996_v27, %v5000_v29 }
 0x3a0   :  { %4935 = vmatpush1.bf16.msra.mxu1 %v11751_v10  ;;  %4772 = vmatprep.subr.bf16.mxu0 %v11758_v49  ;;  %v11802_v10 = vcombine.high %v5003_v38, %v5007_v40  ;;  %v11804_v49 = vcombine.high %v5004_v44, %v5008_v45  ;;  %v5056_v38 = vld [vmem:[#allocation10 + $0x2e8] sm:$0xff] }
 0x3a1   :  { %4936 = vmatprep.subr.bf16.mxu1 %v11760_v35  ;;  %v5011_v35 = vld [vmem:[#allocation10 + $0x180] sm:$0xff] }
 0x3a2   :  { %v11809_v5 = vcombine.low %v5011_v35, %v5015_v2 }
 0x3a3   :  { %4773 = vmatpush1.bf16.msra.mxu0 %v11757_v52  ;;  %v11810_v52 = vcombine.high %v5011_v35, %v5015_v2  ;;  %v5064_v35 = vld [vmem:[#allocation10 + $0x328] sm:$0xff] }
 0x3a4   :  { %4937 = vmatpush1.bf16.msra.mxu1 %v11759_v53  ;;  %8077 = vmatprep.subr.bf16.mxu0 %v11762_v55  ;;  %v11812_v53 = vcombine.high %v5012_v50, %v5016_v51  ;;  %v5019_v55 = vld [vmem:[#allocation10 + $0x1c0] sm:$0xff] }
 0x3a5   :  { %8241 = vmatprep.subr.bf16.mxu1 %v11764_v56  ;;  %v5023_v56 = vld [vmem:[#allocation10 + $0x1e0] sm:$0xff] }
 0x3a6   :  { %4775 = vmatmul.mubr.bf16.vlgmr.msra.gmra.mrb[12].mxu0 %v13877_v23  ;;  %v11818_v1 = vcombine.high %v5019_v55, %v5023_v56 }
 0x3a7   :  { %4939 = vmatmul.mubr.bf16.vlgmr.msra.gmra.mrb[12].mxu1 %v13877_v23  ;;  %8078 = vmatpush1.bf16.msra.mxu0 %v11761_v58  ;;  %v11779_v23 = vcombine.low %v4980_v39, %v4984_v61  ;;  %v11811_v58 = vcombine.low %v5012_v50, %v5016_v51  ;;  %v11819_v39 = vcombine.low %v5020_v57, %v5024_v25 }
 0x3a8   :  { %8109 = vmatprep.mubr.bf16.mxu0 %v13908_v9  ;;  %8242 = vmatpush1.bf16.msra.mxu1 %v11763_v13  ;;  %v5027_v13 = vld [vmem:[#allocation10 + $0x200] sm:$0xff] }
 0x3a9   :  { %8273 = vmatprep.mubr.bf16.mxu1 %v13908_v9  ;;  %8079 = vmatprep.subr.bf16.mxu0 %v11770_v63  ;;  %v5031_v63 = vld [vmem:[#allocation10 + $0x220] sm:$0xff] }
 0x3aa   :  { %8243 = vmatprep.subr.bf16.mxu1 %v11772_v54  ;;  %v11817_v54 = vcombine.low %v5019_v55, %v5023_v56  ;;  %v11826_v61 = vcombine.high %v5027_v13, %v5031_v63  ;;  %v11825_v42 = vcombine.low %v5027_v13, %v5031_v63  ;;  %v5072_v55 = vld [vmem:[#allocation10 + $0x368] sm:$0xff] }
 0x3ab   :  { %8080 = vmatpush1.bf16.msra.mxu0 %v11769_v62  ;;  %v11828_v62 = vcombine.high %v5028_v0, %v5032_v7  ;;  %v5080_v13 = vld [vmem:[#allocation10 + $0x3a8] sm:$0xff]  ;;  %v1694_v0 = vrot.slane %v13903_v32, %v13791_v24 }
 0x3ac   :  { %8244 = vmatpush1.bf16.msra.mxu1 %v11771_v6  ;;  %8081 = vmatprep.subr.bf16.mxu0 %v11778_v8  ;;  %v5035_v6 = vld [vmem:[#allocation10 + $0x240] sm:$0xff] }
 0x3ad   :  { %8245 = vmatprep.subr.bf16.mxu1 %v11780_v12  ;;  %v5039_v8 = vld [vmem:[#allocation10 + $0x260] sm:$0xff]  ;;  %v5036_v12 = vld [vmem:[#allocation10 + $0x248] sm:$0xff] }
 0x3ae   :  { %v11834_v22 = vcombine.high %v5035_v6, %v5039_v8  ;;  %v11833_v21 = vcombine.low %v5035_v6, %v5039_v8  ;;  %v11835_v27 = vcombine.low %v5036_v12, %v5040_v14  ;;  %v1706_v6 = vrot.slane %v13903_v32, %v13803_v41  ;;  %v5084_v8 = vld [vmem:[#allocation10 + $0x3c8] sm:$0xff] }
 0x3af   :  { %8082 = vmatpush1.bf16.msra.mxu0 %v11777_v18  ;;  %v11836_v18 = vcombine.high %v5036_v12, %v5040_v14  ;;  %v5088_v12 = vld [vmem:[#allocation10 + $0x3e8] sm:$0xff] }
 0x3b0   :  { %8246 = vmatpush1.bf16.msra.mxu1 %v11779_v23  ;;  %8083 = vmatprep.subr.bf16.mxu0 %v11786_v19  ;;  %v5043_v23 = vld [vmem:[#allocation10 + $0x280] sm:$0xff] }
 0x3b1   :  { %8247 = vmatprep.subr.bf16.mxu1 %v11788_v20  ;;  %v5047_v19 = vld [vmem:[#allocation10 + $0x2a0] sm:$0xff]  ;;  %v5044_v20 = vld [vmem:[#allocation10 + $0x288] sm:$0xff] }
 0x3b2   :  { %v11842_v29 = vcombine.high %v5043_v23, %v5047_v19  ;;  %v11841_v40 = vcombine.low %v5043_v23, %v5047_v19  ;;  %v11843_v44 = vcombine.low %v5044_v20, %v5048_v28  ;;  %v5091_v23 = vld [vmem:[#allocation10 + $0x400] sm:$0xff] }
 0x3b3   :  { %8084 = vmatpush1.bf16.msra.mxu0 %v11785_v33  ;;  %v11844_v33 = vcombine.high %v5044_v20, %v5048_v28  ;;  %v5095_v19 = vld [vmem:[#allocation10 + $0x420] sm:$0xff]  ;;  %v12647_v20 = vadd.f32 %v13901_v16, %v1706_v6  ;;  %v5092_v28 = vld [vmem:[#allocation10 + $0x408] sm:$0xff] }
 0x3b4   :  { %8248 = vmatpush1.bf16.msra.mxu1 %v11787_v34  ;;  %8085 = vmatprep.subr.bf16.mxu0 %v11794_v36  ;;  %v5051_v34 = vld [vmem:[#allocation10 + $0x2c0] sm:$0xff] }
 0x3b5   :  { %8249 = vmatprep.subr.bf16.mxu1 %v11796_v37  ;;  %v5055_v36 = vld [vmem:[#allocation10 + $0x2e0] sm:$0xff]  ;;  %v5052_v37 = vld [vmem:[#allocation10 + $0x2c8] sm:$0xff] }
 0x3b6   :  { %v11850_v45 = vcombine.high %v5051_v34, %v5055_v36  ;;  %v11849_v2 = vcombine.low %v5051_v34, %v5055_v36  ;;  %v11851_v50 = vcombine.low %v5052_v37, %v5056_v38  ;;  %v11890_v34 = vcombine.high %v5091_v23, %v5095_v19  ;;  %v5131_v6 = vld [vmem:[#allocation10 + $0x540] sm:$0xff] }
 0x3b7   :  { %8086 = vmatpush1.bf16.msra.mxu0 %v11793_v47  ;;  %v11852_v47 = vcombine.high %v5052_v37, %v5056_v38  ;;  %v4950_v36 = vmax.f32 %v12647_v20, 0.0  ;;  %v5099_v37 = vld [vmem:[#allocation10 + $0x440] sm:$0xff]  ;;  %v5140_v20 = vld [vmem:[#allocation10 + $0x588] sm:$0xff] }
 0x3b8   :  { %8250 = vmatpush1.bf16.msra.mxu1 %v11795_v48  ;;  %8087 = vmatprep.subr.bf16.mxu0 %v11802_v10  ;;  %v5059_v48 = vld [vmem:[#allocation10 + $0x300] sm:$0xff] }
 0x3b9   :  { %8251 = vmatprep.subr.bf16.mxu1 %v11804_v49  ;;  %v5063_v10 = vld [vmem:[#allocation10 + $0x320] sm:$0xff]  ;;  %v5060_v49 = vld [vmem:[#allocation10 + $0x308] sm:$0xff] }
 0x3ba   :  { %v11858_v51 = vcombine.high %v5059_v48, %v5063_v10  ;;  %v11857_v56 = vcombine.low %v5059_v48, %v5063_v10  ;;  %v11859_v57 = vcombine.low %v5060_v49, %v5064_v35  ;;  %v5103_v38 = vld [vmem:[#allocation10 + $0x460] sm:$0xff] }
 0x3bb   :  { %8088 = vmatpush1.bf16.msra.mxu0 %v11801_v43  ;;  %v11860_v43 = vcombine.high %v5060_v49, %v5064_v35  ;;  %v11898_v48 = vcombine.high %v5099_v37, %v5103_v38  ;;  %v5107_v10 = vld [vmem:[#allocation10 + $0x480] sm:$0xff]  ;;  %v13922_v35 = vpack.c.bf16 %v4950_v36, %v4950_v36  ;;  %v5148_v36 = vld [vmem:[#allocation10 + $0x5c8] sm:$0xff] }
 0x3bc   :  { %8252 = vmatpush1.bf16.msra.mxu1 %v11803_v11  ;;  %8089 = vmatprep.subr.bf16.mxu0 %v11810_v52  ;;  %v5067_v11 = vld [vmem:[#allocation10 + $0x340] sm:$0xff] }
 0x3bd   :  { %8253 = vmatprep.subr.bf16.mxu1 %v11812_v53  ;;  %v5071_v52 = vld [vmem:[#allocation10 + $0x360] sm:$0xff]  ;;  %v5068_v53 = vld [vmem:[#allocation10 + $0x348] sm:$0xff] }
 0x3be   :  { %v11866_v25 = vcombine.high %v5067_v11, %v5071_v52  ;;  %v11865_v63 = vcombine.low %v5067_v11, %v5071_v52  ;;  %v11867_v7 = vcombine.low %v5068_v53, %v5072_v55  ;;  %v5111_v49 = vld [vmem:[#allocation10 + $0x4a0] sm:$0xff] }
 0x3bf   :  { %8090 = vmatpush1.bf16.msra.mxu0 %v11809_v5  ;;  %v11868_v5 = vcombine.high %v5068_v53, %v5072_v55  ;;  %v11906_v52 = vcombine.high %v5107_v10, %v5111_v49  ;;  %v5115_v55 = vld [vmem:[#allocation10 + $0x4c0] sm:$0xff] }
 0x3c0   :  { %8254 = vmatpush1.bf16.msra.mxu1 %v11811_v58  ;;  %8091 = vmatprep.subr.bf16.mxu0 %v11818_v1  ;;  %v5075_v58 = vld [vmem:[#allocation10 + $0x380] sm:$0xff] }
 0x3c1   :  { %8255 = vmatprep.subr.bf16.mxu1 %v11820_v59  ;;  %v5079_v1 = vld [vmem:[#allocation10 + $0x3a0] sm:$0xff]  ;;  %v5076_v59 = vld [vmem:[#allocation10 + $0x388] sm:$0xff] }
 0x3c2   :  { %v11873_v14 = vcombine.low %v5075_v58, %v5079_v1 }
 0x3c3   :  { %8092 = vmatpush1.bf16.msra.mxu0 %v11817_v54  ;;  %v11874_v54 = vcombine.high %v5075_v58, %v5079_v1 }
 0x3c4   :  { %8256 = vmatpush1.bf16.msra.mxu1 %v11819_v39  ;;  %8093 = vmatprep.subr.bf16.mxu0 %v11826_v61  ;;  %v11876_v39 = vcombine.high %v5076_v59, %v5080_v13  ;;  %v5083_v61 = vld [vmem:[#allocation10 + $0x3c0] sm:$0xff] }
 0x3c5   :  { %8257 = vmatprep.subr.bf16.mxu1 %v11828_v62  ;;  %v5087_v62 = vld [vmem:[#allocation10 + $0x3e0] sm:$0xff] }
 0x3c7   :  { %8094 = vmatpush1.bf16.msra.mxu0 %v11825_v42  ;;  %v12644_v42 = vadd.f32 %v13895_v3, %v1694_v0  ;;  %v5124_v0 = vld [vmem:[#allocation10 + $0x508] sm:$0xff] }
 0x3c8   :  { %8258 = vmatpush1.bf16.msra.mxu1 %v11827_v17  ;;  %8095 = vmatprep.subr.bf16.mxu0 %v11834_v22  ;;  %v11875_v17 = vcombine.low %v5076_v59, %v5080_v13  ;;  %v11882_v22 = vcombine.high %v5083_v61, %v5087_v62  ;;  %v5123_v13 = vld [vmem:[#allocation10 + $0x500] sm:$0xff] }
 0x3c9   :  { %8259 = vmatprep.subr.bf16.mxu1 %v11836_v18  ;;  %v11884_v18 = vcombine.high %v5084_v8, %v5088_v12 }
 0x3cb   :  { %8096 = vmatpush1.bf16.msra.mxu0 %v11833_v21  ;;  %v5096_v21 = vld [vmem:[#allocation10 + $0x428] sm:$0xff] }
 0x3cc   :  { %8260 = vmatpush1.bf16.msra.mxu1 %v11835_v27  ;;  %8097 = vmatprep.subr.bf16.mxu0 %v11842_v29  ;;  %v11881_v27 = vcombine.low %v5083_v61, %v5087_v62  ;;  %v4947_v29 = vmax.f32 %v12644_v42, 0.0  ;;  %v11892_v3 = vcombine.high %v5092_v28, %v5096_v21  ;;  %v11891_v16 = vcombine.low %v5092_v28, %v5096_v21  ;;  %v5144_v28 = vld [vmem:[#allocation10 + $0x5a8] sm:$0xff] }
 0x3cd   :  { %8261 = vmatprep.subr.bf16.mxu1 %v11844_v33  ;;  %v11883_v33 = vcombine.low %v5084_v8, %v5088_v12  ;;  %v5135_v8 = vld [vmem:[#allocation10 + $0x560] sm:$0xff]  ;;  %v5132_v12 = vld [vmem:[#allocation10 + $0x548] sm:$0xff] }
 0x3ce   :  { %v11929_v21 = vcombine.low %v5131_v6, %v5135_v8 }
 0x3cf   :  { %8098 = vmatpush1.bf16.msra.mxu0 %v11841_v40  ;;  %v11889_v40 = vcombine.low %v5091_v23, %v5095_v19  ;;  %v5139_v23 = vld [vmem:[#allocation10 + $0x580] sm:$0xff] }
 0x3d0   :  { %8262 = vmatpush1.bf16.msra.mxu1 %v11843_v44  ;;  %8099 = vmatprep.subr.bf16.mxu0 %v11850_v45  ;;  %v5100_v44 = vld [vmem:[#allocation10 + $0x448] sm:$0xff]  ;;  %v5143_v19 = vld [vmem:[#allocation10 + $0x5a0] sm:$0xff] }
 0x3d1   :  { %8263 = vmatprep.subr.bf16.mxu1 %v11852_v47  ;;  %v5104_v45 = vld [vmem:[#allocation10 + $0x468] sm:$0xff]  ;;  %v13920_v47 = vpack.c.bf16 %v4947_v29, %v4947_v29  ;;  %v11938_v29 = vcombine.high %v5139_v23, %v5143_v19 }
 0x3d2   :  { %v11899_v11 = vcombine.low %v5100_v44, %v5104_v45 }
 0x3d3   :  { %8100 = vmatpush1.bf16.msra.mxu0 %v11849_v2  ;;  %v11900_v2 = vcombine.high %v5100_v44, %v5104_v45 }
 0x3d4   :  { %8264 = vmatpush1.bf16.msra.mxu1 %v11851_v50  ;;  %8101 = vmatprep.subr.bf16.mxu0 %v11858_v51  ;;  %v5108_v50 = vld [vmem:[#allocation10 + $0x488] sm:$0xff] }
 0x3d5   :  { %8265 = vmatprep.subr.bf16.mxu1 %v11860_v43  ;;  %v5112_v51 = vld [vmem:[#allocation10 + $0x4a8] sm:$0xff]  ;;  %v11897_v43 = vcombine.low %v5099_v37, %v5103_v38  ;;  %v11937_v38 = vcombine.low %v5139_v23, %v5143_v19 }
 0x3d6   :  { %v11908_v53 = vcombine.high %v5108_v50, %v5112_v51  ;;  %v11907_v58 = vcombine.low %v5108_v50, %v5112_v51  ;;  %v5152_v37 = vld [vmem:[#allocation10 + $0x5e8] sm:$0xff] }
 0x3d7   :  { %8102 = vmatpush1.bf16.msra.mxu0 %v11857_v56  ;;  %v5119_v56 = vld [vmem:[#allocation10 + $0x4e0] sm:$0xff]  ;;  %v11948_v45 = vcombine.high %v5148_v36, %v5152_v37  ;;  %v11947_v50 = vcombine.low %v5148_v36, %v5152_v37  ;;  %v5192_v23 = vld [vmem:[#allocation10 + $0x728] sm:$0xff] }
 0x3d8   :  { %8266 = vmatpush1.bf16.msra.mxu1 %v11859_v57  ;;  %8103 = vmatprep.subr.bf16.mxu0 %v11866_v25  ;;  %v5116_v57 = vld [vmem:[#allocation10 + $0x4c8] sm:$0xff]  ;;  %v11914_v1 = vcombine.high %v5115_v55, %v5119_v56 }
 0x3d9   :  { %8267 = vmatprep.subr.bf16.mxu1 %v11868_v5  ;;  %v5120_v25 = vld [vmem:[#allocation10 + $0x4e8] sm:$0xff]  ;;  %v11905_v5 = vcombine.low %v5107_v10, %v5111_v49 }
 0x3da   :  { %v11916_v59 = vcombine.high %v5116_v57, %v5120_v25  ;;  %v5156_v10 = vld [vmem:[#allocation10 + $0x608] sm:$0xff] }
 0x3db   :  { %8104 = vmatpush1.bf16.msra.mxu0 %v11865_v63  ;;  %v5127_v63 = vld [vmem:[#allocation10 + $0x520] sm:$0xff]  ;;  %v5160_v49 = vld [vmem:[#allocation10 + $0x628] sm:$0xff] }
 0x3dc   :  { %8268 = vmatpush1.bf16.msra.mxu1 %v11867_v7  ;;  %8105 = vmatprep.subr.bf16.mxu0 %v11874_v54  ;;  %v5128_v7 = vld [vmem:[#allocation10 + $0x528] sm:$0xff]  ;;  %v11913_v54 = vcombine.low %v5115_v55, %v5119_v56  ;;  %v11922_v61 = vcombine.high %v5123_v13, %v5127_v63  ;;  %v11921_v42 = vcombine.low %v5123_v13, %v5127_v63 }
 0x3dd   :  { %8269 = vmatprep.subr.bf16.mxu1 %v11876_v39  ;;  %v11915_v39 = vcombine.low %v5116_v57, %v5120_v25  ;;  %v11924_v62 = vcombine.high %v5124_v0, %v5128_v7  ;;  %v5168_v55 = vld [vmem:[#allocation10 + $0x668] sm:$0xff]  ;;  %v11955_v57 = vcombine.low %v5156_v10, %v5160_v49 }
 0x3de   :  { %v5176_v13 = vld [vmem:[#allocation10 + $0x6a8] sm:$0xff] }
 0x3df   :  { %8106 = vmatpush1.bf16.msra.mxu0 %v11873_v14  ;;  %v5136_v14 = vld [vmem:[#allocation10 + $0x568] sm:$0xff] }
 0x3e0   :  { %8270 = vmatpush1.bf16.msra.mxu1 %v11875_v17  ;;  %8107 = vmatprep.subr.bf16.mxu0 %v11882_v22  ;;  %v11923_v17 = vcombine.low %v5124_v0, %v5128_v7  ;;  %v11930_v22 = vcombine.high %v5131_v6, %v5135_v8  ;;  %v5184_v6 = vld [vmem:[#allocation10 + $0x6e8] sm:$0xff] }
 0x3e1   :  { %8271 = vmatprep.subr.bf16.mxu1 %v11884_v18  ;;  %v11932_v18 = vcombine.high %v5132_v12, %v5136_v14 }
 0x3e3   :  { %8108 = vmatpush1.bf16.msra.mxu0 %v11881_v27  ;;  %v11931_v27 = vcombine.low %v5132_v12, %v5136_v14 }
 0x3e4   :  { %8272 = vmatpush1.bf16.msra.mxu1 %v11883_v33  ;;  %8118 = vmatprep.subr.bf16.mxu0 %v11890_v34  ;;  %v11940_v33 = vcombine.high %v5140_v20, %v5144_v28  ;;  %v5147_v34 = vld [vmem:[#allocation10 + $0x5c0] sm:$0xff] }
 0x3e5   :  { %8282 = vmatprep.subr.bf16.mxu1 %v11892_v3  ;;  %v5151_v3 = vld [vmem:[#allocation10 + $0x5e0] sm:$0xff] }
 0x3e6   :  { %8110 = vmatmul.mubr.bf16.vlgmr.msra.gmra.mrb[16].mxu0 %v13920_v47  ;;  %v11946_v44 = vcombine.high %v5147_v34, %v5151_v3 }
 0x3e7   :  { %8274 = vmatmul.mubr.bf16.vlgmr.msra.gmra.mrb[16].mxu1 %v13920_v47  ;;  %8119 = vmatpush1.bf16.msra.mxu0 %v11889_v40  ;;  %v11939_v40 = vcombine.low %v5140_v20, %v5144_v28 }
 0x3e8   :  { %8150 = vmatprep.mubr.bf16.mxu0 %v13922_v35  ;;  %8283 = vmatpush1.bf16.msra.mxu1 %v11891_v16  ;;  %v5155_v16 = vld [vmem:[#allocation10 + $0x600] sm:$0xff] }
 0x3e9   :  { %8314 = vmatprep.mubr.bf16.mxu1 %v13922_v35  ;;  %8120 = vmatprep.subr.bf16.mxu0 %v11898_v48  ;;  %v5159_v48 = vld [vmem:[#allocation10 + $0x620] sm:$0xff] }
 0x3ea   :  { %8284 = vmatprep.subr.bf16.mxu1 %v11900_v2  ;;  %v11945_v2 = vcombine.low %v5147_v34, %v5151_v3  ;;  %v11954_v51 = vcombine.high %v5155_v16, %v5159_v48  ;;  %v11953_v56 = vcombine.low %v5155_v16, %v5159_v48  ;;  %v5200_v34 = vld [vmem:[#allocation10 + $0x768] sm:$0xff] }
 0x3eb   :  { %8121 = vmatpush1.bf16.msra.mxu0 %v11897_v43  ;;  %v11956_v43 = vcombine.high %v5156_v10, %v5160_v49  ;;  %v5208_v16 = vld [vmem:[#allocation10 + $0x7a8] sm:$0xff]  ;;  %v1702_v10 = vrot.slane %v13903_v32, %v13828_v31 }
 0x3ec   :  { %8285 = vmatpush1.bf16.msra.mxu1 %v11899_v11  ;;  %8122 = vmatprep.subr.bf16.mxu0 %v11906_v52  ;;  %v5163_v11 = vld [vmem:[#allocation10 + $0x640] sm:$0xff] }
 0x3ed   :  { %8286 = vmatprep.subr.bf16.mxu1 %v11908_v53  ;;  %v5167_v52 = vld [vmem:[#allocation10 + $0x660] sm:$0xff]  ;;  %v5164_v53 = vld [vmem:[#allocation10 + $0x648] sm:$0xff] }
 0x3ee   :  { %v11962_v25 = vcombine.high %v5163_v11, %v5167_v52  ;;  %v11961_v63 = vcombine.low %v5163_v11, %v5167_v52  ;;  %v11963_v0 = vcombine.low %v5164_v53, %v5168_v55  ;;  %v5212_v11 = vld [vmem:[#allocation10 + $0x7c8] sm:$0xff] }
 0x3ef   :  { %8123 = vmatpush1.bf16.msra.mxu0 %v11905_v5  ;;  %v11964_v5 = vcombine.high %v5164_v53, %v5168_v55  ;;  %v5216_v52 = vld [vmem:[#allocation10 + $0x7e8] sm:$0xff]  ;;  %v12646_v55 = vadd.f32 %v13897_v4, %v1702_v10  ;;  %v5227_v4 = vld [vmem:[#allocation10 + $0x840] sm:$0xff] }
 0x3f0   :  { %8287 = vmatpush1.bf16.msra.mxu1 %v11907_v58  ;;  %8124 = vmatprep.subr.bf16.mxu0 %v11914_v1  ;;  %v5171_v58 = vld [vmem:[#allocation10 + $0x680] sm:$0xff]  ;;  %v12012_v32 = vcombine.high %v5212_v11, %v5216_v52 }
 0x3f1   :  { %8288 = vmatprep.subr.bf16.mxu1 %v11916_v59  ;;  %v5175_v1 = vld [vmem:[#allocation10 + $0x6a0] sm:$0xff]  ;;  %v5172_v59 = vld [vmem:[#allocation10 + $0x688] sm:$0xff] }
 0x3f2   :  { %v11970_v7 = vcombine.high %v5171_v58, %v5175_v1  ;;  %v11969_v8 = vcombine.low %v5171_v58, %v5175_v1  ;;  %v11971_v12 = vcombine.low %v5172_v59, %v5176_v13  ;;  %v5220_v58 = vld [vmem:[#allocation10 + $0x808] sm:$0xff] }
 0x3f3   :  { %8125 = vmatpush1.bf16.msra.mxu0 %v11913_v54  ;;  %v11972_v54 = vcombine.high %v5172_v59, %v5176_v13  ;;  %v5224_v1 = vld [vmem:[#allocation10 + $0x828] sm:$0xff]  ;;  %v4949_v13 = vmax.f32 %v12646_v55, 0.0 }
 0x3f4   :  { %8289 = vmatpush1.bf16.msra.mxu1 %v11915_v39  ;;  %8126 = vmatprep.subr.bf16.mxu0 %v11922_v61  ;;  %v5179_v39 = vld [vmem:[#allocation10 + $0x6c0] sm:$0xff] }
 0x3f5   :  { %8290 = vmatprep.subr.bf16.mxu1 %v11924_v62  ;;  %v5183_v61 = vld [vmem:[#allocation10 + $0x6e0] sm:$0xff]  ;;  %v5180_v62 = vld [vmem:[#allocation10 + $0x6c8] sm:$0xff] }
 0x3f6   :  { %v11978_v14 = vcombine.high %v5179_v39, %v5183_v61  ;;  %v11977_v19 = vcombine.low %v5179_v39, %v5183_v61  ;;  %v11979_v20 = vcombine.low %v5180_v62, %v5184_v6  ;;  %v5228_v39 = vld [vmem:[#allocation10 + $0x848] sm:$0xff] }
 0x3f7   :  { %8127 = vmatpush1.bf16.msra.mxu0 %v11921_v42  ;;  %v11980_v42 = vcombine.high %v5180_v62, %v5184_v6  ;;  %v5232_v61 = vld [vmem:[#allocation10 + $0x868] sm:$0xff]  ;;  %v13931_v6 = vpack.c.bf16 %v4949_v13, %v4949_v13  ;;  %v5275_v13 = vld [vmem:[#allocation10 + $0x9c0] sm:$0xff] }
 0x3f8   :  { %8291 = vmatpush1.bf16.msra.mxu1 %v11923_v17  ;;  %8128 = vmatprep.subr.bf16.mxu0 %v11930_v22  ;;  %v5187_v17 = vld [vmem:[#allocation10 + $0x700] sm:$0xff] }
 0x3f9   :  { %8292 = vmatprep.subr.bf16.mxu1 %v11932_v18  ;;  %v5191_v22 = vld [vmem:[#allocation10 + $0x720] sm:$0xff]  ;;  %v5188_v18 = vld [vmem:[#allocation10 + $0x708] sm:$0xff] }
 0x3fa   :  { %v11986_v28 = vcombine.high %v5187_v17, %v5191_v22  ;;  %v11985_v3 = vcombine.low %v5187_v17, %v5191_v22  ;;  %v11987_v36 = vcombine.low %v5188_v18, %v5192_v23  ;;  %v5239_v17 = vld [vmem:[#allocation10 + $0x8a0] sm:$0xff]  ;;  %v5236_v22 = vld [vmem:[#allocation10 + $0x888] sm:$0xff] }
 0x3fb   :  { %8129 = vmatpush1.bf16.msra.mxu0 %v11929_v21  ;;  %v11988_v21 = vcombine.high %v5188_v18, %v5192_v23  ;;  %v5240_v18 = vld [vmem:[#allocation10 + $0x8a8] sm:$0xff] }
 0x3fc   :  { %8293 = vmatpush1.bf16.msra.mxu1 %v11931_v27  ;;  %8130 = vmatprep.subr.bf16.mxu0 %v11938_v29  ;;  %v5195_v27 = vld [vmem:[#allocation10 + $0x740] sm:$0xff] }
 0x3fd   :  { %8294 = vmatprep.subr.bf16.mxu1 %v11940_v33  ;;  %v5199_v29 = vld [vmem:[#allocation10 + $0x760] sm:$0xff]  ;;  %v5196_v33 = vld [vmem:[#allocation10 + $0x748] sm:$0xff] }
 0x3fe   :  { %v11994_v37 = vcombine.high %v5195_v27, %v5199_v29  ;;  %v11993_v48 = vcombine.low %v5195_v27, %v5199_v29  ;;  %v11995_v49 = vcombine.low %v5196_v33, %v5200_v34  ;;  %v5247_v27 = vld [vmem:[#allocation10 + $0x8e0] sm:$0xff]  ;;  %v5244_v29 = vld [vmem:[#allocation10 + $0x8c8] sm:$0xff] }
 0x3ff   :  { %8131 = vmatpush1.bf16.msra.mxu0 %v11937_v38  ;;  %v11996_v38 = vcombine.high %v5196_v33, %v5200_v34  ;;  %v5248_v33 = vld [vmem:[#allocation10 + $0x8e8] sm:$0xff] }
 0x400   :  { %8295 = vmatpush1.bf16.msra.mxu1 %v11939_v40  ;;  %8132 = vmatprep.subr.bf16.mxu0 %v11946_v44  ;;  %v5203_v40 = vld [vmem:[#allocation10 + $0x780] sm:$0xff] }
 0x401   :  { %8296 = vmatprep.subr.bf16.mxu1 %v11948_v45  ;;  %v5207_v44 = vld [vmem:[#allocation10 + $0x7a0] sm:$0xff]  ;;  %v5204_v45 = vld [vmem:[#allocation10 + $0x788] sm:$0xff] }
 0x402   :  { %v12001_v53 = vcombine.low %v5203_v40, %v5207_v44 }
 0x403   :  { %8133 = vmatpush1.bf16.msra.mxu0 %v11945_v2  ;;  %v12002_v2 = vcombine.high %v5203_v40, %v5207_v44  ;;  %v5255_v40 = vld [vmem:[#allocation10 + $0x920] sm:$0xff]  ;;  %v5252_v44 = vld [vmem:[#allocation10 + $0x908] sm:$0xff] }
 0x404   :  { %8297 = vmatpush1.bf16.msra.mxu1 %v11947_v50  ;;  %8134 = vmatprep.subr.bf16.mxu0 %v11954_v51  ;;  %v12004_v50 = vcombine.high %v5204_v45, %v5208_v16  ;;  %v5211_v51 = vld [vmem:[#allocation10 + $0x7c0] sm:$0xff] }
 0x405   :  { %8298 = vmatprep.subr.bf16.mxu1 %v11956_v43  ;;  %v5215_v43 = vld [vmem:[#allocation10 + $0x7e0] sm:$0xff] }
 0x406   :  { %v12009_v59 = vcombine.low %v5211_v51, %v5215_v43 }
 0x407   :  { %8135 = vmatpush1.bf16.msra.mxu0 %v11953_v56  ;;  %v12003_v56 = vcombine.low %v5204_v45, %v5208_v16  ;;  %v5256_v45 = vld [vmem:[#allocation10 + $0x928] sm:$0xff] }
 0x408   :  { %8299 = vmatpush1.bf16.msra.mxu1 %v11955_v57  ;;  %8136 = vmatprep.subr.bf16.mxu0 %v11962_v25  ;;  %v12010_v57 = vcombine.high %v5211_v51, %v5215_v43  ;;  %v5219_v25 = vld [vmem:[#allocation10 + $0x800] sm:$0xff]  ;;  %v5260_v51 = vld [vmem:[#allocation10 + $0x948] sm:$0xff] }
 0x409   :  { %8300 = vmatprep.subr.bf16.mxu1 %v11964_v5  ;;  %v5223_v5 = vld [vmem:[#allocation10 + $0x820] sm:$0xff]  ;;  %v5264_v43 = vld [vmem:[#allocation10 + $0x968] sm:$0xff] }
 0x40a   :  { %v12017_v62 = vcombine.low %v5219_v25, %v5223_v5  ;;  %v12060_v55 = vcombine.high %v5260_v51, %v5264_v43 }
 0x40b   :  { %8137 = vmatpush1.bf16.msra.mxu0 %v11961_v63  ;;  %v12011_v63 = vcombine.low %v5212_v11, %v5216_v52  ;;  %v12051_v52 = vcombine.low %v5252_v44, %v5256_v45 }
 0x40c   :  { %8301 = vmatpush1.bf16.msra.mxu1 %v11963_v0  ;;  %8138 = vmatprep.subr.bf16.mxu0 %v11970_v7  ;;  %v12018_v0 = vcombine.high %v5219_v25, %v5223_v5  ;;  %v12020_v7 = vcombine.high %v5220_v58, %v5224_v1  ;;  %v5272_v25 = vld [vmem:[#allocation10 + $0x9a8] sm:$0xff] }
 0x40d   :  { %8302 = vmatprep.subr.bf16.mxu1 %v11972_v54  ;;  %v5231_v54 = vld [vmem:[#allocation10 + $0x860] sm:$0xff] }
 0x40e   :  { %v12025_v23 = vcombine.low %v5227_v4, %v5231_v54 }
 0x40f   :  { %8139 = vmatpush1.bf16.msra.mxu0 %v11969_v8  ;;  %v12019_v8 = vcombine.low %v5220_v58, %v5224_v1  ;;  %v12059_v58 = vcombine.low %v5260_v51, %v5264_v43 }
 0x410   :  { %8303 = vmatpush1.bf16.msra.mxu1 %v11971_v12  ;;  %8140 = vmatprep.subr.bf16.mxu0 %v11978_v14  ;;  %v12026_v12 = vcombine.high %v5227_v4, %v5231_v54  ;;  %v12028_v14 = vcombine.high %v5228_v39, %v5232_v61 }
 0x411   :  { %8304 = vmatprep.subr.bf16.mxu1 %v11980_v42  ;;  %v5235_v42 = vld [vmem:[#allocation10 + $0x880] sm:$0xff] }
 0x412   :  { %v12033_v34 = vcombine.low %v5235_v42, %v5239_v17 }
 0x413   :  { %8141 = vmatpush1.bf16.msra.mxu0 %v11977_v19  ;;  %v12027_v19 = vcombine.low %v5228_v39, %v5232_v61 }
 0x414   :  { %8305 = vmatpush1.bf16.msra.mxu1 %v11979_v20  ;;  %8142 = vmatprep.subr.bf16.mxu0 %v11986_v28  ;;  %v12034_v20 = vcombine.high %v5235_v42, %v5239_v17  ;;  %v12036_v28 = vcombine.high %v5236_v22, %v5240_v18 }
 0x415   :  { %8306 = vmatprep.subr.bf16.mxu1 %v11988_v21  ;;  %v5243_v21 = vld [vmem:[#allocation10 + $0x8c0] sm:$0xff] }
 0x416   :  { %v12041_v16 = vcombine.low %v5243_v21, %v5247_v27 }
 0x417   :  { %8143 = vmatpush1.bf16.msra.mxu0 %v11985_v3  ;;  %v12035_v3 = vcombine.low %v5236_v22, %v5240_v18 }
 0x418   :  { %8307 = vmatpush1.bf16.msra.mxu1 %v11987_v36  ;;  %8144 = vmatprep.subr.bf16.mxu0 %v11994_v37  ;;  %v12042_v36 = vcombine.high %v5243_v21, %v5247_v27  ;;  %v12044_v37 = vcombine.high %v5244_v29, %v5248_v33 }
 0x419   :  { %8308 = vmatprep.subr.bf16.mxu1 %v11996_v38  ;;  %v5251_v38 = vld [vmem:[#allocation10 + $0x900] sm:$0xff] }
 0x41a   :  { %v12050_v10 = vcombine.high %v5251_v38, %v5255_v40  ;;  %v12049_v11 = vcombine.low %v5251_v38, %v5255_v40 }
 0x41b   :  { %8145 = vmatpush1.bf16.msra.mxu0 %v11993_v48  ;;  %v12043_v48 = vcombine.low %v5244_v29, %v5248_v33 }
 0x41c   :  { %8309 = vmatpush1.bf16.msra.mxu1 %v11995_v49  ;;  %8146 = vmatprep.subr.bf16.mxu0 %v12002_v2  ;;  %v12052_v49 = vcombine.high %v5252_v44, %v5256_v45  ;;  %v5259_v2 = vld [vmem:[#allocation10 + $0x940] sm:$0xff] }
 0x41d   :  { %8310 = vmatprep.subr.bf16.mxu1 %v12004_v50  ;;  %v5263_v50 = vld [vmem:[#allocation10 + $0x960] sm:$0xff] }
 0x41e   :  { %v12057_v5 = vcombine.low %v5259_v2, %v5263_v50 }
 0x41f   :  { %8147 = vmatpush1.bf16.msra.mxu0 %v12001_v53  ;;  %v12058_v53 = vcombine.high %v5259_v2, %v5263_v50 }
 0x420   :  { %8311 = vmatpush1.bf16.msra.mxu1 %v12003_v56  ;;  %8148 = vmatprep.subr.bf16.mxu0 %v12010_v57  ;;  %v5267_v56 = vld [vmem:[#allocation10 + $0x980] sm:$0xff] }
 0x421   :  { %8312 = vmatprep.subr.bf16.mxu1 %v12012_v32  ;;  %v5271_v57 = vld [vmem:[#allocation10 + $0x9a0] sm:$0xff]  ;;  %v5268_v32 = vld [vmem:[#allocation10 + $0x988] sm:$0xff] }
 0x422   :  { %v12066_v1 = vcombine.high %v5267_v56, %v5271_v57  ;;  %v12065_v4 = vcombine.low %v5267_v56, %v5271_v57  ;;  %v12067_v54 = vcombine.low %v5268_v32, %v5272_v25 }
 0x423   :  { %8149 = vmatpush1.bf16.msra.mxu0 %v12009_v59  ;;  %v12068_v59 = vcombine.high %v5268_v32, %v5272_v25 }
 0x424   :  { %8313 = vmatpush1.bf16.msra.mxu1 %v12011_v63  ;;  %8159 = vmatprep.subr.bf16.mxu0 %v12018_v0  ;;  %v5279_v63 = vld [vmem:[#allocation10 + $0x9e0] sm:$0xff]  ;;  %v5276_v0 = vld [vmem:[#allocation10 + $0x9c8] sm:$0xff] }
 0x425   :  { %8323 = vmatprep.subr.bf16.mxu1 %v12020_v7  ;;  %v5280_v7 = vld [vmem:[#allocation10 + $0x9e8] sm:$0xff]  ;;  %v12074_v39 = vcombine.high %v5275_v13, %v5279_v63  ;;  %v12073_v42 = vcombine.low %v5275_v13, %v5279_v63 }
 0x426   :  { %8151 = vmatmul.mubr.bf16.vlgmr.msra.gmra.mrb[16].mxu0 %v13931_v6  ;;  %v12076_v61 = vcombine.high %v5276_v0, %v5280_v7  ;;  %v12075_v17 = vcombine.low %v5276_v0, %v5280_v7 }
 0x427   :  { %8315 = vmatmul.mubr.bf16.vlgmr.msra.gmra.mrb[16].mxu1 %v13931_v6  ;;  %8160 = vmatpush1.bf16.msra.mxu0 %v12017_v62  ;;  %v5283_v62 = vld [vmem:[#allocation10 + $0xa00] sm:$0xff] }
 0x428   :  { %8324 = vmatpush1.bf16.msra.mxu1 %v12019_v8  ;;  %8161 = vmatprep.subr.bf16.mxu0 %v12026_v12  ;;  %v5287_v8 = vld [vmem:[#allocation10 + $0xa20] sm:$0xff]  ;;  %v5284_v12 = vld [vmem:[#allocation10 + $0xa08] sm:$0xff] }
 0x429   :  { %8325 = vmatprep.subr.bf16.mxu1 %v12028_v14  ;;  %v5288_v14 = vld [vmem:[#allocation10 + $0xa28] sm:$0xff]  ;;  %v12082_v22 = vcombine.high %v5283_v62, %v5287_v8  ;;  %v12081_v21 = vcombine.low %v5283_v62, %v5287_v8 }
 0x42a   :  { %v12084_v18 = vcombine.high %v5284_v12, %v5288_v14  ;;  %v12083_v27 = vcombine.low %v5284_v12, %v5288_v14 }
 0x42b   :  { %8162 = vmatpush1.bf16.msra.mxu0 %v12025_v23  ;;  %v5291_v23 = vld [vmem:[#allocation10 + $0xa40] sm:$0xff] }
 0x42c   :  { %8326 = vmatpush1.bf16.msra.mxu1 %v12027_v19  ;;  %8163 = vmatprep.subr.bf16.mxu0 %v12034_v20  ;;  %v5295_v19 = vld [vmem:[#allocation10 + $0xa60] sm:$0xff]  ;;  %v5292_v20 = vld [vmem:[#allocation10 + $0xa48] sm:$0xff] }
 0x42d   :  { %8327 = vmatprep.subr.bf16.mxu1 %v12036_v28  ;;  %v5296_v28 = vld [vmem:[#allocation10 + $0xa68] sm:$0xff]  ;;  %v12090_v29 = vcombine.high %v5291_v23, %v5295_v19  ;;  %v12089_v38 = vcombine.low %v5291_v23, %v5295_v19 }
 0x42e   :  { %v12092_v33 = vcombine.high %v5292_v20, %v5296_v28  ;;  %v12091_v40 = vcombine.low %v5292_v20, %v5296_v28 }
 0x42f   :  { %8164 = vmatpush1.bf16.msra.mxu0 %v12033_v34  ;;  %v5299_v34 = vld [vmem:[#allocation10 + $0xa80] sm:$0xff] }
 0x430   :  { %8328 = vmatpush1.bf16.msra.mxu1 %v12035_v3  ;;  %8165 = vmatprep.subr.bf16.mxu0 %v12042_v36  ;;  %v5303_v3 = vld [vmem:[#allocation10 + $0xaa0] sm:$0xff]  ;;  %v5300_v36 = vld [vmem:[#allocation10 + $0xa88] sm:$0xff] }
 0x431   :  { %8329 = vmatprep.subr.bf16.mxu1 %v12044_v37  ;;  %v5304_v37 = vld [vmem:[#allocation10 + $0xaa8] sm:$0xff]  ;;  %v12098_v44 = vcombine.high %v5299_v34, %v5303_v3  ;;  %v12097_v2 = vcombine.low %v5299_v34, %v5303_v3 }
 0x432   :  { %v12100_v45 = vcombine.high %v5300_v36, %v5304_v37  ;;  %v12099_v50 = vcombine.low %v5300_v36, %v5304_v37 }
 0x433   :  { %8166 = vmatpush1.bf16.msra.mxu0 %v12041_v16  ;;  %v5307_v16 = vld [vmem:[#allocation10 + $0xac0] sm:$0xff] }
 0x434   :  { %8330 = vmatpush1.bf16.msra.mxu1 %v12043_v48  ;;  %8167 = vmatprep.subr.bf16.mxu0 %v12050_v10  ;;  %v5311_v48 = vld [vmem:[#allocation10 + $0xae0] sm:$0xff]  ;;  %v5308_v10 = vld [vmem:[#allocation10 + $0xac8] sm:$0xff] }
 0x435   :  { %8331 = vmatprep.subr.bf16.mxu1 %v12052_v49  ;;  %v5312_v49 = vld [vmem:[#allocation10 + $0xae8] sm:$0xff]  ;;  %v12106_v51 = vcombine.high %v5307_v16, %v5311_v48  ;;  %v12105_v56 = vcombine.low %v5307_v16, %v5311_v48 }
 0x436   :  { %v12108_v43 = vcombine.high %v5308_v10, %v5312_v49  ;;  %v12107_v57 = vcombine.low %v5308_v10, %v5312_v49 }
 0x437   :  { %8168 = vmatpush1.bf16.msra.mxu0 %v12049_v11  ;;  %v5315_v11 = vld [vmem:[#allocation10 + $0xb00] sm:$0xff] }
 0x438   :  { %8332 = vmatpush1.bf16.msra.mxu1 %v12051_v52  ;;  %8169 = vmatprep.subr.bf16.mxu0 %v12058_v53  ;;  %v5319_v52 = vld [vmem:[#allocation10 + $0xb20] sm:$0xff]  ;;  %v5316_v53 = vld [vmem:[#allocation10 + $0xb08] sm:$0xff] }
 0x439   :  { %8333 = vmatprep.subr.bf16.mxu1 %v12060_v55  ;;  %v5320_v55 = vld [vmem:[#allocation10 + $0xb28] sm:$0xff]  ;;  %v12114_v32 = vcombine.high %v5315_v11, %v5319_v52  ;;  %v12113_v13 = vcombine.low %v5315_v11, %v5319_v52 }
 0x43a   :  { %v12116_v25 = vcombine.high %v5316_v53, %v5320_v55  ;;  %v12115_v63 = vcombine.low %v5316_v53, %v5320_v55 }
 0x43b   :  { %8170 = vmatpush1.bf16.msra.mxu0 %v12057_v5  ;;  %v5323_v5 = vld [vmem:[#allocation10 + $0xb40] sm:$0xff] }
 0x43c   :  { %8334 = vmatpush1.bf16.msra.mxu1 %v12059_v58  ;;  %8171 = vmatprep.subr.bf16.mxu0 %v12066_v1  ;;  %v5327_v58 = vld [vmem:[#allocation10 + $0xb60] sm:$0xff]  ;;  %v5324_v1 = vld [vmem:[#allocation10 + $0xb48] sm:$0xff] }
 0x43d   :  { %8335 = vmatprep.subr.bf16.mxu1 %v12068_v59  ;;  %v5328_v59 = vld [vmem:[#allocation10 + $0xb68] sm:$0xff]  ;;  %v12122_v0 = vcombine.high %v5323_v5, %v5327_v58  ;;  %v12121_v62 = vcombine.low %v5323_v5, %v5327_v58 }
 0x43e   :  { %v12124_v7 = vcombine.high %v5324_v1, %v5328_v59  ;;  %v12123_v8 = vcombine.low %v5324_v1, %v5328_v59  ;;  %v5356_v5 = vld [vmem:[#allocation10 + $0xc48] sm:$0xff] }
 0x43f   :  { %8172 = vmatpush1.bf16.msra.mxu0 %v12065_v4  ;;  %v5331_v4 = vld [vmem:[#allocation10 + $0xb80] sm:$0xff]  ;;  %v5360_v58 = vld [vmem:[#allocation10 + $0xc68] sm:$0xff] }
 0x440   :  { %8336 = vmatpush1.bf16.msra.mxu1 %v12067_v54  ;;  %8173 = vmatprep.subr.bf16.mxu0 %v12074_v39  ;;  %v5335_v54 = vld [vmem:[#allocation10 + $0xba0] sm:$0xff]  ;;  %v5332_v39 = vld [vmem:[#allocation10 + $0xb88] sm:$0xff] }
 0x441   :  { %8337 = vmatprep.subr.bf16.mxu1 %v12076_v61  ;;  %v5336_v61 = vld [vmem:[#allocation10 + $0xba8] sm:$0xff]  ;;  %v12130_v12 = vcombine.high %v5331_v4, %v5335_v54  ;;  %v12129_v23 = vcombine.low %v5331_v4, %v5335_v54  ;;  %v12156_v4 = vcombine.high %v5356_v5, %v5360_v58  ;;  %v5367_v54 = vld [vmem:[#allocation10 + $0xca0] sm:$0xff] }
 0x442   :  { %v12132_v14 = vcombine.high %v5332_v39, %v5336_v61  ;;  %v12131_v19 = vcombine.low %v5332_v39, %v5336_v61  ;;  %v5364_v39 = vld [vmem:[#allocation10 + $0xc88] sm:$0xff] }
 0x443   :  { %8174 = vmatpush1.bf16.msra.mxu0 %v12073_v42  ;;  %v5339_v42 = vld [vmem:[#allocation10 + $0xbc0] sm:$0xff]  ;;  %v5368_v61 = vld [vmem:[#allocation10 + $0xca8] sm:$0xff] }
 0x444   :  { %8338 = vmatpush1.bf16.msra.mxu1 %v12075_v17  ;;  %8175 = vmatprep.subr.bf16.mxu0 %v12082_v22  ;;  %v5343_v17 = vld [vmem:[#allocation10 + $0xbe0] sm:$0xff]  ;;  %v5340_v22 = vld [vmem:[#allocation10 + $0xbc8] sm:$0xff] }
 0x445   :  { %8339 = vmatprep.subr.bf16.mxu1 %v12084_v18  ;;  %v5344_v18 = vld [vmem:[#allocation10 + $0xbe8] sm:$0xff]  ;;  %v12138_v20 = vcombine.high %v5339_v42, %v5343_v17  ;;  %v12137_v34 = vcombine.low %v5339_v42, %v5343_v17  ;;  %v12164_v42 = vcombine.high %v5364_v39, %v5368_v61  ;;  %v5371_v17 = vld [vmem:[#allocation10 + $0xcc0] sm:$0xff] }
 0x446   :  { %v12140_v28 = vcombine.high %v5340_v22, %v5344_v18  ;;  %v12139_v3 = vcombine.low %v5340_v22, %v5344_v18  ;;  %v5375_v22 = vld [vmem:[#allocation10 + $0xce0] sm:$0xff]  ;;  %v5372_v18 = vld [vmem:[#allocation10 + $0xcc8] sm:$0xff] }
 0x447   :  { %8176 = vmatpush1.bf16.msra.mxu0 %v12081_v21  ;;  %v5347_v21 = vld [vmem:[#allocation10 + $0xc00] sm:$0xff] }
 0x448   :  { %8340 = vmatpush1.bf16.msra.mxu1 %v12083_v27  ;;  %8177 = vmatprep.subr.bf16.mxu0 %v12090_v29  ;;  %v5351_v27 = vld [vmem:[#allocation10 + $0xc20] sm:$0xff]  ;;  %v5348_v29 = vld [vmem:[#allocation10 + $0xc08] sm:$0xff] }
 0x449   :  { %8341 = vmatprep.subr.bf16.mxu1 %v12092_v33  ;;  %v5352_v33 = vld [vmem:[#allocation10 + $0xc28] sm:$0xff]  ;;  %v12146_v36 = vcombine.high %v5347_v21, %v5351_v27  ;;  %v12145_v59 = vcombine.low %v5347_v21, %v5351_v27  ;;  %v5379_v27 = vld [vmem:[#allocation10 + $0xd00] sm:$0xff] }
 0x44a   :  { %v12148_v37 = vcombine.high %v5348_v29, %v5352_v33 }
 0x44b   :  { %8178 = vmatpush1.bf16.msra.mxu0 %v12089_v38  ;;  %v13935_v38 = vld [vmem:[#allocation8] sm:$0xff] }
 0x44c   :  { %8342 = vmatpush1.bf16.msra.mxu1 %v12091_v40  ;;  %8179 = vmatprep.subr.bf16.mxu0 %v12098_v44  ;;  %v1710_v40 = vrot.slane %v13935_v38, %v13853_v15  ;;  %v1714_v44 = vrot.slane %v13935_v38, %v13833_v46 }
 0x44d   :  { %8343 = vmatprep.subr.bf16.mxu1 %v12100_v45  ;;  %v1722_v45 = vrot.slane %v13935_v38, %v13856_v30 }
 0x44f   :  { %8180 = vmatpush1.bf16.msra.mxu0 %v12097_v2 }
 0x450   :  { %8344 = vmatpush1.bf16.msra.mxu1 %v12099_v50  ;;  %8181 = vmatprep.subr.bf16.mxu0 %v12106_v51 }
 0x451   :  { %8345 = vmatprep.subr.bf16.mxu1 %v12108_v43 }
 0x453   :  { %8182 = vmatpush1.bf16.msra.mxu0 %v12105_v56 }
 0x454   :  { %8346 = vmatpush1.bf16.msra.mxu1 %v12107_v57  ;;  %8183 = vmatprep.subr.bf16.mxu0 %v12114_v32  ;;  %v5355_v57 = vld [vmem:[#allocation10 + $0xc40] sm:$0xff] }
 0x455   :  { %8347 = vmatprep.subr.bf16.mxu1 %v12116_v25  ;;  %v5359_v25 = vld [vmem:[#allocation10 + $0xc60] sm:$0xff] }
 0x457   :  { %8184 = vmatpush1.bf16.msra.mxu0 %v12113_v13  ;;  %v12147_v13 = vcombine.low %v5348_v29, %v5352_v33  ;;  %v5383_v29 = vld [vmem:[#allocation10 + $0xd20] sm:$0xff]  ;;  %v5380_v33 = vld [vmem:[#allocation10 + $0xd08] sm:$0xff] }
 0x458   :  { %8348 = vmatpush1.bf16.msra.mxu1 %v12115_v63  ;;  %8185 = vmatprep.subr.bf16.mxu0 %v12122_v0  ;;  %v5363_v0 = vld [vmem:[#allocation10 + $0xc80] sm:$0xff] }
 0x459   :  { %8349 = vmatprep.subr.bf16.mxu1 %v12124_v7  ;;  %v12154_v7 = vcombine.high %v5355_v57, %v5359_v25 }
 0x45b   :  { %8186 = vmatpush1.bf16.msra.mxu0 %v12121_v62 }
 0x45c   :  { %8350 = vmatpush1.bf16.msra.mxu1 %v12123_v8  ;;  %8187 = vmatprep.subr.bf16.mxu0 %v12130_v12  ;;  %v12153_v8 = vcombine.low %v5355_v57, %v5359_v25  ;;  %v12155_v12 = vcombine.low %v5356_v5, %v5360_v58  ;;  %v5403_v25 = vld [vmem:[#allocation10 + $0xdc0] sm:$0xff]  ;;  %v5404_v58 = vld [vmem:[#allocation10 + $0xdc8] sm:$0xff] }
 0x45d   :  { %8351 = vmatprep.subr.bf16.mxu1 %v12132_v14  ;;  %v12162_v14 = vcombine.high %v5363_v0, %v5367_v54  ;;  %v5407_v5 = vld [vmem:[#allocation10 + $0xde0] sm:$0xff] }
 0x45f   :  { %8188 = vmatpush1.bf16.msra.mxu0 %v12129_v23  ;;  %v5376_v23 = vld [vmem:[#allocation10 + $0xce8] sm:$0xff] }
 0x460   :  { %8352 = vmatpush1.bf16.msra.mxu1 %v12131_v19  ;;  %8189 = vmatprep.subr.bf16.mxu0 %v12138_v20  ;;  %v12161_v19 = vcombine.low %v5363_v0, %v5367_v54  ;;  %v12163_v20 = vcombine.low %v5364_v39, %v5368_v61  ;;  %v12172_v21 = vcombine.high %v5372_v18, %v5376_v23  ;;  %v5411_v54 = vld [vmem:[#allocation10 + $0xe00] sm:$0xff]  ;;  %v5412_v61 = vld [vmem:[#allocation10 + $0xe08] sm:$0xff] }
 0x461   :  { %8353 = vmatprep.subr.bf16.mxu1 %v12140_v28  ;;  %v12170_v28 = vcombine.high %v5371_v17, %v5375_v22  ;;  %v5415_v39 = vld [vmem:[#allocation10 + $0xe20] sm:$0xff] }
 0x463   :  { %8190 = vmatpush1.bf16.msra.mxu0 %v12137_v34  ;;  %v5384_v34 = vld [vmem:[#allocation10 + $0xd28] sm:$0xff] }
 0x464   :  { %8354 = vmatpush1.bf16.msra.mxu1 %v12139_v3  ;;  %8200 = vmatprep.subr.bf16.mxu0 %v12146_v36  ;;  %v12169_v3 = vcombine.low %v5371_v17, %v5375_v22  ;;  %v12171_v36 = vcombine.low %v5372_v18, %v5376_v23  ;;  %v5419_v22 = vld [vmem:[#allocation10 + $0xe40] sm:$0xff]  ;;  %v5420_v23 = vld [vmem:[#allocation10 + $0xe48] sm:$0xff] }
 0x465   :  { %8364 = vmatprep.subr.bf16.mxu1 %v12148_v37  ;;  %v12178_v37 = vcombine.high %v5379_v27, %v5383_v29  ;;  %v5423_v18 = vld [vmem:[#allocation10 + $0xe60] sm:$0xff] }
 0x479   :  { %v4776_v16 = vpop.f32.mrb[12].mxu0 }
 0x47a   :  { %v12648_v48 = vadd.f32 %v4776_v16, %v1710_v40  ;;  %v13943_v10 = vpop.f32.mrb[12].mxu1  ;;  %v4778_v49 = vpop.f32.mrb[13].mxu0  ;;  %v12180_v40 = vcombine.high %v5380_v33, %v5384_v34  ;;  %v5388_v16 = vld [vmem:[#allocation10 + $0xd48] sm:$0xff] }
 0x47b   :  { %v12649_v2 = vadd.f32 %v4778_v49, %v1714_v44  ;;  %v4942_v50 = vpop.f32.mrb[13].mxu1  ;;  %v4780_v51 = vpop.f32.mrb[14].mxu0  ;;  %v5387_v44 = vld [vmem:[#allocation10 + $0xd40] sm:$0xff]  ;;  %v12177_v49 = vcombine.low %v5379_v27, %v5383_v29 }
 0x47c   :  { %v4951_v43 = vmax.f32 %v12648_v48, 0.0  ;;  %v12651_v11 = vadd.f32 %v4942_v50, %v1722_v45  ;;  %v4944_v52 = vpop.f32.mrb[14].mxu1  ;;  %v4781_v53 = vpop.f32.mrb[15].mxu0  ;;  %v5391_v45 = vld [vmem:[#allocation10 + $0xd60] sm:$0xff]  ;;  %v5392_v48 = vld [vmem:[#allocation10 + $0xd68] sm:$0xff] }
 0x47d   :  { %v4952_v55 = vmax.f32 %v12649_v2, 0.0  ;;  %v4945_v56 = vpop.f32.mrb[15].mxu1  ;;  %v12179_v2 = vcombine.low %v5380_v33, %v5384_v34  ;;  %v12186_v50 = vcombine.high %v5387_v44, %v5391_v45  ;;  %v12188_v51 = vcombine.high %v5388_v16, %v5392_v48  ;;  %v5396_v52 = vld [vmem:[#allocation10 + $0xd88] sm:$0xff]  ;;  %v5427_v29 = vld [vmem:[#allocation10 + $0xe80] sm:$0xff] }
 0x47e   :  { %v4954_v32 = vmax.f32 %v12651_v11, 0.0  ;;  %v13947_v63 = vpack.c.bf16 %v4951_v43, %v4951_v43  ;;  %v5395_v43 = vld [vmem:[#allocation10 + $0xd80] sm:$0xff]  ;;  %v5400_v53 = vld [vmem:[#allocation10 + $0xda8] sm:$0xff]  ;;  %v12187_v56 = vcombine.low %v5388_v16, %v5392_v48 }
 0x47f   :  { %v13945_v1 = vpack.c.bf16 %v4952_v55, %v4952_v55  ;;  %v5399_v11 = vld [vmem:[#allocation10 + $0xda0] sm:$0xff]  ;;  %v12185_v55 = vcombine.low %v5387_v44, %v5391_v45  ;;  %v12195_v0 = vcombine.low %v5396_v52, %v5400_v53  ;;  %v5428_v34 = vld [vmem:[#allocation10 + $0xe88] sm:$0xff] }
 0x480   :  { %v13951_v62 = vpack.c.bf16 %v4954_v32, %v4954_v32  ;;  %v12194_v57 = vcombine.high %v5395_v43, %v5399_v11  ;;  %v12196_v32 = vcombine.high %v5396_v52, %v5400_v53  ;;  %v5431_v33 = vld [vmem:[#allocation10 + $0xea0] sm:$0xff]  ;;  %v5436_v48 = vld [vmem:[#allocation10 + $0xec8] sm:$0xff] }
 0x481   :  { %8191 = vmatprep.mubr.bf16.mxu0 %v13945_v1  ;;  %8355 = vmatprep.mubr.bf16.mxu1 %v13945_v1  ;;  %v5435_v45 = vld [vmem:[#allocation10 + $0xec0] sm:$0xff]  ;;  %v5444_v53 = vld [vmem:[#allocation10 + $0xf08] sm:$0xff] }
 0x482   :  { %8192 = vmatmul.mubr.bf16.vlgmr.msra.gmra.mrb[16].mxu0 %v13947_v63  ;;  %8356 = vmatmul.mubr.bf16.vlgmr.msra.gmra.mrb[16].mxu1 %v13947_v63  ;;  %v5439_v16 = vld [vmem:[#allocation10 + $0xee0] sm:$0xff] }
 0x483   :  { %8201 = vmatpush1.bf16.msra.mxu0 %v12145_v59  ;;  %8365 = vmatpush1.bf16.msra.mxu1 %v12147_v13  ;;  %v5408_v59 = vld [vmem:[#allocation10 + $0xde8] sm:$0xff]  ;;  %v12193_v13 = vcombine.low %v5395_v43, %v5399_v11  ;;  %v5443_v11 = vld [vmem:[#allocation10 + $0xf00] sm:$0xff] }
 0x484   :  { %8232 = vmatprep.mubr.bf16.mxu0 %v13951_v62  ;;  %8396 = vmatprep.mubr.bf16.mxu1 %v13951_v62  ;;  %v5447_v52 = vld [vmem:[#allocation10 + $0xf20] sm:$0xff] }
 0x485   :  { %8202 = vmatprep.subr.bf16.mxu0 %v12154_v7  ;;  %8366 = vmatprep.subr.bf16.mxu1 %v12156_v4  ;;  %v12202_v7 = vcombine.high %v5403_v25, %v5407_v5  ;;  %v12204_v4 = vcombine.high %v5404_v58, %v5408_v59 }
 0x487   :  { %8203 = vmatpush1.bf16.msra.mxu0 %v12153_v8  ;;  %8367 = vmatpush1.bf16.msra.mxu1 %v12155_v12  ;;  %v5416_v8 = vld [vmem:[#allocation10 + $0xe28] sm:$0xff]  ;;  %v12201_v12 = vcombine.low %v5403_v25, %v5407_v5  ;;  %v5451_v5 = vld [vmem:[#allocation10 + $0xf40] sm:$0xff] }
 0x488   :  { %8204 = vmatprep.subr.bf16.mxu0 %v12162_v14  ;;  %8368 = vmatprep.subr.bf16.mxu1 %v12164_v42  ;;  %v12203_v14 = vcombine.low %v5404_v58, %v5408_v59  ;;  %v12210_v42 = vcombine.high %v5411_v54, %v5415_v39  ;;  %v12212_v17 = vcombine.high %v5412_v61, %v5416_v8  ;;  %v5455_v58 = vld [vmem:[#allocation10 + $0xf60] sm:$0xff]  ;;  %v5452_v59 = vld [vmem:[#allocation10 + $0xf48] sm:$0xff] }
 0x48b   :  { %8205 = vmatpush1.bf16.msra.mxu0 %v12161_v19  ;;  %8369 = vmatpush1.bf16.msra.mxu1 %v12163_v20  ;;  %v5424_v19 = vld [vmem:[#allocation10 + $0xe68] sm:$0xff]  ;;  %v12209_v20 = vcombine.low %v5411_v54, %v5415_v39  ;;  %v5459_v39 = vld [vmem:[#allocation10 + $0xf80] sm:$0xff] }
 0x48c   :  { %8206 = vmatprep.subr.bf16.mxu0 %v12170_v28  ;;  %8370 = vmatprep.subr.bf16.mxu1 %v12172_v21  ;;  %v12211_v28 = vcombine.low %v5412_v61, %v5416_v8  ;;  %v12218_v21 = vcombine.high %v5419_v22, %v5423_v18  ;;  %v12220_v27 = vcombine.high %v5420_v23, %v5424_v19  ;;  %v5463_v61 = vld [vmem:[#allocation10 + $0xfa0] sm:$0xff]  ;;  %v5460_v8 = vld [vmem:[#allocation10 + $0xf88] sm:$0xff] }
 0x48f   :  { %8207 = vmatpush1.bf16.msra.mxu0 %v12169_v3  ;;  %8371 = vmatpush1.bf16.msra.mxu1 %v12171_v36  ;;  %v5432_v3 = vld [vmem:[#allocation10 + $0xea8] sm:$0xff]  ;;  %v12217_v36 = vcombine.low %v5419_v22, %v5423_v18  ;;  %v12258_v22 = vcombine.high %v5459_v39, %v5463_v61 }
 0x490   :  { %8208 = vmatprep.subr.bf16.mxu0 %v12178_v37  ;;  %8372 = vmatprep.subr.bf16.mxu1 %v12180_v40  ;;  %v12219_v37 = vcombine.low %v5420_v23, %v5424_v19  ;;  %v12226_v40 = vcombine.high %v5427_v29, %v5431_v33  ;;  %v12228_v44 = vcombine.high %v5428_v34, %v5432_v3  ;;  %v5467_v23 = vld [vmem:[#allocation10 + $0xfc0] sm:$0xff] }
 0x491   :  { %v5471_v19 = vld [vmem:[#allocation10 + $0xfe0] sm:$0xff] }
 0x493   :  { %8209 = vmatpush1.bf16.msra.mxu0 %v12177_v49  ;;  %8373 = vmatpush1.bf16.msra.mxu1 %v12179_v2  ;;  %v5440_v49 = vld [vmem:[#allocation10 + $0xee8] sm:$0xff]  ;;  %v12225_v2 = vcombine.low %v5427_v29, %v5431_v33  ;;  %v12266_v33 = vcombine.high %v5467_v23, %v5471_v19 }
 0x494   :  { %8210 = vmatprep.subr.bf16.mxu0 %v12186_v50  ;;  %8374 = vmatprep.subr.bf16.mxu1 %v12188_v51  ;;  %v12227_v50 = vcombine.low %v5428_v34, %v5432_v3  ;;  %v12234_v51 = vcombine.high %v5435_v45, %v5439_v16  ;;  %v12236_v43 = vcombine.high %v5436_v48, %v5440_v49  ;;  %v4965_v3 = vld [vmem:[#allocation10 + $0x10] sm:$0xff] }
 0x497   :  { %8211 = vmatpush1.bf16.msra.mxu0 %v12185_v55  ;;  %8375 = vmatpush1.bf16.msra.mxu1 %v12187_v56  ;;  %v5448_v55 = vld [vmem:[#allocation10 + $0xf28] sm:$0xff]  ;;  %v12233_v56 = vcombine.low %v5435_v45, %v5439_v16 }
 0x498   :  { %8212 = vmatprep.subr.bf16.mxu0 %v12194_v57  ;;  %8376 = vmatprep.subr.bf16.mxu1 %v12196_v32  ;;  %v12235_v57 = vcombine.low %v5436_v48, %v5440_v49  ;;  %v12242_v32 = vcombine.high %v5443_v11, %v5447_v52  ;;  %v12244_v25 = vcombine.high %v5444_v53, %v5448_v55  ;;  %v4973_v49 = vld [vmem:[#allocation10 + $0x50] sm:$0xff] }
 0x49b   :  { %8213 = vmatpush1.bf16.msra.mxu0 %v12193_v13  ;;  %8377 = vmatpush1.bf16.msra.mxu1 %v12195_v0  ;;  %v5456_v13 = vld [vmem:[#allocation10 + $0xf68] sm:$0xff]  ;;  %v12241_v0 = vcombine.low %v5443_v11, %v5447_v52 }
 0x49c   :  { %8214 = vmatprep.subr.bf16.mxu0 %v12202_v7  ;;  %8378 = vmatprep.subr.bf16.mxu1 %v12204_v4  ;;  %v12243_v7 = vcombine.low %v5444_v53, %v5448_v55  ;;  %v12250_v4 = vcombine.high %v5451_v5, %v5455_v58  ;;  %v12252_v54 = vcombine.high %v5452_v59, %v5456_v13  ;;  %v4981_v55 = vld [vmem:[#allocation10 + $0x90] sm:$0xff] }
 0x49f   :  { %8215 = vmatpush1.bf16.msra.mxu0 %v12201_v12  ;;  %8379 = vmatpush1.bf16.msra.mxu1 %v12203_v14  ;;  %v5464_v12 = vld [vmem:[#allocation10 + $0xfa8] sm:$0xff]  ;;  %v12249_v14 = vcombine.low %v5451_v5, %v5455_v58 }
 0x4a0   :  { %8216 = vmatprep.subr.bf16.mxu0 %v12210_v42  ;;  %8380 = vmatprep.subr.bf16.mxu1 %v12212_v17  ;;  %v12251_v42 = vcombine.low %v5452_v59, %v5456_v13  ;;  %v1718_v17 = vrot.slane %v13935_v38, %v13873_v60  ;;  %v12260_v18 = vcombine.high %v5460_v8, %v5464_v12  ;;  %v4969_v38 = vld [vmem:[#allocation10 + $0x30] sm:$0xff] }
 0x4a1   :  { %v11766_v16 = vcombine.high %v4965_v3, %v4969_v38  ;;  %v4989_v13 = vld [vmem:[#allocation10 + $0xd0] sm:$0xff] }
 0x4a2   :  { %v12650_v29 = vadd.f32 %v13943_v10, %v1718_v17  ;;  %v4974_v10 = vld [vmem:[#allocation10 + $0x58] sm:$0xff] }
 0x4a3   :  { %8217 = vmatpush1.bf16.msra.mxu0 %v12209_v20  ;;  %8381 = vmatpush1.bf16.msra.mxu1 %v12211_v28  ;;  %v5468_v20 = vld [vmem:[#allocation10 + $0xfc8] sm:$0xff] }
 0x4a4   :  { %8218 = vmatprep.subr.bf16.mxu0 %v12218_v21  ;;  %8382 = vmatprep.subr.bf16.mxu1 %v12220_v27  ;;  %v5472_v28 = vld [vmem:[#allocation10 + $0xfe8] sm:$0xff]  ;;  %v12257_v21 = vcombine.low %v5459_v39, %v5463_v61  ;;  %v12259_v27 = vcombine.low %v5460_v8, %v5464_v12  ;;  %v4953_v45 = vmax.f32 %v12650_v29, 0.0  ;;  %v4997_v12 = vld [vmem:[#allocation10 + $0x110] sm:$0xff] }
 0x4a5   :  { %v12268_v34 = vcombine.high %v5468_v20, %v5472_v28 }
 0x4a7   :  { %8219 = vmatpush1.bf16.msra.mxu0 %v12217_v36  ;;  %8383 = vmatpush1.bf16.msra.mxu1 %v12219_v37  ;;  %v4966_v36 = vld [vmem:[#allocation10 + $0x18] sm:$0xff] }
 0x4a8   :  { %8220 = vmatprep.subr.bf16.mxu0 %v12226_v40  ;;  %8384 = vmatprep.subr.bf16.mxu1 %v12228_v44  ;;  %v4970_v37 = vld [vmem:[#allocation10 + $0x38] sm:$0xff]  ;;  %v12265_v40 = vcombine.low %v5467_v23, %v5471_v19  ;;  %v12267_v44 = vcombine.low %v5468_v20, %v5472_v28  ;;  %v5005_v19 = vld [vmem:[#allocation10 + $0x150] sm:$0xff] }
 0x4a9   :  { %v11768_v48 = vcombine.high %v4966_v36, %v4970_v37  ;;  %v11767_v11 = vcombine.low %v4966_v36, %v4970_v37  ;;  %v5009_v20 = vld [vmem:[#allocation10 + $0x170] sm:$0xff]  ;;  %v5006_v28 = vld [vmem:[#allocation10 + $0x158] sm:$0xff] }
 0x4aa   :  { %v5014_v36 = vld [vmem:[#allocation10 + $0x198] sm:$0xff] }
 0x4ab   :  { %8221 = vmatpush1.bf16.msra.mxu0 %v12225_v2  ;;  %8385 = vmatpush1.bf16.msra.mxu1 %v12227_v50  ;;  %v4977_v2 = vld [vmem:[#allocation10 + $0x70] sm:$0xff]  ;;  %v4978_v50 = vld [vmem:[#allocation10 + $0x78] sm:$0xff] }
 0x4ac   :  { %8222 = vmatprep.subr.bf16.mxu0 %v12234_v51  ;;  %8386 = vmatprep.subr.bf16.mxu1 %v12236_v43  ;;  %v11765_v51 = vcombine.low %v4965_v3, %v4969_v38  ;;  %v13960_v43 = vpack.c.bf16 %v4953_v45, %v4953_v45  ;;  %v11774_v52 = vcombine.high %v4973_v49, %v4977_v2  ;;  %v5013_v3 = vld [vmem:[#allocation10 + $0x190] sm:$0xff]  ;;  %v5018_v37 = vld [vmem:[#allocation10 + $0x1b8] sm:$0xff] }
 0x4ad   :  { %v11776_v53 = vcombine.high %v4974_v10, %v4978_v50  ;;  %v11775_v5 = vcombine.low %v4974_v10, %v4978_v50  ;;  %v5017_v38 = vld [vmem:[#allocation10 + $0x1b0] sm:$0xff]  ;;  %v5026_v10 = vld [vmem:[#allocation10 + $0x1f8] sm:$0xff] }
 0x4ae   :  { %v11814_v45 = vcombine.high %v5013_v3, %v5017_v38  ;;  %v11813_v50 = vcombine.low %v5013_v3, %v5017_v38  ;;  %v5065_v3 = vld [vmem:[#allocation10 + $0x330] sm:$0xff]  ;;  %v5062_v38 = vld [vmem:[#allocation10 + $0x318] sm:$0xff] }
 0x4af   :  { %8223 = vmatpush1.bf16.msra.mxu0 %v12233_v56  ;;  %8387 = vmatpush1.bf16.msra.mxu1 %v12235_v57  ;;  %v4985_v56 = vld [vmem:[#allocation10 + $0xb0] sm:$0xff]  ;;  %v4982_v57 = vld [vmem:[#allocation10 + $0x98] sm:$0xff] }
 0x4b0   :  { %8224 = vmatprep.subr.bf16.mxu0 %v12242_v32  ;;  %8388 = vmatprep.subr.bf16.mxu1 %v12244_v25  ;;  %v4986_v32 = vld [vmem:[#allocation10 + $0xb8] sm:$0xff]  ;;  %v11773_v25 = vcombine.low %v4973_v49, %v4977_v2  ;;  %v11782_v58 = vcombine.high %v4981_v55, %v4985_v56  ;;  %v5025_v49 = vld [vmem:[#allocation10 + $0x1f0] sm:$0xff] }
 0x4b1   :  { %v11784_v59 = vcombine.high %v4982_v57, %v4986_v32  ;;  %v11783_v39 = vcombine.low %v4982_v57, %v4986_v32  ;;  %v5022_v2 = vld [vmem:[#allocation10 + $0x1d8] sm:$0xff] }
 0x4b2   :  { %v5034_v57 = vld [vmem:[#allocation10 + $0x238] sm:$0xff] }
 0x4b3   :  { %8225 = vmatpush1.bf16.msra.mxu0 %v12241_v0  ;;  %8389 = vmatpush1.bf16.msra.mxu1 %v12243_v7  ;;  %v4993_v0 = vld [vmem:[#allocation10 + $0xf0] sm:$0xff]  ;;  %v4990_v7 = vld [vmem:[#allocation10 + $0xd8] sm:$0xff] }
 0x4b4   :  { %8226 = vmatprep.subr.bf16.mxu0 %v12250_v4  ;;  %8390 = vmatprep.subr.bf16.mxu1 %v12252_v54  ;;  %v4994_v4 = vld [vmem:[#allocation10 + $0xf8] sm:$0xff]  ;;  %v11781_v54 = vcombine.low %v4981_v55, %v4985_v56  ;;  %v11790_v61 = vcombine.high %v4989_v13, %v4993_v0  ;;  %v11789_v17 = vcombine.low %v4989_v13, %v4993_v0  ;;  %v5033_v55 = vld [vmem:[#allocation10 + $0x230] sm:$0xff] }
 0x4b5   :  { %v11792_v8 = vcombine.high %v4990_v7, %v4994_v4  ;;  %v5030_v56 = vld [vmem:[#allocation10 + $0x218] sm:$0xff]  ;;  %v5041_v13 = vld [vmem:[#allocation10 + $0x270] sm:$0xff] }
 0x4b6   :  { %v5038_v0 = vld [vmem:[#allocation10 + $0x258] sm:$0xff] }
 0x4b7   :  { %8227 = vmatpush1.bf16.msra.mxu0 %v12249_v14  ;;  %8391 = vmatpush1.bf16.msra.mxu1 %v12251_v42  ;;  %v5001_v14 = vld [vmem:[#allocation10 + $0x130] sm:$0xff]  ;;  %v5002_v42 = vld [vmem:[#allocation10 + $0x138] sm:$0xff] }
 0x4b8   :  { %8228 = vmatprep.subr.bf16.mxu0 %v12258_v22  ;;  %8392 = vmatprep.subr.bf16.mxu1 %v12260_v18  ;;  %v11791_v22 = vcombine.low %v4990_v7, %v4994_v4  ;;  %v11798_v18 = vcombine.high %v4997_v12, %v5001_v14  ;;  %v5042_v7 = vld [vmem:[#allocation10 + $0x278] sm:$0xff] }
 0x4bb   :  { %8229 = vmatpush1.bf16.msra.mxu0 %v12257_v21  ;;  %8393 = vmatpush1.bf16.msra.mxu1 %v12259_v27  ;;  %v5010_v21 = vld [vmem:[#allocation10 + $0x178] sm:$0xff]  ;;  %v11797_v27 = vcombine.low %v4997_v12, %v5001_v14  ;;  %v5049_v12 = vld [vmem:[#allocation10 + $0x2b0] sm:$0xff] }
 0x4bc   :  { %8230 = vmatprep.subr.bf16.mxu0 %v12266_v33  ;;  %8394 = vmatprep.subr.bf16.mxu1 %v12268_v34  ;;  %v11806_v33 = vcombine.high %v5005_v19, %v5009_v20  ;;  %v11808_v34 = vcombine.high %v5006_v28, %v5010_v21  ;;  %v5046_v14 = vld [vmem:[#allocation10 + $0x298] sm:$0xff] }
 0x4bf   :  { %8231 = vmatpush1.bf16.msra.mxu0 %v12265_v40  ;;  %8395 = vmatpush1.bf16.msra.mxu1 %v12267_v44  ;;  %v11805_v40 = vcombine.low %v5005_v19, %v5009_v20  ;;  %v11807_v44 = vcombine.low %v5006_v28, %v5010_v21  ;;  %v5057_v19 = vld [vmem:[#allocation10 + $0x2f0] sm:$0xff]  ;;  %v5054_v20 = vld [vmem:[#allocation10 + $0x2d8] sm:$0xff] }
 0x4c0   :  { %8405 = vmatprep.subr.bf16.mxu0 %v11766_v16  ;;  %8569 = vmatprep.subr.bf16.mxu1 %v11768_v48  ;;  %v11816_v16 = vcombine.high %v5014_v36, %v5018_v37  ;;  %v5021_v48 = vld [vmem:[#allocation10 + $0x1d0] sm:$0xff]  ;;  %v5058_v28 = vld [vmem:[#allocation10 + $0x2f8] sm:$0xff] }
 0x4c1   :  { %v11821_v32 = vcombine.low %v5021_v48, %v5025_v49 }
 0x4c2   :  { %8233 = vmatmul.mubr.bf16.vlgmr.msra.gmra.mrb[16].mxu0 %v13960_v43  ;;  %8397 = vmatmul.mubr.bf16.vlgmr.msra.gmra.mrb[16].mxu1 %v13960_v43 }
 0x4c3   :  { %8406 = vmatpush1.bf16.msra.mxu0 %v11765_v51  ;;  %8437 = vmatprep.mubr.bf16.mxu0 %v13908_v9  ;;  %v11815_v51 = vcombine.low %v5014_v36, %v5018_v37  ;;  %v5066_v36 = vld [vmem:[#allocation10 + $0x338] sm:$0xff] }
 0x4c4   :  { %8570 = vmatpush1.bf16.msra.mxu1 %v11767_v11  ;;  %8601 = vmatprep.mubr.bf16.mxu1 %v13908_v9  ;;  %v4998_v9 = vld [vmem:[#allocation10 + $0x118] sm:$0xff]  ;;  %v11822_v11 = vcombine.high %v5021_v48, %v5025_v49  ;;  %v5073_v48 = vld [vmem:[#allocation10 + $0x370] sm:$0xff] }
 0x4c5   :  { %8407 = vmatprep.subr.bf16.mxu0 %v11774_v52  ;;  %8571 = vmatprep.subr.bf16.mxu1 %v11776_v53  ;;  %v11800_v23 = vcombine.high %v4998_v9, %v5002_v42  ;;  %v11799_v29 = vcombine.low %v4998_v9, %v5002_v42  ;;  %v11824_v52 = vcombine.high %v5022_v2, %v5026_v10  ;;  %v5029_v53 = vld [vmem:[#allocation10 + $0x210] sm:$0xff]  ;;  %v5050_v9 = vld [vmem:[#allocation10 + $0x2b8] sm:$0xff] }
 0x4c6   :  { %v11829_v4 = vcombine.low %v5029_v53, %v5033_v55  ;;  %v5070_v49 = vld [vmem:[#allocation10 + $0x358] sm:$0xff] }
 0x4c7   :  { %8408 = vmatpush1.bf16.msra.mxu0 %v11773_v25  ;;  %v11823_v25 = vcombine.low %v5022_v2, %v5026_v10  ;;  %v5074_v2 = vld [vmem:[#allocation10 + $0x378] sm:$0xff] }
 0x4c8   :  { %8572 = vmatpush1.bf16.msra.mxu1 %v11775_v5  ;;  %8409 = vmatprep.subr.bf16.mxu0 %v11782_v58  ;;  %v11830_v5 = vcombine.high %v5029_v53, %v5033_v55  ;;  %v11832_v58 = vcombine.high %v5030_v56, %v5034_v57  ;;  %v5081_v53 = vld [vmem:[#allocation10 + $0x3b0] sm:$0xff]  ;;  %v5078_v55 = vld [vmem:[#allocation10 + $0x398] sm:$0xff] }
 0x4c9   :  { %8573 = vmatprep.subr.bf16.mxu1 %v11784_v59  ;;  %v5037_v59 = vld [vmem:[#allocation10 + $0x250] sm:$0xff] }
 0x4ca   :  { %v11837_v42 = vcombine.low %v5037_v59, %v5041_v13 }
 0x4cb   :  { %8410 = vmatpush1.bf16.msra.mxu0 %v11781_v54  ;;  %v11831_v54 = vcombine.low %v5030_v56, %v5034_v57  ;;  %v5082_v56 = vld [vmem:[#allocation10 + $0x3b8] sm:$0xff] }
 0x4cc   :  { %8574 = vmatpush1.bf16.msra.mxu1 %v11783_v39  ;;  %8411 = vmatprep.subr.bf16.mxu0 %v11790_v61  ;;  %v11838_v39 = vcombine.high %v5037_v59, %v5041_v13  ;;  %v11840_v61 = vcombine.high %v5038_v0, %v5042_v7  ;;  %v5089_v59 = vld [vmem:[#allocation10 + $0x3f0] sm:$0xff]  ;;  %v5086_v13 = vld [vmem:[#allocation10 + $0x3d8] sm:$0xff] }
 0x4cd   :  { %8575 = vmatprep.subr.bf16.mxu1 %v11792_v8  ;;  %v5045_v8 = vld [vmem:[#allocation10 + $0x290] sm:$0xff] }
 0x4ce   :  { %v11845_v21 = vcombine.low %v5045_v8, %v5049_v12 }
 0x4cf   :  { %8412 = vmatpush1.bf16.msra.mxu0 %v11789_v17  ;;  %v11839_v17 = vcombine.low %v5038_v0, %v5042_v7  ;;  %v5090_v0 = vld [vmem:[#allocation10 + $0x3f8] sm:$0xff] }
 0x4d0   :  { %8576 = vmatpush1.bf16.msra.mxu1 %v11791_v22  ;;  %8413 = vmatprep.subr.bf16.mxu0 %v11798_v18  ;;  %v11846_v22 = vcombine.high %v5045_v8, %v5049_v12  ;;  %v11848_v18 = vcombine.high %v5046_v14, %v5050_v9  ;;  %v5097_v8 = vld [vmem:[#allocation10 + $0x430] sm:$0xff]  ;;  %v5094_v12 = vld [vmem:[#allocation10 + $0x418] sm:$0xff] }
 0x4d1   :  { %8577 = vmatprep.subr.bf16.mxu1 %v11800_v23  ;;  %v5053_v23 = vld [vmem:[#allocation10 + $0x2d0] sm:$0xff] }
 0x4d2   :  { %v11853_v37 = vcombine.low %v5053_v23, %v5057_v19 }
 0x4d3   :  { %8414 = vmatpush1.bf16.msra.mxu0 %v11797_v27  ;;  %v11847_v27 = vcombine.low %v5046_v14, %v5050_v9  ;;  %v5098_v14 = vld [vmem:[#allocation10 + $0x438] sm:$0xff] }
 0x4d4   :  { %8578 = vmatpush1.bf16.msra.mxu1 %v11799_v29  ;;  %8415 = vmatprep.subr.bf16.mxu0 %v11806_v33  ;;  %v11854_v29 = vcombine.high %v5053_v23, %v5057_v19  ;;  %v11856_v33 = vcombine.high %v5054_v20, %v5058_v28  ;;  %v5105_v23 = vld [vmem:[#allocation10 + $0x470] sm:$0xff] }
 0x4d5   :  { %8579 = vmatprep.subr.bf16.mxu1 %v11808_v34  ;;  %v5061_v34 = vld [vmem:[#allocation10 + $0x310] sm:$0xff] }
 0x4d6   :  { %v11861_v10 = vcombine.low %v5061_v34, %v5065_v3 }
 0x4d7   :  { %8416 = vmatpush1.bf16.msra.mxu0 %v11805_v40  ;;  %v11855_v40 = vcombine.low %v5054_v20, %v5058_v28  ;;  %v5102_v20 = vld [vmem:[#allocation10 + $0x458] sm:$0xff] }
 0x4d8   :  { %8580 = vmatpush1.bf16.msra.mxu1 %v11807_v44  ;;  %8417 = vmatprep.subr.bf16.mxu0 %v11814_v45  ;;  %v11862_v44 = vcombine.high %v5061_v34, %v5065_v3  ;;  %v11864_v45 = vcombine.high %v5062_v38, %v5066_v36  ;;  %v5106_v28 = vld [vmem:[#allocation10 + $0x478] sm:$0xff] }
 0x4d9   :  { %8581 = vmatprep.subr.bf16.mxu1 %v11816_v16  ;;  %v5069_v16 = vld [vmem:[#allocation10 + $0x350] sm:$0xff]  ;;  %v11904_v34 = vcombine.high %v5102_v20, %v5106_v28  ;;  %v5110_v3 = vld [vmem:[#allocation10 + $0x498] sm:$0xff] }
 0x4da   :  { %v11869_v57 = vcombine.low %v5069_v16, %v5073_v48 }
 0x4db   :  { %8418 = vmatpush1.bf16.msra.mxu0 %v11813_v50  ;;  %v11863_v50 = vcombine.low %v5062_v38, %v5066_v36  ;;  %v5114_v38 = vld [vmem:[#allocation10 + $0x4b8] sm:$0xff] }
 0x4dc   :  { %8582 = vmatpush1.bf16.msra.mxu1 %v11815_v51  ;;  %8419 = vmatprep.subr.bf16.mxu0 %v11822_v11  ;;  %v11870_v51 = vcombine.high %v5069_v16, %v5073_v48  ;;  %v11872_v11 = vcombine.high %v5070_v49, %v5074_v2  ;;  %v5121_v16 = vld [vmem:[#allocation10 + $0x4f0] sm:$0xff]  ;;  %v5118_v48 = vld [vmem:[#allocation10 + $0x4d8] sm:$0xff] }
 0x4dd   :  { %8583 = vmatprep.subr.bf16.mxu1 %v11824_v52  ;;  %v5077_v52 = vld [vmem:[#allocation10 + $0x390] sm:$0xff] }
 0x4de   :  { %v11877_v7 = vcombine.low %v5077_v52, %v5081_v53 }
 0x4df   :  { %8420 = vmatpush1.bf16.msra.mxu0 %v11821_v32  ;;  %v11871_v32 = vcombine.low %v5070_v49, %v5074_v2  ;;  %v5122_v49 = vld [vmem:[#allocation10 + $0x4f8] sm:$0xff] }
 0x4e0   :  { %8584 = vmatpush1.bf16.msra.mxu1 %v11823_v25  ;;  %8421 = vmatprep.subr.bf16.mxu0 %v11830_v5  ;;  %v11878_v25 = vcombine.high %v5077_v52, %v5081_v53  ;;  %v11880_v5 = vcombine.high %v5078_v55, %v5082_v56  ;;  %v5126_v52 = vld [vmem:[#allocation10 + $0x518] sm:$0xff] }
 0x4e1   :  { %8585 = vmatprep.subr.bf16.mxu1 %v11832_v58  ;;  %v5085_v58 = vld [vmem:[#allocation10 + $0x3d0] sm:$0xff]  ;;  %v5130_v53 = vld [vmem:[#allocation10 + $0x538] sm:$0xff] }
 0x4e2   :  { %v11885_v9 = vcombine.low %v5085_v58, %v5089_v59 }
 0x4e3   :  { %8422 = vmatpush1.bf16.msra.mxu0 %v11829_v4  ;;  %v11879_v4 = vcombine.low %v5078_v55, %v5082_v56  ;;  %v11919_v55 = vcombine.low %v5118_v48, %v5122_v49 }
 0x4e4   :  { %8586 = vmatpush1.bf16.msra.mxu1 %v11831_v54  ;;  %8423 = vmatprep.subr.bf16.mxu0 %v11838_v39  ;;  %v11886_v54 = vcombine.high %v5085_v58, %v5089_v59  ;;  %v11888_v39 = vcombine.high %v5086_v13, %v5090_v0  ;;  %v5138_v58 = vld [vmem:[#allocation10 + $0x578] sm:$0xff] }
 0x4e5   :  { %8587 = vmatprep.subr.bf16.mxu1 %v11840_v61  ;;  %v5093_v61 = vld [vmem:[#allocation10 + $0x410] sm:$0xff] }
 0x4e6   :  { %v11893_v19 = vcombine.low %v5093_v61, %v5097_v8 }
 0x4e7   :  { %8424 = vmatpush1.bf16.msra.mxu0 %v11837_v42  ;;  %v11887_v42 = vcombine.low %v5086_v13, %v5090_v0  ;;  %v11927_v13 = vcombine.low %v5126_v52, %v5130_v53 }
 0x4e8   :  { %8588 = vmatpush1.bf16.msra.mxu1 %v11839_v17  ;;  %8425 = vmatprep.subr.bf16.mxu0 %v11846_v22  ;;  %v11894_v17 = vcombine.high %v5093_v61, %v5097_v8  ;;  %v11896_v22 = vcombine.high %v5094_v12, %v5098_v14  ;;  %v5146_v61 = vld [vmem:[#allocation10 + $0x5b8] sm:$0xff] }
 0x4e9   :  { %8589 = vmatprep.subr.bf16.mxu1 %v11848_v18  ;;  %v5101_v18 = vld [vmem:[#allocation10 + $0x450] sm:$0xff] }
 0x4ea   :  { %v11901_v36 = vcombine.low %v5101_v18, %v5105_v23 }
 0x4eb   :  { %8426 = vmatpush1.bf16.msra.mxu0 %v11845_v21  ;;  %v11895_v21 = vcombine.low %v5094_v12, %v5098_v14 }
 0x4ec   :  { %8590 = vmatpush1.bf16.msra.mxu1 %v11847_v27  ;;  %8427 = vmatprep.subr.bf16.mxu0 %v11854_v29  ;;  %v11902_v27 = vcombine.high %v5101_v18, %v5105_v23  ;;  %v5109_v29 = vld [vmem:[#allocation10 + $0x490] sm:$0xff]  ;;  %v5154_v18 = vld [vmem:[#allocation10 + $0x5f8] sm:$0xff] }
 0x4ed   :  { %8591 = vmatprep.subr.bf16.mxu1 %v11856_v33  ;;  %v5113_v33 = vld [vmem:[#allocation10 + $0x4b0] sm:$0xff] }
 0x4ee   :  { %v11909_v2 = vcombine.low %v5109_v29, %v5113_v33 }
 0x4ef   :  { %8428 = vmatpush1.bf16.msra.mxu0 %v11853_v37  ;;  %v11903_v37 = vcombine.low %v5102_v20, %v5106_v28 }
 0x4f0   :  { %8592 = vmatpush1.bf16.msra.mxu1 %v11855_v40  ;;  %8429 = vmatprep.subr.bf16.mxu0 %v11862_v44  ;;  %v11910_v40 = vcombine.high %v5109_v29, %v5113_v33  ;;  %v11912_v44 = vcombine.high %v5110_v3, %v5114_v38  ;;  %v5158_v29 = vld [vmem:[#allocation10 + $0x618] sm:$0xff] }
 0x4f1   :  { %8593 = vmatprep.subr.bf16.mxu1 %v11864_v45  ;;  %v5117_v45 = vld [vmem:[#allocation10 + $0x4d0] sm:$0xff]  ;;  %v5162_v33 = vld [vmem:[#allocation10 + $0x638] sm:$0xff] }
 0x4f3   :  { %8430 = vmatpush1.bf16.msra.mxu0 %v11861_v10  ;;  %v11918_v10 = vcombine.high %v5117_v45, %v5121_v16 }
 0x4f4   :  { %8594 = vmatpush1.bf16.msra.mxu1 %v11863_v50  ;;  %8431 = vmatprep.subr.bf16.mxu0 %v11870_v51  ;;  %v11920_v50 = vcombine.high %v5118_v48, %v5122_v49  ;;  %v5125_v51 = vld [vmem:[#allocation10 + $0x510] sm:$0xff]  ;;  %v11959_v48 = vcombine.low %v5158_v29, %v5162_v33 }
 0x4f5   :  { %8595 = vmatprep.subr.bf16.mxu1 %v11872_v11  ;;  %v5129_v11 = vld [vmem:[#allocation10 + $0x530] sm:$0xff] }
 0x4f6   :  { %v11926_v56 = vcombine.high %v5125_v51, %v5129_v11  ;;  %v11925_v59 = vcombine.low %v5125_v51, %v5129_v11  ;;  %v5178_v51 = vld [vmem:[#allocation10 + $0x6b8] sm:$0xff] }
 0x4f7   :  { %8432 = vmatpush1.bf16.msra.mxu0 %v11869_v57  ;;  %v11928_v57 = vcombine.high %v5126_v52, %v5130_v53 }
 0x4f8   :  { %8596 = vmatpush1.bf16.msra.mxu1 %v11871_v32  ;;  %8433 = vmatprep.subr.bf16.mxu0 %v11878_v25  ;;  %v5133_v32 = vld [vmem:[#allocation10 + $0x550] sm:$0xff] }
 0x4f9   :  { %8597 = vmatprep.subr.bf16.mxu1 %v11880_v5  ;;  %v5137_v25 = vld [vmem:[#allocation10 + $0x570] sm:$0xff]  ;;  %v5134_v5 = vld [vmem:[#allocation10 + $0x558] sm:$0xff] }
 0x4fa   :  { %v11934_v0 = vcombine.high %v5133_v32, %v5137_v25  ;;  %v11933_v8 = vcombine.low %v5133_v32, %v5137_v25  ;;  %v11935_v12 = vcombine.low %v5134_v5, %v5138_v58  ;;  %v5186_v32 = vld [vmem:[#allocation10 + $0x6f8] sm:$0xff] }
 0x4fb   :  { %8434 = vmatpush1.bf16.msra.mxu0 %v11877_v7  ;;  %v11936_v7 = vcombine.high %v5134_v5, %v5138_v58 }
 0x4fc   :  { %8598 = vmatpush1.bf16.msra.mxu1 %v11879_v4  ;;  %8435 = vmatprep.subr.bf16.mxu0 %v11886_v54  ;;  %v5141_v4 = vld [vmem:[#allocation10 + $0x590] sm:$0xff] }
 0x4fd   :  { %8599 = vmatprep.subr.bf16.mxu1 %v11888_v39  ;;  %v5145_v54 = vld [vmem:[#allocation10 + $0x5b0] sm:$0xff]  ;;  %v5142_v39 = vld [vmem:[#allocation10 + $0x598] sm:$0xff] }
 0x4fe   :  { %v11942_v14 = vcombine.high %v5141_v4, %v5145_v54  ;;  %v11941_v23 = vcombine.low %v5141_v4, %v5145_v54  ;;  %v5194_v4 = vld [vmem:[#allocation10 + $0x738] sm:$0xff] }
 0x4ff   :  { %8436 = vmatpush1.bf16.msra.mxu0 %v11885_v9  ;;  %v11944_v9 = vcombine.high %v5142_v39, %v5146_v61 }
 0x500   :  { %8600 = vmatpush1.bf16.msra.mxu1 %v11887_v42  ;;  %8446 = vmatprep.subr.bf16.mxu0 %v11894_v17  ;;  %v5149_v42 = vld [vmem:[#allocation10 + $0x5d0] sm:$0xff] }
 0x501   :  { %8610 = vmatprep.subr.bf16.mxu1 %v11896_v22  ;;  %v5153_v17 = vld [vmem:[#allocation10 + $0x5f0] sm:$0xff]  ;;  %v5150_v22 = vld [vmem:[#allocation10 + $0x5d8] sm:$0xff] }
 0x502   :  { %8438 = vmatmul.mubr.bf16.vlgmr.msra.gmra.mrb[20].mxu0 %v13920_v47  ;;  %v11950_v20 = vcombine.high %v5149_v42, %v5153_v17  ;;  %v11952_v28 = vcombine.high %v5150_v22, %v5154_v18 }
 0x503   :  { %8602 = vmatmul.mubr.bf16.vlgmr.msra.gmra.mrb[20].mxu1 %v13920_v47  ;;  %8447 = vmatpush1.bf16.msra.mxu0 %v11893_v19  ;;  %v11911_v47 = vcombine.low %v5110_v3, %v5114_v38  ;;  %v11943_v19 = vcombine.low %v5142_v39, %v5146_v61  ;;  %v11951_v3 = vcombine.low %v5150_v22, %v5154_v18 }
 0x504   :  { %8478 = vmatprep.mubr.bf16.mxu0 %v13922_v35  ;;  %8611 = vmatpush1.bf16.msra.mxu1 %v11895_v21  ;;  %v5157_v21 = vld [vmem:[#allocation10 + $0x610] sm:$0xff] }
 0x505   :  { %8642 = vmatprep.mubr.bf16.mxu1 %v13922_v35  ;;  %8448 = vmatprep.subr.bf16.mxu0 %v11902_v27  ;;  %v11917_v35 = vcombine.low %v5117_v45, %v5121_v16  ;;  %v5161_v27 = vld [vmem:[#allocation10 + $0x630] sm:$0xff]  ;;  %v5170_v45 = vld [vmem:[#allocation10 + $0x678] sm:$0xff] }
 0x506   :  { %8612 = vmatprep.subr.bf16.mxu1 %v11904_v34  ;;  %v11949_v34 = vcombine.low %v5149_v42, %v5153_v17  ;;  %v11958_v38 = vcombine.high %v5157_v21, %v5161_v27  ;;  %v11957_v16 = vcombine.low %v5157_v21, %v5161_v27  ;;  %v5202_v42 = vld [vmem:[#allocation10 + $0x778] sm:$0xff] }
 0x507   :  { %8449 = vmatpush1.bf16.msra.mxu0 %v11901_v36  ;;  %v11960_v36 = vcombine.high %v5158_v29, %v5162_v33  ;;  %v5210_v21 = vld [vmem:[#allocation10 + $0x7b8] sm:$0xff] }
 0x508   :  { %8613 = vmatpush1.bf16.msra.mxu1 %v11903_v37  ;;  %8450 = vmatprep.subr.bf16.mxu0 %v11910_v40  ;;  %v5165_v37 = vld [vmem:[#allocation10 + $0x650] sm:$0xff] }
 0x509   :  { %8614 = vmatprep.subr.bf16.mxu1 %v11912_v44  ;;  %v5169_v40 = vld [vmem:[#allocation10 + $0x670] sm:$0xff]  ;;  %v5166_v44 = vld [vmem:[#allocation10 + $0x658] sm:$0xff] }
 0x50a   :  { %v11966_v49 = vcombine.high %v5165_v37, %v5169_v40  ;;  %v11965_v11 = vcombine.low %v5165_v37, %v5169_v40  ;;  %v11967_v52 = vcombine.low %v5166_v44, %v5170_v45  ;;  %v5218_v37 = vld [vmem:[#allocation10 + $0x7f8] sm:$0xff] }
 0x50b   :  { %8451 = vmatpush1.bf16.msra.mxu0 %v11909_v2  ;;  %v11968_v2 = vcombine.high %v5166_v44, %v5170_v45 }
 0x50c   :  { %8615 = vmatpush1.bf16.msra.mxu1 %v11911_v47  ;;  %8452 = vmatprep.subr.bf16.mxu0 %v11918_v10  ;;  %v5173_v47 = vld [vmem:[#allocation10 + $0x690] sm:$0xff] }
 0x50d   :  { %8616 = vmatprep.subr.bf16.mxu1 %v11920_v50  ;;  %v5177_v10 = vld [vmem:[#allocation10 + $0x6b0] sm:$0xff]  ;;  %v5174_v50 = vld [vmem:[#allocation10 + $0x698] sm:$0xff] }
 0x50e   :  { %v11974_v53 = vcombine.high %v5173_v47, %v5177_v10  ;;  %v11973_v25 = vcombine.low %v5173_v47, %v5177_v10  ;;  %v11975_v5 = vcombine.low %v5174_v50, %v5178_v51  ;;  %v5226_v47 = vld [vmem:[#allocation10 + $0x838] sm:$0xff] }
 0x50f   :  { %8453 = vmatpush1.bf16.msra.mxu0 %v11917_v35  ;;  %v11976_v35 = vcombine.high %v5174_v50, %v5178_v51 }
 0x510   :  { %8617 = vmatpush1.bf16.msra.mxu1 %v11919_v55  ;;  %8454 = vmatprep.subr.bf16.mxu0 %v11926_v56  ;;  %v5181_v55 = vld [vmem:[#allocation10 + $0x6d0] sm:$0xff] }
 0x511   :  { %8618 = vmatprep.subr.bf16.mxu1 %v11928_v57  ;;  %v5185_v56 = vld [vmem:[#allocation10 + $0x6f0] sm:$0xff]  ;;  %v5182_v57 = vld [vmem:[#allocation10 + $0x6d8] sm:$0xff] }
 0x512   :  { %v11982_v58 = vcombine.high %v5181_v55, %v5185_v56  ;;  %v11981_v54 = vcombine.low %v5181_v55, %v5185_v56  ;;  %v11983_v39 = vcombine.low %v5182_v57, %v5186_v32  ;;  %v5230_v55 = vld [vmem:[#allocation10 + $0x858] sm:$0xff] }
 0x513   :  { %8455 = vmatpush1.bf16.msra.mxu0 %v11925_v59  ;;  %v11984_v59 = vcombine.high %v5182_v57, %v5186_v32  ;;  %v5234_v56 = vld [vmem:[#allocation10 + $0x878] sm:$0xff] }
 0x514   :  { %8619 = vmatpush1.bf16.msra.mxu1 %v11927_v13  ;;  %8456 = vmatprep.subr.bf16.mxu0 %v11934_v0  ;;  %v5189_v13 = vld [vmem:[#allocation10 + $0x710] sm:$0xff] }
 0x515   :  { %8620 = vmatprep.subr.bf16.mxu1 %v11936_v7  ;;  %v5193_v0 = vld [vmem:[#allocation10 + $0x730] sm:$0xff]  ;;  %v5190_v7 = vld [vmem:[#allocation10 + $0x718] sm:$0xff] }
 0x516   :  { %v11990_v61 = vcombine.high %v5189_v13, %v5193_v0  ;;  %v11989_v17 = vcombine.low %v5189_v13, %v5193_v0  ;;  %v11991_v22 = vcombine.low %v5190_v7, %v5194_v4  ;;  %v5242_v13 = vld [vmem:[#allocation10 + $0x8b8] sm:$0xff] }
 0x517   :  { %8457 = vmatpush1.bf16.msra.mxu0 %v11933_v8  ;;  %v11992_v8 = vcombine.high %v5190_v7, %v5194_v4  ;;  %v12031_v7 = vcombine.low %v5230_v55, %v5234_v56 }
 0x518   :  { %8621 = vmatpush1.bf16.msra.mxu1 %v11935_v12  ;;  %8458 = vmatprep.subr.bf16.mxu0 %v11942_v14  ;;  %v5197_v12 = vld [vmem:[#allocation10 + $0x750] sm:$0xff] }
 0x519   :  { %8622 = vmatprep.subr.bf16.mxu1 %v11944_v9  ;;  %v5201_v14 = vld [vmem:[#allocation10 + $0x770] sm:$0xff]  ;;  %v5198_v9 = vld [vmem:[#allocation10 + $0x758] sm:$0xff] }
 0x51a   :  { %v11998_v18 = vcombine.high %v5197_v12, %v5201_v14  ;;  %v11997_v27 = vcombine.low %v5197_v12, %v5201_v14  ;;  %v11999_v29 = vcombine.low %v5198_v9, %v5202_v42  ;;  %v5250_v12 = vld [vmem:[#allocation10 + $0x8f8] sm:$0xff] }
 0x51b   :  { %8459 = vmatpush1.bf16.msra.mxu0 %v11941_v23  ;;  %v12000_v23 = vcombine.high %v5198_v9, %v5202_v42 }
 0x51c   :  { %8623 = vmatpush1.bf16.msra.mxu1 %v11943_v19  ;;  %8460 = vmatprep.subr.bf16.mxu0 %v11950_v20  ;;  %v5205_v19 = vld [vmem:[#allocation10 + $0x790] sm:$0xff] }
 0x51d   :  { %8624 = vmatprep.subr.bf16.mxu1 %v11952_v28  ;;  %v5209_v20 = vld [vmem:[#allocation10 + $0x7b0] sm:$0xff]  ;;  %v5206_v28 = vld [vmem:[#allocation10 + $0x798] sm:$0xff] }
 0x51e   :  { %v12006_v33 = vcombine.high %v5205_v19, %v5209_v20  ;;  %v12005_v40 = vcombine.low %v5205_v19, %v5209_v20  ;;  %v12007_v44 = vcombine.low %v5206_v28, %v5210_v21 }
 0x51f   :  { %8461 = vmatpush1.bf16.msra.mxu0 %v11949_v34  ;;  %v12008_v34 = vcombine.high %v5206_v28, %v5210_v21  ;;  %v5261_v21 = vld [vmem:[#allocation10 + $0x950] sm:$0xff] }
 0x520   :  { %8625 = vmatpush1.bf16.msra.mxu1 %v11951_v3  ;;  %8462 = vmatprep.subr.bf16.mxu0 %v11958_v38  ;;  %v5213_v3 = vld [vmem:[#allocation10 + $0x7d0] sm:$0xff] }
 0x521   :  { %8626 = vmatprep.subr.bf16.mxu1 %v11960_v36  ;;  %v5217_v38 = vld [vmem:[#allocation10 + $0x7f0] sm:$0xff]  ;;  %v5214_v36 = vld [vmem:[#allocation10 + $0x7d8] sm:$0xff] }
 0x522   :  { %v12014_v45 = vcombine.high %v5213_v3, %v5217_v38  ;;  %v12013_v10 = vcombine.low %v5213_v3, %v5217_v38  ;;  %v12015_v50 = vcombine.low %v5214_v36, %v5218_v37 }
 0x523   :  { %8463 = vmatpush1.bf16.msra.mxu0 %v11957_v16  ;;  %v12016_v16 = vcombine.high %v5214_v36, %v5218_v37  ;;  %v5269_v37 = vld [vmem:[#allocation10 + $0x990] sm:$0xff] }
 0x524   :  { %8627 = vmatpush1.bf16.msra.mxu1 %v11959_v48  ;;  %8464 = vmatprep.subr.bf16.mxu0 %v11966_v49  ;;  %v5221_v48 = vld [vmem:[#allocation10 + $0x810] sm:$0xff] }
 0x525   :  { %8628 = vmatprep.subr.bf16.mxu1 %v11968_v2  ;;  %v5225_v49 = vld [vmem:[#allocation10 + $0x830] sm:$0xff]  ;;  %v5222_v2 = vld [vmem:[#allocation10 + $0x818] sm:$0xff] }
 0x526   :  { %v12022_v51 = vcombine.high %v5221_v48, %v5225_v49  ;;  %v12023_v57 = vcombine.low %v5222_v2, %v5226_v47 }
 0x527   :  { %8465 = vmatpush1.bf16.msra.mxu0 %v11965_v11  ;;  %v12024_v11 = vcombine.high %v5222_v2, %v5226_v47  ;;  %v5277_v47 = vld [vmem:[#allocation10 + $0x9d0] sm:$0xff] }
 0x528   :  { %8629 = vmatpush1.bf16.msra.mxu1 %v11967_v52  ;;  %8466 = vmatprep.subr.bf16.mxu0 %v11974_v53  ;;  %v5229_v52 = vld [vmem:[#allocation10 + $0x850] sm:$0xff] }
 0x529   :  { %8630 = vmatprep.subr.bf16.mxu1 %v11976_v35  ;;  %v5233_v53 = vld [vmem:[#allocation10 + $0x870] sm:$0xff]  ;;  %v12021_v35 = vcombine.low %v5221_v48, %v5225_v49 }
 0x52a   :  { %v12030_v32 = vcombine.high %v5229_v52, %v5233_v53  ;;  %v12029_v0 = vcombine.low %v5229_v52, %v5233_v53 }
 0x52b   :  { %8467 = vmatpush1.bf16.msra.mxu0 %v11973_v25  ;;  %v5237_v25 = vld [vmem:[#allocation10 + $0x890] sm:$0xff] }
 0x52c   :  { %8631 = vmatpush1.bf16.msra.mxu1 %v11975_v5  ;;  %8468 = vmatprep.subr.bf16.mxu0 %v11982_v58  ;;  %v5241_v5 = vld [vmem:[#allocation10 + $0x8b0] sm:$0xff]  ;;  %v12032_v58 = vcombine.high %v5230_v55, %v5234_v56 }
 0x52d   :  { %8632 = vmatprep.subr.bf16.mxu1 %v11984_v59  ;;  %v5238_v59 = vld [vmem:[#allocation10 + $0x898] sm:$0xff]  ;;  %v12038_v4 = vcombine.high %v5237_v25, %v5241_v5  ;;  %v12037_v14 = vcombine.low %v5237_v25, %v5241_v5  ;;  %v5285_v55 = vld [vmem:[#allocation10 + $0xa10] sm:$0xff] }
 0x52e   :  { %v5289_v56 = vld [vmem:[#allocation10 + $0xa30] sm:$0xff] }
 0x52f   :  { %8469 = vmatpush1.bf16.msra.mxu0 %v11981_v54  ;;  %v12040_v54 = vcombine.high %v5238_v59, %v5242_v13 }
 0x530   :  { %8633 = vmatpush1.bf16.msra.mxu1 %v11983_v39  ;;  %8470 = vmatprep.subr.bf16.mxu0 %v11990_v61  ;;  %v5245_v39 = vld [vmem:[#allocation10 + $0x8d0] sm:$0xff] }
 0x531   :  { %8634 = vmatprep.subr.bf16.mxu1 %v11992_v8  ;;  %v5249_v61 = vld [vmem:[#allocation10 + $0x8f0] sm:$0xff]  ;;  %v5246_v8 = vld [vmem:[#allocation10 + $0x8d8] sm:$0xff] }
 0x532   :  { %v12046_v9 = vcombine.high %v5245_v39, %v5249_v61  ;;  %v12048_v42 = vcombine.high %v5246_v8, %v5250_v12  ;;  %v12047_v19 = vcombine.low %v5246_v8, %v5250_v12  ;;  %v5301_v12 = vld [vmem:[#allocation10 + $0xa90] sm:$0xff] }
 0x533   :  { %8471 = vmatpush1.bf16.msra.mxu0 %v11989_v17  ;;  %v5253_v17 = vld [vmem:[#allocation10 + $0x910] sm:$0xff] }
 0x534   :  { %8635 = vmatpush1.bf16.msra.mxu1 %v11991_v22  ;;  %8472 = vmatprep.subr.bf16.mxu0 %v11998_v18  ;;  %v5257_v22 = vld [vmem:[#allocation10 + $0x930] sm:$0xff]  ;;  %v5254_v18 = vld [vmem:[#allocation10 + $0x918] sm:$0xff] }
 0x535   :  { %8636 = vmatprep.subr.bf16.mxu1 %v12000_v23  ;;  %v5258_v23 = vld [vmem:[#allocation10 + $0x938] sm:$0xff]  ;;  %v12054_v20 = vcombine.high %v5253_v17, %v5257_v22 }
 0x536   :  { %v12056_v28 = vcombine.high %v5254_v18, %v5258_v23  ;;  %v12055_v3 = vcombine.low %v5254_v18, %v5258_v23  ;;  %v5309_v23 = vld [vmem:[#allocation10 + $0xad0] sm:$0xff] }
 0x537   :  { %8473 = vmatpush1.bf16.msra.mxu0 %v11997_v27  ;;  %v5265_v27 = vld [vmem:[#allocation10 + $0x970] sm:$0xff] }
 0x538   :  { %8637 = vmatpush1.bf16.msra.mxu1 %v11999_v29  ;;  %8474 = vmatprep.subr.bf16.mxu0 %v12006_v33  ;;  %v5262_v29 = vld [vmem:[#allocation10 + $0x958] sm:$0xff]  ;;  %v12062_v38 = vcombine.high %v5261_v21, %v5265_v27 }
 0x539   :  { %8638 = vmatprep.subr.bf16.mxu1 %v12008_v34  ;;  %v5266_v33 = vld [vmem:[#allocation10 + $0x978] sm:$0xff]  ;;  %v12053_v34 = vcombine.low %v5253_v17, %v5257_v22 }
 0x53a   :  { %v12064_v36 = vcombine.high %v5262_v29, %v5266_v33  ;;  %v12063_v48 = vcombine.low %v5262_v29, %v5266_v33  ;;  %v5317_v33 = vld [vmem:[#allocation10 + $0xb10] sm:$0xff] }
 0x53b   :  { %8475 = vmatpush1.bf16.msra.mxu0 %v12005_v40  ;;  %v5273_v40 = vld [vmem:[#allocation10 + $0x9b0] sm:$0xff] }
 0x53c   :  { %8639 = vmatpush1.bf16.msra.mxu1 %v12007_v44  ;;  %8476 = vmatprep.subr.bf16.mxu0 %v12014_v45  ;;  %v5270_v44 = vld [vmem:[#allocation10 + $0x998] sm:$0xff]  ;;  %v12070_v49 = vcombine.high %v5269_v37, %v5273_v40 }
 0x53d   :  { %8640 = vmatprep.subr.bf16.mxu1 %v12016_v16  ;;  %v5274_v45 = vld [vmem:[#allocation10 + $0x9b8] sm:$0xff]  ;;  %v12061_v16 = vcombine.low %v5261_v21, %v5265_v27 }
 0x53e   :  { %v12072_v2 = vcombine.high %v5270_v44, %v5274_v45  ;;  %v12071_v52 = vcombine.low %v5270_v44, %v5274_v45  ;;  %v5325_v45 = vld [vmem:[#allocation10 + $0xb50] sm:$0xff] }
 0x53f   :  { %8477 = vmatpush1.bf16.msra.mxu0 %v12013_v10  ;;  %v5281_v10 = vld [vmem:[#allocation10 + $0x9f0] sm:$0xff] }
 0x540   :  { %8641 = vmatpush1.bf16.msra.mxu1 %v12015_v50  ;;  %8487 = vmatprep.subr.bf16.mxu0 %v12022_v51  ;;  %v5278_v50 = vld [vmem:[#allocation10 + $0x9d8] sm:$0xff]  ;;  %v12078_v53 = vcombine.high %v5277_v47, %v5281_v10  ;;  %v12077_v25 = vcombine.low %v5277_v47, %v5281_v10 }
 0x541   :  { %8651 = vmatprep.subr.bf16.mxu1 %v12024_v11  ;;  %v5282_v51 = vld [vmem:[#allocation10 + $0x9f8] sm:$0xff]  ;;  %v12069_v11 = vcombine.low %v5269_v37, %v5273_v40 }
 0x542   :  { %8479 = vmatmul.mubr.bf16.vlgmr.msra.gmra.mrb[20].mxu0 %v13931_v6  ;;  %v12079_v5 = vcombine.low %v5278_v50, %v5282_v51 }
 0x543   :  { %8643 = vmatmul.mubr.bf16.vlgmr.msra.gmra.mrb[20].mxu1 %v13931_v6  ;;  %8488 = vmatpush1.bf16.msra.mxu0 %v12021_v35  ;;  %v12039_v6 = vcombine.low %v5238_v59, %v5242_v13  ;;  %v12080_v35 = vcombine.high %v5278_v50, %v5282_v51  ;;  %v5293_v13 = vld [vmem:[#allocation10 + $0xa50] sm:$0xff] }
 0x544   :  { %8519 = vmatprep.mubr.bf16.mxu0 %v13945_v1  ;;  %8652 = vmatpush1.bf16.msra.mxu1 %v12023_v57  ;;  %v5286_v57 = vld [vmem:[#allocation10 + $0xa18] sm:$0xff]  ;;  %v5333_v51 = vld [vmem:[#allocation10 + $0xb90] sm:$0xff] }
 0x545   :  { %8683 = vmatprep.mubr.bf16.mxu1 %v13945_v1  ;;  %8489 = vmatprep.subr.bf16.mxu0 %v12030_v32  ;;  %v12045_v1 = vcombine.low %v5245_v39, %v5249_v61  ;;  %v5290_v32 = vld [vmem:[#allocation10 + $0xa38] sm:$0xff] }
 0x546   :  { %8653 = vmatprep.subr.bf16.mxu1 %v12032_v58  ;;  %v12086_v58 = vcombine.high %v5285_v55, %v5289_v56  ;;  %v12088_v59 = vcombine.high %v5286_v57, %v5290_v32  ;;  %v12087_v39 = vcombine.low %v5286_v57, %v5290_v32  ;;  %v5341_v32 = vld [vmem:[#allocation10 + $0xbd0] sm:$0xff] }
 0x547   :  { %8490 = vmatpush1.bf16.msra.mxu0 %v12029_v0  ;;  %v5297_v0 = vld [vmem:[#allocation10 + $0xa70] sm:$0xff] }
 0x548   :  { %8654 = vmatpush1.bf16.msra.mxu1 %v12031_v7  ;;  %8491 = vmatprep.subr.bf16.mxu0 %v12038_v4  ;;  %v5294_v7 = vld [vmem:[#allocation10 + $0xa58] sm:$0xff]  ;;  %v12094_v61 = vcombine.high %v5293_v13, %v5297_v0 }
 0x549   :  { %8655 = vmatprep.subr.bf16.mxu1 %v12040_v54  ;;  %v5298_v4 = vld [vmem:[#allocation10 + $0xa78] sm:$0xff]  ;;  %v12085_v54 = vcombine.low %v5285_v55, %v5289_v56 }
 0x54a   :  { %v12096_v8 = vcombine.high %v5294_v7, %v5298_v4  ;;  %v12095_v17 = vcombine.low %v5294_v7, %v5298_v4  ;;  %v5349_v4 = vld [vmem:[#allocation10 + $0xc10] sm:$0xff] }
 0x54b   :  { %8492 = vmatpush1.bf16.msra.mxu0 %v12037_v14  ;;  %v5305_v14 = vld [vmem:[#allocation10 + $0xab0] sm:$0xff] }
 0x54c   :  { %8656 = vmatpush1.bf16.msra.mxu1 %v12039_v6  ;;  %8493 = vmatprep.subr.bf16.mxu0 %v12046_v9  ;;  %v5302_v6 = vld [vmem:[#allocation10 + $0xa98] sm:$0xff]  ;;  %v12102_v22 = vcombine.high %v5301_v12, %v5305_v14 }
 0x54d   :  { %8657 = vmatprep.subr.bf16.mxu1 %v12048_v42  ;;  %v5306_v9 = vld [vmem:[#allocation10 + $0xab8] sm:$0xff]  ;;  %v12093_v42 = vcombine.low %v5293_v13, %v5297_v0 }
 0x54e   :  { %v12104_v18 = vcombine.high %v5302_v6, %v5306_v9  ;;  %v12103_v21 = vcombine.low %v5302_v6, %v5306_v9  ;;  %v5357_v9 = vld [vmem:[#allocation10 + $0xc50] sm:$0xff] }
 0x54f   :  { %8494 = vmatpush1.bf16.msra.mxu0 %v12045_v1  ;;  %v5313_v1 = vld [vmem:[#allocation10 + $0xaf0] sm:$0xff] }
 0x550   :  { %8658 = vmatpush1.bf16.msra.mxu1 %v12047_v19  ;;  %8495 = vmatprep.subr.bf16.mxu0 %v12054_v20  ;;  %v5310_v19 = vld [vmem:[#allocation10 + $0xad8] sm:$0xff]  ;;  %v12110_v27 = vcombine.high %v5309_v23, %v5313_v1 }
 0x551   :  { %8659 = vmatprep.subr.bf16.mxu1 %v12056_v28  ;;  %v5314_v20 = vld [vmem:[#allocation10 + $0xaf8] sm:$0xff]  ;;  %v12101_v28 = vcombine.low %v5301_v12, %v5305_v14 }
 0x552   :  { %v12112_v29 = vcombine.high %v5310_v19, %v5314_v20  ;;  %v12111_v37 = vcombine.low %v5310_v19, %v5314_v20  ;;  %v5365_v19 = vld [vmem:[#allocation10 + $0xc90] sm:$0xff] }
 0x553   :  { %8496 = vmatpush1.bf16.msra.mxu0 %v12053_v34  ;;  %v5321_v34 = vld [vmem:[#allocation10 + $0xb30] sm:$0xff] }
 0x554   :  { %8660 = vmatpush1.bf16.msra.mxu1 %v12055_v3  ;;  %8497 = vmatprep.subr.bf16.mxu0 %v12062_v38  ;;  %v5318_v3 = vld [vmem:[#allocation10 + $0xb18] sm:$0xff]  ;;  %v12118_v40 = vcombine.high %v5317_v33, %v5321_v34  ;;  %v5369_v20 = vld [vmem:[#allocation10 + $0xcb0] sm:$0xff] }
 0x555   :  { %8661 = vmatprep.subr.bf16.mxu1 %v12064_v36  ;;  %v5322_v38 = vld [vmem:[#allocation10 + $0xb38] sm:$0xff]  ;;  %v12109_v36 = vcombine.low %v5309_v23, %v5313_v1 }
 0x556   :  { %v12120_v44 = vcombine.high %v5318_v3, %v5322_v38  ;;  %v12119_v47 = vcombine.low %v5318_v3, %v5322_v38  ;;  %v5373_v38 = vld [vmem:[#allocation10 + $0xcd0] sm:$0xff] }
 0x557   :  { %8498 = vmatpush1.bf16.msra.mxu0 %v12061_v16  ;;  %v5329_v16 = vld [vmem:[#allocation10 + $0xb70] sm:$0xff] }
 0x558   :  { %8662 = vmatpush1.bf16.msra.mxu1 %v12063_v48  ;;  %8499 = vmatprep.subr.bf16.mxu0 %v12070_v49  ;;  %v5326_v48 = vld [vmem:[#allocation10 + $0xb58] sm:$0xff]  ;;  %v12126_v10 = vcombine.high %v5325_v45, %v5329_v16 }
 0x559   :  { %8663 = vmatprep.subr.bf16.mxu1 %v12072_v2  ;;  %v5330_v49 = vld [vmem:[#allocation10 + $0xb78] sm:$0xff]  ;;  %v12117_v2 = vcombine.low %v5317_v33, %v5321_v34  ;;  %v12166_v34 = vcombine.high %v5365_v19, %v5369_v20 }
 0x55a   :  { %v12128_v50 = vcombine.high %v5326_v48, %v5330_v49  ;;  %v12127_v55 = vcombine.low %v5326_v48, %v5330_v49  ;;  %v5381_v48 = vld [vmem:[#allocation10 + $0xd10] sm:$0xff] }
 0x55b   :  { %8500 = vmatpush1.bf16.msra.mxu0 %v12069_v11  ;;  %v5337_v11 = vld [vmem:[#allocation10 + $0xbb0] sm:$0xff] }
 0x55c   :  { %8664 = vmatpush1.bf16.msra.mxu1 %v12071_v52  ;;  %8501 = vmatprep.subr.bf16.mxu0 %v12078_v53  ;;  %v5334_v52 = vld [vmem:[#allocation10 + $0xb98] sm:$0xff]  ;;  %v12134_v56 = vcombine.high %v5333_v51, %v5337_v11  ;;  %v5385_v49 = vld [vmem:[#allocation10 + $0xd30] sm:$0xff] }
 0x55d   :  { %8665 = vmatprep.subr.bf16.mxu1 %v12080_v35  ;;  %v5338_v53 = vld [vmem:[#allocation10 + $0xbb8] sm:$0xff]  ;;  %v12125_v35 = vcombine.low %v5325_v45, %v5329_v16 }
 0x55e   :  { %v12136_v57 = vcombine.high %v5334_v52, %v5338_v53  ;;  %v12135_v13 = vcombine.low %v5334_v52, %v5338_v53  ;;  %v5393_v52 = vld [vmem:[#allocation10 + $0xd70] sm:$0xff]  ;;  %v5390_v53 = vld [vmem:[#allocation10 + $0xd58] sm:$0xff] }
 0x55f   :  { %8502 = vmatpush1.bf16.msra.mxu0 %v12077_v25  ;;  %v5345_v25 = vld [vmem:[#allocation10 + $0xbf0] sm:$0xff] }
 0x560   :  { %8666 = vmatpush1.bf16.msra.mxu1 %v12079_v5  ;;  %8503 = vmatprep.subr.bf16.mxu0 %v12086_v58  ;;  %v5342_v5 = vld [vmem:[#allocation10 + $0xbd8] sm:$0xff]  ;;  %v12142_v0 = vcombine.high %v5341_v32, %v5345_v25 }
 0x561   :  { %8667 = vmatprep.subr.bf16.mxu1 %v12088_v59  ;;  %v5346_v58 = vld [vmem:[#allocation10 + $0xbf8] sm:$0xff]  ;;  %v12133_v59 = vcombine.low %v5333_v51, %v5337_v11  ;;  %v5389_v11 = vld [vmem:[#allocation10 + $0xd50] sm:$0xff] }
 0x562   :  { %v12144_v7 = vcombine.high %v5342_v5, %v5346_v58  ;;  %v12143_v12 = vcombine.low %v5342_v5, %v5346_v58  ;;  %v5401_v5 = vld [vmem:[#allocation10 + $0xdb0] sm:$0xff]  ;;  %v5398_v58 = vld [vmem:[#allocation10 + $0xd98] sm:$0xff] }
 0x563   :  { %8504 = vmatpush1.bf16.msra.mxu0 %v12085_v54  ;;  %v5353_v54 = vld [vmem:[#allocation10 + $0xc30] sm:$0xff] }
 0x564   :  { %8668 = vmatpush1.bf16.msra.mxu1 %v12087_v39  ;;  %8505 = vmatprep.subr.bf16.mxu0 %v12094_v61  ;;  %v5350_v39 = vld [vmem:[#allocation10 + $0xc18] sm:$0xff]  ;;  %v12150_v14 = vcombine.high %v5349_v4, %v5353_v54 }
 0x565   :  { %8669 = vmatprep.subr.bf16.mxu1 %v12096_v8  ;;  %v5354_v61 = vld [vmem:[#allocation10 + $0xc38] sm:$0xff]  ;;  %v12141_v8 = vcombine.low %v5341_v32, %v5345_v25  ;;  %v5397_v25 = vld [vmem:[#allocation10 + $0xd90] sm:$0xff] }
 0x566   :  { %v12152_v6 = vcombine.high %v5350_v39, %v5354_v61  ;;  %v12151_v23 = vcombine.low %v5350_v39, %v5354_v61  ;;  %v5405_v61 = vld [vmem:[#allocation10 + $0xdd0] sm:$0xff] }
 0x567   :  { %8506 = vmatpush1.bf16.msra.mxu0 %v12093_v42  ;;  %v5361_v42 = vld [vmem:[#allocation10 + $0xc70] sm:$0xff] }
 0x568   :  { %8670 = vmatpush1.bf16.msra.mxu1 %v12095_v17  ;;  %8507 = vmatprep.subr.bf16.mxu0 %v12102_v22  ;;  %v12149_v17 = vcombine.low %v5349_v4, %v5353_v54  ;;  %v5358_v22 = vld [vmem:[#allocation10 + $0xc58] sm:$0xff]  ;;  %v12158_v1 = vcombine.high %v5357_v9, %v5361_v42 }
 0x569   :  { %8671 = vmatprep.subr.bf16.mxu1 %v12104_v18  ;;  %v5362_v18 = vld [vmem:[#allocation10 + $0xc78] sm:$0xff] }
 0x56a   :  { %v12159_v33 = vcombine.low %v5358_v22, %v5362_v18 }
 0x56b   :  { %8508 = vmatpush1.bf16.msra.mxu0 %v12101_v28  ;;  %v12160_v28 = vcombine.high %v5358_v22, %v5362_v18  ;;  %v12197_v22 = vcombine.low %v5397_v25, %v5401_v5 }
 0x56c   :  { %8672 = vmatpush1.bf16.msra.mxu1 %v12103_v21  ;;  %8509 = vmatprep.subr.bf16.mxu0 %v12110_v27  ;;  %v5366_v21 = vld [vmem:[#allocation10 + $0xc98] sm:$0xff] }
 0x56d   :  { %8673 = vmatprep.subr.bf16.mxu1 %v12112_v29  ;;  %v5370_v27 = vld [vmem:[#allocation10 + $0xcb8] sm:$0xff]  ;;  %v12157_v29 = vcombine.low %v5357_v9, %v5361_v42 }
 0x56e   :  { %v12168_v3 = vcombine.high %v5366_v21, %v5370_v27  ;;  %v5410_v9 = vld [vmem:[#allocation10 + $0xdf8] sm:$0xff] }
 0x56f   :  { %8510 = vmatpush1.bf16.msra.mxu0 %v12109_v36  ;;  %v5377_v36 = vld [vmem:[#allocation10 + $0xcf0] sm:$0xff] }
 0x570   :  { %8674 = vmatpush1.bf16.msra.mxu1 %v12111_v37  ;;  %8511 = vmatprep.subr.bf16.mxu0 %v12118_v40  ;;  %v5374_v37 = vld [vmem:[#allocation10 + $0xcd8] sm:$0xff]  ;;  %v12174_v45 = vcombine.high %v5373_v38, %v5377_v36 }
 0x571   :  { %8675 = vmatprep.subr.bf16.mxu1 %v12120_v44  ;;  %v5378_v40 = vld [vmem:[#allocation10 + $0xcf8] sm:$0xff]  ;;  %v12165_v44 = vcombine.low %v5365_v19, %v5369_v20 }
 0x572   :  { %v12176_v16 = vcombine.high %v5374_v37, %v5378_v40 }
 0x573   :  { %8512 = vmatpush1.bf16.msra.mxu0 %v12117_v2  ;;  %v5382_v2 = vld [vmem:[#allocation10 + $0xd18] sm:$0xff] }
 0x574   :  { %8676 = vmatpush1.bf16.msra.mxu1 %v12119_v47  ;;  %8513 = vmatprep.subr.bf16.mxu0 %v12126_v10  ;;  %v5386_v47 = vld [vmem:[#allocation10 + $0xd38] sm:$0xff]  ;;  %v12175_v10 = vcombine.low %v5374_v37, %v5378_v40  ;;  %v5425_v37 = vld [vmem:[#allocation10 + $0xe70] sm:$0xff] }
 0x575   :  { %8677 = vmatprep.subr.bf16.mxu1 %v12128_v50  ;;  %v12182_v50 = vcombine.high %v5381_v48, %v5385_v49  ;;  %v12184_v51 = vcombine.high %v5382_v2, %v5386_v47  ;;  %v5422_v40 = vld [vmem:[#allocation10 + $0xe58] sm:$0xff] }
 0x577   :  { %8514 = vmatpush1.bf16.msra.mxu0 %v12125_v35  ;;  %v5394_v35 = vld [vmem:[#allocation10 + $0xd78] sm:$0xff] }
 0x578   :  { %8678 = vmatpush1.bf16.msra.mxu1 %v12127_v55  ;;  %8515 = vmatprep.subr.bf16.mxu0 %v12134_v56  ;;  %v12181_v55 = vcombine.low %v5381_v48, %v5385_v49  ;;  %v12183_v56 = vcombine.low %v5382_v2, %v5386_v47  ;;  %v12192_v32 = vcombine.high %v5390_v53, %v5394_v35  ;;  %v5429_v49 = vld [vmem:[#allocation10 + $0xe90] sm:$0xff]  ;;  %v5430_v47 = vld [vmem:[#allocation10 + $0xe98] sm:$0xff] }
 0x579   :  { %8679 = vmatprep.subr.bf16.mxu1 %v12136_v57  ;;  %v12190_v57 = vcombine.high %v5389_v11, %v5393_v52  ;;  %v5433_v2 = vld [vmem:[#allocation10 + $0xeb0] sm:$0xff] }
 0x57b   :  { %8516 = vmatpush1.bf16.msra.mxu0 %v12133_v59  ;;  %v5402_v59 = vld [vmem:[#allocation10 + $0xdb8] sm:$0xff] }
 0x57c   :  { %8680 = vmatpush1.bf16.msra.mxu1 %v12135_v13  ;;  %8517 = vmatprep.subr.bf16.mxu0 %v12142_v0  ;;  %v12189_v13 = vcombine.low %v5389_v11, %v5393_v52  ;;  %v12191_v0 = vcombine.low %v5390_v53, %v5394_v35  ;;  %v12200_v39 = vcombine.high %v5398_v58, %v5402_v59  ;;  %v5437_v52 = vld [vmem:[#allocation10 + $0xed0] sm:$0xff]  ;;  %v5438_v35 = vld [vmem:[#allocation10 + $0xed8] sm:$0xff] }
 0x57d   :  { %8681 = vmatprep.subr.bf16.mxu1 %v12144_v7  ;;  %v12198_v7 = vcombine.high %v5397_v25, %v5401_v5  ;;  %v5441_v53 = vld [vmem:[#allocation10 + $0xef0] sm:$0xff] }
 0x57e   :  { %v5445_v5 = vld [vmem:[#allocation10 + $0xf10] sm:$0xff] }
 0x57f   :  { %8518 = vmatpush1.bf16.msra.mxu0 %v12141_v8  ;;  %v5409_v8 = vld [vmem:[#allocation10 + $0xdf0] sm:$0xff] }
 0x580   :  { %8682 = vmatpush1.bf16.msra.mxu1 %v12143_v12  ;;  %8528 = vmatprep.subr.bf16.mxu0 %v12150_v14  ;;  %v12206_v19 = vcombine.high %v5405_v61, %v5409_v8 }
 0x581   :  { %8692 = vmatprep.subr.bf16.mxu1 %v12152_v6  ;;  %v5406_v6 = vld [vmem:[#allocation10 + $0xdd8] sm:$0xff] }
 0x582   :  { %8520 = vmatmul.mubr.bf16.vlgmr.msra.gmra.mrb[20].mxu0 %v13947_v63  ;;  %v12208_v20 = vcombine.high %v5406_v6, %v5410_v9 }
 0x583   :  { %8684 = vmatmul.mubr.bf16.vlgmr.msra.gmra.mrb[20].mxu1 %v13947_v63  ;;  %8529 = vmatpush1.bf16.msra.mxu0 %v12149_v17  ;;  %v12167_v63 = vcombine.low %v5366_v21, %v5370_v27  ;;  %v5417_v21 = vld [vmem:[#allocation10 + $0xe30] sm:$0xff]  ;;  %v5414_v27 = vld [vmem:[#allocation10 + $0xe18] sm:$0xff] }
 0x584   :  { %8560 = vmatprep.mubr.bf16.mxu0 %v13951_v62  ;;  %8693 = vmatpush1.bf16.msra.mxu1 %v12151_v23 }
 0x585   :  { %8724 = vmatprep.mubr.bf16.mxu1 %v13951_v62  ;;  %8530 = vmatprep.subr.bf16.mxu0 %v12158_v1  ;;  %v12173_v62 = vcombine.low %v5373_v38, %v5377_v36  ;;  %v12199_v1 = vcombine.low %v5398_v58, %v5402_v59  ;;  %v5421_v36 = vld [vmem:[#allocation10 + $0xe50] sm:$0xff]  ;;  %v5446_v59 = vld [vmem:[#allocation10 + $0xf18] sm:$0xff] }
 0x586   :  { %8694 = vmatprep.subr.bf16.mxu1 %v12160_v28  ;;  %v5413_v28 = vld [vmem:[#allocation10 + $0xe10] sm:$0xff] }
 0x587   :  { %8531 = vmatpush1.bf16.msra.mxu0 %v12157_v29  ;;  %v5418_v29 = vld [vmem:[#allocation10 + $0xe38] sm:$0xff]  ;;  %v5449_v58 = vld [vmem:[#allocation10 + $0xf30] sm:$0xff] }
 0x588   :  { %8695 = vmatpush1.bf16.msra.mxu1 %v12159_v33  ;;  %8532 = vmatprep.subr.bf16.mxu0 %v12166_v34  ;;  %v12205_v33 = vcombine.low %v5405_v61, %v5409_v8  ;;  %v12207_v34 = vcombine.low %v5406_v6, %v5410_v9  ;;  %v12216_v38 = vcombine.high %v5414_v27, %v5418_v29  ;;  %v5453_v8 = vld [vmem:[#allocation10 + $0xf50] sm:$0xff]  ;;  %v5454_v9 = vld [vmem:[#allocation10 + $0xf58] sm:$0xff] }
 0x589   :  { %8696 = vmatprep.subr.bf16.mxu1 %v12168_v3  ;;  %v12214_v3 = vcombine.high %v5413_v28, %v5417_v21  ;;  %v5457_v6 = vld [vmem:[#allocation10 + $0xf70] sm:$0xff] }
 0x58b   :  { %8533 = vmatpush1.bf16.msra.mxu0 %v12165_v44  ;;  %v5426_v44 = vld [vmem:[#allocation10 + $0xe78] sm:$0xff] }
 0x58c   :  { %8697 = vmatpush1.bf16.msra.mxu1 %v12167_v63  ;;  %8534 = vmatprep.subr.bf16.mxu0 %v12174_v45  ;;  %v12213_v63 = vcombine.low %v5413_v28, %v5417_v21  ;;  %v12215_v45 = vcombine.low %v5414_v27, %v5418_v29  ;;  %v12224_v48 = vcombine.high %v5422_v40, %v5426_v44  ;;  %v5466_v28 = vld [vmem:[#allocation10 + $0xfb8] sm:$0xff]  ;;  %v13986_v21 = vld [vmem:[#allocation11] sm:$0xff] }
 0x58d   :  { %8698 = vmatprep.subr.bf16.mxu1 %v12176_v16  ;;  %v12222_v16 = vcombine.high %v5421_v36, %v5425_v37  ;;  %v12253_v27 = vcombine.low %v5453_v8, %v5457_v6 }
 0x58f   :  { %8535 = vmatpush1.bf16.msra.mxu0 %v12173_v62  ;;  %v5434_v62 = vld [vmem:[#allocation10 + $0xeb8] sm:$0xff] }
 0x590   :  { %8699 = vmatpush1.bf16.msra.mxu1 %v12175_v10  ;;  %8536 = vmatprep.subr.bf16.mxu0 %v12182_v50  ;;  %v12221_v10 = vcombine.low %v5421_v36, %v5425_v37  ;;  %v12223_v50 = vcombine.low %v5422_v40, %v5426_v44  ;;  %v12232_v11 = vcombine.high %v5430_v47, %v5434_v62  ;;  %v5470_v37 = vld [vmem:[#allocation10 + $0xfd8] sm:$0xff] }
 0x591   :  { %8700 = vmatprep.subr.bf16.mxu1 %v12184_v51  ;;  %v12230_v51 = vcombine.high %v5429_v49, %v5433_v2  ;;  %v5484_v36 = vrot.slane %v13986_v21, %v13796_v26  ;;  %v5474_v40 = vld [vmem:[#allocation10 + $0xff8] sm:$0xff] }
 0x593   :  { %8537 = vmatpush1.bf16.msra.mxu0 %v12181_v55  ;;  %v5442_v55 = vld [vmem:[#allocation10 + $0xef8] sm:$0xff] }
 0x594   :  { %8701 = vmatpush1.bf16.msra.mxu1 %v12183_v56  ;;  %8538 = vmatprep.subr.bf16.mxu0 %v12190_v57  ;;  %v12229_v56 = vcombine.low %v5429_v49, %v5433_v2  ;;  %v12231_v57 = vcombine.low %v5430_v47, %v5434_v62  ;;  %v12240_v25 = vcombine.high %v5438_v35, %v5442_v55  ;;  %v12806_v47 = vld [vmem:[#allocation13 + $0x4] ss:$16 sps:$4 sm:$0xff]   ;;  %v12809_v62 = vld [vmem:[#allocation13 + $0xc] ss:$16 sps:$4 sm:$0xff]  }
 0x595   :  { %v13978_v4 = vpop.f32.mrb[16].mxu0  ;;  %v13980_v54 = vpop.f32.mrb[16].mxu1  ;;  %8702 = vmatprep.subr.bf16.mxu1 %v12192_v32  ;;  %v12238_v32 = vcombine.high %v5437_v52, %v5441_v53  ;;  %v12271_v2 = vcombine.low %v5470_v37, %v5474_v40 }
 0x596   :  { %v13982_v12 = vpop.f32.mrb[17].mxu0  ;;  %v13984_v14 = vpop.f32.mrb[17].mxu1 }
 0x597   :  { %v8238_v42 = vpop.f32.mrb[18].mxu0  ;;  %v8402_v17 = vpop.f32.mrb[18].mxu1  ;;  %8539 = vmatpush1.bf16.msra.mxu0 %v12189_v13  ;;  %v5450_v13 = vld [vmem:[#allocation10 + $0xf38] sm:$0xff] }
 0x598   :  { %8703 = vmatpush1.bf16.msra.mxu1 %v12191_v0  ;;  %v8239_v18 = vpop.f32.mrb[19].mxu0  ;;  %v8403_v23 = vpop.f32.mrb[19].mxu1  ;;  %8540 = vmatprep.subr.bf16.mxu0 %v12198_v7  ;;  %v12237_v0 = vcombine.low %v5437_v52, %v5441_v53  ;;  %v12239_v7 = vcombine.low %v5438_v35, %v5442_v55  ;;  %v12248_v61 = vcombine.high %v5446_v59, %v5450_v13  ;;  %v5458_v42 = vld [vmem:[#allocation10 + $0xf78] sm:$0xff]  ;;  %v12813_v35 = vld [vmem:[#allocation13 + $0x28] ss:$16 sps:$4 sm:$0xff]  }
 0x599   :  { %8704 = vmatprep.subr.bf16.mxu1 %v12200_v39  ;;  %v12246_v39 = vcombine.high %v5445_v5, %v5449_v58  ;;  %v12245_v17 = vcombine.low %v5445_v5, %v5449_v58  ;;  %v12254_v18 = vcombine.high %v5453_v8, %v5457_v6  ;;  %v12256_v23 = vcombine.high %v5454_v9, %v5458_v42  ;;  %v12810_v53 = vld [vmem:[#allocation13 + $0x20] ss:$16 sps:$4 sm:$0xff]   ;;  %v12818_v55 = vld [vmem:[#allocation13 + $0x44] ss:$16 sps:$4 sm:$0xff]   ;;  %v12827_v5 = vld [vmem:[#allocation13 + $0x6c] ss:$16 sps:$4 sm:$0xff]  }
 0x59a   :  { %v12255_v29 = vcombine.low %v5454_v9, %v5458_v42  ;;  %v12825_v58 = vld [vmem:[#allocation13 + $0x68] ss:$16 sps:$4 sm:$0xff]   ;;  %v12834_v8 = vld [vmem:[#allocation13 + $0xa0] ss:$16 sps:$4 sm:$0xff]   ;;  %v12842_v9 = vld [vmem:[#allocation13 + $0xc4] ss:$16 sps:$4 sm:$0xff]  }
 0x59b   :  { %8541 = vmatpush1.bf16.msra.mxu0 %v12197_v22  ;;  %v12247_v22 = vcombine.low %v5446_v59, %v5450_v13  ;;  %v12830_v59 = vld [vmem:[#allocation13 + $0x84] ss:$16 sps:$4 sm:$0xff]   ;;  %v12833_v13 = vld [vmem:[#allocation13 + $0x8c] ss:$16 sps:$4 sm:$0xff]   ;;  %v12837_v6 = vld [vmem:[#allocation13 + $0xa8] ss:$16 sps:$4 sm:$0xff]  }
 0x59c   :  { %8705 = vmatpush1.bf16.msra.mxu1 %v12199_v1  ;;  %8542 = vmatprep.subr.bf16.mxu0 %v12206_v19  ;;  %v5461_v1 = vld [vmem:[#allocation10 + $0xf90] sm:$0xff] }
 0x59d   :  { %8706 = vmatprep.subr.bf16.mxu1 %v12208_v20  ;;  %v5465_v19 = vld [vmem:[#allocation10 + $0xfb0] sm:$0xff]  ;;  %v5462_v20 = vld [vmem:[#allocation10 + $0xf98] sm:$0xff] }
 0x59e   :  { %v12261_v44 = vcombine.low %v5461_v1, %v5465_v19  ;;  %v12845_v42 = vld [vmem:[#allocation13 + $0xcc] ss:$16 sps:$4 sm:$0xff]  }
 0x59f   :  { %8543 = vmatpush1.bf16.msra.mxu0 %v12205_v33  ;;  %v12262_v33 = vcombine.high %v5461_v1, %v5465_v19  ;;  %v12846_v1 = vld [vmem:[#allocation13 + $0xe0] ss:$16 sps:$4 sm:$0xff]   ;;  %v12849_v19 = vld [vmem:[#allocation13 + $0xe8] ss:$16 sps:$4 sm:$0xff]  }
 0x5a0   :  { %8707 = vmatpush1.bf16.msra.mxu1 %v12207_v34  ;;  %8544 = vmatprep.subr.bf16.mxu0 %v12214_v3  ;;  %v12264_v34 = vcombine.high %v5462_v20, %v5466_v28  ;;  %v5469_v3 = vld [vmem:[#allocation10 + $0xfd0] sm:$0xff] }
 0x5a1   :  { %8708 = vmatprep.subr.bf16.mxu1 %v12216_v38  ;;  %v5473_v38 = vld [vmem:[#allocation10 + $0xff0] sm:$0xff] }
 0x5a2   :  { %v12269_v49 = vcombine.low %v5469_v3, %v5473_v38 }
 0x5a3   :  { %8545 = vmatpush1.bf16.msra.mxu0 %v12213_v63  ;;  %v12263_v63 = vcombine.low %v5462_v20, %v5466_v28  ;;  %v12854_v20 = vld [vmem:[#allocation13 + $0x104] ss:$16 sps:$4 sm:$0xff]   ;;  %v12857_v28 = vld [vmem:[#allocation13 + $0x10c] ss:$16 sps:$4 sm:$0xff]  }
 0x5a4   :  { %8709 = vmatpush1.bf16.msra.mxu1 %v12215_v45  ;;  %8546 = vmatprep.subr.bf16.mxu0 %v12222_v16  ;;  %v12270_v45 = vcombine.high %v5469_v3, %v5473_v38  ;;  %v12272_v16 = vcombine.high %v5470_v37, %v5474_v40  ;;  %v12858_v3 = vld [vmem:[#allocation13 + $0x120] ss:$16 sps:$4 sm:$0xff]   ;;  %v12861_v38 = vld [vmem:[#allocation13 + $0x128] ss:$16 sps:$4 sm:$0xff]   ;;  %v12869_v37 = vld [vmem:[#allocation13 + $0x14c] ss:$16 sps:$4 sm:$0xff]  }
 0x5a5   :  { %8710 = vmatprep.subr.bf16.mxu1 %v12224_v48  ;;  %v12653_v48 = vadd.f32 %v13982_v12, %v5484_v36  ;;  %v12815_v12 = vld [vmem:[#allocation13 + $0x2c] ss:$16 sps:$4 sm:$0xff]   ;;  %v12866_v36 = vld [vmem:[#allocation13 + $0x144] ss:$16 sps:$4 sm:$0xff]   ;;  %v12864_v40 = vld [vmem:[#allocation13 + $0x140] ss:$16 sps:$4 sm:$0xff]  }
 0x5a7   :  { %8547 = vmatpush1.bf16.msra.mxu0 %v12221_v10  ;;  %v8734_v10 = vmax.f32 %v12653_v48, 0.0  ;;  %v12873_v48 = vld [vmem:[#allocation13 + $0x168] ss:$16 sps:$4 sm:$0xff]  }
 0x5a8   :  { %8711 = vmatpush1.bf16.msra.mxu1 %v12223_v50  ;;  %8548 = vmatprep.subr.bf16.mxu0 %v12230_v51  ;;  %v12804_v50 = vld [vmem:[#allocation13] ss:$16 sps:$4 sm:$0xff]   ;;  %v12807_v51 = vld [vmem:[#allocation13 + $0x8] ss:$16 sps:$4 sm:$0xff]  }
 0x5a9   :  { %8712 = vmatprep.subr.bf16.mxu1 %v12232_v11  ;;  %v12812_v11 = vld [vmem:[#allocation13 + $0x24] ss:$16 sps:$4 sm:$0xff]   ;;  %v8742_v52 = vpack.c.bf16 %v8734_v10, %v8734_v10 }
 0x5aa   :  { %v12884_v10 = vld [vmem:[#allocation13 + $0x1a4] ss:$16 sps:$4 sm:$0xff]  }
 0x5ab   :  { %8549 = vmatpush1.bf16.msra.mxu0 %v12229_v56  ;;  %v12821_v56 = vld [vmem:[#allocation13 + $0x4c] ss:$16 sps:$4 sm:$0xff]  }
 0x5ac   :  { %8713 = vmatpush1.bf16.msra.mxu1 %v12231_v57  ;;  %8550 = vmatprep.subr.bf16.mxu0 %v12238_v32  ;;  %v12816_v57 = vld [vmem:[#allocation13 + $0x40] ss:$16 sps:$4 sm:$0xff]   ;;  %v12819_v32 = vld [vmem:[#allocation13 + $0x48] ss:$16 sps:$4 sm:$0xff]  }
 0x5ad   :  { %8714 = vmatprep.subr.bf16.mxu1 %v12240_v25  ;;  %v12824_v25 = vld [vmem:[#allocation13 + $0x64] ss:$16 sps:$4 sm:$0xff]  }
 0x5af   :  { %8551 = vmatpush1.bf16.msra.mxu0 %v12237_v0  ;;  %v12828_v0 = vld [vmem:[#allocation13 + $0x80] ss:$16 sps:$4 sm:$0xff]  }
 0x5b0   :  { %8715 = vmatpush1.bf16.msra.mxu1 %v12239_v7  ;;  %8552 = vmatprep.subr.bf16.mxu0 %v12246_v39  ;;  %v12831_v7 = vld [vmem:[#allocation13 + $0x88] ss:$16 sps:$4 sm:$0xff]   ;;  %v12836_v39 = vld [vmem:[#allocation13 + $0xa4] ss:$16 sps:$4 sm:$0xff]  }
 0x5b1   :  { %8716 = vmatprep.subr.bf16.mxu1 %v12248_v61  ;;  %v12839_v61 = vld [vmem:[#allocation13 + $0xac] ss:$16 sps:$4 sm:$0xff]  }
 0x5b3   :  { %8553 = vmatpush1.bf16.msra.mxu0 %v12245_v17  ;;  %v12840_v17 = vld [vmem:[#allocation13 + $0xc0] ss:$16 sps:$4 sm:$0xff]  }
 0x5b4   :  { %8717 = vmatpush1.bf16.msra.mxu1 %v12247_v22  ;;  %8554 = vmatprep.subr.bf16.mxu0 %v12254_v18  ;;  %v12843_v22 = vld [vmem:[#allocation13 + $0xc8] ss:$16 sps:$4 sm:$0xff]   ;;  %v12848_v18 = vld [vmem:[#allocation13 + $0xe4] ss:$16 sps:$4 sm:$0xff]  }
 0x5b5   :  { %8718 = vmatprep.subr.bf16.mxu1 %v12256_v23  ;;  %v12851_v23 = vld [vmem:[#allocation13 + $0xec] ss:$16 sps:$4 sm:$0xff]  }
 0x5b7   :  { %8555 = vmatpush1.bf16.msra.mxu0 %v12253_v27  ;;  %v12852_v27 = vld [vmem:[#allocation13 + $0x100] ss:$16 sps:$4 sm:$0xff]  }
 0x5b8   :  { %8719 = vmatpush1.bf16.msra.mxu1 %v12255_v29  ;;  %8556 = vmatprep.subr.bf16.mxu0 %v12262_v33  ;;  %v12855_v29 = vld [vmem:[#allocation13 + $0x108] ss:$16 sps:$4 sm:$0xff]   ;;  %v12860_v33 = vld [vmem:[#allocation13 + $0x124] ss:$16 sps:$4 sm:$0xff]  }
 0x5b9   :  { %8720 = vmatprep.subr.bf16.mxu1 %v12264_v34  ;;  %v12863_v34 = vld [vmem:[#allocation13 + $0x12c] ss:$16 sps:$4 sm:$0xff]  }
 0x5bb   :  { %8557 = vmatpush1.bf16.msra.mxu0 %v12261_v44  ;;  %v12867_v44 = vld [vmem:[#allocation13 + $0x148] ss:$16 sps:$4 sm:$0xff]  }
 0x5bc   :  { %8721 = vmatpush1.bf16.msra.mxu1 %v12263_v63  ;;  %8558 = vmatprep.subr.bf16.mxu0 %v12270_v45  ;;  %v12872_v63 = vld [vmem:[#allocation13 + $0x164] ss:$16 sps:$4 sm:$0xff]   ;;  %v12875_v45 = vld [vmem:[#allocation13 + $0x16c] ss:$16 sps:$4 sm:$0xff]  }
 0x5bd   :  { %8722 = vmatprep.subr.bf16.mxu1 %v12272_v16  ;;  %v12870_v16 = vld [vmem:[#allocation13 + $0x160] ss:$16 sps:$4 sm:$0xff]  }
 0x5bf   :  { %8559 = vmatpush1.bf16.msra.mxu0 %v12269_v49  ;;  %v12878_v49 = vld [vmem:[#allocation13 + $0x184] ss:$16 sps:$4 sm:$0xff]  }
 0x5c0   :  { %8723 = vmatpush1.bf16.msra.mxu1 %v12271_v2  ;;  %10307 = vmatprep.subr.bf16.mxu0 %v12806_v47  ;;  %v12881_v2 = vld [vmem:[#allocation13 + $0x18c] ss:$16 sps:$4 sm:$0xff]   ;;  %v12876_v47 = vld [vmem:[#allocation13 + $0x180] ss:$16 sps:$4 sm:$0xff]  }
 0x5c1   :  { %10471 = vmatprep.subr.bf16.mxu1 %v12809_v62  ;;  %v12879_v62 = vld [vmem:[#allocation13 + $0x188] ss:$16 sps:$4 sm:$0xff]  }
 0x5c2   :  { %8561 = vmatmul.mubr.bf16.vlgmr.msra.gmra.mrb[20].mxu0 %v13960_v43 }
 0x5c3   :  { %8725 = vmatmul.mubr.bf16.vlgmr.msra.gmra.mrb[20].mxu1 %v13960_v43  ;;  %10308 = vmatpush1.bf16.msra.mxu0 %v12804_v50  ;;  %v12822_v43 = vld [vmem:[#allocation13 + $0x60] ss:$16 sps:$4 sm:$0xff]   ;;  %v12887_v50 = vld [vmem:[#allocation13 + $0x1ac] ss:$16 sps:$4 sm:$0xff]  }
 0x5c4   :  { %10339 = vmatprep.mubr.bf16.mxu0 %v8742_v52  ;;  %10472 = vmatpush1.bf16.msra.mxu1 %v12807_v51  ;;  %v12882_v51 = vld [vmem:[#allocation13 + $0x1a0] ss:$16 sps:$4 sm:$0xff]  }
 0x5c5   :  { %10503 = vmatprep.mubr.bf16.mxu1 %v8742_v52  ;;  %10309 = vmatprep.subr.bf16.mxu0 %v12812_v11  ;;  %v5480_v11 = vrot.slane %v13986_v21, %v13791_v24  ;;  %v12885_v52 = vld [vmem:[#allocation13 + $0x1a8] ss:$16 sps:$4 sm:$0xff]  }
 0x5c6   :  { %10473 = vmatprep.subr.bf16.mxu1 %v12815_v12  ;;  %v12890_v12 = vld [vmem:[#allocation13 + $0x1c4] ss:$16 sps:$4 sm:$0xff]  }
 0x5c7   :  { %10310 = vmatpush1.bf16.msra.mxu0 %v12810_v53  ;;  %v12893_v53 = vld [vmem:[#allocation13 + $0x1cc] ss:$16 sps:$4 sm:$0xff]  }
 0x5c8   :  { %10474 = vmatpush1.bf16.msra.mxu1 %v12813_v35  ;;  %10311 = vmatprep.subr.bf16.mxu0 %v12818_v55  ;;  %v5492_v35 = vrot.slane %v13986_v21, %v13803_v41  ;;  %v12888_v55 = vld [vmem:[#allocation13 + $0x1c0] ss:$16 sps:$4 sm:$0xff]  }
 0x5c9   :  { %10475 = vmatprep.subr.bf16.mxu1 %v12821_v56  ;;  %v12652_v56 = vadd.f32 %v13978_v4, %v5480_v11  ;;  %v12900_v4 = vld [vmem:[#allocation13 + $0x200] ss:$16 sps:$4 sm:$0xff]   ;;  %v12959_v11 = vld [vmem:[#allocation13 + $0x32c] ss:$16 sps:$4 sm:$0xff]  }
 0x5cb   :  { %10312 = vmatpush1.bf16.msra.mxu0 %v12816_v57  ;;  %v12891_v57 = vld [vmem:[#allocation13 + $0x1c8] ss:$16 sps:$4 sm:$0xff]  }
 0x5cc   :  { %10476 = vmatpush1.bf16.msra.mxu1 %v12819_v32  ;;  %10313 = vmatprep.subr.bf16.mxu0 %v12824_v25  ;;  %v12896_v32 = vld [vmem:[#allocation13 + $0x1e4] ss:$16 sps:$4 sm:$0xff]   ;;  %v12899_v25 = vld [vmem:[#allocation13 + $0x1ec] ss:$16 sps:$4 sm:$0xff]  }
 0x5cd   :  { %10477 = vmatprep.subr.bf16.mxu1 %v12827_v5  ;;  %v12655_v5 = vadd.f32 %v13984_v14, %v5492_v35  ;;  %v12911_v14 = vld [vmem:[#allocation13 + $0x22c] ss:$16 sps:$4 sm:$0xff]  }
 0x5ce   :  { %v12965_v35 = vld [vmem:[#allocation13 + $0x34c] ss:$16 sps:$4 sm:$0xff]  }
 0x5cf   :  { %10314 = vmatpush1.bf16.msra.mxu0 %v12822_v43  ;;  %v12894_v43 = vld [vmem:[#allocation13 + $0x1e0] ss:$16 sps:$4 sm:$0xff]  }
 0x5d0   :  { %10478 = vmatpush1.bf16.msra.mxu1 %v12825_v58  ;;  %10315 = vmatprep.subr.bf16.mxu0 %v12830_v59  ;;  %v8733_v58 = vmax.f32 %v12652_v56, 0.0  ;;  %v12897_v59 = vld [vmem:[#allocation13 + $0x1e8] ss:$16 sps:$4 sm:$0xff]  }
 0x5d1   :  { %10479 = vmatprep.subr.bf16.mxu1 %v12833_v13  ;;  %v12902_v13 = vld [vmem:[#allocation13 + $0x204] ss:$16 sps:$4 sm:$0xff]   ;;  %v12963_v56 = vld [vmem:[#allocation13 + $0x348] ss:$16 sps:$4 sm:$0xff]  }
 0x5d3   :  { %10316 = vmatpush1.bf16.msra.mxu0 %v12828_v0  ;;  %v12905_v0 = vld [vmem:[#allocation13 + $0x20c] ss:$16 sps:$4 sm:$0xff]  }
 0x5d4   :  { %10480 = vmatpush1.bf16.msra.mxu1 %v12831_v7  ;;  %10317 = vmatprep.subr.bf16.mxu0 %v12836_v39  ;;  %v8736_v7 = vmax.f32 %v12655_v5, 0.0  ;;  %v8741_v39 = vpack.c.bf16 %v8733_v58, %v8733_v58  ;;  %v12969_v5 = vld [vmem:[#allocation13 + $0x368] ss:$16 sps:$4 sm:$0xff]   ;;  %v12977_v58 = vld [vmem:[#allocation13 + $0x38c] ss:$16 sps:$4 sm:$0xff]  }
 0x5d5   :  { %10481 = vmatprep.subr.bf16.mxu1 %v12839_v61  ;;  %v12903_v61 = vld [vmem:[#allocation13 + $0x208] ss:$16 sps:$4 sm:$0xff]  }
 0x5d7   :  { %10318 = vmatpush1.bf16.msra.mxu0 %v12834_v8  ;;  %v12908_v8 = vld [vmem:[#allocation13 + $0x224] ss:$16 sps:$4 sm:$0xff]  }
 0x5d8   :  { %10482 = vmatpush1.bf16.msra.mxu1 %v12837_v6  ;;  %10319 = vmatprep.subr.bf16.mxu0 %v12842_v9  ;;  %v8744_v6 = vpack.c.bf16 %v8736_v7, %v8736_v7  ;;  %v12906_v9 = vld [vmem:[#allocation13 + $0x220] ss:$16 sps:$4 sm:$0xff]   ;;  %v12983_v7 = vld [vmem:[#allocation13 + $0x3ac] ss:$16 sps:$4 sm:$0xff]  }
 0x5d9   :  { %10483 = vmatprep.subr.bf16.mxu1 %v12845_v42  ;;  %v12909_v42 = vld [vmem:[#allocation13 + $0x228] ss:$16 sps:$4 sm:$0xff]  }
 0x5db   :  { %10320 = vmatpush1.bf16.msra.mxu0 %v12840_v17  ;;  %v12914_v17 = vld [vmem:[#allocation13 + $0x244] ss:$16 sps:$4 sm:$0xff]  }
 0x5dc   :  { %10484 = vmatpush1.bf16.msra.mxu1 %v12843_v22  ;;  %10321 = vmatprep.subr.bf16.mxu0 %v12848_v18  ;;  %v12917_v22 = vld [vmem:[#allocation13 + $0x24c] ss:$16 sps:$4 sm:$0xff]   ;;  %v12912_v18 = vld [vmem:[#allocation13 + $0x240] ss:$16 sps:$4 sm:$0xff]  }
 0x5dd   :  { %10485 = vmatprep.subr.bf16.mxu1 %v12851_v23  ;;  %v12915_v23 = vld [vmem:[#allocation13 + $0x248] ss:$16 sps:$4 sm:$0xff]  }
 0x5df   :  { %10322 = vmatpush1.bf16.msra.mxu0 %v12846_v1  ;;  %v12920_v1 = vld [vmem:[#allocation13 + $0x264] ss:$16 sps:$4 sm:$0xff]  }
 0x5e0   :  { %10486 = vmatpush1.bf16.msra.mxu1 %v12849_v19  ;;  %10323 = vmatprep.subr.bf16.mxu0 %v12854_v20  ;;  %v12923_v19 = vld [vmem:[#allocation13 + $0x26c] ss:$16 sps:$4 sm:$0xff]   ;;  %v12918_v20 = vld [vmem:[#allocation13 + $0x260] ss:$16 sps:$4 sm:$0xff]  }
 0x5e1   :  { %10487 = vmatprep.subr.bf16.mxu1 %v12857_v28  ;;  %v12921_v28 = vld [vmem:[#allocation13 + $0x268] ss:$16 sps:$4 sm:$0xff]  }
 0x5e3   :  { %10324 = vmatpush1.bf16.msra.mxu0 %v12852_v27  ;;  %v12926_v27 = vld [vmem:[#allocation13 + $0x284] ss:$16 sps:$4 sm:$0xff]  }
 0x5e4   :  { %10488 = vmatpush1.bf16.msra.mxu1 %v12855_v29  ;;  %10325 = vmatprep.subr.bf16.mxu0 %v12860_v33  ;;  %v12929_v29 = vld [vmem:[#allocation13 + $0x28c] ss:$16 sps:$4 sm:$0xff]   ;;  %v12924_v33 = vld [vmem:[#allocation13 + $0x280] ss:$16 sps:$4 sm:$0xff]  }
 0x5e5   :  { %10489 = vmatprep.subr.bf16.mxu1 %v12863_v34  ;;  %v12927_v34 = vld [vmem:[#allocation13 + $0x288] ss:$16 sps:$4 sm:$0xff]  }
 0x5e7   :  { %10326 = vmatpush1.bf16.msra.mxu0 %v12858_v3  ;;  %v12932_v3 = vld [vmem:[#allocation13 + $0x2a4] ss:$16 sps:$4 sm:$0xff]  }
 0x5e8   :  { %10490 = vmatpush1.bf16.msra.mxu1 %v12861_v38  ;;  %10327 = vmatprep.subr.bf16.mxu0 %v12866_v36  ;;  %v12935_v38 = vld [vmem:[#allocation13 + $0x2ac] ss:$16 sps:$4 sm:$0xff]   ;;  %v12930_v36 = vld [vmem:[#allocation13 + $0x2a0] ss:$16 sps:$4 sm:$0xff]  }
 0x5e9   :  { %10491 = vmatprep.subr.bf16.mxu1 %v12869_v37  ;;  %v12933_v37 = vld [vmem:[#allocation13 + $0x2a8] ss:$16 sps:$4 sm:$0xff]  }
 0x5eb   :  { %10328 = vmatpush1.bf16.msra.mxu0 %v12864_v40  ;;  %v12938_v40 = vld [vmem:[#allocation13 + $0x2c4] ss:$16 sps:$4 sm:$0xff]  }
 0x5ec   :  { %10492 = vmatpush1.bf16.msra.mxu1 %v12867_v44  ;;  %10329 = vmatprep.subr.bf16.mxu0 %v12872_v63  ;;  %v12941_v44 = vld [vmem:[#allocation13 + $0x2cc] ss:$16 sps:$4 sm:$0xff]   ;;  %v12936_v63 = vld [vmem:[#allocation13 + $0x2c0] ss:$16 sps:$4 sm:$0xff]  }
 0x5ed   :  { %10493 = vmatprep.subr.bf16.mxu1 %v12875_v45  ;;  %v12939_v45 = vld [vmem:[#allocation13 + $0x2c8] ss:$16 sps:$4 sm:$0xff]  }
 0x5ef   :  { %10330 = vmatpush1.bf16.msra.mxu0 %v12870_v16  ;;  %v12944_v16 = vld [vmem:[#allocation13 + $0x2e4] ss:$16 sps:$4 sm:$0xff]  }
 0x5f0   :  { %10494 = vmatpush1.bf16.msra.mxu1 %v12873_v48  ;;  %10331 = vmatprep.subr.bf16.mxu0 %v12878_v49  ;;  %v12947_v48 = vld [vmem:[#allocation13 + $0x2ec] ss:$16 sps:$4 sm:$0xff]   ;;  %v12942_v49 = vld [vmem:[#allocation13 + $0x2e0] ss:$16 sps:$4 sm:$0xff]  }
 0x5f1   :  { %10495 = vmatprep.subr.bf16.mxu1 %v12881_v2  ;;  %v12945_v2 = vld [vmem:[#allocation13 + $0x2e8] ss:$16 sps:$4 sm:$0xff]  }
 0x5f3   :  { %10332 = vmatpush1.bf16.msra.mxu0 %v12876_v47  ;;  %v12950_v47 = vld [vmem:[#allocation13 + $0x304] ss:$16 sps:$4 sm:$0xff]  }
 0x5f4   :  { %10496 = vmatpush1.bf16.msra.mxu1 %v12879_v62  ;;  %10333 = vmatprep.subr.bf16.mxu0 %v12884_v10  ;;  %v12953_v62 = vld [vmem:[#allocation13 + $0x30c] ss:$16 sps:$4 sm:$0xff]   ;;  %v12948_v10 = vld [vmem:[#allocation13 + $0x300] ss:$16 sps:$4 sm:$0xff]  }
 0x5f5   :  { %10497 = vmatprep.subr.bf16.mxu1 %v12887_v50  ;;  %v12951_v50 = vld [vmem:[#allocation13 + $0x308] ss:$16 sps:$4 sm:$0xff]  }
 0x5f7   :  { %10334 = vmatpush1.bf16.msra.mxu0 %v12882_v51  ;;  %v12956_v51 = vld [vmem:[#allocation13 + $0x324] ss:$16 sps:$4 sm:$0xff]  }
 0x5f8   :  { %10498 = vmatpush1.bf16.msra.mxu1 %v12885_v52  ;;  %10335 = vmatprep.subr.bf16.mxu0 %v12890_v12  ;;  %v12954_v52 = vld [vmem:[#allocation13 + $0x320] ss:$16 sps:$4 sm:$0xff]   ;;  %v12957_v12 = vld [vmem:[#allocation13 + $0x328] ss:$16 sps:$4 sm:$0xff]  }
 0x5f9   :  { %10499 = vmatprep.subr.bf16.mxu1 %v12893_v53  ;;  %v12962_v53 = vld [vmem:[#allocation13 + $0x344] ss:$16 sps:$4 sm:$0xff]  }
 0x5fb   :  { %10336 = vmatpush1.bf16.msra.mxu0 %v12888_v55  ;;  %v12960_v55 = vld [vmem:[#allocation13 + $0x340] ss:$16 sps:$4 sm:$0xff]  }
 0x5fc   :  { %10500 = vmatpush1.bf16.msra.mxu1 %v12891_v57  ;;  %10337 = vmatprep.subr.bf16.mxu0 %v12896_v32  ;;  %v12968_v57 = vld [vmem:[#allocation13 + $0x364] ss:$16 sps:$4 sm:$0xff]   ;;  %v12971_v32 = vld [vmem:[#allocation13 + $0x36c] ss:$16 sps:$4 sm:$0xff]  }
 0x5fd   :  { %10501 = vmatprep.subr.bf16.mxu1 %v12899_v25  ;;  %v12966_v25 = vld [vmem:[#allocation13 + $0x360] ss:$16 sps:$4 sm:$0xff]  }
 0x5ff   :  { %10338 = vmatpush1.bf16.msra.mxu0 %v12894_v43  ;;  %v12974_v43 = vld [vmem:[#allocation13 + $0x384] ss:$16 sps:$4 sm:$0xff]  }
 0x600   :  { %10502 = vmatpush1.bf16.msra.mxu1 %v12897_v59  ;;  %10348 = vmatprep.subr.bf16.mxu0 %v12902_v13  ;;  %v12972_v59 = vld [vmem:[#allocation13 + $0x380] ss:$16 sps:$4 sm:$0xff]   ;;  %v12975_v13 = vld [vmem:[#allocation13 + $0x388] ss:$16 sps:$4 sm:$0xff]  }
 0x601   :  { %10512 = vmatprep.subr.bf16.mxu1 %v12905_v0  ;;  %v12980_v0 = vld [vmem:[#allocation13 + $0x3a4] ss:$16 sps:$4 sm:$0xff]  }
 0x602   :  { %10340 = vmatmul.mubr.bf16.vlgmr.msra.gmra.mrb[24].mxu0 %v8741_v39 }
 0x603   :  { %10504 = vmatmul.mubr.bf16.vlgmr.msra.gmra.mrb[24].mxu1 %v8741_v39  ;;  %10349 = vmatpush1.bf16.msra.mxu0 %v12900_v4  ;;  %v12978_v4 = vld [vmem:[#allocation13 + $0x3a0] ss:$16 sps:$4 sm:$0xff]   ;;  %v5488_v39 = vrot.slane %v13986_v21, %v13828_v31 }
 0x604   :  { %10380 = vmatprep.mubr.bf16.mxu0 %v8744_v6  ;;  %10513 = vmatpush1.bf16.msra.mxu1 %v12903_v61  ;;  %v12981_v61 = vld [vmem:[#allocation13 + $0x3a8] ss:$16 sps:$4 sm:$0xff]  }
 0x605   :  { %10544 = vmatprep.mubr.bf16.mxu1 %v8744_v6  ;;  %10350 = vmatprep.subr.bf16.mxu0 %v12908_v8  ;;  %v12986_v8 = vld [vmem:[#allocation13 + $0x3c4] ss:$16 sps:$4 sm:$0xff]   ;;  %v12989_v6 = vld [vmem:[#allocation13 + $0x3cc] ss:$16 sps:$4 sm:$0xff]  }
 0x606   :  { %10514 = vmatprep.subr.bf16.mxu1 %v12911_v14  ;;  %v12984_v14 = vld [vmem:[#allocation13 + $0x3c0] ss:$16 sps:$4 sm:$0xff]  }
 0x607   :  { %10351 = vmatpush1.bf16.msra.mxu0 %v12906_v9  ;;  %v12654_v9 = vadd.f32 %v13980_v54, %v5488_v39  ;;  %v12999_v54 = vld [vmem:[#allocation13 + $0x408] ss:$16 sps:$4 sm:$0xff]   ;;  %v13056_v39 = vld [vmem:[#allocation13 + $0x540] ss:$16 sps:$4 sm:$0xff]  }
 0x608   :  { %10515 = vmatpush1.bf16.msra.mxu1 %v12909_v42  ;;  %10352 = vmatprep.subr.bf16.mxu0 %v12914_v17  ;;  %v12987_v42 = vld [vmem:[#allocation13 + $0x3c8] ss:$16 sps:$4 sm:$0xff]   ;;  %v12992_v17 = vld [vmem:[#allocation13 + $0x3e4] ss:$16 sps:$4 sm:$0xff]  }
 0x609   :  { %10516 = vmatprep.subr.bf16.mxu1 %v12917_v22  ;;  %v12995_v22 = vld [vmem:[#allocation13 + $0x3ec] ss:$16 sps:$4 sm:$0xff]  }
 0x60b   :  { %10353 = vmatpush1.bf16.msra.mxu0 %v12912_v18  ;;  %v12990_v18 = vld [vmem:[#allocation13 + $0x3e0] ss:$16 sps:$4 sm:$0xff]  }
 0x60c   :  { %10517 = vmatpush1.bf16.msra.mxu1 %v12915_v23  ;;  %10354 = vmatprep.subr.bf16.mxu0 %v12920_v1  ;;  %v8735_v23 = vmax.f32 %v12654_v9, 0.0  ;;  %v12993_v1 = vld [vmem:[#allocation13 + $0x3e8] ss:$16 sps:$4 sm:$0xff]  }
 0x60d   :  { %10518 = vmatprep.subr.bf16.mxu1 %v12923_v19  ;;  %v12998_v19 = vld [vmem:[#allocation13 + $0x404] ss:$16 sps:$4 sm:$0xff]   ;;  %v13065_v9 = vld [vmem:[#allocation13 + $0x568] ss:$16 sps:$4 sm:$0xff]  }
 0x60f   :  { %10355 = vmatpush1.bf16.msra.mxu0 %v12918_v20  ;;  %v13001_v20 = vld [vmem:[#allocation13 + $0x40c] ss:$16 sps:$4 sm:$0xff]  }
 0x610   :  { %10519 = vmatpush1.bf16.msra.mxu1 %v12921_v28  ;;  %10356 = vmatprep.subr.bf16.mxu0 %v12926_v27  ;;  %v12996_v28 = vld [vmem:[#allocation13 + $0x400] ss:$16 sps:$4 sm:$0xff]   ;;  %v8743_v27 = vpack.c.bf16 %v8735_v23, %v8735_v23  ;;  %v13076_v23 = vld [vmem:[#allocation13 + $0x5a4] ss:$16 sps:$4 sm:$0xff]  }
 0x611   :  { %10520 = vmatprep.subr.bf16.mxu1 %v12929_v29  ;;  %v13004_v29 = vld [vmem:[#allocation13 + $0x424] ss:$16 sps:$4 sm:$0xff]  }
 0x613   :  { %10357 = vmatpush1.bf16.msra.mxu0 %v12924_v33  ;;  %v13007_v33 = vld [vmem:[#allocation13 + $0x42c] ss:$16 sps:$4 sm:$0xff]  }
 0x614   :  { %10521 = vmatpush1.bf16.msra.mxu1 %v12927_v34  ;;  %10358 = vmatprep.subr.bf16.mxu0 %v12932_v3  ;;  %v13002_v34 = vld [vmem:[#allocation13 + $0x420] ss:$16 sps:$4 sm:$0xff]   ;;  %v13005_v3 = vld [vmem:[#allocation13 + $0x428] ss:$16 sps:$4 sm:$0xff]  }
 0x615   :  { %10522 = vmatprep.subr.bf16.mxu1 %v12935_v38  ;;  %v13010_v38 = vld [vmem:[#allocation13 + $0x444] ss:$16 sps:$4 sm:$0xff]  }
 0x617   :  { %10359 = vmatpush1.bf16.msra.mxu0 %v12930_v36  ;;  %v13013_v36 = vld [vmem:[#allocation13 + $0x44c] ss:$16 sps:$4 sm:$0xff]  }
 0x618   :  { %10523 = vmatpush1.bf16.msra.mxu1 %v12933_v37  ;;  %10360 = vmatprep.subr.bf16.mxu0 %v12938_v40  ;;  %v13008_v37 = vld [vmem:[#allocation13 + $0x440] ss:$16 sps:$4 sm:$0xff]   ;;  %v13011_v40 = vld [vmem:[#allocation13 + $0x448] ss:$16 sps:$4 sm:$0xff]  }
 0x619   :  { %10524 = vmatprep.subr.bf16.mxu1 %v12941_v44  ;;  %v13016_v44 = vld [vmem:[#allocation13 + $0x464] ss:$16 sps:$4 sm:$0xff]  }
 0x61b   :  { %10361 = vmatpush1.bf16.msra.mxu0 %v12936_v63  ;;  %v13019_v63 = vld [vmem:[#allocation13 + $0x46c] ss:$16 sps:$4 sm:$0xff]  }
 0x61c   :  { %10525 = vmatpush1.bf16.msra.mxu1 %v12939_v45  ;;  %10362 = vmatprep.subr.bf16.mxu0 %v12944_v16  ;;  %v13014_v45 = vld [vmem:[#allocation13 + $0x460] ss:$16 sps:$4 sm:$0xff]   ;;  %v13017_v16 = vld [vmem:[#allocation13 + $0x468] ss:$16 sps:$4 sm:$0xff]  }
 0x61d   :  { %10526 = vmatprep.subr.bf16.mxu1 %v12947_v48  ;;  %v13022_v48 = vld [vmem:[#allocation13 + $0x484] ss:$16 sps:$4 sm:$0xff]  }
 0x61f   :  { %10363 = vmatpush1.bf16.msra.mxu0 %v12942_v49  ;;  %v13025_v49 = vld [vmem:[#allocation13 + $0x48c] ss:$16 sps:$4 sm:$0xff]  }
 0x620   :  { %10527 = vmatpush1.bf16.msra.mxu1 %v12945_v2  ;;  %10364 = vmatprep.subr.bf16.mxu0 %v12950_v47  ;;  %v13020_v2 = vld [vmem:[#allocation13 + $0x480] ss:$16 sps:$4 sm:$0xff]   ;;  %v13023_v47 = vld [vmem:[#allocation13 + $0x488] ss:$16 sps:$4 sm:$0xff]  }
 0x621   :  { %10528 = vmatprep.subr.bf16.mxu1 %v12953_v62  ;;  %v13028_v62 = vld [vmem:[#allocation13 + $0x4a4] ss:$16 sps:$4 sm:$0xff]  }
 0x623   :  { %10365 = vmatpush1.bf16.msra.mxu0 %v12948_v10  ;;  %v13031_v10 = vld [vmem:[#allocation13 + $0x4ac] ss:$16 sps:$4 sm:$0xff]  }
 0x624   :  { %10529 = vmatpush1.bf16.msra.mxu1 %v12951_v50  ;;  %10366 = vmatprep.subr.bf16.mxu0 %v12956_v51  ;;  %v13026_v50 = vld [vmem:[#allocation13 + $0x4a0] ss:$16 sps:$4 sm:$0xff]   ;;  %v13029_v51 = vld [vmem:[#allocation13 + $0x4a8] ss:$16 sps:$4 sm:$0xff]  }
 0x625   :  { %10530 = vmatprep.subr.bf16.mxu1 %v12959_v11  ;;  %v13034_v11 = vld [vmem:[#allocation13 + $0x4c4] ss:$16 sps:$4 sm:$0xff]  }
 0x627   :  { %10367 = vmatpush1.bf16.msra.mxu0 %v12954_v52  ;;  %v13037_v52 = vld [vmem:[#allocation13 + $0x4cc] ss:$16 sps:$4 sm:$0xff]  }
 0x628   :  { %10531 = vmatpush1.bf16.msra.mxu1 %v12957_v12  ;;  %10368 = vmatprep.subr.bf16.mxu0 %v12962_v53  ;;  %v13032_v12 = vld [vmem:[#allocation13 + $0x4c0] ss:$16 sps:$4 sm:$0xff]   ;;  %v13035_v53 = vld [vmem:[#allocation13 + $0x4c8] ss:$16 sps:$4 sm:$0xff]  }
 0x629   :  { %10532 = vmatprep.subr.bf16.mxu1 %v12965_v35  ;;  %v13040_v35 = vld [vmem:[#allocation13 + $0x4e4] ss:$16 sps:$4 sm:$0xff]  }
 0x62b   :  { %10369 = vmatpush1.bf16.msra.mxu0 %v12960_v55  ;;  %v13043_v55 = vld [vmem:[#allocation13 + $0x4ec] ss:$16 sps:$4 sm:$0xff]  }
 0x62c   :  { %10533 = vmatpush1.bf16.msra.mxu1 %v12963_v56  ;;  %10370 = vmatprep.subr.bf16.mxu0 %v12968_v57  ;;  %v13038_v56 = vld [vmem:[#allocation13 + $0x4e0] ss:$16 sps:$4 sm:$0xff]   ;;  %v13041_v57 = vld [vmem:[#allocation13 + $0x4e8] ss:$16 sps:$4 sm:$0xff]  }
 0x62d   :  { %10534 = vmatprep.subr.bf16.mxu1 %v12971_v32  ;;  %v13046_v32 = vld [vmem:[#allocation13 + $0x504] ss:$16 sps:$4 sm:$0xff]  }
 0x62f   :  { %10371 = vmatpush1.bf16.msra.mxu0 %v12966_v25  ;;  %v13049_v25 = vld [vmem:[#allocation13 + $0x50c] ss:$16 sps:$4 sm:$0xff]  }
 0x630   :  { %10535 = vmatpush1.bf16.msra.mxu1 %v12969_v5  ;;  %10372 = vmatprep.subr.bf16.mxu0 %v12974_v43  ;;  %v13044_v5 = vld [vmem:[#allocation13 + $0x500] ss:$16 sps:$4 sm:$0xff]   ;;  %v13047_v43 = vld [vmem:[#allocation13 + $0x508] ss:$16 sps:$4 sm:$0xff]  }
 0x631   :  { %10536 = vmatprep.subr.bf16.mxu1 %v12977_v58  ;;  %v13052_v58 = vld [vmem:[#allocation13 + $0x524] ss:$16 sps:$4 sm:$0xff]  }
 0x633   :  { %10373 = vmatpush1.bf16.msra.mxu0 %v12972_v59  ;;  %v13055_v59 = vld [vmem:[#allocation13 + $0x52c] ss:$16 sps:$4 sm:$0xff]  }
 0x634   :  { %10537 = vmatpush1.bf16.msra.mxu1 %v12975_v13  ;;  %10374 = vmatprep.subr.bf16.mxu0 %v12980_v0  ;;  %v13050_v13 = vld [vmem:[#allocation13 + $0x520] ss:$16 sps:$4 sm:$0xff]   ;;  %v13053_v0 = vld [vmem:[#allocation13 + $0x528] ss:$16 sps:$4 sm:$0xff]  }
 0x635   :  { %10538 = vmatprep.subr.bf16.mxu1 %v12983_v7  ;;  %v13058_v7 = vld [vmem:[#allocation13 + $0x544] ss:$16 sps:$4 sm:$0xff]  }
 0x637   :  { %10375 = vmatpush1.bf16.msra.mxu0 %v12978_v4  ;;  %v13061_v4 = vld [vmem:[#allocation13 + $0x54c] ss:$16 sps:$4 sm:$0xff]  }
 0x638   :  { %10539 = vmatpush1.bf16.msra.mxu1 %v12981_v61  ;;  %10376 = vmatprep.subr.bf16.mxu0 %v12986_v8  ;;  %v13059_v61 = vld [vmem:[#allocation13 + $0x548] ss:$16 sps:$4 sm:$0xff]   ;;  %v13064_v8 = vld [vmem:[#allocation13 + $0x564] ss:$16 sps:$4 sm:$0xff]  }
 0x639   :  { %10540 = vmatprep.subr.bf16.mxu1 %v12989_v6  ;;  %v13067_v6 = vld [vmem:[#allocation13 + $0x56c] ss:$16 sps:$4 sm:$0xff]  }
 0x63b   :  { %10377 = vmatpush1.bf16.msra.mxu0 %v12984_v14  ;;  %v13062_v14 = vld [vmem:[#allocation13 + $0x560] ss:$16 sps:$4 sm:$0xff]  }
 0x63c   :  { %10541 = vmatpush1.bf16.msra.mxu1 %v12987_v42  ;;  %10378 = vmatprep.subr.bf16.mxu0 %v12992_v17  ;;  %v13070_v42 = vld [vmem:[#allocation13 + $0x584] ss:$16 sps:$4 sm:$0xff]   ;;  %v13073_v17 = vld [vmem:[#allocation13 + $0x58c] ss:$16 sps:$4 sm:$0xff]  }
 0x63d   :  { %10542 = vmatprep.subr.bf16.mxu1 %v12995_v22  ;;  %v13068_v22 = vld [vmem:[#allocation13 + $0x580] ss:$16 sps:$4 sm:$0xff]  }
 0x63f   :  { %10379 = vmatpush1.bf16.msra.mxu0 %v12990_v18  ;;  %v13071_v18 = vld [vmem:[#allocation13 + $0x588] ss:$16 sps:$4 sm:$0xff]  }
 0x640   :  { %10543 = vmatpush1.bf16.msra.mxu1 %v12993_v1  ;;  %10389 = vmatprep.subr.bf16.mxu0 %v12998_v19  ;;  %v13079_v1 = vld [vmem:[#allocation13 + $0x5ac] ss:$16 sps:$4 sm:$0xff]   ;;  %v13074_v19 = vld [vmem:[#allocation13 + $0x5a0] ss:$16 sps:$4 sm:$0xff]  }
 0x641   :  { %10553 = vmatprep.subr.bf16.mxu1 %v13001_v20  ;;  %v13077_v20 = vld [vmem:[#allocation13 + $0x5a8] ss:$16 sps:$4 sm:$0xff]  }
 0x642   :  { %10381 = vmatmul.mubr.bf16.vlgmr.msra.gmra.mrb[24].mxu0 %v8743_v27 }
 0x643   :  { %10545 = vmatmul.mubr.bf16.vlgmr.msra.gmra.mrb[24].mxu1 %v8743_v27  ;;  %10390 = vmatpush1.bf16.msra.mxu0 %v12996_v28  ;;  %v13082_v28 = vld [vmem:[#allocation13 + $0x5c4] ss:$16 sps:$4 sm:$0xff]   ;;  %v13085_v27 = vld [vmem:[#allocation13 + $0x5cc] ss:$16 sps:$4 sm:$0xff]  }
 0x644   :  { %10554 = vmatpush1.bf16.msra.mxu1 %v12999_v54  ;;  %10391 = vmatprep.subr.bf16.mxu0 %v13004_v29  ;;  %v13080_v54 = vld [vmem:[#allocation13 + $0x5c0] ss:$16 sps:$4 sm:$0xff]   ;;  %v13083_v29 = vld [vmem:[#allocation13 + $0x5c8] ss:$16 sps:$4 sm:$0xff]  }
 0x645   :  { %10555 = vmatprep.subr.bf16.mxu1 %v13007_v33  ;;  %v13088_v33 = vld [vmem:[#allocation13 + $0x5e4] ss:$16 sps:$4 sm:$0xff]  }
 0x647   :  { %10392 = vmatpush1.bf16.msra.mxu0 %v13002_v34  ;;  %v13091_v34 = vld [vmem:[#allocation13 + $0x5ec] ss:$16 sps:$4 sm:$0xff]  }
 0x648   :  { %10556 = vmatpush1.bf16.msra.mxu1 %v13005_v3  ;;  %10393 = vmatprep.subr.bf16.mxu0 %v13010_v38  ;;  %v13086_v3 = vld [vmem:[#allocation13 + $0x5e0] ss:$16 sps:$4 sm:$0xff]   ;;  %v13089_v38 = vld [vmem:[#allocation13 + $0x5e8] ss:$16 sps:$4 sm:$0xff]  }
 0x649   :  { %10557 = vmatprep.subr.bf16.mxu1 %v13013_v36  ;;  %v13094_v36 = vld [vmem:[#allocation13 + $0x604] ss:$16 sps:$4 sm:$0xff]  }
 0x64b   :  { %10394 = vmatpush1.bf16.msra.mxu0 %v13008_v37  ;;  %v13097_v37 = vld [vmem:[#allocation13 + $0x60c] ss:$16 sps:$4 sm:$0xff]  }
 0x64c   :  { %10558 = vmatpush1.bf16.msra.mxu1 %v13011_v40  ;;  %10395 = vmatprep.subr.bf16.mxu0 %v13016_v44  ;;  %v5496_v40 = vrot.slane %v13986_v21, %v13853_v15  ;;  %v5500_v44 = vrot.slane %v13986_v21, %v13833_v46  ;;  %v13092_v46 = vld [vmem:[#allocation13 + $0x600] ss:$16 sps:$4 sm:$0xff]  }
 0x64d   :  { %10559 = vmatprep.subr.bf16.mxu1 %v13019_v63  ;;  %v5508_v63 = vrot.slane %v13986_v21, %v13856_v30  ;;  %v13100_v30 = vld [vmem:[#allocation13 + $0x624] ss:$16 sps:$4 sm:$0xff]   ;;  %v13103_v21 = vld [vmem:[#allocation13 + $0x62c] ss:$16 sps:$4 sm:$0xff]  }
 0x64f   :  { %10396 = vmatpush1.bf16.msra.mxu0 %v13014_v45 }
 0x650   :  { %10560 = vmatpush1.bf16.msra.mxu1 %v13017_v16  ;;  %10397 = vmatprep.subr.bf16.mxu0 %v13022_v48 }
 0x651   :  { %10561 = vmatprep.subr.bf16.mxu1 %v13025_v49 }
 0x653   :  { %10398 = vmatpush1.bf16.msra.mxu0 %v13020_v2 }
 0x654   :  { %10562 = vmatpush1.bf16.msra.mxu1 %v13023_v47  ;;  %10399 = vmatprep.subr.bf16.mxu0 %v13028_v62 }
 0x655   :  { %10563 = vmatprep.subr.bf16.mxu1 %v13031_v10 }
 0x657   :  { %10400 = vmatpush1.bf16.msra.mxu0 %v13026_v50 }
 0x658   :  { %10564 = vmatpush1.bf16.msra.mxu1 %v13029_v51  ;;  %10401 = vmatprep.subr.bf16.mxu0 %v13034_v11 }
 0x659   :  { %10565 = vmatprep.subr.bf16.mxu1 %v13037_v52 }
 0x65b   :  { %10402 = vmatpush1.bf16.msra.mxu0 %v13032_v12 }
 0x65c   :  { %10566 = vmatpush1.bf16.msra.mxu1 %v13035_v53  ;;  %10403 = vmatprep.subr.bf16.mxu0 %v13040_v35  ;;  %v13095_v35 = vld [vmem:[#allocation13 + $0x608] ss:$16 sps:$4 sm:$0xff]  }
 0x65d   :  { %10567 = vmatprep.subr.bf16.mxu1 %v13043_v55 }
 0x65f   :  { %10404 = vmatpush1.bf16.msra.mxu0 %v13038_v56 }
 0x660   :  { %10568 = vmatpush1.bf16.msra.mxu1 %v13041_v57  ;;  %10405 = vmatprep.subr.bf16.mxu0 %v13046_v32  ;;  %v13098_v57 = vld [vmem:[#allocation13 + $0x620] ss:$16 sps:$4 sm:$0xff]   ;;  %v13101_v32 = vld [vmem:[#allocation13 + $0x628] ss:$16 sps:$4 sm:$0xff]  }
 0x661   :  { %10569 = vmatprep.subr.bf16.mxu1 %v13049_v25  ;;  %v13106_v25 = vld [vmem:[#allocation13 + $0x644] ss:$16 sps:$4 sm:$0xff]  }
 0x663   :  { %10406 = vmatpush1.bf16.msra.mxu0 %v13044_v5  ;;  %v13109_v5 = vld [vmem:[#allocation13 + $0x64c] ss:$16 sps:$4 sm:$0xff]  }
 0x664   :  { %10570 = vmatpush1.bf16.msra.mxu1 %v13047_v43  ;;  %10407 = vmatprep.subr.bf16.mxu0 %v13052_v58  ;;  %v13104_v43 = vld [vmem:[#allocation13 + $0x640] ss:$16 sps:$4 sm:$0xff]   ;;  %v13107_v58 = vld [vmem:[#allocation13 + $0x648] ss:$16 sps:$4 sm:$0xff]  }
 0x665   :  { %10571 = vmatprep.subr.bf16.mxu1 %v13055_v59  ;;  %v13112_v59 = vld [vmem:[#allocation13 + $0x664] ss:$16 sps:$4 sm:$0xff]  }
 0x667   :  { %10408 = vmatpush1.bf16.msra.mxu0 %v13050_v13  ;;  %v13115_v13 = vld [vmem:[#allocation13 + $0x66c] ss:$16 sps:$4 sm:$0xff]  }
 0x668   :  { %10572 = vmatpush1.bf16.msra.mxu1 %v13053_v0  ;;  %10409 = vmatprep.subr.bf16.mxu0 %v13058_v7  ;;  %v13110_v0 = vld [vmem:[#allocation13 + $0x660] ss:$16 sps:$4 sm:$0xff]   ;;  %v13113_v7 = vld [vmem:[#allocation13 + $0x668] ss:$16 sps:$4 sm:$0xff]  }
 0x669   :  { %10573 = vmatprep.subr.bf16.mxu1 %v13061_v4  ;;  %v13118_v4 = vld [vmem:[#allocation13 + $0x684] ss:$16 sps:$4 sm:$0xff]  }
 0x66b   :  { %10410 = vmatpush1.bf16.msra.mxu0 %v13056_v39  ;;  %v13121_v39 = vld [vmem:[#allocation13 + $0x68c] ss:$16 sps:$4 sm:$0xff]  }
 0x66c   :  { %10574 = vmatpush1.bf16.msra.mxu1 %v13059_v61  ;;  %10411 = vmatprep.subr.bf16.mxu0 %v13064_v8  ;;  %v13116_v61 = vld [vmem:[#allocation13 + $0x680] ss:$16 sps:$4 sm:$0xff]   ;;  %v13119_v8 = vld [vmem:[#allocation13 + $0x688] ss:$16 sps:$4 sm:$0xff]  }
 0x66d   :  { %10575 = vmatprep.subr.bf16.mxu1 %v13067_v6  ;;  %v13124_v6 = vld [vmem:[#allocation13 + $0x6a4] ss:$16 sps:$4 sm:$0xff]  }
 0x66f   :  { %10412 = vmatpush1.bf16.msra.mxu0 %v13062_v14  ;;  %v13127_v14 = vld [vmem:[#allocation13 + $0x6ac] ss:$16 sps:$4 sm:$0xff]  }
 0x670   :  { %10576 = vmatpush1.bf16.msra.mxu1 %v13065_v9  ;;  %10413 = vmatprep.subr.bf16.mxu0 %v13070_v42  ;;  %v13122_v9 = vld [vmem:[#allocation13 + $0x6a0] ss:$16 sps:$4 sm:$0xff]   ;;  %v13125_v42 = vld [vmem:[#allocation13 + $0x6a8] ss:$16 sps:$4 sm:$0xff]  }
 0x671   :  { %10577 = vmatprep.subr.bf16.mxu1 %v13073_v17  ;;  %v13130_v17 = vld [vmem:[#allocation13 + $0x6c4] ss:$16 sps:$4 sm:$0xff]  }
 0x673   :  { %10414 = vmatpush1.bf16.msra.mxu0 %v13068_v22  ;;  %v13133_v22 = vld [vmem:[#allocation13 + $0x6cc] ss:$16 sps:$4 sm:$0xff]  }
 0x674   :  { %10578 = vmatpush1.bf16.msra.mxu1 %v13071_v18  ;;  %10415 = vmatprep.subr.bf16.mxu0 %v13076_v23  ;;  %v13128_v18 = vld [vmem:[#allocation13 + $0x6c0] ss:$16 sps:$4 sm:$0xff]   ;;  %v13131_v23 = vld [vmem:[#allocation13 + $0x6c8] ss:$16 sps:$4 sm:$0xff]  }
 0x675   :  { %10579 = vmatprep.subr.bf16.mxu1 %v13079_v1  ;;  %v13136_v1 = vld [vmem:[#allocation13 + $0x6e4] ss:$16 sps:$4 sm:$0xff]  }
 0x677   :  { %10416 = vmatpush1.bf16.msra.mxu0 %v13074_v19  ;;  %v13139_v19 = vld [vmem:[#allocation13 + $0x6ec] ss:$16 sps:$4 sm:$0xff]  }
 0x678   :  { %10580 = vmatpush1.bf16.msra.mxu1 %v13077_v20  ;;  %10417 = vmatprep.subr.bf16.mxu0 %v13082_v28  ;;  %v13134_v20 = vld [vmem:[#allocation13 + $0x6e0] ss:$16 sps:$4 sm:$0xff]   ;;  %v13137_v28 = vld [vmem:[#allocation13 + $0x6e8] ss:$16 sps:$4 sm:$0xff]  }
 0x679   :  { %10581 = vmatprep.subr.bf16.mxu1 %v13085_v27  ;;  %v13142_v27 = vld [vmem:[#allocation13 + $0x704] ss:$16 sps:$4 sm:$0xff]  }
 0x67b   :  { %10418 = vmatpush1.bf16.msra.mxu0 %v13080_v54  ;;  %v13145_v54 = vld [vmem:[#allocation13 + $0x70c] ss:$16 sps:$4 sm:$0xff]  }
 0x67c   :  { %10582 = vmatpush1.bf16.msra.mxu1 %v13083_v29  ;;  %10419 = vmatprep.subr.bf16.mxu0 %v13088_v33  ;;  %v13140_v29 = vld [vmem:[#allocation13 + $0x700] ss:$16 sps:$4 sm:$0xff]   ;;  %v13143_v33 = vld [vmem:[#allocation13 + $0x708] ss:$16 sps:$4 sm:$0xff]  }
 0x67d   :  { %10583 = vmatprep.subr.bf16.mxu1 %v13091_v34  ;;  %v13148_v34 = vld [vmem:[#allocation13 + $0x724] ss:$16 sps:$4 sm:$0xff]  }
 0x67f   :  { %10420 = vmatpush1.bf16.msra.mxu0 %v13086_v3  ;;  %v13151_v3 = vld [vmem:[#allocation13 + $0x72c] ss:$16 sps:$4 sm:$0xff]  }
 0x680   :  { %10584 = vmatpush1.bf16.msra.mxu1 %v13089_v38  ;;  %10430 = vmatprep.subr.bf16.mxu0 %v13094_v36  ;;  %v13146_v38 = vld [vmem:[#allocation13 + $0x720] ss:$16 sps:$4 sm:$0xff]   ;;  %v13149_v36 = vld [vmem:[#allocation13 + $0x728] ss:$16 sps:$4 sm:$0xff]  }
 0x681   :  { %10594 = vmatprep.subr.bf16.mxu1 %v13097_v37  ;;  %v13154_v37 = vld [vmem:[#allocation13 + $0x744] ss:$16 sps:$4 sm:$0xff]  }
 0x695   :  { %v8562_v45 = vpop.f32.mrb[20].mxu0 }
 0x696   :  { %v12656_v16 = vadd.f32 %v8562_v45, %v5496_v40  ;;  %v14008_v48 = vpop.f32.mrb[20].mxu1  ;;  %v8564_v49 = vpop.f32.mrb[21].mxu0  ;;  %v13157_v40 = vld [vmem:[#allocation13 + $0x74c] ss:$16 sps:$4 sm:$0xff]   ;;  %v13160_v45 = vld [vmem:[#allocation13 + $0x764] ss:$16 sps:$4 sm:$0xff]  }
 0x697   :  { %v12657_v2 = vadd.f32 %v8564_v49, %v5500_v44  ;;  %v8728_v47 = vpop.f32.mrb[21].mxu1  ;;  %v8566_v62 = vpop.f32.mrb[22].mxu0  ;;  %v13152_v44 = vld [vmem:[#allocation13 + $0x740] ss:$16 sps:$4 sm:$0xff]  }
 0x698   :  { %v8737_v10 = vmax.f32 %v12656_v16, 0.0  ;;  %v12659_v50 = vadd.f32 %v8728_v47, %v5508_v63  ;;  %v8730_v51 = vpop.f32.mrb[22].mxu1  ;;  %v8567_v11 = vpop.f32.mrb[23].mxu0  ;;  %v13155_v63 = vld [vmem:[#allocation13 + $0x748] ss:$16 sps:$4 sm:$0xff]  }
 0x699   :  { %v8738_v52 = vmax.f32 %v12657_v2, 0.0  ;;  %v8731_v15 = vpop.f32.mrb[23].mxu1  ;;  %v13163_v16 = vld [vmem:[#allocation13 + $0x76c] ss:$16 sps:$4 sm:$0xff]   ;;  %v13158_v49 = vld [vmem:[#allocation13 + $0x760] ss:$16 sps:$4 sm:$0xff]  }
 0x69a   :  { %v8740_v12 = vmax.f32 %v12659_v50, 0.0  ;;  %v8745_v55 = vpack.c.bf16 %v8737_v10, %v8737_v10  ;;  %v13161_v2 = vld [vmem:[#allocation13 + $0x768] ss:$16 sps:$4 sm:$0xff]   ;;  %v13166_v47 = vld [vmem:[#allocation13 + $0x784] ss:$16 sps:$4 sm:$0xff]  }
 0x69b   :  { %v8746_v53 = vpack.c.bf16 %v8738_v52, %v8738_v52  ;;  %v13169_v62 = vld [vmem:[#allocation13 + $0x78c] ss:$16 sps:$4 sm:$0xff]   ;;  %v13164_v10 = vld [vmem:[#allocation13 + $0x780] ss:$16 sps:$4 sm:$0xff]   ;;  %v13167_v50 = vld [vmem:[#allocation13 + $0x788] ss:$16 sps:$4 sm:$0xff]  }
 0x69c   :  { %v8748_v56 = vpack.c.bf16 %v8740_v12, %v8740_v12  ;;  %v13172_v51 = vld [vmem:[#allocation13 + $0x7a4] ss:$16 sps:$4 sm:$0xff]   ;;  %v13175_v11 = vld [vmem:[#allocation13 + $0x7ac] ss:$16 sps:$4 sm:$0xff]   ;;  %v13170_v52 = vld [vmem:[#allocation13 + $0x7a0] ss:$16 sps:$4 sm:$0xff]  }
 0x69d   :  { %10421 = vmatprep.mubr.bf16.mxu0 %v8746_v53  ;;  %10585 = vmatprep.mubr.bf16.mxu1 %v8746_v53  ;;  %v13173_v15 = vld [vmem:[#allocation13 + $0x7a8] ss:$16 sps:$4 sm:$0xff]  }
 0x69e   :  { %10422 = vmatmul.mubr.bf16.vlgmr.msra.gmra.mrb[24].mxu0 %v8745_v55  ;;  %10586 = vmatmul.mubr.bf16.vlgmr.msra.gmra.mrb[24].mxu1 %v8745_v55  ;;  %v13230_v12 = vld [vmem:[#allocation11] sm:$0xff]  ;;  %v13176_v55 = vld [vmem:[#allocation13 + $0x7c0] ss:$16 sps:$4 sm:$0xff]  }
 0x69f   :  { %10431 = vmatpush1.bf16.msra.mxu0 %v13092_v46  ;;  %10595 = vmatpush1.bf16.msra.mxu1 %v13095_v35  ;;  %v5504_v53 = vrot.slane %v13230_v12, %v13873_v60  ;;  %v13178_v46 = vld [vmem:[#allocation13 + $0x7c4] ss:$16 sps:$4 sm:$0xff]   ;;  %v13181_v35 = vld [vmem:[#allocation13 + $0x7cc] ss:$16 sps:$4 sm:$0xff]  }
 0x6a0   :  { %10462 = vmatprep.mubr.bf16.mxu0 %v8748_v56  ;;  %10626 = vmatprep.mubr.bf16.mxu1 %v8748_v56  ;;  %v13184_v56 = vld [vmem:[#allocation13 + $0x7e4] ss:$16 sps:$4 sm:$0xff]  }
 0x6a1   :  { %10432 = vmatprep.subr.bf16.mxu0 %v13100_v30  ;;  %10596 = vmatprep.subr.bf16.mxu1 %v13103_v21  ;;  %v13179_v30 = vld [vmem:[#allocation13 + $0x7c8] ss:$16 sps:$4 sm:$0xff]   ;;  %v12658_v21 = vadd.f32 %v14008_v48, %v5504_v53  ;;  %v13192_v48 = vld [vmem:[#allocation16 + $0x48] sm:$0xff]  }
 0x6a2   :  { %v13188_v60 = vld [vmem:[#allocation16 + $0x40] sm:$0xff]  }
 0x6a3   :  { %10433 = vmatpush1.bf16.msra.mxu0 %v13098_v57  ;;  %10597 = vmatpush1.bf16.msra.mxu1 %v13101_v32  ;;  %v13187_v57 = vld [vmem:[#allocation13 + $0x7ec] ss:$16 sps:$4 sm:$0xff]   ;;  %v13182_v32 = vld [vmem:[#allocation13 + $0x7e0] ss:$16 sps:$4 sm:$0xff]  }
 0x6a4   :  { %10434 = vmatprep.subr.bf16.mxu0 %v13106_v25  ;;  %10598 = vmatprep.subr.bf16.mxu1 %v13109_v5  ;;  %v13185_v25 = vld [vmem:[#allocation13 + $0x7e8] ss:$16 sps:$4 sm:$0xff]   ;;  %v8739_v5 = vmax.f32 %v12658_v21, 0.0 }
 0x6a7   :  { %10435 = vmatpush1.bf16.msra.mxu0 %v13104_v43  ;;  %10599 = vmatpush1.bf16.msra.mxu1 %v13107_v58  ;;  %v13189_v43 = vld [vmem:[#allocation16 + $0xc0] sm:$0xff]  }
 0x6a8   :  { %10436 = vmatprep.subr.bf16.mxu0 %v13112_v59  ;;  %10600 = vmatprep.subr.bf16.mxu1 %v13115_v13  ;;  %v13190_v58 = vld [vmem:[#allocation16] sm:$0xff]   ;;  %v8747_v13 = vpack.c.bf16 %v8739_v5, %v8739_v5  ;;  %v13224_v5 = vld [vmem:[%s14063_s11 + $0x20] sm:$0xff]  }
 0x6a9   :  { %v13191_v59 = vld [vmem:[#allocation16 + $0x80] sm:$0xff]  }
 0x6ab   :  { %10437 = vmatpush1.bf16.msra.mxu0 %v13110_v0  ;;  %10601 = vmatpush1.bf16.msra.mxu1 %v13113_v7  ;;  %v13193_v0 = vld [vmem:[#allocation16 + $0xc8] sm:$0xff]  }
 0x6ac   :  { %10438 = vmatprep.subr.bf16.mxu0 %v13118_v4  ;;  %10602 = vmatprep.subr.bf16.mxu1 %v13121_v39  ;;  %v13194_v7 = vld [vmem:[#allocation16 + $0x8] sm:$0xff]   ;;  %v13196_v39 = vld [vmem:[#allocation16 + $0x50] sm:$0xff]  }
 0x6ad   :  { %v13195_v4 = vld [vmem:[#allocation16 + $0x88] sm:$0xff]  }
 0x6af   :  { %10439 = vmatpush1.bf16.msra.mxu0 %v13116_v61  ;;  %10603 = vmatpush1.bf16.msra.mxu1 %v13119_v8  ;;  %v13197_v61 = vld [vmem:[#allocation16 + $0xd0] sm:$0xff]  }
 0x6b0   :  { %10440 = vmatprep.subr.bf16.mxu0 %v13124_v6  ;;  %10604 = vmatprep.subr.bf16.mxu1 %v13127_v14  ;;  %v13198_v8 = vld [vmem:[#allocation16 + $0x10] sm:$0xff]   ;;  %v13200_v14 = vld [vmem:[#allocation16 + $0x58] sm:$0xff]  }
 0x6b1   :  { %v13199_v6 = vld [vmem:[#allocation16 + $0x90] sm:$0xff]  }
 0x6b3   :  { %10441 = vmatpush1.bf16.msra.mxu0 %v13122_v9  ;;  %10605 = vmatpush1.bf16.msra.mxu1 %v13125_v42  ;;  %v13201_v9 = vld [vmem:[#allocation16 + $0xd8] sm:$0xff]  }
 0x6b4   :  { %10442 = vmatprep.subr.bf16.mxu0 %v13130_v17  ;;  %10606 = vmatprep.subr.bf16.mxu1 %v13133_v22  ;;  %v13202_v42 = vld [vmem:[#allocation16 + $0x18] sm:$0xff]   ;;  %v13204_v22 = vld [vmem:[#allocation16 + $0x60] sm:$0xff]  }
 0x6b5   :  { %v13203_v17 = vld [vmem:[#allocation16 + $0x98] sm:$0xff]  }
 0x6b7   :  { %10443 = vmatpush1.bf16.msra.mxu0 %v13128_v18  ;;  %10607 = vmatpush1.bf16.msra.mxu1 %v13131_v23  ;;  %v13205_v18 = vld [vmem:[#allocation16 + $0xe0] sm:$0xff]  }
 0x6b8   :  { %10444 = vmatprep.subr.bf16.mxu0 %v13136_v1  ;;  %10608 = vmatprep.subr.bf16.mxu1 %v13139_v19  ;;  %v13206_v23 = vld [vmem:[#allocation16 + $0x20] sm:$0xff]   ;;  %v13208_v19 = vld [vmem:[#allocation16 + $0x68] sm:$0xff]  }
 0x6b9   :  { %v13207_v1 = vld [vmem:[#allocation16 + $0xa0] sm:$0xff]  }
 0x6bb   :  { %10445 = vmatpush1.bf16.msra.mxu0 %v13134_v20  ;;  %10609 = vmatpush1.bf16.msra.mxu1 %v13137_v28  ;;  %v13209_v20 = vld [vmem:[#allocation16 + $0xe8] sm:$0xff]  }
 0x6bc   :  { %10446 = vmatprep.subr.bf16.mxu0 %v13142_v27  ;;  %10610 = vmatprep.subr.bf16.mxu1 %v13145_v54  ;;  %v13210_v28 = vld [vmem:[#allocation16 + $0x28] sm:$0xff]   ;;  %v13212_v54 = vld [vmem:[#allocation16 + $0x70] sm:$0xff]  }
 0x6bd   :  { %v13211_v27 = vld [vmem:[#allocation16 + $0xa8] sm:$0xff]  }
 0x6bf   :  { %10447 = vmatpush1.bf16.msra.mxu0 %v13140_v29  ;;  %10611 = vmatpush1.bf16.msra.mxu1 %v13143_v33  ;;  %v13213_v29 = vld [vmem:[#allocation16 + $0xf0] sm:$0xff]  }
 0x6c0   :  { %10448 = vmatprep.subr.bf16.mxu0 %v13148_v34  ;;  %10612 = vmatprep.subr.bf16.mxu1 %v13151_v3  ;;  %v13214_v33 = vld [vmem:[#allocation16 + $0x30] sm:$0xff]   ;;  %v13216_v3 = vld [vmem:[#allocation16 + $0x78] sm:$0xff]  }
 0x6c1   :  { %v13215_v34 = vld [vmem:[#allocation16 + $0xb0] sm:$0xff]  }
 0x6c3   :  { %10449 = vmatpush1.bf16.msra.mxu0 %v13146_v38  ;;  %10613 = vmatpush1.bf16.msra.mxu1 %v13149_v36  ;;  %v13217_v38 = vld [vmem:[#allocation16 + $0xf8] sm:$0xff]  }
 0x6c4   :  { %10450 = vmatprep.subr.bf16.mxu0 %v13154_v37  ;;  %10614 = vmatprep.subr.bf16.mxu1 %v13157_v40  ;;  %v13218_v36 = vld [vmem:[#allocation16 + $0x38] sm:$0xff]   ;;  %v13526_v40 = vmov 0.0  }
 0x6c5   :  { %v13219_v37 = vld [vmem:[#allocation16 + $0xb8] sm:$0xff]  }
 0x6c7   :  { %10451 = vmatpush1.bf16.msra.mxu0 %v13152_v44  ;;  %10615 = vmatpush1.bf16.msra.mxu1 %v13155_v63  ;;  %v9005_v44 = vld [vmem:[#allocation14] sm:$0xf] }
 0x6c8   :  { %10452 = vmatprep.subr.bf16.mxu0 %v13160_v45  ;;  %10616 = vmatprep.subr.bf16.mxu1 %v13163_v16  ;;  %v9010_v63 = vrot.slane %v9005_v44, %v13791_v24  ;;  %v9018_v45 = vrot.slane %v9005_v44, %v13828_v31  ;;  %v9014_v16 = vrot.slane %v9005_v44, %v13796_v26 }
 0x6cb   :  { %10453 = vmatpush1.bf16.msra.mxu0 %v13158_v49  ;;  %10617 = vmatpush1.bf16.msra.mxu1 %v13161_v2  ;;  %v9022_v49 = vrot.slane %v9005_v44, %v13803_v41  ;;  %v13220_v41 = vld [vmem:[%s14063_s11] sm:$0xff]  }
 0x6cc   :  { %10454 = vmatprep.subr.bf16.mxu0 %v13166_v47  ;;  %10618 = vmatprep.subr.bf16.mxu1 %v13169_v62 }
 0x6cf   :  { %10455 = vmatpush1.bf16.msra.mxu0 %v13164_v10  ;;  %10619 = vmatpush1.bf16.msra.mxu1 %v13167_v50 }
 0x6d0   :  { %10456 = vmatprep.subr.bf16.mxu0 %v13172_v51  ;;  %10620 = vmatprep.subr.bf16.mxu1 %v13175_v11 }
 0x6d3   :  { %10457 = vmatpush1.bf16.msra.mxu0 %v13170_v52  ;;  %10621 = vmatpush1.bf16.msra.mxu1 %v13173_v15 }
 0x6d4   :  { %10458 = vmatprep.subr.bf16.mxu0 %v13178_v46  ;;  %10622 = vmatprep.subr.bf16.mxu1 %v13181_v35 }
 0x6d7   :  { %10459 = vmatpush1.bf16.msra.mxu0 %v13176_v55  ;;  %10623 = vmatpush1.bf16.msra.mxu1 %v13179_v30 }
 0x6d8   :  { %10460 = vmatprep.subr.bf16.mxu0 %v13184_v56  ;;  %10624 = vmatprep.subr.bf16.mxu1 %v13187_v57  ;;  %v13221_v57 = vld [vmem:[%s14063_s11 + $0x8] sm:$0xff]  }
 0x6db   :  { %10461 = vmatpush1.bf16.msra.mxu0 %v13182_v32  ;;  %10625 = vmatpush1.bf16.msra.mxu1 %v13185_v25  ;;  %v13222_v32 = vld [vmem:[%s14063_s11 + $0x10] sm:$0xff]   ;;  %v13223_v25 = vld [vmem:[%s14063_s11 + $0x18] sm:$0xff]  }
 0x6dc   :  { %12571 = vmatprep.subr.bf16.mxu0 %v13188_v60  ;;  %12593 = vmatprep.subr.bf16.mxu1 %v13189_v43  ;;  %v13225_v60 = vld [vmem:[%s14063_s11 + $0x28] sm:$0xff]   ;;  %v13226_v43 = vld [vmem:[%s14063_s11 + $0x30] sm:$0xff]  }
 0x6de   :  { %10463 = vmatmul.mubr.bf16.vlgmr.msra.gmra.mrb[24].mxu0 %v8747_v13  ;;  %10627 = vmatmul.mubr.bf16.vlgmr.msra.gmra.mrb[24].mxu1 %v8747_v13 }
 0x6df   :  { %12572 = vmatpush3.bf16.msra.mxu0 %v13190_v58  ;;  %12594 = vmatpush3.bf16.msra.mxu1 %v13191_v59  ;;  %v13227_v58 = vld [vmem:[%s14063_s11 + $0x38] sm:$0xff]   ;;  %s13528_s11 = smov [#allocation20]  }
 0x6e0   :  { %12573 = vmatprep.subr.bf16.mxu0 %v13192_v48  ;;  %12595 = vmatprep.subr.bf16.mxu1 %v13193_v0  ;;  %v12529_v48 = vld [vmem:[#allocation17] ss:$0 sm:$0xff]  ;;  %s11107_s26 = sshll.u32 %s13528_s11, 4  ;;  %s11108_s26 = int_to_ptr.vmem [resolvable:$true] %s11107_s26 }
 0x6e1   :  { %s13473_s15 = scalar_lea.vmem %s11108_s26, 128  ;;  %p13478_p5 = scmp.lt.s32.totalorder %s11108_s26, %s11108_s26 }
 0x6e2   :  { %p13474_p4 = scmp.ne.s32.totalorder %s11108_s26, %s13473_s15  ;;  %p13479_p6 = scmp.lt.s32.totalorder %s13473_s15, %s13473_s15 }
 0x6e3   :  { %12574 = vmatpush3.bf16.msra.mxu0 %v13194_v7  ;;  %12596 = vmatpush3.bf16.msra.mxu1 %v13195_v4 }
 0x6e4   :  { %12575 = vmatprep.subr.bf16.mxu0 %v13196_v39  ;;  %12597 = vmatprep.subr.bf16.mxu1 %v13197_v61  ;;  %p13480_p7 = por %p13479_p6, %p13478_p5 }
 0x6e6   :  { %p13481_p8 = pnand %p13480_p7, %p13474_p4 }
 0x6e7   :  { %12576 = vmatpush3.bf16.msra.mxu0 %v13198_v8  ;;  %12598 = vmatpush3.bf16.msra.mxu1 %v13199_v6 }
 0x6e8   :  { %12577 = vmatprep.subr.bf16.mxu0 %v13200_v14  ;;  %12599 = vmatprep.subr.bf16.mxu1 %v13201_v9 }
 0x6eb   :  { %12578 = vmatpush3.bf16.msra.mxu0 %v13202_v42  ;;  %12600 = vmatpush3.bf16.msra.mxu1 %v13203_v17 }
 0x6ec   :  { %12579 = vmatprep.subr.bf16.mxu0 %v13204_v22  ;;  %12601 = vmatprep.subr.bf16.mxu1 %v13205_v18  ;;  %v12562_v18 = vld [vmem:[#allocation19] ss:$0 sm:$0xff] }
 0x6ef   :  { %12580 = vmatpush3.bf16.msra.mxu0 %v13206_v23  ;;  %12602 = vmatpush3.bf16.msra.mxu1 %v13207_v1 }
 0x6f0   :  { %12581 = vmatprep.subr.bf16.mxu0 %v13208_v19  ;;  %12603 = vmatprep.subr.bf16.mxu1 %v13209_v20 }
 0x6f3   :  { %12582 = vmatpush3.bf16.msra.mxu0 %v13210_v28  ;;  %12604 = vmatpush3.bf16.msra.mxu1 %v13211_v27 }
 0x6f4   :  { %12583 = vmatprep.subr.bf16.mxu0 %v13212_v54  ;;  %12605 = vmatprep.subr.bf16.mxu1 %v13213_v29 }
 0x6f7   :  { %12584 = vmatpush3.bf16.msra.mxu0 %v13214_v33  ;;  %12606 = vmatpush3.bf16.msra.mxu1 %v13215_v34 }
 0x6f8   :  { %12585 = vmatprep.subr.bf16.mxu0 %v13216_v3  ;;  %12607 = vmatprep.subr.bf16.mxu1 %v13217_v38 }
 0x6fb   :  { %12586 = vmatpush3.bf16.msra.mxu0 %v13218_v36  ;;  %12608 = vmatpush3.bf16.msra.mxu1 %v13219_v37 }
 0x6fc   :  { %12624 = vmatprep.subr.bf16.mxu0 %v13526_v40 }
 0x7b1   :  { %v10464_v2 = vpop.f32.mrb[24].mxu0  ;;  %v10628_v47 = vpop.f32.mrb[24].mxu1 }
 0x7b2   :  { %v12660_v62 = vadd.f32 %v10464_v2, %v9010_v63  ;;  %v12662_v10 = vadd.f32 %v10628_v47, %v9018_v45  ;;  %v10466_v50 = vpop.f32.mrb[25].mxu0  ;;  %v10630_v51 = vpop.f32.mrb[25].mxu1 }
 0x7b3   :  { %v12661_v11 = vadd.f32 %v10466_v50, %v9014_v16  ;;  %v12663_v52 = vadd.f32 %v10630_v51, %v9022_v49  ;;  %v10468_v15 = vpop.f32.mrb[26].mxu0  ;;  %v10632_v12 = vpop.f32.mrb[26].mxu1 }
 0x7b4   :  { %v10635_v53 = vmax.f32 %v12660_v62, 0.0  ;;  %v10637_v46 = vmax.f32 %v12662_v10, 0.0  ;;  %v10469_v35 = vpop.f32.mrb[27].mxu0  ;;  %v10633_v24 = vpop.f32.mrb[27].mxu1 }
 0x7b5   :  { %v10636_v55 = vmax.f32 %v12661_v11, 0.0  ;;  %v10638_v31 = vmax.f32 %v12663_v52, 0.0 }
 0x7b6   :  { %v10639_v21 = vpack.c.bf16 %v10635_v53, %v10635_v53  ;;  %v10641_v56 = vpack.c.bf16 %v10637_v46, %v10637_v46 }
 0x7b7   :  { %v10640_v30 = vpack.c.bf16 %v10636_v55, %v10636_v55  ;;  %v10642_v26 = vpack.c.bf16 %v10638_v31, %v10638_v31 }
 0x7b9   :  { %10938 = vmatprep.mubr.bf16.mxu0 %v10640_v30  ;;  %10978 = vmatprep.mubr.bf16.mxu1 %v10642_v26 }
 0x7ba   :  { %10939 = vmatmul.mubr.bf16.vlgmr.msra.gmra.mrb[28].mxu0 %v10639_v21  ;;  %10979 = vmatmul.mubr.bf16.vlgmr.msra.gmra.mrb[28].mxu1 %v10641_v56 }
 0x7bb   :  { %12625 = vmatpush3.bf16.msra.mxu0 %v13220_v41  ;;  %12640 = vmatprep.mubr.msk.bf16.mxu0 %vm13527_vm0, %v13526_v40 }
 0x7bc   :  { %12626 = vmatprep.subr.bf16.mxu0 %v13526_v40 }
 0x7bf   :  { %12627 = vmatpush3.bf16.msra.mxu0 %v13221_v57 }
 0x7c0   :  { %12628 = vmatprep.subr.bf16.mxu0 %v13526_v40 }
 0x7c3   :  { %12629 = vmatpush3.bf16.msra.mxu0 %v13222_v32 }
 0x7c4   :  { %12630 = vmatprep.subr.bf16.mxu0 %v13526_v40 }
 0x7c7   :  { %12631 = vmatpush3.bf16.msra.mxu0 %v13223_v25 }
 0x7c8   :  { %12632 = vmatprep.subr.bf16.mxu0 %v13526_v40 }
 0x7cb   :  { %12633 = vmatpush3.bf16.msra.mxu0 %v13224_v5 }
 0x7cc   :  { %12634 = vmatprep.subr.bf16.mxu0 %v13526_v40 }
 0x7cf   :  { %12635 = vmatpush3.bf16.msra.mxu0 %v13225_v60 }
 0x7d0   :  { %12636 = vmatprep.subr.bf16.mxu0 %v13526_v40 }
 0x7d3   :  { %12637 = vmatpush3.bf16.msra.mxu0 %v13226_v43 }
 0x7d4   :  { %12638 = vmatprep.subr.bf16.mxu0 %v13526_v40 }
 0x7d7   :  { %12639 = vmatpush3.bf16.msra.mxu0 %v13227_v58 }
 0x88d   :  { %v12587_v59 = vpop.f32.mrb[28].mxu0  ;;  %v12609_v13 = vpop.f32.mrb[28].mxu1 }
 0x88e   :  { %v12588_v0 = vpop.f32.mrb[29].mxu0  ;;  %v12610_v7 = vpop.f32.mrb[29].mxu1 }
 0x88f   :  { %v12589_v4 = vadd.f32 %v12588_v0, %v12587_v59  ;;  %v12611_v39 = vadd.f32 %v12610_v7, %v12609_v13  ;;  %v12590_v61 = vpop.f32.mrb[30].mxu0  ;;  %v12612_v8 = vpop.f32.mrb[30].mxu1 }
 0x890   :  { %v12591_v6 = vpop.f32.mrb[31].mxu0  ;;  %v12613_v14 = vpop.f32.mrb[31].mxu1 }
 0x891   :  { %v10941_v9 = vadd.f32 %v12589_v4, %v12529_v48 }
 0x893   :  { %v10981_v42 = vadd.f32 %v12611_v39, %v10941_v9 }
 0x895   :  { %v10986_v17 = vmax.f32 %v10981_v42, 0.0 }
 0x897   :  { %v10987_v22 = vpack.c.bf16 %v10986_v17, %v10986_v17 }
 0x899   :  { %12641 = vmatmul.mubr.bf16.vlgmr.msra.gmra.mrb[32].mxu0 %v10987_v22 }
 0x96c   :  { %v11093_v23 = vpop.f32.mrb[32].mxu0 }
 0x96d   :  { %v11094_v1 = vadd.f32 %v12562_v18, %v11093_v23  ;;  %v12642_v19 = vpop.f32.mrb[33].mxu0 }
 0x96e   :  { %v11096_v20 = vpop.f32.mrb[34].mxu0 }
 0x96f   :  { %v12643_v28 = vpop.f32.mrb[35].mxu0  ;;  %11100 = vst.msk [vmem:[#allocation20] sm:$0xff] %vm11099_vm1, %v11094_v1 }
 0x970   :  { %13484 = shalt.err (!%p13481_p8)
}
 0x971   :  { %s13485_s5 = scalar_lea.hbm %s14065_s13, 128 }
 0x972   :  { %p13486_p9 = scmp.ne.s32.totalorder %s14065_s13, %s13485_s5  ;;  %p13489_p10 = scmp.lt.u32.totalorder %s13485_s5, %s14065_s13 }
 0x974   :  { %p13491_p11 = pnand %p13489_p10, %p13486_p9 }
 0x976   :  { %13494 = shalt.err (!%p13491_p11)
}
 0x977   :  { %11110 = dma.vmem_to_hbm [thread:$0]  %s11108_s26, 128, %s14065_s13, [#allocation4]  }
 0x978   :  { %13507 = dma.done.wait [#allocation4], 128  }
 0x979   :  { %13508 = vsyncadd [#allocation4], 4294967168 }
 0x97a   :  { %11114 = vsyncpa [#allocation3], 1 }
 0x97b   :  { %11115 = vsyncpa [#allocation6], 1 }
 0x97c   :  { %11116 = vsyncpa [#allocation9], 1 }
 0x97d   :  { %11117 = vsyncpa [#allocation12], 1 }
 0x97e   :  { %11118 = vsyncpa [#allocation15], 1 }
 0x97f   :  { %11119 = vsyncpa [#allocation18], 1 }
 0x980   :  { %11120 = vsyncpa [#allocation4], 1 }

</bundles_post_ra>
